<compile_context>
chip_gen: v5e
topology: v5e:2x2
jax: 0.10.0
libtpu: 0.0.40
codegen_flags: <defaults>
</compile_context>

<pallas_src>
import functools

import jax
import jax.numpy as jnp
import numpy as np
from jax.experimental import pallas as pl
from jax.experimental.pallas import tpu as pltpu


# ----------------------------------------------------------------------------
# Fused Pallas kernel: whole forward pass in one launch
# ----------------------------------------------------------------------------
def _fused_forward_kernel(
    e1_ref, e2_ref, lm_ref,
    wlm1_ref, blm1_ref,
    wlm2_ref, blm2_ref,
    w1a_ref, w1b_ref, w1c_ref, b1_ref,
    w2_ref, b2_ref,
    w3_ref, b3_ref,
    w4_ref, b4_ref,
    o_ref,
):
    bf16 = jnp.bfloat16
    f32 = jnp.float32

    def leaky(y):  # nn.LeakyReLU default negative_slope = 0.01
        return jnp.where(y >= 0, y, jnp.float32(0.01) * y)

    def mm(x, w_ref, b_ref):
        # bf16 x bf16 MXU matmul with f32 accumulation, then f32 bias add.
        return jnp.dot(x.astype(bf16), w_ref[...],
                       preferred_element_type=f32) + b_ref[...]

    # ---- LM branch (dropout = identity in eval) ----
    h = leaky(mm(lm_ref[...], wlm1_ref, blm1_ref))       # (B, 512)
    lm400 = leaky(mm(h, wlm2_ref, blm2_ref))              # (B, 400)

    # ---- mix stage: torch float `//` is floor division ----
    e1 = e1_ref[...]
    e2 = e2_ref[...]
    mean = jnp.floor((e1 + e2 + lm400) / jnp.float32(3.0))

    # ---- dense1 fused with the implicit concat: three K-chunks ----
    x1 = (e1 + mean).astype(bf16)
    x2 = (e2 + mean).astype(bf16)
    x3 = (lm400 + mean).astype(bf16)
    h1 = (jnp.dot(x1, w1a_ref[...], preferred_element_type=f32)
          + jnp.dot(x2, w1b_ref[...], preferred_element_type=f32)
          + jnp.dot(x3, w1c_ref[...], preferred_element_type=f32)
          + b1_ref[...])                                   # (B, 1024), BN1 folded
    h1 = leaky(h1)

    # ---- remaining MLP (BN folded into weights/biases) ----
    h2 = leaky(mm(h1, w2_ref, b2_ref))                     # (B, 512)
    h3 = leaky(mm(h2, w3_ref, b3_ref))                     # (B, 256)
    logits = mm(h3, w4_ref, b4_ref)                        # (B, 128 padded)
    o_ref[...] = jax.nn.sigmoid(logits).astype(o_ref.dtype)


def _fused_forward_call(e1, e2, lm, params):
    """Single pallas_call with every operand resident in VMEM."""
    inputs = [e1, e2, lm] + list(params)

    def full_spec(arr):
        return pl.BlockSpec(arr.shape, lambda i: (0, 0))

    Bp = e1.shape[0]
    n_out_pad = params[-1].shape[1]  # padded num_labels (multiple of 128)

    return pl.pallas_call(
        _fused_forward_kernel,
        out_shape=jax.ShapeDtypeStruct((Bp, n_out_pad), jnp.float32),
        grid=(1,),
        in_specs=[full_spec(a) for a in inputs],
        out_specs=pl.BlockSpec((Bp, n_out_pad), lambda i: (0, 0)),
        compiler_params=pltpu.CompilerParams(
            dimension_semantics=("arbitrary",),
            vmem_limit_bytes=48 * 1024 * 1024,   # ~5.3 MB bf16 weights; safe on v7x 64 MiB
        ),
    )(*inputs)


# ----------------------------------------------------------------------------
# Deterministic parameter construction (matches module __init__ shapes)
# ----------------------------------------------------------------------------
def _init_linear(key, fan_in, fan_out):
    k1, k2 = jax.random.split(key)
    bound = 1.0 / np.sqrt(fan_in)
    w = jax.random.uniform(k1, (fan_in, fan_out), jnp.float32, -bound, bound)
    b = jax.random.uniform(k2, (1, fan_out), jnp.float32, -bound, bound)
    return w, b


def _fold_bn(w, b, n, eps=1e-5):
    # PyTorch BatchNorm1d defaults: gamma=1, beta=0, running_mean=0, running_var=1
    gamma = jnp.ones((1, n), jnp.float32)
    beta = jnp.zeros((1, n), jnp.float32)
    rmean = jnp.zeros((1, n), jnp.float32)
    rvar = jnp.ones((1, n), jnp.float32)
    scale = gamma / jnp.sqrt(rvar + eps)
    shift = beta - rmean * scale
    return w * scale, b * scale + shift


def _round_up(n, m):
    return ((n + m - 1) // m) * m


def make_params(num_labels, seed=0):
    """Returns a flat list of arrays in kernel-argument order.

    Weights are bf16 (BN folded, dense1 split into three 400-row K-chunks,
    dense4 padded to 128 output lanes); biases stay f32.
    """
    keys = jax.random.split(jax.random.PRNGKey(seed), 6)
    wlm1, blm1 = _init_linear(keys[0], 1280, 512)
    wlm2, blm2 = _init_linear(keys[1], 512, 400)
    w1, b1 = _init_linear(keys[2], 1200, 1024)
    w2, b2 = _init_linear(keys[3], 1024, 512)
    w3, b3 = _init_linear(keys[4], 512, 256)
    w4, b4 = _init_linear(keys[5], 256, num_labels)

    # Fold BatchNorm (no-op numerically with default running stats, but kept
    # general so trained stats can be dropped in).
    w1, b1 = _fold_bn(w1, b1, 1024)
    w2, b2 = _fold_bn(w2, b2, 512)
    w3, b3 = _fold_bn(w3, b3, 256)

    # Pad the final layer to a full 128-lane tile; sliced off after the kernel.
    n_pad = _round_up(num_labels, 128)
    w4 = jnp.pad(w4, ((0, 0), (0, n_pad - num_labels)))
    b4 = jnp.pad(b4, ((0, 0), (0, n_pad - num_labels)))

    # Split dense1 along K for the fused mix/concat stage.
    w1a, w1b, w1c = w1[:400], w1[400:800], w1[800:1200]

    bf = lambda w: w.astype(jnp.bfloat16)
    return [
        bf(wlm1), blm1,
        bf(wlm2), blm2,
        bf(w1a), bf(w1b), bf(w1c), b1,
        bf(w2), b2,
        bf(w3), b3,
        bf(w4), b4,
    ]
    # TODO(synk): emb1/emb2/bn4/bn5 from the PyTorch module are unused in its
    # forward() and are intentionally not materialized here.


# ----------------------------------------------------------------------------
# Forward pass (eval mode: dropout = identity, BN uses running stats)
# ----------------------------------------------------------------------------
@functools.partial(jax.jit, static_argnums=(3,))
def forward(emb, lm, params, num_labels):
    B = emb.shape[0]
    Bp = max(8, _round_up(B, 8))  # fill f32 sublanes
    emb_p = jnp.pad(emb, ((0, Bp - B), (0, 0)))
    lm_p = jnp.pad(lm, ((0, Bp - B), (0, 0)))

    e1 = emb_p[:, :400]
    e2 = emb_p[:, 400:800]

    out_padded = _fused_forward_call(e1, e2, lm_p, params)
    return out_padded[:B, :num_labels]


if __name__ == "__main__":
    num_labels = 10
    batch = 2

    key = jax.random.PRNGKey(0)
    k_emb, k_lm = jax.random.split(key)
    emb = jax.random.normal(k_emb, (batch, 800), jnp.float32)
    lm = jax.random.normal(k_lm, (batch, 1280), jnp.float32)

    params = make_params(num_labels, seed=0)

    out = forward(emb, lm, params, num_labels)
    out = jax.block_until_ready(out)
    assert out.shape == (batch, num_labels)
    assert bool(jnp.all(jnp.isfinite(out)))
    print("KERNEL_OK")
</pallas_src>

<mosaic_0001>
module attributes {stable_mosaic.version = 11 : i64} {
  func.func @_fused_forward_kernel(%arg0: i32, %arg1: memref<8x400xf32, #tpu.memory_space<vmem>>, %arg2: memref<8x400xf32, #tpu.memory_space<vmem>>, %arg3: memref<8x1280xf32, #tpu.memory_space<vmem>>, %arg4: memref<1280x512xbf16, #tpu.memory_space<vmem>>, %arg5: memref<1x512xf32, #tpu.memory_space<vmem>>, %arg6: memref<512x400xbf16, #tpu.memory_space<vmem>>, %arg7: memref<1x400xf32, #tpu.memory_space<vmem>>, %arg8: memref<400x1024xbf16, #tpu.memory_space<vmem>>, %arg9: memref<400x1024xbf16, #tpu.memory_space<vmem>>, %arg10: memref<400x1024xbf16, #tpu.memory_space<vmem>>, %arg11: memref<1x1024xf32, #tpu.memory_space<vmem>>, %arg12: memref<1024x512xbf16, #tpu.memory_space<vmem>>, %arg13: memref<1x512xf32, #tpu.memory_space<vmem>>, %arg14: memref<512x256xbf16, #tpu.memory_space<vmem>>, %arg15: memref<1x256xf32, #tpu.memory_space<vmem>>, %arg16: memref<256x128xbf16, #tpu.memory_space<vmem>>, %arg17: memref<1x128xf32, #tpu.memory_space<vmem>>, %arg18: memref<8x128xf32, #tpu.memory_space<vmem>>) attributes {dimension_semantics = [#tpu.dimension_semantics<arbitrary>], iteration_bounds = array<i64: 1>, scalar_prefetch = 0 : i64, scratch_operands = 0 : i64, tpu.core_type = #tpu.core_type<tc>, window_params = [{pipeline_mode = #tpu.pipeline_mode<synchronous>, transform_indices = @transform_0, window_bounds = array<i64: 8, 400>}, {pipeline_mode = #tpu.pipeline_mode<synchronous>, transform_indices = @transform_1, window_bounds = array<i64: 8, 400>}, {pipeline_mode = #tpu.pipeline_mode<synchronous>, transform_indices = @transform_2, window_bounds = array<i64: 8, 1280>}, {pipeline_mode = #tpu.pipeline_mode<synchronous>, transform_indices = @transform_3, window_bounds = array<i64: 1280, 512>}, {pipeline_mode = #tpu.pipeline_mode<synchronous>, transform_indices = @transform_4, window_bounds = array<i64: 1, 512>}, {pipeline_mode = #tpu.pipeline_mode<synchronous>, transform_indices = @transform_5, window_bounds = array<i64: 512, 400>}, {pipeline_mode = #tpu.pipeline_mode<synchronous>, transform_indices = @transform_6, window_bounds = array<i64: 1, 400>}, {pipeline_mode = #tpu.pipeline_mode<synchronous>, transform_indices = @transform_7, window_bounds = array<i64: 400, 1024>}, {pipeline_mode = #tpu.pipeline_mode<synchronous>, transform_indices = @transform_8, window_bounds = array<i64: 400, 1024>}, {pipeline_mode = #tpu.pipeline_mode<synchronous>, transform_indices = @transform_9, window_bounds = array<i64: 400, 1024>}, {pipeline_mode = #tpu.pipeline_mode<synchronous>, transform_indices = @transform_10, window_bounds = array<i64: 1, 1024>}, {pipeline_mode = #tpu.pipeline_mode<synchronous>, transform_indices = @transform_11, window_bounds = array<i64: 1024, 512>}, {pipeline_mode = #tpu.pipeline_mode<synchronous>, transform_indices = @transform_12, window_bounds = array<i64: 1, 512>}, {pipeline_mode = #tpu.pipeline_mode<synchronous>, transform_indices = @transform_13, window_bounds = array<i64: 512, 256>}, {pipeline_mode = #tpu.pipeline_mode<synchronous>, transform_indices = @transform_14, window_bounds = array<i64: 1, 256>}, {pipeline_mode = #tpu.pipeline_mode<synchronous>, transform_indices = @transform_15, window_bounds = array<i64: 256, 128>}, {pipeline_mode = #tpu.pipeline_mode<synchronous>, transform_indices = @transform_16, window_bounds = array<i64: 1, 128>}, {pipeline_mode = #tpu.pipeline_mode<synchronous>, transform_indices = @transform_17, window_bounds = array<i64: 8, 128>}]} {
    %c0 = arith.constant 0 : index
    %c0_0 = arith.constant 0 : index
    %0 = vector.load %arg3[%c0, %c0_0] : memref<8x1280xf32, #tpu.memory_space<vmem>>, vector<8x1280xf32>
    %1 = arith.truncf %0 : vector<8x1280xf32> to vector<8x1280xbf16>
    %c0_1 = arith.constant 0 : index
    %c0_2 = arith.constant 0 : index
    %2 = vector.load %arg4[%c0_1, %c0_2] : memref<1280x512xbf16, #tpu.memory_space<vmem>>, vector<1280x512xbf16>
    %cst = arith.constant dense<0.000000e+00> : vector<8x512xf32>
    %3 = tpu.matmul %1, %2, %cst {dimension_numbers = #tpu.dot_dimension_numbers<[1], [0], [0], [1], [0, 0, 1, 1], [], []>} : vector<8x1280xbf16>, vector<1280x512xbf16>, vector<8x512xf32> -> vector<8x512xf32>
    %c0_3 = arith.constant 0 : index
    %c0_4 = arith.constant 0 : index
    %4 = vector.load %arg5[%c0_3, %c0_4] : memref<1x512xf32, #tpu.memory_space<vmem>>, vector<1x512xf32>
    %5 = vector.broadcast %4 : vector<1x512xf32> to vector<8x512xf32>
    %6 = arith.addf %3, %5 : vector<8x512xf32>
    %cst_5 = arith.constant 0.000000e+00 : f32
    %7 = vector.broadcast %cst_5 : f32 to vector<8x512xf32>
    %8 = arith.cmpf oge, %6, %7 : vector<8x512xf32>
    %cst_6 = arith.constant 0.00999999977 : f32
    %9 = vector.broadcast %cst_6 : f32 to vector<8x512xf32>
    %10 = arith.mulf %9, %6 : vector<8x512xf32>
    %11 = arith.select %8, %6, %10 : vector<8x512xi1>, vector<8x512xf32>
    %12 = arith.truncf %11 : vector<8x512xf32> to vector<8x512xbf16>
    %c0_7 = arith.constant 0 : index
    %c0_8 = arith.constant 0 : index
    %13 = vector.load %arg6[%c0_7, %c0_8] : memref<512x400xbf16, #tpu.memory_space<vmem>>, vector<512x400xbf16>
    %cst_9 = arith.constant dense<0.000000e+00> : vector<8x400xf32>
    %14 = tpu.matmul %12, %13, %cst_9 {dimension_numbers = #tpu.dot_dimension_numbers<[1], [0], [0], [1], [0, 0, 1, 1], [], []>} : vector<8x512xbf16>, vector<512x400xbf16>, vector<8x400xf32> -> vector<8x400xf32>
    %c0_10 = arith.constant 0 : index
    %c0_11 = arith.constant 0 : index
    %15 = vector.load %arg7[%c0_10, %c0_11] : memref<1x400xf32, #tpu.memory_space<vmem>>, vector<1x400xf32>
    %16 = vector.broadcast %15 : vector<1x400xf32> to vector<8x400xf32>
    %17 = arith.addf %14, %16 : vector<8x400xf32>
    %cst_12 = arith.constant 0.000000e+00 : f32
    %18 = vector.broadcast %cst_12 : f32 to vector<8x400xf32>
    %19 = arith.cmpf oge, %17, %18 : vector<8x400xf32>
    %cst_13 = arith.constant 0.00999999977 : f32
    %20 = vector.broadcast %cst_13 : f32 to vector<8x400xf32>
    %21 = arith.mulf %20, %17 : vector<8x400xf32>
    %22 = arith.select %19, %17, %21 : vector<8x400xi1>, vector<8x400xf32>
    %c0_14 = arith.constant 0 : index
    %c0_15 = arith.constant 0 : index
    %23 = vector.load %arg1[%c0_14, %c0_15] : memref<8x400xf32, #tpu.memory_space<vmem>>, vector<8x400xf32>
    %c0_16 = arith.constant 0 : index
    %c0_17 = arith.constant 0 : index
    %24 = vector.load %arg2[%c0_16, %c0_17] : memref<8x400xf32, #tpu.memory_space<vmem>>, vector<8x400xf32>
    %25 = arith.addf %23, %24 : vector<8x400xf32>
    %26 = arith.addf %25, %22 : vector<8x400xf32>
    %cst_18 = arith.constant 3.000000e+00 : f32
    %27 = vector.broadcast %cst_18 : f32 to vector<8x400xf32>
    %28 = arith.divf %26, %27 : vector<8x400xf32>
    %29 = math.floor %28 : vector<8x400xf32>
    %30 = arith.addf %23, %29 : vector<8x400xf32>
    %31 = arith.truncf %30 : vector<8x400xf32> to vector<8x400xbf16>
    %32 = arith.addf %24, %29 : vector<8x400xf32>
    %33 = arith.truncf %32 : vector<8x400xf32> to vector<8x400xbf16>
    %34 = arith.addf %22, %29 : vector<8x400xf32>
    %35 = arith.truncf %34 : vector<8x400xf32> to vector<8x400xbf16>
    %c0_19 = arith.constant 0 : index
    %c0_20 = arith.constant 0 : index
    %36 = vector.load %arg8[%c0_19, %c0_20] : memref<400x1024xbf16, #tpu.memory_space<vmem>>, vector<400x1024xbf16>
    %cst_21 = arith.constant dense<0.000000e+00> : vector<8x1024xf32>
    %37 = tpu.matmul %31, %36, %cst_21 {dimension_numbers = #tpu.dot_dimension_numbers<[1], [0], [0], [1], [0, 0, 1, 1], [], []>} : vector<8x400xbf16>, vector<400x1024xbf16>, vector<8x1024xf32> -> vector<8x1024xf32>
    %c0_22 = arith.constant 0 : index
    %c0_23 = arith.constant 0 : index
    %38 = vector.load %arg9[%c0_22, %c0_23] : memref<400x1024xbf16, #tpu.memory_space<vmem>>, vector<400x1024xbf16>
    %cst_24 = arith.constant dense<0.000000e+00> : vector<8x1024xf32>
    %39 = tpu.matmul %33, %38, %cst_24 {dimension_numbers = #tpu.dot_dimension_numbers<[1], [0], [0], [1], [0, 0, 1, 1], [], []>} : vector<8x400xbf16>, vector<400x1024xbf16>, vector<8x1024xf32> -> vector<8x1024xf32>
    %40 = arith.addf %37, %39 : vector<8x1024xf32>
    %c0_25 = arith.constant 0 : index
    %c0_26 = arith.constant 0 : index
    %41 = vector.load %arg10[%c0_25, %c0_26] : memref<400x1024xbf16, #tpu.memory_space<vmem>>, vector<400x1024xbf16>
    %cst_27 = arith.constant dense<0.000000e+00> : vector<8x1024xf32>
    %42 = tpu.matmul %35, %41, %cst_27 {dimension_numbers = #tpu.dot_dimension_numbers<[1], [0], [0], [1], [0, 0, 1, 1], [], []>} : vector<8x400xbf16>, vector<400x1024xbf16>, vector<8x1024xf32> -> vector<8x1024xf32>
    %43 = arith.addf %40, %42 : vector<8x1024xf32>
    %c0_28 = arith.constant 0 : index
    %c0_29 = arith.constant 0 : index
    %44 = vector.load %arg11[%c0_28, %c0_29] : memref<1x1024xf32, #tpu.memory_space<vmem>>, vector<1x1024xf32>
    %45 = vector.broadcast %44 : vector<1x1024xf32> to vector<8x1024xf32>
    %46 = arith.addf %43, %45 : vector<8x1024xf32>
    %cst_30 = arith.constant 0.000000e+00 : f32
    %47 = vector.broadcast %cst_30 : f32 to vector<8x1024xf32>
    %48 = arith.cmpf oge, %46, %47 : vector<8x1024xf32>
    %cst_31 = arith.constant 0.00999999977 : f32
    %49 = vector.broadcast %cst_31 : f32 to vector<8x1024xf32>
    %50 = arith.mulf %49, %46 : vector<8x1024xf32>
    %51 = arith.select %48, %46, %50 : vector<8x1024xi1>, vector<8x1024xf32>
    %52 = arith.truncf %51 : vector<8x1024xf32> to vector<8x1024xbf16>
    %c0_32 = arith.constant 0 : index
    %c0_33 = arith.constant 0 : index
    %53 = vector.load %arg12[%c0_32, %c0_33] : memref<1024x512xbf16, #tpu.memory_space<vmem>>, vector<1024x512xbf16>
    %cst_34 = arith.constant dense<0.000000e+00> : vector<8x512xf32>
    %54 = tpu.matmul %52, %53, %cst_34 {dimension_numbers = #tpu.dot_dimension_numbers<[1], [0], [0], [1], [0, 0, 1, 1], [], []>} : vector<8x1024xbf16>, vector<1024x512xbf16>, vector<8x512xf32> -> vector<8x512xf32>
    %c0_35 = arith.constant 0 : index
    %c0_36 = arith.constant 0 : index
    %55 = vector.load %arg13[%c0_35, %c0_36] : memref<1x512xf32, #tpu.memory_space<vmem>>, vector<1x512xf32>
    %56 = vector.broadcast %55 : vector<1x512xf32> to vector<8x512xf32>
    %57 = arith.addf %54, %56 : vector<8x512xf32>
    %cst_37 = arith.constant 0.000000e+00 : f32
    %58 = vector.broadcast %cst_37 : f32 to vector<8x512xf32>
    %59 = arith.cmpf oge, %57, %58 : vector<8x512xf32>
    %cst_38 = arith.constant 0.00999999977 : f32
    %60 = vector.broadcast %cst_38 : f32 to vector<8x512xf32>
    %61 = arith.mulf %60, %57 : vector<8x512xf32>
    %62 = arith.select %59, %57, %61 : vector<8x512xi1>, vector<8x512xf32>
    %63 = arith.truncf %62 : vector<8x512xf32> to vector<8x512xbf16>
    %c0_39 = arith.constant 0 : index
    %c0_40 = arith.constant 0 : index
    %64 = vector.load %arg14[%c0_39, %c0_40] : memref<512x256xbf16, #tpu.memory_space<vmem>>, vector<512x256xbf16>
    %cst_41 = arith.constant dense<0.000000e+00> : vector<8x256xf32>
    %65 = tpu.matmul %63, %64, %cst_41 {dimension_numbers = #tpu.dot_dimension_numbers<[1], [0], [0], [1], [0, 0, 1, 1], [], []>} : vector<8x512xbf16>, vector<512x256xbf16>, vector<8x256xf32> -> vector<8x256xf32>
    %c0_42 = arith.constant 0 : index
    %c0_43 = arith.constant 0 : index
    %66 = vector.load %arg15[%c0_42, %c0_43] : memref<1x256xf32, #tpu.memory_space<vmem>>, vector<1x256xf32>
    %67 = vector.broadcast %66 : vector<1x256xf32> to vector<8x256xf32>
    %68 = arith.addf %65, %67 : vector<8x256xf32>
    %cst_44 = arith.constant 0.000000e+00 : f32
    %69 = vector.broadcast %cst_44 : f32 to vector<8x256xf32>
    %70 = arith.cmpf oge, %68, %69 : vector<8x256xf32>
    %cst_45 = arith.constant 0.00999999977 : f32
    %71 = vector.broadcast %cst_45 : f32 to vector<8x256xf32>
    %72 = arith.mulf %71, %68 : vector<8x256xf32>
    %73 = arith.select %70, %68, %72 : vector<8x256xi1>, vector<8x256xf32>
    %74 = arith.truncf %73 : vector<8x256xf32> to vector<8x256xbf16>
    %c0_46 = arith.constant 0 : index
    %c0_47 = arith.constant 0 : index
    %75 = vector.load %arg16[%c0_46, %c0_47] : memref<256x128xbf16, #tpu.memory_space<vmem>>, vector<256x128xbf16>
    %cst_48 = arith.constant dense<0.000000e+00> : vector<8x128xf32>
    %76 = tpu.matmul %74, %75, %cst_48 {dimension_numbers = #tpu.dot_dimension_numbers<[1], [0], [0], [1], [0, 0, 1, 1], [], []>} : vector<8x256xbf16>, vector<256x128xbf16>, vector<8x128xf32> -> vector<8x128xf32>
    %c0_49 = arith.constant 0 : index
    %c0_50 = arith.constant 0 : index
    %77 = vector.load %arg17[%c0_49, %c0_50] : memref<1x128xf32, #tpu.memory_space<vmem>>, vector<1x128xf32>
    %78 = vector.broadcast %77 : vector<1x128xf32> to vector<8x128xf32>
    %79 = arith.addf %76, %78 : vector<8x128xf32>
    %80 = arith.negf %79 : vector<8x128xf32>
    %81 = math.exp %80 : vector<8x128xf32>
    %cst_51 = arith.constant 1.000000e+00 : f32
    %82 = vector.broadcast %cst_51 : f32 to vector<8x128xf32>
    %83 = arith.addf %82, %81 : vector<8x128xf32>
    %84 = arith.divf %82, %83 : vector<8x128xf32>
    %c0_52 = arith.constant 0 : index
    %c0_53 = arith.constant 0 : index
    %85 = vector.load %arg18[%c0_52, %c0_53] : memref<8x128xf32, #tpu.memory_space<vmem>>, vector<8x128xf32>
    tpu.vector_store %arg18[%c0_52, %c0_53], %84 {strides = array<i32>} : memref<8x128xf32, #tpu.memory_space<vmem>>, vector<8x128xf32>,
    return
  }
  func.func @transform_0(%arg0: i32) -> (i32, i32) {
    %c0_i32 = arith.constant 0 : i32
    %c0_i32_0 = arith.constant 0 : i32
    %c0_i32_1 = arith.constant 0 : i32
    return %c0_i32, %c0_i32_0 : i32, i32
  }
  func.func @transform_1(%arg0: i32) -> (i32, i32) {
    %c0_i32 = arith.constant 0 : i32
    %c0_i32_0 = arith.constant 0 : i32
    %c0_i32_1 = arith.constant 0 : i32
    return %c0_i32, %c0_i32_0 : i32, i32
  }
  func.func @transform_2(%arg0: i32) -> (i32, i32) {
    %c0_i32 = arith.constant 0 : i32
    %c0_i32_0 = arith.constant 0 : i32
    %c0_i32_1 = arith.constant 0 : i32
    return %c0_i32, %c0_i32_0 : i32, i32
  }
  func.func @transform_3(%arg0: i32) -> (i32, i32) {
    %c0_i32 = arith.constant 0 : i32
    %c0_i32_0 = arith.constant 0 : i32
    %c0_i32_1 = arith.constant 0 : i32
    return %c0_i32, %c0_i32_0 : i32, i32
  }
  func.func @transform_4(%arg0: i32) -> (i32, i32) {
    %c0_i32 = arith.constant 0 : i32
    %c0_i32_0 = arith.constant 0 : i32
    %c0_i32_1 = arith.constant 0 : i32
    return %c0_i32, %c0_i32_0 : i32, i32
  }
  func.func @transform_5(%arg0: i32) -> (i32, i32) {
    %c0_i32 = arith.constant 0 : i32
    %c0_i32_0 = arith.constant 0 : i32
    %c0_i32_1 = arith.constant 0 : i32
    return %c0_i32, %c0_i32_0 : i32, i32
  }
  func.func @transform_6(%arg0: i32) -> (i32, i32) {
    %c0_i32 = arith.constant 0 : i32
    %c0_i32_0 = arith.constant 0 : i32
    %c0_i32_1 = arith.constant 0 : i32
    return %c0_i32, %c0_i32_0 : i32, i32
  }
  func.func @transform_7(%arg0: i32) -> (i32, i32) {
    %c0_i32 = arith.constant 0 : i32
    %c0_i32_0 = arith.constant 0 : i32
    %c0_i32_1 = arith.constant 0 : i32
    return %c0_i32, %c0_i32_0 : i32, i32
  }
  func.func @transform_8(%arg0: i32) -> (i32, i32) {
    %c0_i32 = arith.constant 0 : i32
    %c0_i32_0 = arith.constant 0 : i32
    %c0_i32_1 = arith.constant 0 : i32
    return %c0_i32, %c0_i32_0 : i32, i32
  }
  func.func @transform_9(%arg0: i32) -> (i32, i32) {
    %c0_i32 = arith.constant 0 : i32
    %c0_i32_0 = arith.constant 0 : i32
    %c0_i32_1 = arith.constant 0 : i32
    return %c0_i32, %c0_i32_0 : i32, i32
  }
  func.func @transform_10(%arg0: i32) -> (i32, i32) {
    %c0_i32 = arith.constant 0 : i32
    %c0_i32_0 = arith.constant 0 : i32
    %c0_i32_1 = arith.constant 0 : i32
    return %c0_i32, %c0_i32_0 : i32, i32
  }
  func.func @transform_11(%arg0: i32) -> (i32, i32) {
    %c0_i32 = arith.constant 0 : i32
    %c0_i32_0 = arith.constant 0 : i32
    %c0_i32_1 = arith.constant 0 : i32
    return %c0_i32, %c0_i32_0 : i32, i32
  }
  func.func @transform_12(%arg0: i32) -> (i32, i32) {
    %c0_i32 = arith.constant 0 : i32
    %c0_i32_0 = arith.constant 0 : i32
    %c0_i32_1 = arith.constant 0 : i32
    return %c0_i32, %c0_i32_0 : i32, i32
  }
  func.func @transform_13(%arg0: i32) -> (i32, i32) {
    %c0_i32 = arith.constant 0 : i32
    %c0_i32_0 = arith.constant 0 : i32
    %c0_i32_1 = arith.constant 0 : i32
    return %c0_i32, %c0_i32_0 : i32, i32
  }
  func.func @transform_14(%arg0: i32) -> (i32, i32) {
    %c0_i32 = arith.constant 0 : i32
    %c0_i32_0 = arith.constant 0 : i32
    %c0_i32_1 = arith.constant 0 : i32
    return %c0_i32, %c0_i32_0 : i32, i32
  }
  func.func @transform_15(%arg0: i32) -> (i32, i32) {
    %c0_i32 = arith.constant 0 : i32
    %c0_i32_0 = arith.constant 0 : i32
    %c0_i32_1 = arith.constant 0 : i32
    return %c0_i32, %c0_i32_0 : i32, i32
  }
  func.func @transform_16(%arg0: i32) -> (i32, i32) {
    %c0_i32 = arith.constant 0 : i32
    %c0_i32_0 = arith.constant 0 : i32
    %c0_i32_1 = arith.constant 0 : i32
    return %c0_i32, %c0_i32_0 : i32, i32
  }
  func.func @transform_17(%arg0: i32) -> (i32, i32) {
    %c0_i32 = arith.constant 0 : i32
    %c0_i32_0 = arith.constant 0 : i32
    %c0_i32_1 = arith.constant 0 : i32
    return %c0_i32, %c0_i32_0 : i32, i32
  }
}

</mosaic_0001>

<bundles_post_ra>
// kernel: forward.1
= control target key start
LH: loop header
LB: loop body
LE: loop exit
PB: predicated region body
PF: predicated region fallthrough
CT: control target
= control target key end

     0   :  { %s20421_s0 = inlined_call_operand.vmem [shape: f32[8,400], index: 0, kind: input, shape index: {}]   ;;  %s20422_s1 = inlined_call_operand.vmem [shape: f32[8,400], index: 1, kind: input, shape index: {}]   ;;  %s20423_s2 = inlined_call_operand.vmem [shape: f32[8,1280], index: 2, kind: input, shape index: {}]   ;;  %s20424_s3 = inlined_call_operand.hbm [shape: bf16[1280,512], index: 3, kind: input, shape index: {}]   ;;  %s20425_s4 = inlined_call_operand.hbm [shape: f32[1,512], index: 4, kind: input, shape index: {}]   ;;  %s20426_s5 = inlined_call_operand.vmem [shape: bf16[512,400], index: 5, kind: input, shape index: {}]   ;;  %s20427_s6 = inlined_call_operand.hbm [shape: f32[1,400], index: 6, kind: input, shape index: {}]   ;;  %s20428_s7 = inlined_call_operand.hbm [shape: bf16[400,1024], index: 7, kind: input, shape index: {}]   ;;  %s20429_s8 = inlined_call_operand.hbm [shape: bf16[400,1024], index: 8, kind: input, shape index: {}]   ;;  %s20430_s9 = inlined_call_operand.hbm [shape: bf16[400,1024], index: 9, kind: input, shape index: {}]   ;;  %s20431_s10 = inlined_call_operand.hbm [shape: f32[1,1024], index: 10, kind: input, shape index: {}]   ;;  %s20432_s11 = inlined_call_operand.hbm [shape: bf16[1024,512], index: 11, kind: input, shape index: {}]   ;;  %s20433_s12 = inlined_call_operand.hbm [shape: f32[1,512], index: 12, kind: input, shape index: {}]   ;;  %s20434_s13 = inlined_call_operand.hbm [shape: bf16[512,256], index: 13, kind: input, shape index: {}]   ;;  %s20435_s14 = inlined_call_operand.hbm [shape: f32[1,256], index: 14, kind: input, shape index: {}]   ;;  %s20436_s15 = inlined_call_operand.hbm [shape: bf16[256,128], index: 15, kind: input, shape index: {}]   ;;  %s20437_s16 = inlined_call_operand.hbm [shape: f32[1,128], index: 16, kind: input, shape index: {}]   ;;  %s20438_s17 = inlined_call_operand.vmem [shape: f32[8,128], index: 17, kind: output, shape index: {}]  }
   0x1   :  { %20441 = sst [smem:[#allocation29_spill]] %s20421_s0 }
   0x2   :  { %20442 = sst [smem:[#allocation30_spill]] %s20422_s1 }
   0x3   :  { %22 = vsyncpa [#allocation3], 0 }
   0x4   :  { %23 = vsyncpa [#allocation5], 0 }
   0x5   :  { %24 = vsyncpa [#allocation8], 0 }
   0x6   :  { %25 = vsyncpa [#allocation11], 0 }
   0x7   :  { %26 = vsyncpa [#allocation14], 0 }
   0x8   :  { %27 = vsyncpa [#allocation17], 0  ;;  %s53_s26 = sshll.u32 %s20425_s4, 4  ;;  %s54_s26 = int_to_ptr.hbm [resolvable:$true] %s53_s26 }
   0x9   :  { %28 = vsyncpa [#allocation20], 0  ;;  %s18682_s27 = smov [#allocation4]   ;;  %s76_s30 = sshll.u32 %s20428_s7, 4  ;;  %s77_s30 = int_to_ptr.hbm [resolvable:$true] %s76_s30 }
   0xa   :  { %s55_s28 = sshll.u32 %s18682_s27, 4  ;;  %s18683_s18 = smov [#allocation7]   ;;  %s56_s28 = int_to_ptr.vmem [resolvable:$true] %s55_s28 }
   0xb   :  { %58 = dma.hbm_to_vmem [thread:$0]  %s54_s26, 64, %s56_s28, [#allocation5]  }
   0xc   :  { %s78_s19 = sshll.u32 %s18683_s18, 4  ;;  %s18684_s1 = smov 512   ;;  %s79_s19 = int_to_ptr.vmem [resolvable:$true] %s78_s19 }
   0xd   :  { %s18685_s20 = smov 32   ;;  %s102_s22 = sshll.u32 %s20430_s9, 4  ;;  %s103_s22 = int_to_ptr.hbm [resolvable:$true] %s102_s22 }
   0xe   :  { %84 = dma.hbm_to_vmem [thread:$0]  %s77_s30, 25600, %s79_s19, [#allocation8], %s18684_s1, %s18684_s1, %s18685_s20  }
   0xf   :  { %s18686_s23 = smov [#allocation10]   ;;  %s126_s26 = sshll.u32 %s20432_s11, 4  ;;  %s127_s26 = int_to_ptr.hbm [resolvable:$true] %s126_s26 }
  0x10   :  { %s104_s24 = sshll.u32 %s18686_s23, 4  ;;  %s18687_s27 = smov [#allocation13]   ;;  %s105_s24 = int_to_ptr.vmem [resolvable:$true] %s104_s24 }
  0x11   :  { %110 = dma.hbm_to_vmem [thread:$0]  %s103_s22, 25600, %s105_s24, [#allocation11], %s18684_s1, %s18684_s1, %s18685_s20  }
  0x12   :  { %s128_s28 = sshll.u32 %s18687_s27, 4  ;;  %s150_s30 = sshll.u32 %s20434_s13, 4  ;;  %s129_s28 = int_to_ptr.vmem [resolvable:$true] %s128_s28  ;;  %s151_s30 = int_to_ptr.hbm [resolvable:$true] %s150_s30 }
  0x13   :  { %s18688_s9 = smov 256   ;;  %s18689_s18 = smov 16  }
  0x14   :  { %134 = dma.hbm_to_vmem [thread:$0]  %s127_s26, 32768, %s129_s28, [#allocation14], %s18688_s9, %s18688_s9, %s18689_s18  }
  0x15   :  { %s18690_s19 = smov [#allocation16]   ;;  %s174_s23 = sshll.u32 %s20436_s15, 4  ;;  %s175_s23 = int_to_ptr.hbm [resolvable:$true] %s174_s23 }
  0x16   :  { %s152_s4 = sshll.u32 %s18690_s19, 4  ;;  %s18691_s11 = smov 128   ;;  %s153_s4 = int_to_ptr.vmem [resolvable:$true] %s152_s4 }
  0x17   :  { %s18692_s24 = smov 8   ;;  %s18693_s7 = smov [#allocation19]  }
  0x18   :  { %158 = dma.hbm_to_vmem [thread:$0]  %s151_s30, 8192, %s153_s4, [#allocation17], %s18691_s11, %s18691_s11, %s18692_s24  }
  0x19   :  { %s176_s25 = sshll.u32 %s18693_s7, 4  ;;  %s18694_s13 = smov 64   ;;  %s177_s25 = int_to_ptr.vmem [resolvable:$true] %s176_s25 }
  0x1a   :  { %s18695_s27 = smov 4   ;;  %s39_s26 = sshll.u32 %s20424_s3, 4  ;;  %s40_s26 = int_to_ptr.hbm [resolvable:$true] %s39_s26 }
  0x1b   :  { %182 = dma.hbm_to_vmem [thread:$0]  %s175_s23, 2048, %s177_s25, [#allocation20], %s18694_s13, %s18694_s13, %s18695_s27  }
  0x1c   :  { %s18696_s28 = smov [#allocation2]   ;;  %s66_s22 = sshll.u32 %s20427_s6, 4  ;;  %s67_s22 = int_to_ptr.hbm [resolvable:$true] %s66_s22 }
  0x1d   :  { %s41_s19 = sshll.u32 %s18696_s28, 4  ;;  %s18697_s30 = smov [#allocation6]   ;;  %s42_s19 = int_to_ptr.vmem [resolvable:$true] %s41_s19 }
  0x1e   :  { %47 = dma.hbm_to_vmem [thread:$0]  %s40_s26, 40960, %s42_s19, [#allocation3], %s18688_s9, %s18688_s9, %s18689_s18  }
  0x1f   :  { %s68_s4 = sshll.u32 %s18697_s30, 4  ;;  %s89_s23 = sshll.u32 %s20429_s8, 4  ;;  %s69_s4 = int_to_ptr.vmem [resolvable:$true] %s68_s4  ;;  %s90_s23 = int_to_ptr.hbm [resolvable:$true] %s89_s23 }
  0x20   :  { %71 = dma.hbm_to_vmem [thread:$0]  %s67_s22, 64, %s69_s4, [#allocation5]  }
  0x21   :  { %s116_s25 = sshll.u32 %s20431_s10, 4  ;;  %s18698_s13 = smov [#allocation9]   ;;  %s117_s25 = int_to_ptr.hbm [resolvable:$true] %s116_s25 }
  0x22   :  { %s91_s27 = sshll.u32 %s18698_s13, 4  ;;  %s18699_s6 = smov [#allocation12]   ;;  %s92_s27 = int_to_ptr.vmem [resolvable:$true] %s91_s27 }
  0x23   :  { %97 = dma.hbm_to_vmem [thread:$0]  %s90_s23, 25600, %s92_s27, [#allocation8], %s18684_s1, %s18684_s1, %s18685_s20  }
  0x24   :  { %s118_s9 = sshll.u32 %s18699_s6, 4  ;;  %s140_s8 = sshll.u32 %s20433_s12, 4  ;;  %s119_s9 = int_to_ptr.vmem [resolvable:$true] %s118_s9  ;;  %s141_s8 = int_to_ptr.hbm [resolvable:$true] %s140_s8 }
  0x25   :  { %121 = dma.hbm_to_vmem [thread:$0]  %s117_s25, 128, %s119_s9, [#allocation11]  }
  0x26   :  { %s164_s10 = sshll.u32 %s20435_s14, 4  ;;  %s18700_s28 = smov [#allocation15]   ;;  %s165_s10 = int_to_ptr.hbm [resolvable:$true] %s164_s10 }
  0x27   :  { %s142_s19 = sshll.u32 %s18700_s28, 4  ;;  %s18701_s21 = smov [#allocation18]   ;;  %s143_s19 = int_to_ptr.vmem [resolvable:$true] %s142_s19 }
  0x28   :  { %145 = dma.hbm_to_vmem [thread:$0]  %s141_s8, 64, %s143_s19, [#allocation14]  }
  0x29   :  { %s166_s1 = sshll.u32 %s18701_s21, 4  ;;  %s188_s22 = sshll.u32 %s20437_s16, 4  ;;  %s167_s1 = int_to_ptr.vmem [resolvable:$true] %s166_s1  ;;  %s189_s22 = int_to_ptr.hbm [resolvable:$true] %s188_s22 }
  0x2a   :  { %169 = dma.hbm_to_vmem [thread:$0]  %s165_s10, 32, %s167_s1, [#allocation17]  }
  0x2b   :  { %s18702_s12 = smov [#allocation21]  }
  0x2c   :  { %s190_s30 = sshll.u32 %s18702_s12, 4  ;;  %s191_s30 = int_to_ptr.vmem [resolvable:$true] %s190_s30 }
  0x2d   :  { %193 = dma.hbm_to_vmem [thread:$0]  %s189_s22, 16, %s191_s30, [#allocation20]  }
  0x2e   :  { %18668 = dma.done.wait [#allocation3], 40960  }
  0x2f   :  { %18669 = vsyncadd [#allocation3], 4294926336 }
  0x30   :  { %18670 = dma.done.wait [#allocation5], 128  }
  0x31   :  { %18671 = vsyncadd [#allocation5], 4294967168 }
  0x32   :  { %18672 = dma.done.wait [#allocation8], 51200  }
  0x33   :  { %18673 = vsyncadd [#allocation8], 4294916096 }
  0x34   :  { %18674 = dma.done.wait [#allocation11], 25728  }
  0x35   :  { %18675 = vsyncadd [#allocation11], 4294941568 }
  0x36   :  { %18676 = dma.done.wait [#allocation14], 32832  }
  0x37   :  { %18677 = vsyncadd [#allocation14], 4294934464 }
  0x38   :  { %18678 = dma.done.wait [#allocation17], 8224  }
  0x39   :  { %18679 = vsyncadd [#allocation17], 4294959072 }
  0x3a   :  { %18680 = dma.done.wait [#allocation20], 2064  }
  0x3b   :  { %18681 = vsyncadd [#allocation20], 4294965232  ;;  %v11493_v0 = vld [vmem:[#allocation2 + $0xe0] sm:$0xf]  ;;  %v16970_v1 = vld [vmem:[#allocation2 + $0xec] sm:$0xf0] }
  0x3c   :  { %v11621_v2 = vld [vmem:[#allocation2 + $0x1e0] sm:$0xf]  ;;  %v11494_v3 = vor.u32 %v16970_v1, %v11493_v0  ;;  %v17002_v4 = vld [vmem:[#allocation2 + $0x1ec] sm:$0xf0]  ;;  %s20443_s6 = sld [smem:[#allocation29_spill]]  ;;  %vm5186_vm9 = vcmask 130048  }
  0x3d   :  { %v11749_v5 = vld [vmem:[#allocation2 + $0x2e0] sm:$0xf]  ;;  %v17034_v6 = vld [vmem:[#allocation2 + $0x2ec] sm:$0xf0]  ;;  %v11622_v7 = vor.u32 %v17002_v4, %v11621_v2  ;;  %s20444_s29 = sld [smem:[#allocation30_spill]] }
  0x3e   :  { %v11750_v8 = vor.u32 %v17034_v6, %v11749_v5  ;;  %v11877_v9 = vld [vmem:[#allocation2 + $0x3e0] sm:$0xf]  ;;  %v17066_v10 = vld [vmem:[#allocation2 + $0x3ec] sm:$0xf0]  ;;  %2197 = vmatpush.bf16.msra.mxu0 %v11494_v3 }
  0x3f   :  { %v11477_v11 = vld [vmem:[#allocation2 + $0xc0] sm:$0xf]  ;;  %v11878_v12 = vor.u32 %v17066_v10, %v11877_v9  ;;  %v16966_v13 = vld [vmem:[#allocation2 + $0xcc] sm:$0xf0]  ;;  %2210 = vmatpush.bf16.msra.mxu1 %v11622_v7 }
  0x40   :  { %v11605_v14 = vld [vmem:[#allocation2 + $0x1c0] sm:$0xf]  ;;  %v16998_v15 = vld [vmem:[#allocation2 + $0x1cc] sm:$0xf0]  ;;  %2223 = vmatpush.bf16.msra.mxu2 %v11750_v8  ;;  %v11478_v16 = vor.u32 %v16966_v13, %v11477_v11 }
  0x41   :  { %v11606_v17 = vor.u32 %v16998_v15, %v11605_v14  ;;  %v11733_v18 = vld [vmem:[#allocation2 + $0x2c0] sm:$0xf]  ;;  %v17030_v19 = vld [vmem:[#allocation2 + $0x2cc] sm:$0xf0]  ;;  %2236 = vmatpush.bf16.msra.mxu3 %v11878_v12 }
  0x42   :  { %v11861_v20 = vld [vmem:[#allocation2 + $0x3c0] sm:$0xf]  ;;  %v11734_v21 = vor.u32 %v17030_v19, %v11733_v18  ;;  %v17062_v22 = vld [vmem:[#allocation2 + $0x3cc] sm:$0xf0]  ;;  %2198 = vmatpush.bf16.msra.mxu0 %v11478_v16 }
  0x43   :  { %v11461_v23 = vld [vmem:[#allocation2 + $0xa0] sm:$0xf]  ;;  %v16962_v24 = vld [vmem:[#allocation2 + $0xac] sm:$0xf0]  ;;  %v11862_v25 = vor.u32 %v17062_v22, %v11861_v20  ;;  %2211 = vmatpush.bf16.msra.mxu1 %v11606_v17 }
  0x44   :  { %v11589_v26 = vld [vmem:[#allocation2 + $0x1a0] sm:$0xf]  ;;  %v16994_v27 = vld [vmem:[#allocation2 + $0x1ac] sm:$0xf0]  ;;  %v11462_v29 = vor.u32 %v16962_v24, %v11461_v23  ;;  %2224 = vmatpush.bf16.msra.mxu2 %v11734_v21 }
  0x45   :  { %v11717_v28 = vld [vmem:[#allocation2 + $0x2a0] sm:$0xf]  ;;  %v17026_v30 = vld [vmem:[#allocation2 + $0x2ac] sm:$0xf0]  ;;  %v11590_v33 = vor.u32 %v16994_v27, %v11589_v26  ;;  %2237 = vmatpush.bf16.msra.mxu3 %v11862_v25 }
  0x46   :  { %v11845_v31 = vld [vmem:[#allocation2 + $0x3a0] sm:$0xf]  ;;  %v17058_v32 = vld [vmem:[#allocation2 + $0x3ac] sm:$0xf0]  ;;  %v11718_v34 = vor.u32 %v17026_v30, %v11717_v28  ;;  %2199 = vmatpush.bf16.msra.mxu0 %v11462_v29 }
  0x47   :  { %v11445_v35 = vld [vmem:[#allocation2 + $0x80] sm:$0xf]  ;;  %v16958_v36 = vld [vmem:[#allocation2 + $0x8c] sm:$0xf0]  ;;  %v11846_v38 = vor.u32 %v17058_v32, %v11845_v31  ;;  %2212 = vmatpush.bf16.msra.mxu1 %v11590_v33 }
  0x48   :  { %v11573_v37 = vld [vmem:[#allocation2 + $0x180] sm:$0xf]  ;;  %v16990_v39 = vld [vmem:[#allocation2 + $0x18c] sm:$0xf0]  ;;  %v11446_v44 = vor.u32 %v16958_v36, %v11445_v35  ;;  %2225 = vmatpush.bf16.msra.mxu2 %v11718_v34 }
  0x49   :  { %v11701_v40 = vld [vmem:[#allocation2 + $0x280] sm:$0xf]  ;;  %v17022_v41 = vld [vmem:[#allocation2 + $0x28c] sm:$0xf0]  ;;  %v11574_v45 = vor.u32 %v16990_v39, %v11573_v37  ;;  %2238 = vmatpush.bf16.msra.mxu3 %v11846_v38 }
  0x4a   :  { %v11829_v42 = vld [vmem:[#allocation2 + $0x380] sm:$0xf]  ;;  %v17054_v43 = vld [vmem:[#allocation2 + $0x38c] sm:$0xf0]  ;;  %v11702_v46 = vor.u32 %v17022_v41, %v11701_v40  ;;  %2200 = vmatpush.bf16.msra.mxu0 %v11446_v44 }
  0x4b   :  { %v11429_v47 = vld [vmem:[#allocation2 + $0x60] sm:$0xf]  ;;  %v16954_v48 = vld [vmem:[#allocation2 + $0x6c] sm:$0xf0]  ;;  %v11830_v50 = vor.u32 %v17054_v43, %v11829_v42  ;;  %2213 = vmatpush.bf16.msra.mxu1 %v11574_v45 }
  0x4c   :  { %v11557_v49 = vld [vmem:[#allocation2 + $0x160] sm:$0xf]  ;;  %v16986_v51 = vld [vmem:[#allocation2 + $0x16c] sm:$0xf0]  ;;  %v11430_v56 = vor.u32 %v16954_v48, %v11429_v47  ;;  %2226 = vmatpush.bf16.msra.mxu2 %v11702_v46 }
  0x4d   :  { %v11685_v52 = vld [vmem:[#allocation2 + $0x260] sm:$0xf]  ;;  %v17018_v53 = vld [vmem:[#allocation2 + $0x26c] sm:$0xf0]  ;;  %v11558_v57 = vor.u32 %v16986_v51, %v11557_v49  ;;  %2239 = vmatpush.bf16.msra.mxu3 %v11830_v50 }
  0x4e   :  { %v11813_v54 = vld [vmem:[#allocation2 + $0x360] sm:$0xf]  ;;  %v17050_v55 = vld [vmem:[#allocation2 + $0x36c] sm:$0xf0]  ;;  %v11686_v58 = vor.u32 %v17018_v53, %v11685_v52  ;;  %2201 = vmatpush.bf16.msra.mxu0 %v11430_v56 }
  0x4f   :  { %v11413_v59 = vld [vmem:[#allocation2 + $0x40] sm:$0xf]  ;;  %v16950_v60 = vld [vmem:[#allocation2 + $0x4c] sm:$0xf0]  ;;  %v11814_v62 = vor.u32 %v17050_v55, %v11813_v54  ;;  %2214 = vmatpush.bf16.msra.mxu1 %v11558_v57 }
  0x50   :  { %v11541_v61 = vld [vmem:[#allocation2 + $0x140] sm:$0xf]  ;;  %v16982_v63 = vld [vmem:[#allocation2 + $0x14c] sm:$0xf0]  ;;  %v11414_v4 = vor.u32 %v16950_v60, %v11413_v59  ;;  %2227 = vmatpush.bf16.msra.mxu2 %v11686_v58 }
  0x51   :  { %v11669_v0 = vld [vmem:[#allocation2 + $0x240] sm:$0xf]  ;;  %v17014_v1 = vld [vmem:[#allocation2 + $0x24c] sm:$0xf0]  ;;  %v11542_v5 = vor.u32 %v16982_v63, %v11541_v61  ;;  %2240 = vmatpush.bf16.msra.mxu3 %v11814_v62 }
  0x52   :  { %v11797_v2 = vld [vmem:[#allocation2 + $0x340] sm:$0xf]  ;;  %v17046_v3 = vld [vmem:[#allocation2 + $0x34c] sm:$0xf0]  ;;  %v11670_v6 = vor.u32 %v17014_v1, %v11669_v0  ;;  %2202 = vmatpush.bf16.msra.mxu0 %v11414_v4 }
  0x53   :  { %v11397_v7 = vld [vmem:[#allocation2 + $0x20] sm:$0xf]  ;;  %v16946_v8 = vld [vmem:[#allocation2 + $0x2c] sm:$0xf0]  ;;  %v11798_v10 = vor.u32 %v17046_v3, %v11797_v2  ;;  %2215 = vmatpush.bf16.msra.mxu1 %v11542_v5 }
  0x54   :  { %v11525_v9 = vld [vmem:[#allocation2 + $0x120] sm:$0xf]  ;;  %v16978_v11 = vld [vmem:[#allocation2 + $0x12c] sm:$0xf0]  ;;  %v11398_v16 = vor.u32 %v16946_v8, %v11397_v7  ;;  %2228 = vmatpush.bf16.msra.mxu2 %v11670_v6 }
  0x55   :  { %v11653_v12 = vld [vmem:[#allocation2 + $0x220] sm:$0xf]  ;;  %v17010_v13 = vld [vmem:[#allocation2 + $0x22c] sm:$0xf0]  ;;  %v11526_v19 = vor.u32 %v16978_v11, %v11525_v9  ;;  %2241 = vmatpush.bf16.msra.mxu3 %v11798_v10  ;;  %v250_v10 = vld [vmem:[%s20423_s2 + $0x18] sm:$0xff] }
  0x56   :  { %v11781_v14 = vld [vmem:[#allocation2 + $0x320] sm:$0xf]  ;;  %v17042_v15 = vld [vmem:[#allocation2 + $0x32c] sm:$0xf0]  ;;  %v11654_v20 = vor.u32 %v17010_v13, %v11653_v12  ;;  %2203 = vmatpush.bf16.msra.mxu0 %v11398_v16 }
  0x57   :  { %v11381_v17 = vld [vmem:[#allocation2] sm:$0xf]  ;;  %v16942_v18 = vld [vmem:[#allocation2 + $0xc] sm:$0xf0]  ;;  %v11782_v24 = vor.u32 %v17042_v15, %v11781_v14  ;;  %2216 = vmatpush.bf16.msra.mxu1 %v11526_v19  ;;  %v18855_v15 = vpack.c.bf16 %v250_v10, %v250_v10  ;;  %v248_v19 = vld [vmem:[%s20423_s2 + $0x8] sm:$0xff] }
  0x58   :  { %v11509_v21 = vld [vmem:[#allocation2 + $0x100] sm:$0xf]  ;;  %v16974_v22 = vld [vmem:[#allocation2 + $0x10c] sm:$0xf0]  ;;  %v11382_v31 = vor.u32 %v16942_v18, %v11381_v17  ;;  %2229 = vmatpush.bf16.msra.mxu2 %v11654_v20 }
  0x59   :  { %v11637_v23 = vld [vmem:[#allocation2 + $0x200] sm:$0xf]  ;;  %v17006_v25 = vld [vmem:[#allocation2 + $0x20c] sm:$0xf0]  ;;  %v11510_v35 = vor.u32 %v16974_v22, %v11509_v21  ;;  %2242 = vmatpush.bf16.msra.mxu3 %v11782_v24 }
  0x5a   :  { %v11765_v26 = vld [vmem:[#allocation2 + $0x300] sm:$0xf]  ;;  %v17038_v27 = vld [vmem:[#allocation2 + $0x30c] sm:$0xf0]  ;;  %v11638_v36 = vor.u32 %v17006_v25, %v11637_v23  ;;  %2204 = vmatpush.bf16.msra.mxu0 %v11382_v31  ;;  %v18863_v25 = vpack.c.bf16 %v248_v19, %v248_v19 }
  0x5b   :  { %v12005_v28 = vld [vmem:[#allocation2 + $0x4e0] sm:$0xf]  ;;  %v17098_v29 = vld [vmem:[#allocation2 + $0x4ec] sm:$0xf0]  ;;  %v11766_v39 = vor.u32 %v17038_v27, %v11765_v26  ;;  %2217 = vmatpush.bf16.msra.mxu1 %v11510_v35 }
  0x5c   :  { %v12133_v30 = vld [vmem:[#allocation2 + $0x5e0] sm:$0xf]  ;;  %v17130_v32 = vld [vmem:[#allocation2 + $0x5ec] sm:$0xf0]  ;;  %v12006_v40 = vor.u32 %v17098_v29, %v12005_v28  ;;  %2230 = vmatpush.bf16.msra.mxu2 %v11638_v36 }
  0x5d   :  { %v12261_v33 = vld [vmem:[#allocation2 + $0x6e0] sm:$0xf]  ;;  %v17162_v34 = vld [vmem:[#allocation2 + $0x6ec] sm:$0xf0]  ;;  %v12134_v41 = vor.u32 %v17130_v32, %v12133_v30  ;;  %2243 = vmatpush.bf16.msra.mxu3 %v11766_v39 }
  0x5e   :  { %v12389_v37 = vld [vmem:[#allocation2 + $0x7e0] sm:$0xf]  ;;  %v17194_v38 = vld [vmem:[#allocation2 + $0x7ec] sm:$0xf0]  ;;  %v12262_v42 = vor.u32 %v17162_v34, %v12261_v33  ;;  %2249 = vmatpush.bf16.msrb.mxu0 %v12006_v40  ;;  %2218 = vmatmul.bf16.vlgmr.msra.gmra.mxu1 %v18863_v25 }
  0x5f   :  { %v11989_v43 = vld [vmem:[#allocation2 + $0x4c0] sm:$0xf]  ;;  %v17094_v44 = vld [vmem:[#allocation2 + $0x4cc] sm:$0xf0]  ;;  %v12390_v46 = vor.u32 %v17194_v38, %v12389_v37  ;;  %2262 = vmatpush.bf16.msrb.mxu1 %v12134_v41 }
  0x60   :  { %v12117_v45 = vld [vmem:[#allocation2 + $0x5c0] sm:$0xf]  ;;  %v17126_v47 = vld [vmem:[#allocation2 + $0x5cc] sm:$0xf0]  ;;  %v11990_v52 = vor.u32 %v17094_v44, %v11989_v43  ;;  %2275 = vmatpush.bf16.msrb.mxu2 %v12262_v42  ;;  %2244 = vmatmul.bf16.vlgmr.msra.gmra.mxu3 %v18855_v15 }
  0x61   :  { %v12245_v48 = vld [vmem:[#allocation2 + $0x6c0] sm:$0xf]  ;;  %v17158_v49 = vld [vmem:[#allocation2 + $0x6cc] sm:$0xf0]  ;;  %v12118_v54 = vor.u32 %v17126_v47, %v12117_v45  ;;  %2288 = vmatpush.bf16.msrb.mxu3 %v12390_v46 }
  0x62   :  { %v12373_v50 = vld [vmem:[#allocation2 + $0x7c0] sm:$0xf]  ;;  %v17190_v51 = vld [vmem:[#allocation2 + $0x7cc] sm:$0xf0]  ;;  %v12246_v55 = vor.u32 %v17158_v49, %v12245_v48  ;;  %2250 = vmatpush.bf16.msrb.mxu0 %v11990_v52 }
  0x63   :  { %v11973_v53 = vld [vmem:[#allocation2 + $0x4a0] sm:$0xf]  ;;  %v17090_v56 = vld [vmem:[#allocation2 + $0x4ac] sm:$0xf0]  ;;  %v12374_v59 = vor.u32 %v17190_v51, %v12373_v50  ;;  %2263 = vmatpush.bf16.msrb.mxu1 %v12118_v54 }
  0x64   :  { %v12101_v57 = vld [vmem:[#allocation2 + $0x5a0] sm:$0xf]  ;;  %v17122_v58 = vld [vmem:[#allocation2 + $0x5ac] sm:$0xf0]  ;;  %v11974_v0 = vor.u32 %v17090_v56, %v11973_v53  ;;  %2276 = vmatpush.bf16.msrb.mxu2 %v12246_v55 }
  0x65   :  { %v12229_v60 = vld [vmem:[#allocation2 + $0x6a0] sm:$0xf]  ;;  %v17154_v61 = vld [vmem:[#allocation2 + $0x6ac] sm:$0xf0]  ;;  %v12102_v1 = vor.u32 %v17122_v58, %v12101_v57  ;;  %2289 = vmatpush.bf16.msrb.mxu3 %v12374_v59 }
  0x66   :  { %v12357_v62 = vld [vmem:[#allocation2 + $0x7a0] sm:$0xf]  ;;  %v17186_v63 = vld [vmem:[#allocation2 + $0x7ac] sm:$0xf0]  ;;  %v12230_v5 = vor.u32 %v17154_v61, %v12229_v60  ;;  %2251 = vmatpush.bf16.msrb.mxu0 %v11974_v0 }
  0x67   :  { %v11957_v2 = vld [vmem:[#allocation2 + $0x480] sm:$0xf]  ;;  %v249_v3 = vld [vmem:[%s20423_s2 + $0x10] sm:$0xff]  ;;  %v12358_v11 = vor.u32 %v17186_v63, %v12357_v62  ;;  %2264 = vmatpush.bf16.msrb.mxu1 %v12102_v1 }
  0x68   :  { %v247_v4 = vld [vmem:[%s20423_s2] sm:$0xff]  ;;  %v17086_v6 = vld [vmem:[#allocation2 + $0x48c] sm:$0xf0]  ;;  %v18848_v8 = vpack.c.bf16 %v249_v3, %v249_v3  ;;  %2277 = vmatpush.bf16.msrb.mxu2 %v12230_v5 }
  0x69   :  { %v12085_v7 = vld [vmem:[#allocation2 + $0x580] sm:$0xf]  ;;  %v18850_v9 = vpack.c.bf16 %v247_v4, %v247_v4  ;;  %v17118_v12 = vld [vmem:[#allocation2 + $0x58c] sm:$0xf0]  ;;  %v11958_v18 = vor.u32 %v17086_v6, %v11957_v2  ;;  %2290 = vmatpush.bf16.msrb.mxu3 %v12358_v11  ;;  %v16968_v11 = vld [vmem:[#allocation2 + $0xe4] sm:$0xf] }
  0x6a   :  { %v12213_v13 = vld [vmem:[#allocation2 + $0x680] sm:$0xf]  ;;  %v17150_v14 = vld [vmem:[#allocation2 + $0x68c] sm:$0xf0]  ;;  %2231 = vmatmul.bf16.vlgmr.msra.gmra.mxu2 %v18848_v8  ;;  %v12086_v20 = vor.u32 %v17118_v12, %v12085_v7  ;;  %v11495_v12 = vld [vmem:[#allocation2 + $0xf0] sm:$0xf0] }
  0x6b   :  { %v12341_v16 = vld [vmem:[#allocation2 + $0x780] sm:$0xf]  ;;  %v17182_v17 = vld [vmem:[#allocation2 + $0x78c] sm:$0xf0]  ;;  %2205 = vmatmul.bf16.vlgmr.msra.gmra.mxu0 %v18850_v9  ;;  %v12214_v21 = vor.u32 %v17150_v14, %v12213_v13 }
  0x6c   :  { %v11941_v22 = vld [vmem:[#allocation2 + $0x460] sm:$0xf]  ;;  %v17082_v23 = vld [vmem:[#allocation2 + $0x46c] sm:$0xf0]  ;;  %v12342_v26 = vor.u32 %v17182_v17, %v12341_v16  ;;  %2252 = vmatpush.bf16.msrb.mxu0 %v11958_v18  ;;  %2265 = vmatpush.bf16.msrb.mxu1 %v12086_v20  ;;  %v17000_v16 = vld [vmem:[#allocation2 + $0x1e4] sm:$0xf] }
  0x6d   :  { %v12069_v24 = vld [vmem:[#allocation2 + $0x560] sm:$0xf]  ;;  %v17114_v27 = vld [vmem:[#allocation2 + $0x56c] sm:$0xf0]  ;;  %v11942_v32 = vor.u32 %v17082_v23, %v11941_v22  ;;  %2278 = vmatpush.bf16.msrb.mxu2 %v12214_v21  ;;  %v11623_v17 = vld [vmem:[#allocation2 + $0x1f0] sm:$0xf0] }
  0x6e   :  { %v12197_v28 = vld [vmem:[#allocation2 + $0x660] sm:$0xf]  ;;  %v17146_v29 = vld [vmem:[#allocation2 + $0x66c] sm:$0xf0]  ;;  %v12070_v33 = vor.u32 %v17114_v27, %v12069_v24  ;;  %2291 = vmatpush.bf16.msrb.mxu3 %v12342_v26  ;;  %v254_v23 = vld [vmem:[%s20423_s2 + $0x38] sm:$0xff]  ;;  %v11498_v26 = vor.u32 %v16968_v11, %v11495_v12 }
  0x6f   :  { %v12325_v30 = vld [vmem:[#allocation2 + $0x760] sm:$0xf]  ;;  %v17178_v31 = vld [vmem:[#allocation2 + $0x76c] sm:$0xf0]  ;;  %v12198_v34 = vor.u32 %v17146_v29, %v12197_v28  ;;  %v252_v29 = vld [vmem:[%s20423_s2 + $0x28] sm:$0xff] }
  0x70   :  { %v11925_v35 = vld [vmem:[#allocation2 + $0x440] sm:$0xf]  ;;  %v17078_v36 = vld [vmem:[#allocation2 + $0x44c] sm:$0xf0]  ;;  %v12326_v38 = vor.u32 %v17178_v31, %v12325_v30  ;;  %2253 = vmatpush.bf16.msrb.mxu0 %v11942_v32  ;;  %2266 = vmatpush.bf16.msrb.mxu1 %v12070_v33  ;;  %v11626_v30 = vor.u32 %v17000_v16, %v11623_v17  ;;  %v16964_v32 = vld [vmem:[#allocation2 + $0xc4] sm:$0xf] }
  0x71   :  { %v12053_v37 = vld [vmem:[#allocation2 + $0x540] sm:$0xf]  ;;  %v17110_v39 = vld [vmem:[#allocation2 + $0x54c] sm:$0xf0]  ;;  %v11926_v44 = vor.u32 %v17078_v36, %v11925_v35  ;;  %2279 = vmatpush.bf16.msrb.mxu2 %v12198_v34  ;;  %v11479_v33 = vld [vmem:[#allocation2 + $0xd0] sm:$0xf0] }
  0x72   :  { %v12181_v40 = vld [vmem:[#allocation2 + $0x640] sm:$0xf]  ;;  %v17142_v41 = vld [vmem:[#allocation2 + $0x64c] sm:$0xf0]  ;;  %v12054_v45 = vor.u32 %v17110_v39, %v12053_v37  ;;  %2292 = vmatpush.bf16.msrb.mxu3 %v12326_v38  ;;  %v16996_v35 = vld [vmem:[#allocation2 + $0x1c4] sm:$0xf]  ;;  %v18882_v38 = vpack.c.bf16 %v254_v23, %v254_v23 }
  0x73   :  { %v12309_v42 = vld [vmem:[#allocation2 + $0x740] sm:$0xf]  ;;  %v17174_v43 = vld [vmem:[#allocation2 + $0x74c] sm:$0xf0]  ;;  %v12182_v46 = vor.u32 %v17142_v41, %v12181_v40  ;;  %v11607_v36 = vld [vmem:[#allocation2 + $0x1d0] sm:$0xf0]  ;;  %v18884_v40 = vpack.c.bf16 %v252_v29, %v252_v29 }
  0x74   :  { %v11909_v47 = vld [vmem:[#allocation2 + $0x420] sm:$0xf]  ;;  %v17074_v48 = vld [vmem:[#allocation2 + $0x42c] sm:$0xf0]  ;;  %v12310_v50 = vor.u32 %v17174_v43, %v12309_v42  ;;  %2254 = vmatpush.bf16.msrb.mxu0 %v11926_v44  ;;  %2267 = vmatpush.bf16.msrb.mxu1 %v12054_v45  ;;  %v11482_v42 = vor.u32 %v16964_v32, %v11479_v33  ;;  %v11431_v11 = vld [vmem:[#allocation2 + $0x70] sm:$0xf0] }
  0x75   :  { %v12037_v49 = vld [vmem:[#allocation2 + $0x520] sm:$0xf]  ;;  %v17106_v51 = vld [vmem:[#allocation2 + $0x52c] sm:$0xf0]  ;;  %v11910_v56 = vor.u32 %v17074_v48, %v11909_v47  ;;  %2280 = vmatpush.bf16.msrb.mxu2 %v12182_v46  ;;  %v11610_v46 = vor.u32 %v16996_v35, %v11607_v36  ;;  %v16960_v48 = vld [vmem:[#allocation2 + $0xa4] sm:$0xf] }
  0x76   :  { %v12165_v52 = vld [vmem:[#allocation2 + $0x620] sm:$0xf]  ;;  %v17138_v53 = vld [vmem:[#allocation2 + $0x62c] sm:$0xf0]  ;;  %v12038_v59 = vor.u32 %v17106_v51, %v12037_v49  ;;  %2293 = vmatpush.bf16.msrb.mxu3 %v12310_v50  ;;  %v11463_v49 = vld [vmem:[#allocation2 + $0xb0] sm:$0xf0] }
  0x77   :  { %v12293_v54 = vld [vmem:[#allocation2 + $0x720] sm:$0xf]  ;;  %v17170_v55 = vld [vmem:[#allocation2 + $0x72c] sm:$0xf0]  ;;  %v12166_v60 = vor.u32 %v17138_v53, %v12165_v52  ;;  %v16992_v50 = vld [vmem:[#allocation2 + $0x1a4] sm:$0xf] }
  0x78   :  { %v11893_v57 = vld [vmem:[#allocation2 + $0x400] sm:$0xf]  ;;  %v17070_v58 = vld [vmem:[#allocation2 + $0x40c] sm:$0xf0]  ;;  %v12294_v0 = vor.u32 %v17170_v55, %v12293_v54  ;;  %2255 = vmatpush.bf16.msrb.mxu0 %v11910_v56  ;;  %2268 = vmatpush.bf16.msrb.mxu1 %v12038_v59  ;;  %v11591_v51 = vld [vmem:[#allocation2 + $0x1b0] sm:$0xf0]  ;;  %v11466_v54 = vor.u32 %v16960_v48, %v11463_v49 }
  0x79   :  { %v12021_v61 = vld [vmem:[#allocation2 + $0x500] sm:$0xf]  ;;  %v17102_v62 = vld [vmem:[#allocation2 + $0x50c] sm:$0xf0]  ;;  %v11894_v7 = vor.u32 %v17070_v58, %v11893_v57  ;;  %2281 = vmatpush.bf16.msrb.mxu2 %v12166_v60  ;;  %v11594_v58 = vor.u32 %v16992_v50, %v11591_v51  ;;  %v16956_v60 = vld [vmem:[#allocation2 + $0x84] sm:$0xf] }
  0x7a   :  { %v12149_v63 = vld [vmem:[#allocation2 + $0x600] sm:$0xf]  ;;  %v17134_v1 = vld [vmem:[#allocation2 + $0x60c] sm:$0xf0]  ;;  %v12022_v13 = vor.u32 %v17102_v62, %v12021_v61  ;;  %2294 = vmatpush.bf16.msrb.mxu3 %v12294_v0  ;;  %v11447_v61 = vld [vmem:[#allocation2 + $0x90] sm:$0xf0] }
  0x7b   :  { %v12277_v2 = vld [vmem:[#allocation2 + $0x700] sm:$0xf]  ;;  %v17166_v3 = vld [vmem:[#allocation2 + $0x70c] sm:$0xf0]  ;;  %v12150_v14 = vor.u32 %v17134_v1, %v12149_v63  ;;  %v16988_v62 = vld [vmem:[#allocation2 + $0x184] sm:$0xf] }
  0x7c   :  { %v12517_v4 = vld [vmem:[#allocation2 + $0x8e0] sm:$0xf]  ;;  %v17226_v5 = vld [vmem:[#allocation2 + $0x8ec] sm:$0xf0]  ;;  %v12278_v19 = vor.u32 %v17166_v3, %v12277_v2  ;;  %2256 = vmatpush.bf16.msrb.mxu0 %v11894_v7  ;;  %2269 = vmatpush.bf16.msrb.mxu1 %v12022_v13  ;;  %v11575_v63 = vld [vmem:[#allocation2 + $0x190] sm:$0xf0]  ;;  %v11450_v2 = vor.u32 %v16956_v60, %v11447_v61 }
  0x7d   :  { %v12645_v6 = vld [vmem:[#allocation2 + $0x9e0] sm:$0xf]  ;;  %v17258_v10 = vld [vmem:[#allocation2 + $0x9ec] sm:$0xf0]  ;;  %v12518_v20 = vor.u32 %v17226_v5, %v12517_v4  ;;  %2282 = vmatpush.bf16.msrb.mxu2 %v12150_v14  ;;  %v16984_v12 = vld [vmem:[#allocation2 + $0x164] sm:$0xf] }
  0x7e   :  { %v253_v18 = vld [vmem:[%s20423_s2 + $0x30] sm:$0xff]  ;;  %v12501_v21 = vld [vmem:[#allocation2 + $0x8c0] sm:$0xf]  ;;  %v12646_v24 = vor.u32 %v17258_v10, %v12645_v6  ;;  %2295 = vmatpush.bf16.msrb.mxu3 %v12278_v19  ;;  %v11578_v6 = vor.u32 %v16988_v62, %v11575_v63  ;;  %v16952_v10 = vld [vmem:[#allocation2 + $0x64] sm:$0xf] }
  0x7f   :  { %v251_v22 = vld [vmem:[%s20423_s2 + $0x20] sm:$0xff]  ;;  %v17222_v27 = vld [vmem:[#allocation2 + $0x8cc] sm:$0xf0]  ;;  %v18878_v34 = vpack.c.bf16 %v253_v18, %v253_v18  ;;  %2270 = vmatmul.bf16.vlgmr.msrb.gmra.mxu1 %v18884_v40  ;;  %v11559_v13 = vld [vmem:[#allocation2 + $0x170] sm:$0xf0]  ;;  %v11434_v17 = vor.u32 %v16952_v10, %v11431_v11 }
  0x80   :  { %v12629_v28 = vld [vmem:[#allocation2 + $0x9c0] sm:$0xf]  ;;  %v17254_v31 = vld [vmem:[#allocation2 + $0x9cc] sm:$0xf0]  ;;  %v18880_v37 = vpack.c.bf16 %v251_v22, %v251_v22  ;;  %2301 = vmatpush.bf16.msra.mxu0 %v12518_v20  ;;  %v12502_v39 = vor.u32 %v17222_v27, %v12501_v21  ;;  %2314 = vmatpush.bf16.msra.mxu1 %v12646_v24  ;;  %v11562_v21 = vor.u32 %v16984_v12, %v11559_v13  ;;  %v16948_v23 = vld [vmem:[#allocation2 + $0x44] sm:$0xf] }
  0x81   :  { %2327 = vmatpush.bf16.msra.mxu2 %v11498_v26  ;;  %v12630_v41 = vor.u32 %v17254_v31, %v12629_v28  ;;  %v12485_v43 = vld [vmem:[#allocation2 + $0x8a0] sm:$0xf]  ;;  %v17218_v44 = vld [vmem:[#allocation2 + $0x8ac] sm:$0xf0]  ;;  %2296 = vmatmul.bf16.vlgmr.msrb.gmra.mxu3 %v18882_v38  ;;  %v11415_v24 = vld [vmem:[#allocation2 + $0x50] sm:$0xf0] }
  0x82   :  { %v12613_v45 = vld [vmem:[#allocation2 + $0x9a0] sm:$0xf]  ;;  %2340 = vmatpush.bf16.msra.mxu3 %v11626_v30  ;;  %2283 = vmatmul.bf16.vlgmr.msrb.gmra.mxu2 %v18878_v34  ;;  %v17250_v47 = vld [vmem:[#allocation2 + $0x9ac] sm:$0xf0]  ;;  %v12486_v52 = vor.u32 %v17218_v44, %v12485_v43  ;;  %v16980_v26 = vld [vmem:[#allocation2 + $0x144] sm:$0xf]  ;;  %v11418_v30 = vor.u32 %v16948_v23, %v11415_v24 }
  0x83   :  { %2257 = vmatmul.bf16.vlgmr.msrb.gmra.mxu0 %v18880_v37  ;;  %v12614_v53 = vor.u32 %v17250_v47, %v12613_v45  ;;  %v12469_v55 = vld [vmem:[#allocation2 + $0x880] sm:$0xf]  ;;  %v17214_v56 = vld [vmem:[#allocation2 + $0x88c] sm:$0xf0]  ;;  %v11543_v27 = vld [vmem:[#allocation2 + $0x150] sm:$0xf0] }
  0x84   :  { %2302 = vmatpush.bf16.msra.mxu0 %v12502_v39  ;;  %2315 = vmatpush.bf16.msra.mxu1 %v12630_v41  ;;  %v12597_v57 = vld [vmem:[#allocation2 + $0x980] sm:$0xf]  ;;  %v17246_v59 = vld [vmem:[#allocation2 + $0x98c] sm:$0xf0]  ;;  %v12470_v0 = vor.u32 %v17214_v56, %v12469_v55  ;;  %v11546_v35 = vor.u32 %v16980_v26, %v11543_v27  ;;  %v16944_v39 = vld [vmem:[#allocation2 + $0x24] sm:$0xf] }
  0x85   :  { %2328 = vmatpush.bf16.msra.mxu2 %v11482_v42  ;;  %v12598_v1 = vor.u32 %v17246_v59, %v12597_v57  ;;  %v12453_v3 = vld [vmem:[#allocation2 + $0x860] sm:$0xf]  ;;  %v17210_v4 = vld [vmem:[#allocation2 + $0x86c] sm:$0xf0]  ;;  %v11399_v41 = vld [vmem:[#allocation2 + $0x30] sm:$0xf0] }
  0x86   :  { %2341 = vmatpush.bf16.msra.mxu3 %v11610_v46  ;;  %v12581_v5 = vld [vmem:[#allocation2 + $0x960] sm:$0xf]  ;;  %v17242_v7 = vld [vmem:[#allocation2 + $0x96c] sm:$0xf0]  ;;  %v12454_v14 = vor.u32 %v17210_v4, %v12453_v3  ;;  %v16976_v42 = vld [vmem:[#allocation2 + $0x124] sm:$0xf]  ;;  %v11402_v49 = vor.u32 %v16944_v39, %v11399_v41 }
  0x87   :  { %v12582_v16 = vor.u32 %v17242_v7, %v12581_v5  ;;  %v12437_v18 = vld [vmem:[#allocation2 + $0x840] sm:$0xf]  ;;  %v17206_v19 = vld [vmem:[#allocation2 + $0x84c] sm:$0xf0]  ;;  %v11527_v43 = vld [vmem:[#allocation2 + $0x130] sm:$0xf0] }
  0x88   :  { %2303 = vmatpush.bf16.msra.mxu0 %v12486_v52  ;;  %2316 = vmatpush.bf16.msra.mxu1 %v12614_v53  ;;  %v12565_v20 = vld [vmem:[#allocation2 + $0x940] sm:$0xf]  ;;  %v17238_v22 = vld [vmem:[#allocation2 + $0x94c] sm:$0xf0]  ;;  %v12438_v28 = vor.u32 %v17206_v19, %v12437_v18  ;;  %v16940_v51 = vld [vmem:[#allocation2 + $0x4] sm:$0xf]  ;;  %v11530_v53 = vor.u32 %v16976_v42, %v11527_v43 }
  0x89   :  { %2329 = vmatpush.bf16.msra.mxu2 %v11466_v54  ;;  %v12566_v29 = vor.u32 %v17238_v22, %v12565_v20  ;;  %v12421_v31 = vld [vmem:[#allocation2 + $0x820] sm:$0xf]  ;;  %v17202_v32 = vld [vmem:[#allocation2 + $0x82c] sm:$0xf0]  ;;  %v11383_v52 = vld [vmem:[#allocation2 + $0x10] sm:$0xf0] }
  0x8a   :  { %2342 = vmatpush.bf16.msra.mxu3 %v11594_v58  ;;  %v12549_v33 = vld [vmem:[#allocation2 + $0x920] sm:$0xf]  ;;  %v17234_v36 = vld [vmem:[#allocation2 + $0x92c] sm:$0xf0]  ;;  %v12422_v44 = vor.u32 %v17202_v32, %v12421_v31  ;;  %v16972_v54 = vld [vmem:[#allocation2 + $0x104] sm:$0xf] }
  0x8b   :  { %v12405_v45 = vld [vmem:[#allocation2 + $0x800] sm:$0xf]  ;;  %v17198_v46 = vld [vmem:[#allocation2 + $0x80c] sm:$0xf0]  ;;  %v12550_v48 = vor.u32 %v17234_v36, %v12549_v33  ;;  %v11511_v55 = vld [vmem:[#allocation2 + $0x110] sm:$0xf0] }
  0x8c   :  { %2304 = vmatpush.bf16.msra.mxu0 %v12470_v0  ;;  %2317 = vmatpush.bf16.msra.mxu1 %v12598_v1  ;;  %v12533_v47 = vld [vmem:[#allocation2 + $0x900] sm:$0xf]  ;;  %v17230_v50 = vld [vmem:[#allocation2 + $0x90c] sm:$0xf0]  ;;  %v17032_v56 = vld [vmem:[#allocation2 + $0x2e4] sm:$0xf]  ;;  %v12406_v59 = vor.u32 %v17198_v46, %v12405_v45  ;;  %v11386_v0 = vor.u32 %v16940_v51, %v11383_v52  ;;  %v11514_v4 = vor.u32 %v16972_v54, %v11511_v55 }
  0x8d   :  { %2330 = vmatpush.bf16.msra.mxu2 %v11450_v2  ;;  %v11751_v57 = vld [vmem:[#allocation2 + $0x2f0] sm:$0xf0]  ;;  %v17064_v58 = vld [vmem:[#allocation2 + $0x3e4] sm:$0xf]  ;;  %v12534_v63 = vor.u32 %v17230_v50, %v12533_v47 }
  0x8e   :  { %2343 = vmatpush.bf16.msra.mxu3 %v11578_v6  ;;  %v11879_v60 = vld [vmem:[#allocation2 + $0x3f0] sm:$0xf0]  ;;  %v17096_v61 = vld [vmem:[#allocation2 + $0x4e4] sm:$0xf]  ;;  %v11754_v5 = vor.u32 %v17032_v56, %v11751_v57  ;;  %v256_v6 = vld [vmem:[%s20423_s2 + $0x48] sm:$0xff] }
  0x8f   :  { %v12007_v62 = vld [vmem:[#allocation2 + $0x4f0] sm:$0xf0]  ;;  %v17128_v1 = vld [vmem:[#allocation2 + $0x5e4] sm:$0xf]  ;;  %v11882_v7 = vor.u32 %v17064_v58, %v11879_v60  ;;  %v18898_v20 = vpack.c.bf16 %v256_v6, %v256_v6 }
  0x90   :  { %2305 = vmatpush.bf16.msra.mxu0 %v12454_v14  ;;  %2318 = vmatpush.bf16.msra.mxu1 %v12582_v16  ;;  %v12135_v2 = vld [vmem:[#allocation2 + $0x5f0] sm:$0xf0]  ;;  %v255_v3 = vld [vmem:[%s20423_s2 + $0x40] sm:$0xff]  ;;  %v12010_v10 = vor.u32 %v17096_v61, %v12007_v62 }
  0x91   :  { %2331 = vmatpush.bf16.msra.mxu2 %v11434_v17  ;;  %v17028_v11 = vld [vmem:[#allocation2 + $0x2c4] sm:$0xf]  ;;  %v11735_v12 = vld [vmem:[#allocation2 + $0x2d0] sm:$0xf0]  ;;  %v12138_v14 = vor.u32 %v17128_v1, %v12135_v2  ;;  %v18896_v16 = vpack.c.bf16 %v255_v3, %v255_v3 }
  0x92   :  { %2344 = vmatpush.bf16.msra.mxu3 %v11562_v21  ;;  %v17060_v13 = vld [vmem:[#allocation2 + $0x3c4] sm:$0xf]  ;;  %v11863_v17 = vld [vmem:[#allocation2 + $0x3d0] sm:$0xf0]  ;;  %v11738_v23 = vor.u32 %v17028_v11, %v11735_v12 }
  0x93   :  { %v17092_v18 = vld [vmem:[#allocation2 + $0x4c4] sm:$0xf]  ;;  %v11991_v19 = vld [vmem:[#allocation2 + $0x4d0] sm:$0xf0]  ;;  %v11866_v24 = vor.u32 %v17060_v13, %v11863_v17 }
  0x94   :  { %2306 = vmatpush.bf16.msra.mxu0 %v12438_v28  ;;  %2319 = vmatpush.bf16.msra.mxu1 %v12566_v29  ;;  %v17124_v21 = vld [vmem:[#allocation2 + $0x5c4] sm:$0xf]  ;;  %v12119_v22 = vld [vmem:[#allocation2 + $0x5d0] sm:$0xf0]  ;;  %v11994_v26 = vor.u32 %v17092_v18, %v11991_v19 }
  0x95   :  { %2332 = vmatpush.bf16.msra.mxu2 %v11418_v30  ;;  %v17024_v27 = vld [vmem:[#allocation2 + $0x2a4] sm:$0xf]  ;;  %v11719_v28 = vld [vmem:[#allocation2 + $0x2b0] sm:$0xf0]  ;;  %v12122_v30 = vor.u32 %v17124_v21, %v12119_v22 }
  0x96   :  { %2345 = vmatpush.bf16.msra.mxu3 %v11546_v35  ;;  %v17056_v29 = vld [vmem:[#allocation2 + $0x3a4] sm:$0xf]  ;;  %v11847_v31 = vld [vmem:[#allocation2 + $0x3b0] sm:$0xf0]  ;;  %v11722_v39 = vor.u32 %v17024_v27, %v11719_v28 }
  0x97   :  { %v17088_v32 = vld [vmem:[#allocation2 + $0x4a4] sm:$0xf]  ;;  %v11975_v33 = vld [vmem:[#allocation2 + $0x4b0] sm:$0xf0]  ;;  %v11850_v41 = vor.u32 %v17056_v29, %v11847_v31 }
  0x98   :  { %2307 = vmatpush.bf16.msra.mxu0 %v12422_v44  ;;  %2320 = vmatpush.bf16.msra.mxu1 %v12550_v48  ;;  %v17120_v35 = vld [vmem:[#allocation2 + $0x5a4] sm:$0xf]  ;;  %v12103_v36 = vld [vmem:[#allocation2 + $0x5b0] sm:$0xf0]  ;;  %v11978_v42 = vor.u32 %v17088_v32, %v11975_v33 }
  0x99   :  { %2333 = vmatpush.bf16.msra.mxu2 %v11402_v49  ;;  %v17020_v43 = vld [vmem:[#allocation2 + $0x284] sm:$0xf]  ;;  %v11703_v44 = vld [vmem:[#allocation2 + $0x290] sm:$0xf0]  ;;  %v12106_v46 = vor.u32 %v17120_v35, %v12103_v36 }
  0x9a   :  { %2346 = vmatpush.bf16.msra.mxu3 %v11530_v53  ;;  %v17052_v45 = vld [vmem:[#allocation2 + $0x384] sm:$0xf]  ;;  %v11831_v47 = vld [vmem:[#allocation2 + $0x390] sm:$0xf0]  ;;  %v11706_v52 = vor.u32 %v17020_v43, %v11703_v44 }
  0x9b   :  { %v17084_v48 = vld [vmem:[#allocation2 + $0x484] sm:$0xf]  ;;  %v11959_v49 = vld [vmem:[#allocation2 + $0x490] sm:$0xf0]  ;;  %v11834_v53 = vor.u32 %v17052_v45, %v11831_v47 }
  0x9c   :  { %2308 = vmatpush.bf16.msra.mxu0 %v12406_v59  ;;  %2321 = vmatpush.bf16.msra.mxu1 %v12534_v63  ;;  %v17116_v50 = vld [vmem:[#allocation2 + $0x584] sm:$0xf]  ;;  %v12087_v51 = vld [vmem:[#allocation2 + $0x590] sm:$0xf0]  ;;  %v11962_v54 = vor.u32 %v17084_v48, %v11959_v49 }
  0x9d   :  { %2334 = vmatpush.bf16.msra.mxu2 %v11386_v0  ;;  %v17016_v55 = vld [vmem:[#allocation2 + $0x264] sm:$0xf]  ;;  %v11687_v56 = vld [vmem:[#allocation2 + $0x270] sm:$0xf0]  ;;  %v12090_v58 = vor.u32 %v17116_v50, %v12087_v51 }
  0x9e   :  { %2347 = vmatpush.bf16.msra.mxu3 %v11514_v4  ;;  %v17048_v57 = vld [vmem:[#allocation2 + $0x364] sm:$0xf]  ;;  %v11815_v59 = vld [vmem:[#allocation2 + $0x370] sm:$0xf0]  ;;  %v11690_v0 = vor.u32 %v17016_v55, %v11687_v56 }
  0x9f   :  { %2309 = vmatmul.bf16.vlgmr.msra.gmra.mxu0 %v18896_v16  ;;  %2322 = vmatmul.bf16.vlgmr.msra.gmra.mxu1 %v18898_v20  ;;  %v17080_v60 = vld [vmem:[#allocation2 + $0x464] sm:$0xf]  ;;  %v11943_v61 = vld [vmem:[#allocation2 + $0x470] sm:$0xf0]  ;;  %v11818_v1 = vor.u32 %v17048_v57, %v11815_v59 }
  0xa0   :  { %2353 = vmatpush.bf16.msrb.mxu0 %v11754_v5  ;;  %2366 = vmatpush.bf16.msrb.mxu1 %v11882_v7  ;;  %v17112_v62 = vld [vmem:[#allocation2 + $0x564] sm:$0xf]  ;;  %v12071_v63 = vld [vmem:[#allocation2 + $0x570] sm:$0xf0]  ;;  %v11946_v2 = vor.u32 %v17080_v60, %v11943_v61 }
  0xa1   :  { %2379 = vmatpush.bf16.msrb.mxu2 %v12010_v10  ;;  %2348 = vmatmul.bf16.vlgmr.msra.gmra.mxu3 %v18863_v25  ;;  %v17012_v3 = vld [vmem:[#allocation2 + $0x244] sm:$0xf]  ;;  %v11671_v4 = vld [vmem:[#allocation2 + $0x250] sm:$0xf0]  ;;  %v12074_v6 = vor.u32 %v17112_v62, %v12071_v63 }
  0xa2   :  { %2392 = vmatpush.bf16.msrb.mxu3 %v12138_v14  ;;  %2335 = vmatmul.bf16.vlgmr.msra.gmra.mxu2 %v18850_v9  ;;  %v17044_v5 = vld [vmem:[#allocation2 + $0x344] sm:$0xf]  ;;  %v11799_v7 = vld [vmem:[#allocation2 + $0x350] sm:$0xf0]  ;;  %v11674_v14 = vor.u32 %v17012_v3, %v11671_v4 }
  0xa3   :  { %v17076_v10 = vld [vmem:[#allocation2 + $0x444] sm:$0xf]  ;;  %v11927_v11 = vld [vmem:[#allocation2 + $0x450] sm:$0xf0]  ;;  %v11802_v17 = vor.u32 %v17044_v5, %v11799_v7 }
  0xa4   :  { %2354 = vmatpush.bf16.msrb.mxu0 %v11738_v23  ;;  %2367 = vmatpush.bf16.msrb.mxu1 %v11866_v24  ;;  %v17108_v12 = vld [vmem:[#allocation2 + $0x544] sm:$0xf]  ;;  %v12055_v13 = vld [vmem:[#allocation2 + $0x550] sm:$0xf0]  ;;  %v11930_v18 = vor.u32 %v17076_v10, %v11927_v11 }
  0xa5   :  { %2380 = vmatpush.bf16.msrb.mxu2 %v11994_v26  ;;  %v17008_v19 = vld [vmem:[#allocation2 + $0x224] sm:$0xf]  ;;  %v11655_v21 = vld [vmem:[#allocation2 + $0x230] sm:$0xf0]  ;;  %v12058_v23 = vor.u32 %v17108_v12, %v12055_v13 }
  0xa6   :  { %2393 = vmatpush.bf16.msrb.mxu3 %v12122_v30  ;;  %v17040_v22 = vld [vmem:[#allocation2 + $0x324] sm:$0xf]  ;;  %v11783_v24 = vld [vmem:[#allocation2 + $0x330] sm:$0xf0]  ;;  %v11658_v30 = vor.u32 %v17008_v19, %v11655_v21 }
  0xa7   :  { %v17072_v26 = vld [vmem:[#allocation2 + $0x424] sm:$0xf]  ;;  %v11911_v27 = vld [vmem:[#allocation2 + $0x430] sm:$0xf0]  ;;  %v11786_v33 = vor.u32 %v17040_v22, %v11783_v24 }
  0xa8   :  { %2355 = vmatpush.bf16.msrb.mxu0 %v11722_v39  ;;  %2368 = vmatpush.bf16.msrb.mxu1 %v11850_v41  ;;  %v17104_v28 = vld [vmem:[#allocation2 + $0x524] sm:$0xf]  ;;  %v12039_v29 = vld [vmem:[#allocation2 + $0x530] sm:$0xf0]  ;;  %v11914_v35 = vor.u32 %v17072_v26, %v11911_v27 }
  0xa9   :  { %2381 = vmatpush.bf16.msrb.mxu2 %v11978_v42  ;;  %v17004_v31 = vld [vmem:[#allocation2 + $0x204] sm:$0xf]  ;;  %v11639_v32 = vld [vmem:[#allocation2 + $0x210] sm:$0xf0]  ;;  %v12042_v42 = vor.u32 %v17104_v28, %v12039_v29 }
  0xaa   :  { %2394 = vmatpush.bf16.msrb.mxu3 %v12106_v46  ;;  %v17036_v36 = vld [vmem:[#allocation2 + $0x304] sm:$0xf]  ;;  %v11767_v39 = vld [vmem:[#allocation2 + $0x310] sm:$0xf0]  ;;  %v11642_v49 = vor.u32 %v17004_v31, %v11639_v32 }
  0xab   :  { %v17068_v41 = vld [vmem:[#allocation2 + $0x404] sm:$0xf]  ;;  %v11895_v43 = vld [vmem:[#allocation2 + $0x410] sm:$0xf0] }
  0xac   :  { %2356 = vmatpush.bf16.msrb.mxu0 %v11706_v52  ;;  %2369 = vmatpush.bf16.msrb.mxu1 %v11834_v53  ;;  %v17100_v44 = vld [vmem:[#allocation2 + $0x504] sm:$0xf]  ;;  %v12023_v45 = vld [vmem:[#allocation2 + $0x510] sm:$0xf0]  ;;  %v11770_v53 = vor.u32 %v17036_v36, %v11767_v39 }
  0xad   :  { %2382 = vmatpush.bf16.msrb.mxu2 %v11962_v54  ;;  %v17160_v46 = vld [vmem:[#allocation2 + $0x6e4] sm:$0xf]  ;;  %v12263_v47 = vld [vmem:[#allocation2 + $0x6f0] sm:$0xf0]  ;;  %v11898_v54 = vor.u32 %v17068_v41, %v11895_v43  ;;  %v12026_v57 = vor.u32 %v17100_v44, %v12023_v45 }
  0xae   :  { %2395 = vmatpush.bf16.msrb.mxu3 %v12090_v58  ;;  %v17192_v48 = vld [vmem:[#allocation2 + $0x7e4] sm:$0xf]  ;;  %v12391_v50 = vld [vmem:[#allocation2 + $0x7f0] sm:$0xf0]  ;;  %v12266_v58 = vor.u32 %v17160_v46, %v12263_v47 }
  0xaf   :  { %v17224_v51 = vld [vmem:[#allocation2 + $0x8e4] sm:$0xf]  ;;  %v12519_v52 = vld [vmem:[#allocation2 + $0x8f0] sm:$0xf0]  ;;  %v12394_v59 = vor.u32 %v17192_v48, %v12391_v50 }
  0xb0   :  { %2357 = vmatpush.bf16.msrb.mxu0 %v11690_v0  ;;  %2370 = vmatpush.bf16.msrb.mxu1 %v11818_v1  ;;  %v17256_v55 = vld [vmem:[#allocation2 + $0x9e4] sm:$0xf]  ;;  %v12647_v56 = vld [vmem:[#allocation2 + $0x9f0] sm:$0xf0]  ;;  %v12522_v60 = vor.u32 %v17224_v51, %v12519_v52 }
  0xb1   :  { %2383 = vmatpush.bf16.msrb.mxu2 %v11946_v2  ;;  %v17156_v61 = vld [vmem:[#allocation2 + $0x6c4] sm:$0xf]  ;;  %v12247_v62 = vld [vmem:[#allocation2 + $0x6d0] sm:$0xf0]  ;;  %v12650_v0 = vor.u32 %v17256_v55, %v12647_v56 }
  0xb2   :  { %2396 = vmatpush.bf16.msrb.mxu3 %v12074_v6  ;;  %v17188_v63 = vld [vmem:[#allocation2 + $0x7c4] sm:$0xf]  ;;  %v12375_v1 = vld [vmem:[#allocation2 + $0x7d0] sm:$0xf0]  ;;  %v12250_v6 = vor.u32 %v17156_v61, %v12247_v62 }
  0xb3   :  { %v17220_v2 = vld [vmem:[#allocation2 + $0x8c4] sm:$0xf]  ;;  %v12503_v3 = vld [vmem:[#allocation2 + $0x8d0] sm:$0xf0]  ;;  %v12378_v7 = vor.u32 %v17188_v63, %v12375_v1 }
  0xb4   :  { %2358 = vmatpush.bf16.msrb.mxu0 %v11674_v14  ;;  %2371 = vmatpush.bf16.msrb.mxu1 %v11802_v17  ;;  %v17252_v4 = vld [vmem:[#allocation2 + $0x9c4] sm:$0xf]  ;;  %v12631_v5 = vld [vmem:[#allocation2 + $0x9d0] sm:$0xf0]  ;;  %v12506_v10 = vor.u32 %v17220_v2, %v12503_v3 }
  0xb5   :  { %2384 = vmatpush.bf16.msrb.mxu2 %v11930_v18  ;;  %v17152_v11 = vld [vmem:[#allocation2 + $0x6a4] sm:$0xf]  ;;  %v12231_v12 = vld [vmem:[#allocation2 + $0x6b0] sm:$0xf0]  ;;  %v12634_v14 = vor.u32 %v17252_v4, %v12631_v5 }
  0xb6   :  { %2397 = vmatpush.bf16.msrb.mxu3 %v12058_v23  ;;  %v17184_v13 = vld [vmem:[#allocation2 + $0x7a4] sm:$0xf]  ;;  %v12359_v17 = vld [vmem:[#allocation2 + $0x7b0] sm:$0xf0]  ;;  %v12234_v23 = vor.u32 %v17152_v11, %v12231_v12 }
  0xb7   :  { %v17216_v18 = vld [vmem:[#allocation2 + $0x8a4] sm:$0xf]  ;;  %v12487_v19 = vld [vmem:[#allocation2 + $0x8b0] sm:$0xf0]  ;;  %v12362_v24 = vor.u32 %v17184_v13, %v12359_v17 }
  0xb8   :  { %2359 = vmatpush.bf16.msrb.mxu0 %v11658_v30  ;;  %2372 = vmatpush.bf16.msrb.mxu1 %v11786_v33  ;;  %v17248_v21 = vld [vmem:[#allocation2 + $0x9a4] sm:$0xf]  ;;  %v12615_v22 = vld [vmem:[#allocation2 + $0x9b0] sm:$0xf0]  ;;  %v12490_v26 = vor.u32 %v17216_v18, %v12487_v19 }
  0xb9   :  { %2385 = vmatpush.bf16.msrb.mxu2 %v11914_v35  ;;  %v17148_v27 = vld [vmem:[#allocation2 + $0x684] sm:$0xf]  ;;  %v12215_v28 = vld [vmem:[#allocation2 + $0x690] sm:$0xf0]  ;;  %v12618_v30 = vor.u32 %v17248_v21, %v12615_v22 }
  0xba   :  { %2398 = vmatpush.bf16.msrb.mxu3 %v12042_v42  ;;  %v17180_v29 = vld [vmem:[#allocation2 + $0x784] sm:$0xf]  ;;  %v12343_v31 = vld [vmem:[#allocation2 + $0x790] sm:$0xf0]  ;;  %v12218_v39 = vor.u32 %v17148_v27, %v12215_v28 }
  0xbb   :  { %v17212_v32 = vld [vmem:[#allocation2 + $0x884] sm:$0xf]  ;;  %v12471_v33 = vld [vmem:[#allocation2 + $0x890] sm:$0xf0]  ;;  %v12346_v41 = vor.u32 %v17180_v29, %v12343_v31  ;;  %v16971_v31 = vld [vmem:[#allocation2 + $0xf4] sm:$0xf0] }
  0xbc   :  { %2360 = vmatpush.bf16.msrb.mxu0 %v11642_v49  ;;  %2373 = vmatpush.bf16.msrb.mxu1 %v11770_v53  ;;  %v17244_v35 = vld [vmem:[#allocation2 + $0x984] sm:$0xf]  ;;  %v12599_v36 = vld [vmem:[#allocation2 + $0x990] sm:$0xf0]  ;;  %v12474_v42 = vor.u32 %v17212_v32, %v12471_v33  ;;  %v11629_v32 = vld [vmem:[#allocation2 + $0x1e8] sm:$0xf] }
  0xbd   :  { %2386 = vmatpush.bf16.msrb.mxu2 %v11898_v54  ;;  %v17144_v43 = vld [vmem:[#allocation2 + $0x664] sm:$0xf]  ;;  %v12199_v44 = vld [vmem:[#allocation2 + $0x670] sm:$0xf0]  ;;  %v12602_v46 = vor.u32 %v17244_v35, %v12599_v36  ;;  %v17003_v35 = vld [vmem:[#allocation2 + $0x1f4] sm:$0xf0] }
  0xbe   :  { %2399 = vmatpush.bf16.msrb.mxu3 %v12026_v57  ;;  %v17176_v45 = vld [vmem:[#allocation2 + $0x764] sm:$0xf]  ;;  %v12327_v47 = vld [vmem:[#allocation2 + $0x770] sm:$0xf0]  ;;  %v12202_v52 = vor.u32 %v17144_v43, %v12199_v44  ;;  %v11757_v36 = vld [vmem:[#allocation2 + $0x2e8] sm:$0xf] }
  0xbf   :  { %2361 = vmatmul.bf16.vlgmr.msrb.gmra.mxu0 %v18848_v8  ;;  %2374 = vmatmul.bf16.vlgmr.msrb.gmra.mxu1 %v18855_v15  ;;  %v17208_v48 = vld [vmem:[#allocation2 + $0x864] sm:$0xf]  ;;  %v12455_v49 = vld [vmem:[#allocation2 + $0x870] sm:$0xf0]  ;;  %v12330_v53 = vor.u32 %v17176_v45, %v12327_v47  ;;  %v11885_v43 = vld [vmem:[#allocation2 + $0x3e8] sm:$0xf]  ;;  %v11630_v47 = vor.u32 %v17003_v35, %v11629_v32 }
  0xc0   :  { %2405 = vmatpush.bf16.msra.mxu0 %v12266_v58  ;;  %2418 = vmatpush.bf16.msra.mxu1 %v12394_v59  ;;  %v17240_v50 = vld [vmem:[#allocation2 + $0x964] sm:$0xf]  ;;  %v12583_v51 = vld [vmem:[#allocation2 + $0x970] sm:$0xf0]  ;;  %v12458_v54 = vor.u32 %v17208_v48, %v12455_v49  ;;  %v17067_v44 = vld [vmem:[#allocation2 + $0x3f4] sm:$0xf0] }
  0xc1   :  { %2431 = vmatpush.bf16.msra.mxu2 %v12522_v60  ;;  %2400 = vmatmul.bf16.vlgmr.msrb.gmra.mxu3 %v18884_v40  ;;  %v17140_v55 = vld [vmem:[#allocation2 + $0x644] sm:$0xf]  ;;  %v12183_v56 = vld [vmem:[#allocation2 + $0x650] sm:$0xf0]  ;;  %v12586_v58 = vor.u32 %v17240_v50, %v12583_v51  ;;  %v11485_v49 = vld [vmem:[#allocation2 + $0xc8] sm:$0xf] }
  0xc2   :  { %2444 = vmatpush.bf16.msra.mxu3 %v12650_v0  ;;  %2387 = vmatmul.bf16.vlgmr.msrb.gmra.mxu2 %v18880_v37  ;;  %v17172_v57 = vld [vmem:[#allocation2 + $0x744] sm:$0xf]  ;;  %v12311_v59 = vld [vmem:[#allocation2 + $0x750] sm:$0xf0]  ;;  %v12186_v0 = vor.u32 %v17140_v55, %v12183_v56  ;;  %v16967_v50 = vld [vmem:[#allocation2 + $0xd4] sm:$0xf0] }
  0xc3   :  { %v17204_v60 = vld [vmem:[#allocation2 + $0x844] sm:$0xf]  ;;  %v12439_v61 = vld [vmem:[#allocation2 + $0x850] sm:$0xf0]  ;;  %v12314_v1 = vor.u32 %v17172_v57, %v12311_v59  ;;  %v11613_v51 = vld [vmem:[#allocation2 + $0x1c8] sm:$0xf] }
  0xc4   :  { %2406 = vmatpush.bf16.msra.mxu0 %v12250_v6  ;;  %2419 = vmatpush.bf16.msra.mxu1 %v12378_v7  ;;  %v17236_v62 = vld [vmem:[#allocation2 + $0x944] sm:$0xf]  ;;  %v12567_v63 = vld [vmem:[#allocation2 + $0x950] sm:$0xf0]  ;;  %v12442_v2 = vor.u32 %v17204_v60, %v12439_v61  ;;  %v17031_v55 = vld [vmem:[#allocation2 + $0x2d4] sm:$0xf0] }
  0xc5   :  { %2432 = vmatpush.bf16.msra.mxu2 %v12506_v10  ;;  %v17136_v3 = vld [vmem:[#allocation2 + $0x624] sm:$0xf]  ;;  %v12167_v4 = vld [vmem:[#allocation2 + $0x630] sm:$0xf0]  ;;  %v12570_v6 = vor.u32 %v17236_v62, %v12567_v63  ;;  %v11869_v56 = vld [vmem:[#allocation2 + $0x3c8] sm:$0xf] }
  0xc6   :  { %2445 = vmatpush.bf16.msra.mxu3 %v12634_v14  ;;  %v17168_v5 = vld [vmem:[#allocation2 + $0x724] sm:$0xf]  ;;  %v12295_v7 = vld [vmem:[#allocation2 + $0x730] sm:$0xf0]  ;;  %v12170_v14 = vor.u32 %v17136_v3, %v12167_v4  ;;  %v17063_v57 = vld [vmem:[#allocation2 + $0x3d4] sm:$0xf0] }
  0xc7   :  { %v17200_v10 = vld [vmem:[#allocation2 + $0x824] sm:$0xf]  ;;  %v12423_v11 = vld [vmem:[#allocation2 + $0x830] sm:$0xf0]  ;;  %v12298_v19 = vor.u32 %v17168_v5, %v12295_v7  ;;  %v11469_v61 = vld [vmem:[#allocation2 + $0xa8] sm:$0xf] }
  0xc8   :  { %2407 = vmatpush.bf16.msra.mxu0 %v12234_v23  ;;  %2420 = vmatpush.bf16.msra.mxu1 %v12362_v24  ;;  %v17232_v12 = vld [vmem:[#allocation2 + $0x924] sm:$0xf]  ;;  %v12551_v13 = vld [vmem:[#allocation2 + $0x930] sm:$0xf0]  ;;  %v12426_v21 = vor.u32 %v17200_v10, %v12423_v11  ;;  %v16963_v62 = vld [vmem:[#allocation2 + $0xb4] sm:$0xf0] }
  0xc9   :  { %2433 = vmatpush.bf16.msra.mxu2 %v12490_v26  ;;  %v17132_v17 = vld [vmem:[#allocation2 + $0x604] sm:$0xf]  ;;  %v12151_v18 = vld [vmem:[#allocation2 + $0x610] sm:$0xf0]  ;;  %v12554_v26 = vor.u32 %v17232_v12, %v12551_v13  ;;  %v11597_v63 = vld [vmem:[#allocation2 + $0x1a8] sm:$0xf] }
  0xca   :  { %2446 = vmatpush.bf16.msra.mxu3 %v12618_v30  ;;  %v17164_v22 = vld [vmem:[#allocation2 + $0x704] sm:$0xf]  ;;  %v12279_v23 = vld [vmem:[#allocation2 + $0x710] sm:$0xf0]  ;;  %v11501_v30 = vld [vmem:[#allocation2 + $0xe8] sm:$0xf]  ;;  %v12154_v33 = vor.u32 %v17132_v17, %v12151_v18 }
  0xcb   :  { %v17196_v24 = vld [vmem:[#allocation2 + $0x804] sm:$0xf]  ;;  %v12407_v27 = vld [vmem:[#allocation2 + $0x810] sm:$0xf0]  ;;  %v17027_v3 = vld [vmem:[#allocation2 + $0x2b4] sm:$0xf0] }
  0xcc   :  { %2408 = vmatpush.bf16.msra.mxu0 %v12218_v39  ;;  %2421 = vmatpush.bf16.msra.mxu1 %v12346_v41  ;;  %v17228_v28 = vld [vmem:[#allocation2 + $0x904] sm:$0xf]  ;;  %v12535_v29 = vld [vmem:[#allocation2 + $0x910] sm:$0xf0]  ;;  %v17035_v39 = vld [vmem:[#allocation2 + $0x2f4] sm:$0xf0]  ;;  %v12282_v41 = vor.u32 %v17164_v22, %v12279_v23 }
  0xcd   :  { %2434 = vmatpush.bf16.msra.mxu2 %v12474_v42  ;;  %v12410_v42 = vor.u32 %v17196_v24, %v12407_v27  ;;  %v12538_v45 = vor.u32 %v17228_v28, %v12535_v29  ;;  %v11758_v48 = vor.u32 %v17035_v39, %v11757_v36  ;;  %v11853_v4 = vld [vmem:[#allocation2 + $0x3a8] sm:$0xf]  ;;  %v17059_v5 = vld [vmem:[#allocation2 + $0x3b4] sm:$0xf0] }
  0xce   :  { %2447 = vmatpush.bf16.msra.mxu3 %v12602_v46  ;;  %v11502_v46 = vor.u32 %v16971_v31, %v11501_v30  ;;  %v11453_v7 = vld [vmem:[#allocation2 + $0x88] sm:$0xf]  ;;  %v16959_v12 = vld [vmem:[#allocation2 + $0x94] sm:$0xf0]  ;;  %v11854_v17 = vor.u32 %v17059_v5, %v11853_v4 }
  0xcf   :  { %v11581_v13 = vld [vmem:[#allocation2 + $0x188] sm:$0xf]  ;;  %v17055_v23 = vld [vmem:[#allocation2 + $0x394] sm:$0xf0]  ;;  %v11454_v24 = vor.u32 %v16959_v12, %v11453_v7 }
  0xd0   :  { %2409 = vmatpush.bf16.msra.mxu0 %v12202_v52  ;;  %2422 = vmatpush.bf16.msra.mxu1 %v12330_v53  ;;  %v11886_v52 = vor.u32 %v17067_v44, %v11885_v43  ;;  %v16999_v53 = vld [vmem:[#allocation2 + $0x1d4] sm:$0xf0]  ;;  %v11709_v18 = vld [vmem:[#allocation2 + $0x288] sm:$0xf] }
  0xd1   :  { %2435 = vmatpush.bf16.msra.mxu2 %v12458_v54  ;;  %v11741_v54 = vld [vmem:[#allocation2 + $0x2c8] sm:$0xf]  ;;  %v11614_v59 = vor.u32 %v16999_v53, %v11613_v51  ;;  %v16955_v29 = vld [vmem:[#allocation2 + $0x74] sm:$0xf0] }
  0xd2   :  { %2448 = vmatpush.bf16.msra.mxu3 %v12586_v58  ;;  %v11486_v58 = vor.u32 %v16967_v50, %v11485_v49  ;;  %v11742_v60 = vor.u32 %v17031_v55, %v11741_v54  ;;  %v11837_v22 = vld [vmem:[#allocation2 + $0x388] sm:$0xf]  ;;  %v17019_v36 = vld [vmem:[#allocation2 + $0x274] sm:$0xf0] }
  0xd3   :  { %v11565_v30 = vld [vmem:[#allocation2 + $0x168] sm:$0xf]  ;;  %v11838_v32 = vor.u32 %v17055_v23, %v11837_v22  ;;  %v16983_v51 = vld [vmem:[#allocation2 + $0x154] sm:$0xf0] }
  0xd4   :  { %2410 = vmatpush.bf16.msra.mxu0 %v12186_v0  ;;  %2423 = vmatpush.bf16.msra.mxu1 %v12314_v1  ;;  %v11870_v0 = vor.u32 %v17063_v57, %v11869_v56  ;;  %v16995_v1 = vld [vmem:[#allocation2 + $0x1b4] sm:$0xf0]  ;;  %v11693_v35 = vld [vmem:[#allocation2 + $0x268] sm:$0xf] }
  0xd5   :  { %2436 = vmatpush.bf16.msra.mxu2 %v12442_v2  ;;  %v11725_v2 = vld [vmem:[#allocation2 + $0x2a8] sm:$0xf]  ;;  %v11598_v10 = vor.u32 %v16995_v1, %v11597_v63  ;;  %v17015_v53 = vld [vmem:[#allocation2 + $0x254] sm:$0xf0] }
  0xd6   :  { %2449 = vmatpush.bf16.msra.mxu3 %v12570_v6  ;;  %v11470_v6 = vor.u32 %v16963_v62, %v11469_v61  ;;  %v11726_v11 = vor.u32 %v17027_v3, %v11725_v2  ;;  %v11821_v39 = vld [vmem:[#allocation2 + $0x368] sm:$0xf]  ;;  %v17047_v55 = vld [vmem:[#allocation2 + $0x354] sm:$0xf0] }
  0xd7   :  { %v11805_v54 = vld [vmem:[#allocation2 + $0x348] sm:$0xf]  ;;  %v16947_v61 = vld [vmem:[#allocation2 + $0x34] sm:$0xf0] }
  0xd8   :  { %2411 = vmatpush.bf16.msra.mxu0 %v12170_v14  ;;  %2424 = vmatpush.bf16.msra.mxu1 %v12298_v19  ;;  %v16991_v14 = vld [vmem:[#allocation2 + $0x194] sm:$0xf0]  ;;  %v11533_v62 = vld [vmem:[#allocation2 + $0x128] sm:$0xf] }
  0xd9   :  { %2437 = vmatpush.bf16.msra.mxu2 %v12426_v21  ;;  %v17023_v19 = vld [vmem:[#allocation2 + $0x294] sm:$0xf0]  ;;  %v18912_v21 = vld [vmem:[#allocation4] sm:$0xf]  ;;  %v11582_v27 = vor.u32 %v16991_v14, %v11581_v13  ;;  %v11661_v2 = vld [vmem:[#allocation2 + $0x228] sm:$0xf] }
  0xda   :  { %2450 = vmatpush.bf16.msra.mxu3 %v12554_v26  ;;  %v11437_v26 = vld [vmem:[#allocation2 + $0x68] sm:$0xf]  ;;  %v11710_v28 = vor.u32 %v17023_v19, %v11709_v18  ;;  %v589_v31 = vperm.slane %v18912_v21, 0  ;;  %v16979_v1 = vld [vmem:[#allocation2 + $0x134] sm:$0xf0] }
  0xdb   :  { %v2219_v57 = vpop.f32.mrf.mxu1  ;;  %v17011_v3 = vld [vmem:[#allocation2 + $0x234] sm:$0xf0]  ;;  %v11789_v5 = vld [vmem:[#allocation2 + $0x328] sm:$0xf] }
  0xdc   :  { %2412 = vmatpush.bf16.msra.mxu0 %v12154_v33  ;;  %2425 = vmatpush.bf16.msra.mxu1 %v12282_v41  ;;  %v16987_v33 = vld [vmem:[#allocation2 + $0x174] sm:$0xf0]  ;;  %v11389_v12 = vld [vmem:[#allocation2 + $0x8] sm:$0xf]  ;;  %v11662_v18 = vor.u32 %v17011_v3, %v11661_v2 }
  0xdd   :  { %2438 = vmatpush.bf16.msra.mxu2 %v12410_v42  ;;  %v17051_v41 = vld [vmem:[#allocation2 + $0x374] sm:$0xf0]  ;;  %v11438_v42 = vor.u32 %v16955_v29, %v11437_v26  ;;  %v11566_v44 = vor.u32 %v16987_v33, %v11565_v30  ;;  %v11517_v19 = vld [vmem:[#allocation2 + $0x108] sm:$0xf] }
  0xde   :  { %2451 = vmatpush.bf16.msra.mxu3 %v12538_v45  ;;  %v11694_v45 = vor.u32 %v17019_v36, %v11693_v35  ;;  %v11822_v50 = vor.u32 %v17051_v41, %v11821_v39  ;;  %v16943_v13 = vld [vmem:[#allocation2 + $0x14] sm:$0xf0]  ;;  %v11645_v23 = vld [vmem:[#allocation2 + $0x208] sm:$0xf] }
  0xdf   :  { %2413 = vmatmul.bf16.vlgmr.msra.gmra.mxu0 %v18878_v34  ;;  %2426 = vmatmul.bf16.vlgmr.msra.gmra.mxu1 %v18882_v38  ;;  %v16975_v22 = vld [vmem:[#allocation2 + $0x114] sm:$0xf0]  ;;  %v12013_v30 = vld [vmem:[#allocation2 + $0x4e8] sm:$0xf]  ;;  %v11390_v33 = vor.u32 %v16943_v13, %v11389_v12 }
  0xe0   :  { %2457 = vmatpush.bf16.msrb.mxu0 %v11502_v46  ;;  %2470 = vmatpush.bf16.msrb.mxu1 %v11630_v47  ;;  %v11421_v46 = vld [vmem:[#allocation2 + $0x48] sm:$0xf]  ;;  %v16951_v47 = vld [vmem:[#allocation2 + $0x54] sm:$0xf0] }
  0xe1   :  { %2483 = vmatpush.bf16.msrb.mxu2 %v11758_v48  ;;  %2452 = vmatmul.bf16.vlgmr.msra.gmra.mxu3 %v18898_v20  ;;  %v11549_v48 = vld [vmem:[#allocation2 + $0x148] sm:$0xf]  ;;  %v11422_v56 = vor.u32 %v16951_v47, %v11421_v46  ;;  %v17039_v29 = vld [vmem:[#allocation2 + $0x314] sm:$0xf0] }
  0xe2   :  { %2496 = vmatpush.bf16.msrb.mxu3 %v11886_v52  ;;  %2439 = vmatmul.bf16.vlgmr.msra.gmra.mxu2 %v18896_v16  ;;  %v11677_v52 = vld [vmem:[#allocation2 + $0x248] sm:$0xf]  ;;  %v17131_v35 = vld [vmem:[#allocation2 + $0x5f4] sm:$0xf0] }
  0xe3   :  { %v12269_v36 = vld [vmem:[#allocation2 + $0x6e8] sm:$0xf]  ;;  %v17163_v39 = vld [vmem:[#allocation2 + $0x6f4] sm:$0xf0]  ;;  %v2221_v41 = vpop.f32.mrf.mxu1 }
  0xe4   :  { %2458 = vmatpush.bf16.msrb.mxu0 %v11486_v58  ;;  %2471 = vmatpush.bf16.msrb.mxu1 %v11614_v59  ;;  %v11550_v58 = vor.u32 %v16983_v51, %v11549_v48  ;;  %v11678_v59 = vor.u32 %v17015_v53, %v11677_v52  ;;  %v11997_v51 = vld [vmem:[#allocation2 + $0x4c8] sm:$0xf]  ;;  %v17095_v52 = vld [vmem:[#allocation2 + $0x4d4] sm:$0xf0] }
  0xe5   :  { %2484 = vmatpush.bf16.msrb.mxu2 %v11742_v60  ;;  %v11405_v60 = vld [vmem:[#allocation2 + $0x28] sm:$0xf] }
  0xe6   :  { %2497 = vmatpush.bf16.msrb.mxu3 %v11870_v0  ;;  %v11806_v0 = vor.u32 %v17047_v55, %v11805_v54  ;;  %v12125_v53 = vld [vmem:[#allocation2 + $0x5c8] sm:$0xf] }
  0xe7   :  { %v12109_v2 = vld [vmem:[#allocation2 + $0x5a8] sm:$0xf] }
  0xe8   :  { %2459 = vmatpush.bf16.msrb.mxu0 %v11470_v6  ;;  %2472 = vmatpush.bf16.msrb.mxu1 %v11598_v10  ;;  %v2206_v43 = vpop.f32.mrf.mxu0  ;;  %v17043_v6 = vld [vmem:[#allocation2 + $0x334] sm:$0xf0]  ;;  %v2245_v10 = vpop.f32.mrf.mxu3 }
  0xe9   :  { %2485 = vmatpush.bf16.msrb.mxu2 %v11726_v11  ;;  %v2207_v49 = vadd.f32 %v2206_v43, %v589_v31  ;;  %v11406_v11 = vor.u32 %v16947_v61, %v11405_v60  ;;  %v11790_v26 = vor.u32 %v17043_v6, %v11789_v5  ;;  %v17099_v31 = vld [vmem:[#allocation2 + $0x4f4] sm:$0xf0]  ;;  %v11998_v61 = vor.u32 %v17095_v52, %v11997_v51  ;;  %v12237_v5 = vld [vmem:[#allocation2 + $0x6a8] sm:$0xf] }
  0xea   :  { %2498 = vmatpush.bf16.msrb.mxu3 %v11854_v17  ;;  %v11534_v17 = vor.u32 %v16979_v1, %v11533_v62  ;;  %v12014_v47 = vor.u32 %v17099_v31, %v12013_v30  ;;  %v17191_v60 = vld [vmem:[#allocation2 + $0x7d4] sm:$0xf0]  ;;  %v11933_v52 = vld [vmem:[#allocation2 + $0x448] sm:$0xf] }
  0xeb   :  { %v2220_v63 = vadd.f32 %v2219_v57, %v2207_v49  ;;  %v12253_v57 = vld [vmem:[#allocation2 + $0x6c8] sm:$0xf]  ;;  %v17091_v1 = vld [vmem:[#allocation2 + $0x4b4] sm:$0xf0] }
  0xec   :  { %2460 = vmatpush.bf16.msrb.mxu0 %v11454_v24  ;;  %2473 = vmatpush.bf16.msrb.mxu1 %v11582_v27  ;;  %v17007_v27 = vld [vmem:[#allocation2 + $0x214] sm:$0xf0] }
  0xed   :  { %2486 = vmatpush.bf16.msrb.mxu2 %v11710_v28  ;;  %v2232_v4 = vpop.f32.mrf.mxu2  ;;  %v11773_v28 = vld [vmem:[#allocation2 + $0x308] sm:$0xf]  ;;  %v11646_v43 = vor.u32 %v17007_v27, %v11645_v23  ;;  %v17155_v6 = vld [vmem:[#allocation2 + $0x6b4] sm:$0xf0] }
  0xee   :  { %2499 = vmatpush.bf16.msrb.mxu3 %v11838_v32  ;;  %v2233_v7 = vadd.f32 %v2232_v4, %v2220_v63  ;;  %v12141_v32 = vld [vmem:[#allocation2 + $0x5e8] sm:$0xf]  ;;  %v11774_v46 = vor.u32 %v17039_v29, %v11773_v28  ;;  %v17123_v4 = vld [vmem:[#allocation2 + $0x5b4] sm:$0xf0]  ;;  %v12238_v13 = vor.u32 %v17155_v6, %v12237_v5 }
  0xef   :  { %v12142_v49 = vor.u32 %v17131_v35, %v12141_v32  ;;  %v12110_v12 = vor.u32 %v17123_v4, %v12109_v2  ;;  %v12221_v23 = vld [vmem:[#allocation2 + $0x688] sm:$0xf]  ;;  %v17183_v28 = vld [vmem:[#allocation2 + $0x794] sm:$0xf0] }
  0xf0   :  { %2461 = vmatpush.bf16.msrb.mxu0 %v11438_v42  ;;  %2474 = vmatpush.bf16.msrb.mxu1 %v11566_v44  ;;  %v2208_v14 = vpop.f32.mrf.mxu0  ;;  %v18915_v24 = vadd.f32 %v2245_v10, %v2233_v7  ;;  %v11518_v42 = vor.u32 %v16975_v22, %v11517_v19  ;;  %v12397_v44 = vld [vmem:[#allocation2 + $0x7e8] sm:$0xf]  ;;  %v2247_v54 = vpop.f32.mrf.mxu3  ;;  %v17187_v10 = vld [vmem:[#allocation2 + $0x7b4] sm:$0xf0] }
  0xf1   :  { %2487 = vmatpush.bf16.msrb.mxu2 %v11694_v45  ;;  %v17195_v45 = vld [vmem:[#allocation2 + $0x7f4] sm:$0xf0]  ;;  %v12365_v7 = vld [vmem:[#allocation2 + $0x7a8] sm:$0xf] }
  0xf2   :  { %2500 = vmatpush.bf16.msrb.mxu3 %v11822_v50  ;;  %v12270_v50 = vor.u32 %v17163_v39, %v12269_v36  ;;  %v12398_v55 = vor.u32 %v17195_v45, %v12397_v44  ;;  %v11965_v14 = vld [vmem:[#allocation2 + $0x488] sm:$0xf]  ;;  %v12366_v19 = vor.u32 %v17187_v10, %v12365_v7  ;;  %v17119_v22 = vld [vmem:[#allocation2 + $0x594] sm:$0xf0] }
  0xf3   :  { %v12349_v27 = vld [vmem:[#allocation2 + $0x788] sm:$0xf]  ;;  %v17083_v35 = vld [vmem:[#allocation2 + $0x474] sm:$0xf0] }
  0xf4   :  { %2462 = vmatpush.bf16.msrb.mxu0 %v11422_v56  ;;  %2475 = vmatpush.bf16.msrb.mxu1 %v11550_v58  ;;  %v17127_v56 = vld [vmem:[#allocation2 + $0x5d4] sm:$0xf0]  ;;  %v12077_v36 = vld [vmem:[#allocation2 + $0x568] sm:$0xf] }
  0xf5   :  { %2488 = vmatpush.bf16.msrb.mxu2 %v11678_v59  ;;  %v2234_v48 = vpop.f32.mrf.mxu2  ;;  %v17159_v58 = vld [vmem:[#allocation2 + $0x6d4] sm:$0xf0]  ;;  %v12381_v59 = vld [vmem:[#allocation2 + $0x7c8] sm:$0xf]  ;;  %v12126_v62 = vor.u32 %v17127_v56, %v12125_v53 }
  0xf6   :  { %2501 = vmatpush.bf16.msrb.mxu3 %v11806_v0  ;;  %v12254_v63 = vor.u32 %v17159_v58, %v12253_v57  ;;  %v11981_v0 = vld [vmem:[#allocation2 + $0x4a8] sm:$0xf]  ;;  %v12382_v3 = vor.u32 %v17191_v60, %v12381_v59  ;;  %v17147_v45 = vld [vmem:[#allocation2 + $0x674] sm:$0xf0] }
  0xf7   :  { %v12205_v44 = vld [vmem:[#allocation2 + $0x668] sm:$0xf]  ;;  %v17079_v53 = vld [vmem:[#allocation2 + $0x454] sm:$0xf0] }
  0xf8   :  { %2463 = vmatpush.bf16.msrb.mxu0 %v11406_v11  ;;  %2476 = vmatpush.bf16.msrb.mxu1 %v11534_v17  ;;  %v11982_v11 = vor.u32 %v17091_v1, %v11981_v0  ;;  %v17087_v17 = vld [vmem:[#allocation2 + $0x494] sm:$0xf0]  ;;  %v12206_v51 = vor.u32 %v17147_v45, %v12205_v44  ;;  %v12061_v54 = vld [vmem:[#allocation2 + $0x548] sm:$0xf]  ;;  %v16969_v45 = vld [vmem:[#allocation2 + $0xec] sm:$0xf] }
  0xf9   :  { %2489 = vmatpush.bf16.msrb.mxu2 %v11662_v18  ;;  %v12093_v18 = vld [vmem:[#allocation2 + $0x588] sm:$0xf]  ;;  %v11966_v29 = vor.u32 %v17087_v17, %v11965_v14  ;;  %v17111_v56 = vld [vmem:[#allocation2 + $0x554] sm:$0xf0] }
  0xfa   :  { %2502 = vmatpush.bf16.msrb.mxu3 %v11790_v26  ;;  %v17151_v26 = vld [vmem:[#allocation2 + $0x694] sm:$0xf0]  ;;  %v12094_v31 = vor.u32 %v17119_v22, %v12093_v18  ;;  %v12189_v57 = vld [vmem:[#allocation2 + $0x648] sm:$0xf]  ;;  %v12062_v2 = vor.u32 %v17111_v56, %v12061_v54 }
  0xfb   :  { %v12222_v32 = vor.u32 %v17151_v26, %v12221_v23  ;;  %v17143_v58 = vld [vmem:[#allocation2 + $0x654] sm:$0xf0]  ;;  %v11917_v4 = vld [vmem:[#allocation2 + $0x428] sm:$0xf] }
  0xfc   :  { %2464 = vmatpush.bf16.msrb.mxu0 %v11390_v33  ;;  %2477 = vmatpush.bf16.msrb.mxu1 %v11518_v42  ;;  %v11949_v33 = vld [vmem:[#allocation2 + $0x468] sm:$0xf]  ;;  %v2271_v41 = vpop.f32.mrf.mxu1  ;;  %v12350_v42 = vor.u32 %v17183_v28, %v12349_v27  ;;  %v17075_v5 = vld [vmem:[#allocation2 + $0x434] sm:$0xf0] }
  0xfd   :  { %2490 = vmatpush.bf16.msrb.mxu2 %v11646_v43  ;;  %v17115_v43 = vld [vmem:[#allocation2 + $0x574] sm:$0xf0]  ;;  %v12045_v6 = vld [vmem:[#allocation2 + $0x528] sm:$0xf]  ;;  %v11918_v18 = vor.u32 %v17075_v5, %v11917_v4 }
  0xfe   :  { %2503 = vmatpush.bf16.msrb.mxu3 %v11774_v46  ;;  %v12333_v46 = vld [vmem:[#allocation2 + $0x768] sm:$0xf]  ;;  %v17171_v17 = vld [vmem:[#allocation2 + $0x734] sm:$0xf0] }
  0xff   :  { %2465 = vmatmul.bf16.vlgmr.msrb.gmra.mxu0 %v18850_v9  ;;  %2478 = vmatmul.bf16.vlgmr.msrb.gmra.mxu1 %v18863_v25  ;;  %v12301_v14 = vld [vmem:[#allocation2 + $0x728] sm:$0xf]  ;;  %v17071_v22 = vld [vmem:[#allocation2 + $0x414] sm:$0xf0] }
 0x100   :  { %2509 = vmatpush.bf16.msra.mxu0 %v12014_v47  ;;  %2522 = vmatpush.bf16.msra.mxu1 %v12142_v49  ;;  %v2258_v30 = vpop.f32.mrf.mxu0  ;;  %v17179_v47 = vld [vmem:[#allocation2 + $0x774] sm:$0xf0]  ;;  %v11950_v49 = vor.u32 %v17083_v35, %v11949_v33  ;;  %v12029_v27 = vld [vmem:[#allocation2 + $0x508] sm:$0xf] }
 0x101   :  { %2535 = vmatpush.bf16.msra.mxu2 %v12270_v50  ;;  %2504 = vmatmul.bf16.vlgmr.msrb.gmra.mxu3 %v18855_v15  ;;  %v2259_v39 = vadd.f32 %v2258_v30, %v18915_v24  ;;  %v12078_v50 = vor.u32 %v17115_v43, %v12077_v36  ;;  %v12334_v24 = vor.u32 %v17179_v47, %v12333_v46  ;;  %v17103_v28 = vld [vmem:[#allocation2 + $0x514] sm:$0xf0]  ;;  %v12285_v33 = vld [vmem:[#allocation2 + $0x708] sm:$0xf]  ;;  %v11503_v46 = vld [vmem:[#allocation2 + $0xf8] sm:$0xf0] }
 0x102   :  { %2548 = vmatpush.bf16.msra.mxu3 %v12398_v55  ;;  %2491 = vmatmul.bf16.vlgmr.msrb.gmra.mxu2 %v18848_v8  ;;  %v17167_v35 = vld [vmem:[#allocation2 + $0x714] sm:$0xf0]  ;;  %v12030_v47 = vor.u32 %v17103_v28, %v12029_v27  ;;  %v11506_v54 = vor.u32 %v16969_v45, %v11503_v46  ;;  %v12637_v56 = vld [vmem:[#allocation2 + $0x9c8] sm:$0xf]  ;;  %v16957_v28 = vld [vmem:[#allocation2 + $0x8c] sm:$0xf] }
 0x103   :  { %v2272_v48 = vadd.f32 %v2271_v41, %v2259_v39  ;;  %v12525_v39 = vld [vmem:[#allocation2 + $0x8e8] sm:$0xf]  ;;  %v17227_v41 = vld [vmem:[#allocation2 + $0x8f4] sm:$0xf0] }
 0x104   :  { %2510 = vmatpush.bf16.msra.mxu0 %v11998_v61  ;;  %2523 = vmatpush.bf16.msra.mxu1 %v12126_v62  ;;  %v2297_v60 = vpop.f32.mrf.mxu3  ;;  %v12317_v61 = vld [vmem:[#allocation2 + $0x748] sm:$0xf]  ;;  %v17175_v62 = vld [vmem:[#allocation2 + $0x754] sm:$0xf0]  ;;  %v2273_v7 = vpop.f32.mrf.mxu1 }
 0x105   :  { %2536 = vmatpush.bf16.msra.mxu2 %v12254_v63  ;;  %v2284_v55 = vpop.f32.mrf.mxu2  ;;  %v11934_v63 = vor.u32 %v17079_v53, %v11933_v52  ;;  %v12318_v10 = vor.u32 %v17175_v62, %v12317_v61  ;;  %v17259_v44 = vld [vmem:[#allocation2 + $0x9f4] sm:$0xf0]  ;;  %v12526_v52 = vor.u32 %v17227_v41, %v12525_v39  ;;  %v16997_v61 = vld [vmem:[#allocation2 + $0x1cc] sm:$0xf]  ;;  %v11615_v62 = vld [vmem:[#allocation2 + $0x1d8] sm:$0xf0] }
 0x106   :  { %2549 = vmatpush.bf16.msra.mxu3 %v12382_v3  ;;  %v2285_v59 = vadd.f32 %v2284_v55, %v2272_v48  ;;  %v12190_v3 = vor.u32 %v17143_v58, %v12189_v57  ;;  %v12509_v55 = vld [vmem:[#allocation2 + $0x8c8] sm:$0xf]  ;;  %v17255_v58 = vld [vmem:[#allocation2 + $0x9d4] sm:$0xf0] }
 0x107   :  { %v17219_v4 = vld [vmem:[#allocation2 + $0x8b4] sm:$0xf0]  ;;  %v12621_v5 = vld [vmem:[#allocation2 + $0x9a8] sm:$0xf] }
 0x108   :  { %2511 = vmatpush.bf16.msra.mxu0 %v11982_v11  ;;  %2524 = vmatpush.bf16.msra.mxu1 %v12110_v12  ;;  %v18922_v0 = vadd.f32 %v2297_v60, %v2285_v59  ;;  %v2260_v1 = vpop.f32.mrf.mxu0  ;;  %v17107_v11 = vld [vmem:[#allocation2 + $0x534] sm:$0xf0]  ;;  %v12173_v12 = vld [vmem:[#allocation2 + $0x628] sm:$0xf]  ;;  %v16965_v59 = vld [vmem:[#allocation2 + $0xcc] sm:$0xf] }
 0x109   :  { %2537 = vmatpush.bf16.msra.mxu2 %v12238_v13  ;;  %v17139_v13 = vld [vmem:[#allocation2 + $0x634] sm:$0xf0]  ;;  %v12046_v23 = vor.u32 %v17107_v11, %v12045_v6  ;;  %v11487_v60 = vld [vmem:[#allocation2 + $0xd8] sm:$0xf0]  ;;  %v12638_v1 = vor.u32 %v17255_v58, %v12637_v56  ;;  %v11618_v6 = vor.u32 %v16997_v61, %v11615_v62  ;;  %v12573_v56 = vld [vmem:[#allocation2 + $0x948] sm:$0xf] }
 0x10a   :  { %2550 = vmatpush.bf16.msra.mxu3 %v12366_v19  ;;  %v11901_v19 = vld [vmem:[#allocation2 + $0x408] sm:$0xf]  ;;  %v12174_v26 = vor.u32 %v17139_v13, %v12173_v12  ;;  %v17251_v7 = vld [vmem:[#allocation2 + $0x9b4] sm:$0xf0]  ;;  %v11471_v11 = vld [vmem:[#allocation2 + $0xb8] sm:$0xf0] }
 0x10b   :  { %v11902_v43 = vor.u32 %v17071_v22, %v11901_v19  ;;  %v16993_v12 = vld [vmem:[#allocation2 + $0x1ac] sm:$0xf]  ;;  %v11599_v13 = vld [vmem:[#allocation2 + $0x1b8] sm:$0xf0]  ;;  %v12477_v19 = vld [vmem:[#allocation2 + $0x888] sm:$0xf] }
 0x10c   :  { %2512 = vmatpush.bf16.msra.mxu0 %v11966_v29  ;;  %2525 = vmatpush.bf16.msra.mxu1 %v12094_v31  ;;  %v12157_v29 = vld [vmem:[#allocation2 + $0x608] sm:$0xf]  ;;  %v12302_v31 = vor.u32 %v17171_v17, %v12301_v14  ;;  %v2299_v36 = vpop.f32.mrf.mxu3  ;;  %v12622_v17 = vor.u32 %v17251_v7, %v12621_v5  ;;  %v17215_v22 = vld [vmem:[#allocation2 + $0x894] sm:$0xf0]  ;;  %v16981_v62 = vld [vmem:[#allocation2 + $0x14c] sm:$0xf] }
 0x10d   :  { %2538 = vmatpush.bf16.msra.mxu2 %v12222_v32  ;;  %v2286_v30 = vpop.f32.mrf.mxu2  ;;  %v17135_v32 = vld [vmem:[#allocation2 + $0x614] sm:$0xf0]  ;;  %v12429_v7 = vld [vmem:[#allocation2 + $0x828] sm:$0xf] }
 0x10e   :  { %2551 = vmatpush.bf16.msra.mxu3 %v12350_v42  ;;  %v12653_v42 = vld [vmem:[#allocation2 + $0x9e8] sm:$0xf]  ;;  %v12158_v48 = vor.u32 %v17135_v32, %v12157_v29  ;;  %v17247_v27 = vld [vmem:[#allocation2 + $0x994] sm:$0xf0]  ;;  %v11455_v29 = vld [vmem:[#allocation2 + $0x98] sm:$0xf0] }
 0x10f   :  { %v12654_v53 = vor.u32 %v17259_v44, %v12653_v42  ;;  %v11583_v32 = vld [vmem:[#allocation2 + $0x198] sm:$0xf0]  ;;  %v11458_v41 = vor.u32 %v16957_v28, %v11455_v29  ;;  %v12461_v42 = vld [vmem:[#allocation2 + $0x868] sm:$0xf]  ;;  %v17239_v58 = vld [vmem:[#allocation2 + $0x954] sm:$0xf0] }
 0x110   :  { %2513 = vmatpush.bf16.msra.mxu0 %v11950_v49  ;;  %2526 = vmatpush.bf16.msra.mxu1 %v12078_v50  ;;  %v17001_v49 = vld [vmem:[#allocation2 + $0x1ec] sm:$0xf]  ;;  %v11631_v50 = vld [vmem:[#allocation2 + $0x1f8] sm:$0xf0]  ;;  %v12589_v44 = vld [vmem:[#allocation2 + $0x968] sm:$0xf]  ;;  %v12574_v5 = vor.u32 %v17239_v58, %v12573_v56 }
 0x111   :  { %2539 = vmatpush.bf16.msra.mxu2 %v12206_v51  ;;  %v12286_v51 = vor.u32 %v17167_v35, %v12285_v33  ;;  %v11634_v57 = vor.u32 %v17001_v49, %v11631_v50  ;;  %v12478_v35 = vor.u32 %v17215_v22, %v12477_v19  ;;  %v11439_v49 = vld [vmem:[#allocation2 + $0x78] sm:$0xf0]  ;;  %v16985_v50 = vld [vmem:[#allocation2 + $0x16c] sm:$0xf] }
 0x112   :  { %2552 = vmatpush.bf16.msra.mxu3 %v12334_v24  ;;  %v17223_v24 = vld [vmem:[#allocation2 + $0x8d4] sm:$0xf0]  ;;  %v16977_v19 = vld [vmem:[#allocation2 + $0x12c] sm:$0xf]  ;;  %v11535_v22 = vld [vmem:[#allocation2 + $0x138] sm:$0xf0] }
 0x113   :  { %v11743_v58 = vld [vmem:[#allocation2 + $0x2d8] sm:$0xf0] }
 0x114   :  { %2514 = vmatpush.bf16.msra.mxu0 %v11934_v63  ;;  %2527 = vmatpush.bf16.msra.mxu1 %v12062_v2  ;;  %v12510_v63 = vor.u32 %v17223_v24, %v12509_v55  ;;  %v11490_v2 = vor.u32 %v16965_v59, %v11487_v60  ;;  %v12445_v55 = vld [vmem:[#allocation2 + $0x848] sm:$0xf]  ;;  %v17207_v24 = vld [vmem:[#allocation2 + $0x854] sm:$0xf0]  ;;  %v16949_v59 = vld [vmem:[#allocation2 + $0x4c] sm:$0xf] }
 0x115   :  { %2540 = vmatpush.bf16.msra.mxu2 %v12190_v3  ;;  %v12493_v3 = vld [vmem:[#allocation2 + $0x8a8] sm:$0xf]  ;;  %v11423_v60 = vld [vmem:[#allocation2 + $0x58] sm:$0xf0] }
 0x116   :  { %2553 = vmatpush.bf16.msra.mxu3 %v12318_v10  ;;  %v16961_v10 = vld [vmem:[#allocation2 + $0xac] sm:$0xf]  ;;  %v12494_v14 = vor.u32 %v17219_v4, %v12493_v3  ;;  %v12446_v3 = vor.u32 %v17207_v24, %v12445_v55 }
 0x118   :  { %2515 = vmatpush.bf16.msra.mxu0 %v11918_v18  ;;  %2528 = vmatpush.bf16.msra.mxu1 %v12046_v23  ;;  %v11474_v18 = vor.u32 %v16961_v10, %v11471_v11  ;;  %v12605_v23 = vld [vmem:[#allocation2 + $0x988] sm:$0xf]  ;;  %v17203_v10 = vld [vmem:[#allocation2 + $0x834] sm:$0xf0] }
 0x119   :  { %2541 = vmatpush.bf16.msra.mxu2 %v12174_v26  ;;  %v11602_v26 = vor.u32 %v16993_v12, %v11599_v13  ;;  %v12606_v39 = vor.u32 %v17247_v27, %v12605_v23  ;;  %v12557_v11 = vld [vmem:[#allocation2 + $0x928] sm:$0xf]  ;;  %v12430_v23 = vor.u32 %v17203_v10, %v12429_v7  ;;  %v17199_v27 = vld [vmem:[#allocation2 + $0x814] sm:$0xf0]  ;;  %v17057_v7 = vld [vmem:[#allocation2 + $0x3ac] sm:$0xf] }
 0x11a   :  { %2554 = vmatpush.bf16.msra.mxu3 %v12302_v31  ;;  %v16989_v31 = vld [vmem:[#allocation2 + $0x18c] sm:$0xf] }
 0x11b   :  { %v11586_v45 = vor.u32 %v16989_v31, %v11583_v32  ;;  %v17231_v31 = vld [vmem:[#allocation2 + $0x914] sm:$0xf0]  ;;  %v16941_v32 = vld [vmem:[#allocation2 + $0xc] sm:$0xf] }
 0x11c   :  { %2516 = vmatpush.bf16.msra.mxu0 %v11902_v43  ;;  %2529 = vmatpush.bf16.msra.mxu1 %v12030_v47  ;;  %v2310_v30 = vpop.f32.mrf.mxu0  ;;  %v2323_v36 = vpop.f32.mrf.mxu1  ;;  %v17211_v43 = vld [vmem:[#allocation2 + $0x874] sm:$0xf0] }
 0x11d   :  { %2542 = vmatpush.bf16.msra.mxu2 %v12158_v48  ;;  %v2311_v33 = vadd.f32 %v2310_v30, %v18922_v0  ;;  %v17243_v47 = vld [vmem:[#allocation2 + $0x974] sm:$0xf0]  ;;  %v16953_v48 = vld [vmem:[#allocation2 + $0x6c] sm:$0xf]  ;;  %v590_v0 = vperm.slane %v18912_v21, 1 }
 0x11e   :  { %2555 = vmatpush.bf16.msra.mxu3 %v12286_v51  ;;  %v11567_v51 = vld [vmem:[#allocation2 + $0x178] sm:$0xf0]  ;;  %v12541_v30 = vld [vmem:[#allocation2 + $0x908] sm:$0xf] }
 0x11f   :  { %2517 = vmatmul.bf16.vlgmr.msra.gmra.mxu0 %v18880_v37  ;;  %2530 = vmatmul.bf16.vlgmr.msra.gmra.mxu1 %v18884_v40  ;;  %v18929_v46 = vadd.f32 %v2323_v36, %v2311_v33  ;;  %v11538_v33 = vor.u32 %v16977_v19, %v11535_v22  ;;  %v16973_v36 = vld [vmem:[#allocation2 + $0x10c] sm:$0xf] }
 0x120   :  { %2561 = vmatpush.bf16.msrb.mxu0 %v12526_v52  ;;  %2574 = vmatpush.bf16.msrb.mxu1 %v12654_v53  ;;  %v12462_v52 = vor.u32 %v17211_v43, %v12461_v42  ;;  %v12590_v53 = vor.u32 %v17243_v47, %v12589_v44  ;;  %v17033_v42 = vld [vmem:[#allocation2 + $0x2ec] sm:$0xf]  ;;  %v11759_v43 = vld [vmem:[#allocation2 + $0x2f8] sm:$0xf0] }
 0x121   :  { %2587 = vmatpush.bf16.msrb.mxu2 %v11506_v54  ;;  %2556 = vmatmul.bf16.vlgmr.msra.gmra.mxu3 %v18882_v38  ;;  %v11442_v54 = vor.u32 %v16953_v48, %v11439_v49  ;;  %v17065_v44 = vld [vmem:[#allocation2 + $0x3ec] sm:$0xf]  ;;  %v11887_v48 = vld [vmem:[#allocation2 + $0x3f8] sm:$0xf0]  ;;  %v11762_v55 = vor.u32 %v17033_v42, %v11759_v43  ;;  %vm2717_vm0 = vcmp.ge.f32.partialorder %v18929_v46, 0.0 }
 0x122   :  { %2600 = vmatpush.bf16.msrb.mxu3 %v11634_v57  ;;  %2543 = vmatmul.bf16.vlgmr.msra.gmra.mxu2 %v18878_v34  ;;  %v11570_v57 = vor.u32 %v16985_v50, %v11567_v51  ;;  %v17097_v49 = vld [vmem:[#allocation2 + $0x4ec] sm:$0xf]  ;;  %v12015_v50 = vld [vmem:[#allocation2 + $0x4f8] sm:$0xf0]  ;;  %v12542_v51 = vor.u32 %v17231_v31, %v12541_v30  ;;  %v11890_v24 = vor.u32 %v17065_v44, %v11887_v48 }
 0x123   :  { %v12018_v56 = vor.u32 %v17097_v49, %v12015_v50  ;;  %v11839_v30 = vld [vmem:[#allocation2 + $0x398] sm:$0xf0]  ;;  %v17085_v31 = vld [vmem:[#allocation2 + $0x48c] sm:$0xf] }
 0x124   :  { %2562 = vmatpush.bf16.msrb.mxu0 %v12510_v63  ;;  %2575 = vmatpush.bf16.msrb.mxu1 %v12638_v1  ;;  %v11551_v63 = vld [vmem:[#allocation2 + $0x158] sm:$0xf0]  ;;  %v2312_v21 = vpop.f32.mrf.mxu0  ;;  %v2325_v4 = vpop.f32.mrf.mxu1  ;;  %v17049_v43 = vld [vmem:[#allocation2 + $0x36c] sm:$0xf] }
 0x125   :  { %2588 = vmatpush.bf16.msrb.mxu2 %v11490_v2  ;;  %v2336_v61 = vpop.f32.mrf.mxu2  ;;  %v2349_v2 = vpop.f32.mrf.mxu3  ;;  %v11554_v13 = vor.u32 %v16981_v62, %v11551_v63  ;;  %v17093_v62 = vld [vmem:[#allocation2 + $0x4cc] sm:$0xf]  ;;  %v11999_v63 = vld [vmem:[#allocation2 + $0x4d8] sm:$0xf0] }
 0x126   :  { %2601 = vmatpush.bf16.msrb.mxu3 %v11618_v6  ;;  %v2337_v1 = vadd.f32 %v2336_v61, %v590_v0  ;;  %v11426_v6 = vor.u32 %v16949_v59, %v11423_v60  ;;  %v17061_v59 = vld [vmem:[#allocation2 + $0x3cc] sm:$0xf]  ;;  %v11871_v61 = vld [vmem:[#allocation2 + $0x3d8] sm:$0xf0]  ;;  %v12002_v4 = vor.u32 %v17093_v62, %v11999_v63 }
 0x127   :  { %v11695_v42 = vld [vmem:[#allocation2 + $0x278] sm:$0xf0]  ;;  %v17081_v48 = vld [vmem:[#allocation2 + $0x46c] sm:$0xf] }
 0x128   :  { %2563 = vmatpush.bf16.msrb.mxu0 %v12494_v14  ;;  %2576 = vmatpush.bf16.msrb.mxu1 %v12622_v17  ;;  %v18932_v12 = vadd.f32 %v2349_v2, %v2337_v1  ;;  %v17235_v14 = vld [vmem:[#allocation2 + $0x934] sm:$0xf0]  ;;  %v16945_v17 = vld [vmem:[#allocation2 + $0x2c] sm:$0xf]  ;;  %v12127_v2 = vld [vmem:[#allocation2 + $0x5d8] sm:$0xf0] }
 0x129   :  { %2589 = vmatpush.bf16.msrb.mxu2 %v11474_v18  ;;  %v11407_v18 = vld [vmem:[#allocation2 + $0x38] sm:$0xf0]  ;;  %v12558_v28 = vor.u32 %v17235_v14, %v12557_v11  ;;  %v17125_v1 = vld [vmem:[#allocation2 + $0x5cc] sm:$0xf] }
 0x12a   :  { %2602 = vmatpush.bf16.msrb.mxu3 %v11602_v26  ;;  %v12413_v26 = vld [vmem:[#allocation2 + $0x808] sm:$0xf]  ;;  %v11410_v29 = vor.u32 %v16945_v17, %v11407_v18  ;;  %v12130_v10 = vor.u32 %v17125_v1, %v12127_v2  ;;  %v11855_v11 = vld [vmem:[#allocation2 + $0x3b8] sm:$0xf0]  ;;  %v17121_v17 = vld [vmem:[#allocation2 + $0x5ac] sm:$0xf] }
 0x12b   :  { %v12414_v47 = vor.u32 %v17199_v27, %v12413_v26  ;;  %v11983_v14 = vld [vmem:[#allocation2 + $0x4b8] sm:$0xf0]  ;;  %v11858_v22 = vor.u32 %v17057_v7, %v11855_v11  ;;  %v17021_v26 = vld [vmem:[#allocation2 + $0x28c] sm:$0xf] }
 0x12c   :  { %2564 = vmatpush.bf16.msrb.mxu0 %v12478_v35  ;;  %2577 = vmatpush.bf16.msrb.mxu1 %v12606_v39  ;;  %v11391_v35 = vld [vmem:[#allocation2 + $0x18] sm:$0xf0]  ;;  %v17113_v50 = vld [vmem:[#allocation2 + $0x56c] sm:$0xf] }
 0x12d   :  { %2590 = vmatpush.bf16.msrb.mxu2 %v11458_v41  ;;  %v11519_v39 = vld [vmem:[#allocation2 + $0x118] sm:$0xf0]  ;;  %v2338_v41 = vpop.f32.mrf.mxu2  ;;  %v11394_v0 = vor.u32 %v16941_v32, %v11391_v35  ;;  %v17109_v62 = vld [vmem:[#allocation2 + $0x54c] sm:$0xf] }
 0x12e   :  { %2603 = vmatpush.bf16.msrb.mxu3 %v11586_v45  ;;  %v2351_v45 = vpop.f32.mrf.mxu3  ;;  %v12111_v18 = vld [vmem:[#allocation2 + $0x5b8] sm:$0xf0]  ;;  %v17017_v41 = vld [vmem:[#allocation2 + $0x26c] sm:$0xf] }
 0x12f   :  { %v11711_v27 = vld [vmem:[#allocation2 + $0x298] sm:$0xf0] }
 0x130   :  { %2565 = vmatpush.bf16.msrb.mxu0 %v12462_v52  ;;  %2578 = vmatpush.bf16.msrb.mxu1 %v12590_v53  ;;  %v17129_v52 = vld [vmem:[#allocation2 + $0x5ec] sm:$0xf]  ;;  %v12143_v53 = vld [vmem:[#allocation2 + $0x5f8] sm:$0xf0] }
 0x131   :  { %2591 = vmatpush.bf16.msrb.mxu2 %v11442_v54  ;;  %v11522_v54 = vor.u32 %v16973_v36, %v11519_v39  ;;  %v12146_v60 = vor.u32 %v17129_v52, %v12143_v53  ;;  %v11967_v32 = vld [vmem:[#allocation2 + $0x498] sm:$0xf0] }
 0x132   :  { %2604 = vmatpush.bf16.msrb.mxu3 %v11570_v57  ;;  %v17029_v57 = vld [vmem:[#allocation2 + $0x2cc] sm:$0xf]  ;;  %v12095_v35 = vld [vmem:[#allocation2 + $0x598] sm:$0xf0]  ;;  %v11970_v39 = vor.u32 %v17085_v31, %v11967_v32 }
 0x133   :  { %v11746_v21 = vor.u32 %v17029_v57, %v11743_v58  ;;  %v11951_v49 = vld [vmem:[#allocation2 + $0x478] sm:$0xf0] }
 0x134   :  { %2566 = vmatpush.bf16.msrb.mxu0 %v12446_v3  ;;  %2579 = vmatpush.bf16.msrb.mxu1 %v12574_v5  ;;  %v11874_v3 = vor.u32 %v17061_v59, %v11871_v61  ;;  %v17025_v5 = vld [vmem:[#allocation2 + $0x2ac] sm:$0xf]  ;;  %v11954_v53 = vor.u32 %v17081_v48, %v11951_v49  ;;  %v11807_v58 = vld [vmem:[#allocation2 + $0x358] sm:$0xf0] }
 0x135   :  { %2592 = vmatpush.bf16.msrb.mxu2 %v11426_v6  ;;  %v11727_v6 = vld [vmem:[#allocation2 + $0x2b8] sm:$0xf0]  ;;  %v17077_v59 = vld [vmem:[#allocation2 + $0x44c] sm:$0xf] }
 0x136   :  { %2605 = vmatpush.bf16.msrb.mxu3 %v11554_v13  ;;  %v17089_v13 = vld [vmem:[#allocation2 + $0x4ac] sm:$0xf]  ;;  %v11730_v19 = vor.u32 %v17025_v5, %v11727_v6  ;;  %v12063_v63 = vld [vmem:[#allocation2 + $0x558] sm:$0xf0] }
 0x137   :  { %v11663_v5 = vld [vmem:[#allocation2 + $0x238] sm:$0xf0]  ;;  %v17041_v6 = vld [vmem:[#allocation2 + $0x32c] sm:$0xf] }
 0x138   :  { %2567 = vmatpush.bf16.msrb.mxu0 %v12430_v23  ;;  %2580 = vmatpush.bf16.msrb.mxu1 %v12558_v28  ;;  %v11986_v23 = vor.u32 %v17089_v13, %v11983_v14  ;;  %v17053_v28 = vld [vmem:[#allocation2 + $0x38c] sm:$0xf]  ;;  %v11791_v11 = vld [vmem:[#allocation2 + $0x338] sm:$0xf0] }
 0x139   :  { %2593 = vmatpush.bf16.msrb.mxu2 %v11410_v29  ;;  %v12114_v29 = vor.u32 %v17121_v17, %v12111_v18  ;;  %v17073_v13 = vld [vmem:[#allocation2 + $0x42c] sm:$0xf]  ;;  %v11919_v14 = vld [vmem:[#allocation2 + $0x438] sm:$0xf0] }
 0x13a   :  { %2606 = vmatpush.bf16.msrb.mxu3 %v11538_v33  ;;  %v17117_v33 = vld [vmem:[#allocation2 + $0x58c] sm:$0xf]  ;;  %v12047_v18 = vld [vmem:[#allocation2 + $0x538] sm:$0xf0] }
 0x13b   :  { %v12098_v45 = vor.u32 %v17117_v33, %v12095_v35  ;;  %v17105_v17 = vld [vmem:[#allocation2 + $0x52c] sm:$0xf]  ;;  %v11903_v33 = vld [vmem:[#allocation2 + $0x418] sm:$0xf0] }
 0x13c   :  { %2568 = vmatpush.bf16.msrb.mxu0 %v12414_v47  ;;  %2581 = vmatpush.bf16.msrb.mxu1 %v12542_v51  ;;  %v18938_v36 = vpop.f32.mrf.mxu0  ;;  %v18940_v44 = vpop.f32.mrf.mxu1  ;;  %v11823_v47 = vld [vmem:[#allocation2 + $0x378] sm:$0xf0]  ;;  %v12050_v32 = vor.u32 %v17105_v17, %v12047_v18  ;;  %v17101_v35 = vld [vmem:[#allocation2 + $0x50c] sm:$0xf] }
 0x13d   :  { %2594 = vmatpush.bf16.msrb.mxu2 %v11394_v0  ;;  %v12079_v51 = vld [vmem:[#allocation2 + $0x578] sm:$0xf0]  ;;  %v11698_v0 = vor.u32 %v17017_v41, %v11695_v42  ;;  %v11826_v52 = vor.u32 %v17049_v43, %v11823_v47  ;;  %v17193_v42 = vld [vmem:[#allocation2 + $0x7ec] sm:$0xf] }
 0x13e   :  { %2607 = vmatpush.bf16.msrb.mxu3 %v11522_v54  ;;  %v17013_v54 = vld [vmem:[#allocation2 + $0x24c] sm:$0xf]  ;;  %v12082_v57 = vor.u32 %v17113_v50, %v12079_v51  ;;  %v12271_v41 = vld [vmem:[#allocation2 + $0x6f8] sm:$0xf0] }
 0x13f   :  { %2569 = vmatmul.bf16.vlgmr.msrb.gmra.mxu0 %v18896_v16  ;;  %2582 = vmatmul.bf16.vlgmr.msrb.gmra.mxu1 %v18898_v20  ;;  %v17225_v47 = vld [vmem:[#allocation2 + $0x8ec] sm:$0xf]  ;;  %v12527_v48 = vld [vmem:[#allocation2 + $0x8f8] sm:$0xf0] }
 0x140   :  { %2613 = vmatpush.bf16.msra.mxu0 %v11762_v55  ;;  %2626 = vmatpush.bf16.msra.mxu1 %v11890_v24  ;;  %v11679_v55 = vld [vmem:[#allocation2 + $0x258] sm:$0xf0]  ;;  %v17045_v24 = vld [vmem:[#allocation2 + $0x34c] sm:$0xf] }
 0x141   :  { %2639 = vmatpush.bf16.msra.mxu2 %v12018_v56  ;;  %2608 = vmatmul.bf16.vlgmr.msrb.gmra.mxu3 %v18863_v25  ;;  %v11842_v25 = vor.u32 %v17053_v28, %v11839_v30  ;;  %v11682_v1 = vor.u32 %v17013_v54, %v11679_v55  ;;  %v17037_v28 = vld [vmem:[#allocation2 + $0x30c] sm:$0xf]  ;;  %v12530_v55 = vor.u32 %v17225_v47, %v12527_v48  ;;  %v12623_v18 = vld [vmem:[#allocation2 + $0x9b8] sm:$0xf0] }
 0x142   :  { %2652 = vmatpush.bf16.msra.mxu3 %v12146_v60  ;;  %2595 = vmatmul.bf16.vlgmr.msrb.gmra.mxu2 %v18850_v9  ;;  %v11714_v9 = vor.u32 %v17021_v26, %v11711_v27  ;;  %v11935_v60 = vld [vmem:[#allocation2 + $0x458] sm:$0xf0]  ;;  %v11794_v26 = vor.u32 %v17041_v6, %v11791_v11  ;;  %v11922_v27 = vor.u32 %v17073_v13, %v11919_v14  ;;  %v17069_v30 = vld [vmem:[#allocation2 + $0x40c] sm:$0xf] }
 0x143   :  { %v11906_v50 = vor.u32 %v17069_v30, %v11903_v33  ;;  %v17257_v51 = vld [vmem:[#allocation2 + $0x9ec] sm:$0xf]  ;;  %v12239_v6 = vld [vmem:[#allocation2 + $0x6b8] sm:$0xf0] }
 0x144   :  { %2614 = vmatpush.bf16.msra.mxu0 %v11746_v21  ;;  %2627 = vmatpush.bf16.msra.mxu1 %v11874_v3  ;;  %v18944_v61 = vpop.f32.mrf.mxu3  ;;  %v2364_v2 = vpop.f32.mrf.mxu0  ;;  %v11810_v21 = vor.u32 %v17045_v24, %v11807_v58  ;;  %v11938_v3 = vor.u32 %v17077_v59, %v11935_v60  ;;  %v17157_v24 = vld [vmem:[#allocation2 + $0x6cc] sm:$0xf]  ;;  %v12383_v60 = vld [vmem:[#allocation2 + $0x7d8] sm:$0xf0] }
 0x145   :  { %2640 = vmatpush.bf16.msra.mxu2 %v12002_v4  ;;  %v18942_v56 = vpop.f32.mrf.mxu2  ;;  %v17009_v4 = vld [vmem:[#allocation2 + $0x22c] sm:$0xf]  ;;  %v2377_v7 = vpop.f32.mrf.mxu1  ;;  %v12639_v2 = vld [vmem:[#allocation2 + $0x9d8] sm:$0xf0] }
 0x146   :  { %2653 = vmatpush.bf16.msra.mxu3 %v12130_v10  ;;  %v12066_v10 = vor.u32 %v17109_v62, %v12063_v63  ;;  %v17189_v58 = vld [vmem:[#allocation2 + $0x7cc] sm:$0xf]  ;;  %v12511_v63 = vld [vmem:[#allocation2 + $0x8d8] sm:$0xf0] }
 0x147   :  { %v17221_v62 = vld [vmem:[#allocation2 + $0x8cc] sm:$0xf]  ;;  %v12367_v11 = vld [vmem:[#allocation2 + $0x7b8] sm:$0xf0] }
 0x148   :  { %2615 = vmatpush.bf16.msra.mxu0 %v11730_v19  ;;  %2628 = vmatpush.bf16.msra.mxu1 %v11858_v22  ;;  %v11666_v19 = vor.u32 %v17009_v4, %v11663_v5  ;;  %v17005_v22 = vld [vmem:[#allocation2 + $0x20c] sm:$0xf]  ;;  %v12514_v4 = vor.u32 %v17221_v62, %v12511_v63  ;;  %v12495_v14 = vld [vmem:[#allocation2 + $0x8b8] sm:$0xf0] }
 0x149   :  { %2641 = vmatpush.bf16.msra.mxu2 %v11986_v23  ;;  %v11647_v23 = vld [vmem:[#allocation2 + $0x218] sm:$0xf0]  ;;  %v17153_v5 = vld [vmem:[#allocation2 + $0x6ac] sm:$0xf] }
 0x14a   :  { %2654 = vmatpush.bf16.msra.mxu3 %v12114_v29  ;;  %v11775_v29 = vld [vmem:[#allocation2 + $0x318] sm:$0xf0]  ;;  %v11650_v43 = vor.u32 %v17005_v22, %v11647_v23  ;;  %v17185_v7 = vld [vmem:[#allocation2 + $0x7ac] sm:$0xf] }
 0x14b   :  { %v11778_v49 = vor.u32 %v17037_v28, %v11775_v29  ;;  %v17217_v13 = vld [vmem:[#allocation2 + $0x8ac] sm:$0xf]  ;;  %v12370_v22 = vor.u32 %v17185_v7, %v12367_v11  ;;  %v12351_v29 = vld [vmem:[#allocation2 + $0x798] sm:$0xf0] }
 0x14c   :  { %2616 = vmatpush.bf16.msra.mxu0 %v11714_v9  ;;  %2629 = vmatpush.bf16.msra.mxu1 %v11842_v25  ;;  %v12031_v9 = vld [vmem:[#allocation2 + $0x518] sm:$0xf0]  ;;  %v2403_v25 = vpop.f32.mrf.mxu3  ;;  %v17249_v17 = vld [vmem:[#allocation2 + $0x9ac] sm:$0xf]  ;;  %v12498_v23 = vor.u32 %v17217_v13, %v12495_v14 }
 0x14d   :  { %2642 = vmatpush.bf16.msra.mxu2 %v11970_v39  ;;  %v2390_v31 = vpop.f32.mrf.mxu2  ;;  %v17161_v39 = vld [vmem:[#allocation2 + $0x6ec] sm:$0xf]  ;;  %v12626_v28 = vor.u32 %v17249_v17, %v12623_v18  ;;  %v12463_v47 = vld [vmem:[#allocation2 + $0x878] sm:$0xf0] }
 0x14e   :  { %2655 = vmatpush.bf16.msra.mxu3 %v12098_v45  ;;  %v12399_v45 = vld [vmem:[#allocation2 + $0x7f8] sm:$0xf0]  ;;  %v17213_v30 = vld [vmem:[#allocation2 + $0x88c] sm:$0xf] }
 0x14f   :  { %v12402_v54 = vor.u32 %v17193_v42, %v12399_v45  ;;  %v12479_v31 = vld [vmem:[#allocation2 + $0x898] sm:$0xf0]  ;;  %v17145_v25 = vld [vmem:[#allocation2 + $0x66c] sm:$0xf] }
 0x150   :  { %2617 = vmatpush.bf16.msra.mxu0 %v11698_v0  ;;  %2630 = vmatpush.bf16.msra.mxu1 %v11826_v52  ;;  %v12655_v0 = vld [vmem:[#allocation2 + $0x9f8] sm:$0xf0]  ;;  %v12034_v52 = vor.u32 %v17101_v35, %v12031_v9  ;;  %v12482_v9 = vor.u32 %v17213_v30, %v12479_v31  ;;  %v17209_v45 = vld [vmem:[#allocation2 + $0x86c] sm:$0xf] }
 0x151   :  { %2643 = vmatpush.bf16.msra.mxu2 %v11954_v53  ;;  %v12274_v53 = vor.u32 %v17161_v39, %v12271_v41  ;;  %v12658_v59 = vor.u32 %v17257_v51, %v12655_v0  ;;  %v12207_v39 = vld [vmem:[#allocation2 + $0x678] sm:$0xf0]  ;;  %v17177_v41 = vld [vmem:[#allocation2 + $0x76c] sm:$0xf]  ;;  %v12466_v0 = vor.u32 %v17209_v45, %v12463_v47 }
 0x152   :  { %2656 = vmatpush.bf16.msra.mxu3 %v12082_v57  ;;  %v12255_v57 = vld [vmem:[#allocation2 + $0x6d8] sm:$0xf0]  ;;  %v17241_v48 = vld [vmem:[#allocation2 + $0x96c] sm:$0xf] }
 0x153   :  { %v17237_v62 = vld [vmem:[#allocation2 + $0x94c] sm:$0xf]  ;;  %v12575_v63 = vld [vmem:[#allocation2 + $0x958] sm:$0xf0] }
 0x154   :  { %2618 = vmatpush.bf16.msra.mxu0 %v11682_v1  ;;  %2631 = vmatpush.bf16.msra.mxu1 %v11810_v21  ;;  %v17253_v1 = vld [vmem:[#allocation2 + $0x9cc] sm:$0xf]  ;;  %v12258_v21 = vor.u32 %v17157_v24, %v12255_v57  ;;  %v12319_v57 = vld [vmem:[#allocation2 + $0x758] sm:$0xf0] }
 0x155   :  { %2644 = vmatpush.bf16.msra.mxu2 %v11938_v3  ;;  %v12386_v3 = vor.u32 %v17189_v58, %v12383_v60  ;;  %v17205_v58 = vld [vmem:[#allocation2 + $0x84c] sm:$0xf]  ;;  %v12303_v11 = vld [vmem:[#allocation2 + $0x738] sm:$0xf0] }
 0x156   :  { %2657 = vmatpush.bf16.msra.mxu3 %v12066_v10  ;;  %v12642_v10 = vor.u32 %v17253_v1, %v12639_v2  ;;  %v17169_v7 = vld [vmem:[#allocation2 + $0x72c] sm:$0xf]  ;;  %v12431_v14 = vld [vmem:[#allocation2 + $0x838] sm:$0xf0] }
 0x157   :  { %v17201_v13 = vld [vmem:[#allocation2 + $0x82c] sm:$0xf]  ;;  %v12559_v18 = vld [vmem:[#allocation2 + $0x938] sm:$0xf0] }
 0x158   :  { %2619 = vmatpush.bf16.msra.mxu0 %v11666_v19  ;;  %2632 = vmatpush.bf16.msra.mxu1 %v11794_v26  ;;  %v12242_v19 = vor.u32 %v17153_v5, %v12239_v6  ;;  %v17149_v26 = vld [vmem:[#allocation2 + $0x68c] sm:$0xf]  ;;  %v12175_v6 = vld [vmem:[#allocation2 + $0x638] sm:$0xf0] }
 0x159   :  { %2645 = vmatpush.bf16.msra.mxu2 %v11922_v27  ;;  %v12223_v27 = vld [vmem:[#allocation2 + $0x698] sm:$0xf0]  ;;  %v17137_v5 = vld [vmem:[#allocation2 + $0x62c] sm:$0xf] }
 0x15a   :  { %2658 = vmatpush.bf16.msra.mxu3 %v12050_v32  ;;  %v12226_v33 = vor.u32 %v17149_v26, %v12223_v27  ;;  %v17233_v17 = vld [vmem:[#allocation2 + $0x92c] sm:$0xf]  ;;  %v12434_v26 = vor.u32 %v17201_v13, %v12431_v14  ;;  %v12159_v27 = vld [vmem:[#allocation2 + $0x618] sm:$0xf0]  ;;  %v12981_v14 = vld [vmem:[%s20426_s5 + $0x280] sm:$0xf] }
 0x15b   :  { %v17197_v30 = vld [vmem:[#allocation2 + $0x80c] sm:$0xf]  ;;  %v12415_v31 = vld [vmem:[#allocation2 + $0x818] sm:$0xf0] }
 0x15c   :  { %2620 = vmatpush.bf16.msra.mxu0 %v11650_v43  ;;  %2633 = vmatpush.bf16.msra.mxu1 %v11778_v49  ;;  %v18950_v32 = vpop.f32.mrf.mxu0  ;;  %v18952_v35 = vpop.f32.mrf.mxu1  ;;  %v12335_v43 = vld [vmem:[#allocation2 + $0x778] sm:$0xf0]  ;;  %v12418_v47 = vor.u32 %v17197_v30, %v12415_v31 }
 0x15d   :  { %2646 = vmatpush.bf16.msra.mxu2 %v11906_v50  ;;  %v12591_v49 = vld [vmem:[#allocation2 + $0x978] sm:$0xf0]  ;;  %v12210_v50 = vor.u32 %v17145_v25, %v12207_v39  ;;  %v12338_v51 = vor.u32 %v17177_v41, %v12335_v43  ;;  %v12901_v41 = vld [vmem:[%s20426_s5 + $0x1e0] sm:$0xf]  ;;  %v2363_v43 = vadd.f32 %v18938_v36, %v18932_v12  ;;  %v17286_v36 = vld [vmem:[%s20426_s5 + $0xcc] sm:$0xf0] }
 0x15e   :  { %2659 = vmatpush.bf16.msra.mxu3 %v12034_v52  ;;  %v17141_v52 = vld [vmem:[#allocation2 + $0x64c] sm:$0xf]  ;;  %v12757_v12 = vld [vmem:[%s20426_s5 + $0xc0] sm:$0xf] }
 0x15f   :  { %2621 = vmatmul.bf16.vlgmr.msra.gmra.mxu0 %v18848_v8  ;;  %2634 = vmatmul.bf16.vlgmr.msra.gmra.mxu1 %v18855_v15  ;;  %v17245_v8 = vld [vmem:[#allocation2 + $0x98c] sm:$0xf] }
 0x160   :  { %2665 = vmatpush.bf16.msrb.mxu0 %v12274_v53  ;;  %2678 = vmatpush.bf16.msrb.mxu1 %v12402_v54  ;;  %v12191_v53 = vld [vmem:[#allocation2 + $0x658] sm:$0xf0]  ;;  %v17173_v54 = vld [vmem:[#allocation2 + $0x74c] sm:$0xf] }
 0x161   :  { %2691 = vmatpush.bf16.msrb.mxu2 %v12530_v55  ;;  %2660 = vmatmul.bf16.vlgmr.msra.gmra.mxu3 %v18884_v40  ;;  %v12607_v40 = vld [vmem:[#allocation2 + $0x998] sm:$0xf0]  ;;  %v12594_v55 = vor.u32 %v17241_v48, %v12591_v49  ;;  %v12194_v2 = vor.u32 %v17141_v52, %v12191_v53  ;;  %v12885_v52 = vld [vmem:[%s20426_s5 + $0x1c0] sm:$0xf]  ;;  %v17318_v53 = vld [vmem:[%s20426_s5 + $0x1cc] sm:$0xf0] }
 0x162   :  { %2704 = vmatpush.bf16.msrb.mxu3 %v12658_v59  ;;  %2647 = vmatmul.bf16.vlgmr.msra.gmra.mxu2 %v18880_v37  ;;  %v17181_v37 = vld [vmem:[#allocation2 + $0x78c] sm:$0xf]  ;;  %v12610_v42 = vor.u32 %v17245_v8, %v12607_v40  ;;  %v12447_v59 = vld [vmem:[#allocation2 + $0x858] sm:$0xf0] }
 0x163   :  { %v12354_v15 = vor.u32 %v17181_v37, %v12351_v29  ;;  %v17165_v37 = vld [vmem:[#allocation2 + $0x70c] sm:$0xf]  ;;  %v12562_v29 = vor.u32 %v17233_v17, %v12559_v18  ;;  %v17342_v17 = vld [vmem:[%s20426_s5 + $0x28c] sm:$0xf0] }
 0x164   :  { %2666 = vmatpush.bf16.msrb.mxu0 %v12258_v21  ;;  %2679 = vmatpush.bf16.msrb.mxu1 %v12386_v3  ;;  %v18956_v60 = vpop.f32.mrf.mxu3  ;;  %v2416_v1 = vpop.f32.mrf.mxu0  ;;  %v12322_v3 = vor.u32 %v17173_v54, %v12319_v57  ;;  %v17229_v8 = vld [vmem:[#allocation2 + $0x90c] sm:$0xf]  ;;  %v2376_v54 = vadd.f32 %v18940_v44, %v2363_v43  ;;  %v12758_v57 = vor.u32 %v17286_v36, %v12757_v12  ;;  %v12741_v44 = vld [vmem:[%s20426_s5 + $0xa0] sm:$0xf]  ;;  %v2721_v36 = vmul.f32 0.01, %v18929_v46 }
 0x165   :  { %2692 = vmatpush.bf16.msrb.mxu2 %v12514_v4  ;;  %v18954_v24 = vpop.f32.mrf.mxu2  ;;  %v2429_v21 = vpop.f32.mrf.mxu1  ;;  %v12450_v4 = vor.u32 %v17205_v58, %v12447_v59  ;;  %v13013_v58 = vld [vmem:[%s20426_s5 + $0x2c0] sm:$0xf]  ;;  %v17350_v59 = vld [vmem:[%s20426_s5 + $0x2cc] sm:$0xf0] }
 0x166   :  { %2705 = vmatpush.bf16.msrb.mxu3 %v12642_v10  ;;  %v12578_v10 = vor.u32 %v17237_v62, %v12575_v63  ;;  %v12886_v62 = vor.u32 %v17318_v53, %v12885_v52  ;;  %v17282_v63 = vld [vmem:[%s20426_s5 + $0xac] sm:$0xf0]  ;;  %v12869_v1 = vld [vmem:[%s20426_s5 + $0x1a0] sm:$0xf]  ;;  %v13014_v21 = vor.u32 %v17350_v59, %v13013_v58 }
 0x167   :  { %v12949_v43 = vld [vmem:[%s20426_s5 + $0x240] sm:$0xf] }
 0x168   :  { %2667 = vmatpush.bf16.msrb.mxu0 %v12242_v19  ;;  %2680 = vmatpush.bf16.msrb.mxu1 %v12370_v22  ;;  %v12178_v19 = vor.u32 %v17137_v5, %v12175_v6  ;;  %v17133_v22 = vld [vmem:[#allocation2 + $0x60c] sm:$0xf]  ;;  %v12853_v5 = vld [vmem:[%s20426_s5 + $0x180] sm:$0xf]  ;;  %v17310_v6 = vld [vmem:[%s20426_s5 + $0x18c] sm:$0xf0] }
 0x169   :  { %2693 = vmatpush.bf16.msrb.mxu2 %v12498_v23  ;;  %v12306_v23 = vor.u32 %v17169_v7, %v12303_v11  ;;  %v12162_v39 = vor.u32 %v17133_v22, %v12159_v27  ;;  %v17274_v22 = vld [vmem:[%s20426_s5 + $0x6c] sm:$0xf0]  ;;  %v12982_v27 = vor.u32 %v17342_v17, %v12981_v14  ;;  %v12933_v53 = vld [vmem:[%s20426_s5 + $0x220] sm:$0xf]  ;;  %v12759_v14 = vld [vmem:[%s20426_s5 + $0xd0] sm:$0xf0] }
 0x16a   :  { %2706 = vmatpush.bf16.msrb.mxu3 %v12626_v28  ;;  %v12287_v28 = vld [vmem:[#allocation2 + $0x718] sm:$0xf0]  ;;  %v12789_v58 = vld [vmem:[%s20426_s5 + $0x100] sm:$0xf] }
 0x16b   :  { %v12290_v45 = vor.u32 %v17165_v37, %v12287_v28  ;;  %v12965_v28 = vld [vmem:[%s20426_s5 + $0x260] sm:$0xf] }
 0x16c   :  { %2668 = vmatpush.bf16.msrb.mxu0 %v12226_v33  ;;  %2681 = vmatpush.bf16.msrb.mxu1 %v12354_v15  ;;  %v12543_v33 = vld [vmem:[#allocation2 + $0x918] sm:$0xf0]  ;;  %v12773_v15 = vld [vmem:[%s20426_s5 + $0xe0] sm:$0xf]  ;;  %v2455_v25 = vpop.f32.mrf.mxu3 }
 0x16d   :  { %2694 = vmatpush.bf16.msrb.mxu2 %v12482_v9  ;;  %v2442_v40 = vpop.f32.mrf.mxu2  ;;  %v17290_v9 = vld [vmem:[%s20426_s5 + $0xec] sm:$0xf0]  ;;  %v12546_v48 = vor.u32 %v17229_v8, %v12543_v33  ;;  %v12693_v8 = vld [vmem:[%s20426_s5 + $0x40] sm:$0xf] }
 0x16e   :  { %2707 = vmatpush.bf16.msrb.mxu3 %v12610_v42  ;;  %v17322_v42 = vld [vmem:[%s20426_s5 + $0x1ec] sm:$0xf0]  ;;  %v12774_v49 = vor.u32 %v17290_v9, %v12773_v15  ;;  %v12821_v15 = vld [vmem:[%s20426_s5 + $0x140] sm:$0xf] }
 0x16f   :  { %v17270_v40 = vld [vmem:[%s20426_s5 + $0x4c] sm:$0xf0] }
 0x170   :  { %2669 = vmatpush.bf16.msrb.mxu0 %v12210_v50  ;;  %2682 = vmatpush.bf16.msrb.mxu1 %v12338_v51  ;;  %v13029_v50 = vld [vmem:[%s20426_s5 + $0x2e0] sm:$0xf]  ;;  %v17354_v51 = vld [vmem:[%s20426_s5 + $0x2ec] sm:$0xf0] }
 0x171   :  { %2695 = vmatpush.bf16.msrb.mxu2 %v12466_v0  ;;  %v12902_v0 = vor.u32 %v17322_v42, %v12901_v41  ;;  %v12694_v41 = vor.u32 %v17270_v40, %v12693_v8  ;;  %v12871_v8 = vld [vmem:[%s20426_s5 + $0x1b0] sm:$0xf0] }
 0x172   :  { %2708 = vmatpush.bf16.msrb.mxu3 %v12594_v55  ;;  %v13030_v55 = vor.u32 %v17354_v51, %v13029_v50  ;;  %v12805_v50 = vld [vmem:[%s20426_s5 + $0x120] sm:$0xf]  ;;  %v17298_v51 = vld [vmem:[%s20426_s5 + $0x12c] sm:$0xf0] }
 0x174   :  { %2670 = vmatpush.bf16.msrb.mxu0 %v12194_v2  ;;  %2683 = vmatpush.bf16.msrb.mxu1 %v12322_v3  ;;  %v2389_v2 = vadd.f32 %v18942_v56, %v2376_v54  ;;  %v12742_v3 = vor.u32 %v17282_v63, %v12741_v44  ;;  %v12725_v56 = vld [vmem:[%s20426_s5 + $0x80] sm:$0xf]  ;;  %v17330_v54 = vld [vmem:[%s20426_s5 + $0x22c] sm:$0xf0]  ;;  %v17288_v44 = vld [vmem:[%s20426_s5 + $0xe4] sm:$0xf] }
 0x175   :  { %2696 = vmatpush.bf16.msrb.mxu2 %v12450_v4  ;;  %v12775_v63 = vld [vmem:[%s20426_s5 + $0xf0] sm:$0xf0] }
 0x176   :  { %2709 = vmatpush.bf16.msrb.mxu3 %v12578_v10  ;;  %v2402_v7 = vadd.f32 %v18944_v61, %v2389_v2  ;;  %v12709_v61 = vld [vmem:[%s20426_s5 + $0x60] sm:$0xf]  ;;  %v17320_v2 = vld [vmem:[%s20426_s5 + $0x1e4] sm:$0xf] }
 0x177   :  { %v12710_v37 = vor.u32 %v17274_v22, %v12709_v61 }
 0x178   :  { %2671 = vmatpush.bf16.msrb.mxu0 %v12178_v19  ;;  %2684 = vmatpush.bf16.msrb.mxu1 %v12306_v23  ;;  %v2415_v18 = vadd.f32 %v18950_v32, %v2402_v7  ;;  %v12854_v19 = vor.u32 %v17310_v6, %v12853_v5  ;;  %v17306_v32 = vld [vmem:[%s20426_s5 + $0x16c] sm:$0xf0]  ;;  %v17352_v5 = vld [vmem:[%s20426_s5 + $0x2e4] sm:$0xf]  ;;  %v13031_v6 = vld [vmem:[%s20426_s5 + $0x2f0] sm:$0xf0]  ;;  %v2725_v7 = vsel %vm2717_vm0, %v18929_v46, %v2721_v36 }
 0x179   :  { %2697 = vmatpush.bf16.msrb.mxu2 %v12434_v26  ;;  %v12837_v26 = vld [vmem:[%s20426_s5 + $0x160] sm:$0xf]  ;;  %v13034_v61 = vor.u32 %v17352_v5, %v13031_v6  ;;  %v19158_v22 = vpack.c.bf16 %v2725_v7, %v2725_v7  ;;  %v17272_v36 = vld [vmem:[%s20426_s5 + $0x64] sm:$0xf]  ;;  %v12679_v6 = vld [vmem:[%s20426_s5 + $0x30] sm:$0xf0] }
 0x17a   :  { %2710 = vmatpush.bf16.msrb.mxu3 %v12562_v29  ;;  %v17338_v29 = vld [vmem:[%s20426_s5 + $0x26c] sm:$0xf0]  ;;  %v2428_v30 = vadd.f32 %v18952_v35, %v2415_v18  ;;  %v12838_v31 = vor.u32 %v17306_v32, %v12837_v26  ;;  %v17316_v18 = vld [vmem:[%s20426_s5 + $0x1c4] sm:$0xf] }
 0x17b   :  { %v17302_v35 = vld [vmem:[%s20426_s5 + $0x14c] sm:$0xf0]  ;;  %v17348_v32 = vld [vmem:[%s20426_s5 + $0x2c4] sm:$0xf] }
 0x17c   :  { %2672 = vmatpush.bf16.msrb.mxu0 %v12162_v39  ;;  %2685 = vmatpush.bf16.msrb.mxu1 %v12290_v45  ;;  %v19033_v13 = vpop.f32.mrf.mxu0  ;;  %v19048_v23 = vpop.f32.mrf.mxu1  ;;  %v2441_v25 = vadd.f32 %v18954_v24, %v2428_v30  ;;  %v12966_v39 = vor.u32 %v17338_v29, %v12965_v28  ;;  %v17334_v45 = vld [vmem:[%s20426_s5 + $0x24c] sm:$0xf0]  ;;  %v17280_v29 = vld [vmem:[%s20426_s5 + $0xa4] sm:$0xf]  ;;  %v12743_v30 = vld [vmem:[%s20426_s5 + $0xb0] sm:$0xf0] }
 0x17d   :  { %2698 = vmatpush.bf16.msrb.mxu2 %v12418_v47  ;;  %v12822_v47 = vor.u32 %v17302_v35, %v12821_v15  ;;  %v17266_v24 = vld [vmem:[%s20426_s5 + $0x2c] sm:$0xf0]  ;;  %v12950_v12 = vor.u32 %v17334_v45, %v12949_v43  ;;  %v12746_v15 = vor.u32 %v17280_v29, %v12743_v30  ;;  %v17344_v35 = vld [vmem:[%s20426_s5 + $0x2a4] sm:$0xf]  ;;  %v12727_v45 = vld [vmem:[%s20426_s5 + $0x90] sm:$0xf0] }
 0x17e   :  { %2711 = vmatpush.bf16.msrb.mxu3 %v12546_v48  ;;  %v12677_v48 = vld [vmem:[%s20426_s5 + $0x20] sm:$0xf]  ;;  %v17276_v43 = vld [vmem:[%s20426_s5 + $0x84] sm:$0xf]  ;;  %v12781_v29 = vld [vmem:[%s20426_s5 + $0xe8] sm:$0xf] }
 0x17f   :  { %2673 = vmatmul.bf16.vlgmr.msrb.gmra.mxu0 %v18878_v34  ;;  %2686 = vmatmul.bf16.vlgmr.msrb.gmra.mxu1 %v18882_v38  ;;  %v17314_v34 = vld [vmem:[%s20426_s5 + $0x1ac] sm:$0xf0]  ;;  %v12997_v38 = vld [vmem:[%s20426_s5 + $0x2a0] sm:$0xf]  ;;  %v12678_v52 = vor.u32 %v17266_v24, %v12677_v48  ;;  %v12855_v48 = vld [vmem:[%s20426_s5 + $0x190] sm:$0xf0] }
 0x180   :  { %3511 = vmatpush.bf16.msra.mxu0 %v12774_v49  ;;  %3524 = vmatpush.bf16.msra.mxu1 %v12902_v0  ;;  %v12870_v4 = vor.u32 %v17314_v34, %v12869_v1  ;;  %v2454_v0 = vadd.f32 %v18956_v60, %v2441_v25  ;;  %v12661_v60 = vld [vmem:[%s20426_s5] sm:$0xf]  ;;  %v12999_v25 = vld [vmem:[%s20426_s5 + $0x2b0] sm:$0xf0]  ;;  %v17264_v5 = vld [vmem:[%s20426_s5 + $0x24] sm:$0xf] }
 0x181   :  { %2699 = vmatmul.bf16.vlgmr.msrb.gmra.mxu2 %v18896_v16  ;;  %2712 = vmatmul.bf16.vlgmr.msrb.gmra.mxu3 %v18898_v20  ;;  %v17346_v16 = vld [vmem:[%s20426_s5 + $0x2ac] sm:$0xf0]  ;;  %v13002_v24 = vor.u32 %v17344_v35, %v12999_v25  ;;  %v17291_v30 = vld [vmem:[%s20426_s5 + $0xf4] sm:$0xf0] }
 0x182   :  { %3537 = vmatpush.bf16.msra.mxu2 %v13030_v55  ;;  %v17278_v20 = vld [vmem:[%s20426_s5 + $0x8c] sm:$0xf0]  ;;  %v12998_v10 = vor.u32 %v17346_v16, %v12997_v38  ;;  %v12806_v55 = vor.u32 %v17298_v51, %v12805_v50  ;;  %v2722_v34 = vmul.f32 0.01, %v2454_v0  ;;  %vm2718_vm1 = vcmp.ge.f32.partialorder %v2454_v0, 0.0 }
 0x183   :  { %v12726_v11 = vor.u32 %v17278_v20, %v12725_v56  ;;  %v12917_v16 = vld [vmem:[%s20426_s5 + $0x200] sm:$0xf]  ;;  %v12778_v20 = vor.u32 %v17288_v44, %v12775_v63  ;;  %v17340_v50 = vld [vmem:[%s20426_s5 + $0x284] sm:$0xf]  ;;  %v12983_v51 = vld [vmem:[%s20426_s5 + $0x290] sm:$0xf0] }
 0x184   :  { %3512 = vmatpush.bf16.msra.mxu0 %v12758_v57  ;;  %3525 = vmatpush.bf16.msra.mxu1 %v12886_v62  ;;  %v19077_v9 = vpop.f32.mrf.mxu3  ;;  %v2468_v42 = vpop.f32.mrf.mxu0  ;;  %v17262_v57 = vld [vmem:[%s20426_s5 + $0xc] sm:$0xf0]  ;;  %v2726_v17 = vsel %vm2718_vm1, %v2454_v0, %v2722_v34  ;;  %v17268_v63 = vld [vmem:[%s20426_s5 + $0x44] sm:$0xf] }
 0x185   :  { %v19069_v33 = vpop.f32.mrf.mxu2  ;;  %v2481_v49 = vpop.f32.mrf.mxu1  ;;  %v17294_v62 = vld [vmem:[%s20426_s5 + $0x10c] sm:$0xf0]  ;;  %v12662_v38 = vor.u32 %v17262_v57, %v12661_v60  ;;  %v12986_v60 = vor.u32 %v17340_v50, %v12983_v51  ;;  %v17300_v34 = vld [vmem:[%s20426_s5 + $0x144] sm:$0xf]  ;;  %v17287_v51 = vld [vmem:[%s20426_s5 + $0xd4] sm:$0xf0] }
 0x186   :  { %3538 = vmatpush.bf16.msra.mxu2 %v13014_v21  ;;  %v12903_v21 = vld [vmem:[%s20426_s5 + $0x1f0] sm:$0xf0]  ;;  %v12790_v56 = vor.u32 %v17294_v62, %v12789_v58  ;;  %v12730_v49 = vor.u32 %v17276_v43, %v12727_v45  ;;  %v17336_v58 = vld [vmem:[%s20426_s5 + $0x264] sm:$0xf] }
 0x187   :  { %v17324_v43 = vld [vmem:[%s20426_s5 + $0x204] sm:$0xf]  ;;  %v12919_v45 = vld [vmem:[%s20426_s5 + $0x210] sm:$0xf0] }
 0x188   :  { %3513 = vmatpush.bf16.msra.mxu0 %v12742_v3  ;;  %3526 = vmatpush.bf16.msra.mxu1 %v12870_v4  ;;  %v12934_v3 = vor.u32 %v17330_v54, %v12933_v53  ;;  %v17326_v4 = vld [vmem:[%s20426_s5 + $0x20c] sm:$0xf0]  ;;  %v17304_v54 = vld [vmem:[%s20426_s5 + $0x164] sm:$0xf] }
 0x189   :  { %v12918_v46 = vor.u32 %v17326_v4, %v12917_v16  ;;  %v17332_v16 = vld [vmem:[%s20426_s5 + $0x244] sm:$0xf]  ;;  %v12951_v4 = vld [vmem:[%s20426_s5 + $0x250] sm:$0xf0] }
 0x18a   :  { %3539 = vmatpush.bf16.msra.mxu2 %v12998_v10  ;;  %v12906_v10 = vor.u32 %v17320_v2, %v12903_v21  ;;  %v12823_v2 = vld [vmem:[%s20426_s5 + $0x150] sm:$0xf0] }
 0x18c   :  { %3514 = vmatpush.bf16.msra.mxu0 %v12726_v11  ;;  %3527 = vmatpush.bf16.msra.mxu1 %v12854_v19  ;;  %v2507_v1 = vpop.f32.mrf.mxu3  ;;  %v17284_v11 = vld [vmem:[%s20426_s5 + $0xc4] sm:$0xf]  ;;  %v12887_v19 = vld [vmem:[%s20426_s5 + $0x1d0] sm:$0xf0] }
 0x18d   :  { %v2494_v59 = vpop.f32.mrf.mxu2  ;;  %v12762_v26 = vor.u32 %v17284_v11, %v12759_v14  ;;  %v12890_v28 = vor.u32 %v17316_v18, %v12887_v19  ;;  %v12695_v1 = vld [vmem:[%s20426_s5 + $0x50] sm:$0xf0]  ;;  %v17260_v14 = vld [vmem:[%s20426_s5 + $0x4] sm:$0xf]  ;;  %v12682_v18 = vor.u32 %v17264_v5, %v12679_v6 }
 0x18e   :  { %3540 = vmatpush.bf16.msra.mxu2 %v12982_v27  ;;  %v13015_v27 = vld [vmem:[%s20426_s5 + $0x2d0] sm:$0xf0] }
 0x18f   :  { %v13018_v40 = vor.u32 %v17348_v32, %v13015_v27  ;;  %v12967_v59 = vld [vmem:[%s20426_s5 + $0x270] sm:$0xf0]  ;;  %v17292_v27 = vld [vmem:[%s20426_s5 + $0x104] sm:$0xf] }
 0x190   :  { %3515 = vmatpush.bf16.msra.mxu0 %v12710_v37  ;;  %3528 = vmatpush.bf16.msra.mxu1 %v12838_v31  ;;  %v19166_v37 = vpack.c.bf16 %v2726_v17, %v2726_v17  ;;  %v17312_v31 = vld [vmem:[%s20426_s5 + $0x1a4] sm:$0xf]  ;;  %v12807_v11 = vld [vmem:[%s20426_s5 + $0x130] sm:$0xf0]  ;;  %v12954_v17 = vor.u32 %v17332_v16, %v12951_v4  ;;  %v17279_v16 = vld [vmem:[%s20426_s5 + $0x94] sm:$0xf0] }
 0x191   :  { %v12874_v42 = vor.u32 %v17312_v31, %v12871_v8  ;;  %v12663_v19 = vld [vmem:[%s20426_s5 + $0x10] sm:$0xf0]  ;;  %v17386_v8 = vld [vmem:[%s20426_s5 + $0x3ec] sm:$0xf0]  ;;  %v13109_v4 = vld [vmem:[%s20426_s5 + $0x380] sm:$0xf] }
 0x192   :  { %3541 = vmatpush.bf16.msra.mxu2 %v12966_v39  ;;  %v19188_v39 = vld [vmem:[#allocation4] sm:$0xf] }
 0x194   :  { %3516 = vmatpush.bf16.msra.mxu0 %v12694_v41  ;;  %3529 = vmatpush.bf16.msra.mxu1 %v12822_v47  ;;  %v591_v41 = vperm.slane %v19188_v39, 2  ;;  %v17308_v47 = vld [vmem:[%s20426_s5 + $0x184] sm:$0xf] }
 0x196   :  { %3542 = vmatpush.bf16.msra.mxu2 %v12950_v12  ;;  %v2467_v0 = vadd.f32 %v19033_v13, %v591_v41  ;;  %v12858_v12 = vor.u32 %v17308_v47, %v12855_v48 }
 0x198   :  { %3517 = vmatpush.bf16.msra.mxu0 %v12678_v52  ;;  %3530 = vmatpush.bf16.msra.mxu1 %v12806_v55  ;;  %v12711_v52 = vld [vmem:[%s20426_s5 + $0x70] sm:$0xf0]  ;;  %v2480_v62 = vadd.f32 %v19048_v23, %v2467_v0  ;;  %v13141_v0 = vld [vmem:[%s20426_s5 + $0x3c0] sm:$0xf] }
 0x199   :  { %v12839_v55 = vld [vmem:[%s20426_s5 + $0x170] sm:$0xf0]  ;;  %v12714_v57 = vor.u32 %v17272_v36, %v12711_v52  ;;  %v12893_v36 = vld [vmem:[%s20426_s5 + $0x1c8] sm:$0xf]  ;;  %v17319_v52 = vld [vmem:[%s20426_s5 + $0x1d4] sm:$0xf0] }
 0x19a   :  { %3543 = vmatpush.bf16.msra.mxu2 %v12934_v3  ;;  %v12842_v44 = vor.u32 %v17304_v54, %v12839_v55  ;;  %v12970_v3 = vor.u32 %v17336_v58, %v12967_v59  ;;  %v12894_v58 = vor.u32 %v17319_v52, %v12893_v36  ;;  %v17283_v59 = vld [vmem:[%s20426_s5 + $0xb4] sm:$0xf0]  ;;  %v13061_v52 = vld [vmem:[%s20426_s5 + $0x320] sm:$0xf] }
 0x19c   :  { %3518 = vmatpush.bf16.msra.mxu0 %v12662_v38  ;;  %3531 = vmatpush.bf16.msra.mxu1 %v12790_v56  ;;  %v2518_v53 = vpop.f32.mrf.mxu0  ;;  %v19222_v13 = vpop.f32.mrf.mxu1  ;;  %v12698_v38 = vor.u32 %v17268_v63, %v12695_v1  ;;  %v2493_v56 = vadd.f32 %v19069_v33, %v2480_v62  ;;  %v13125_v62 = vld [vmem:[%s20426_s5 + $0x3a0] sm:$0xf]  ;;  %v17315_v63 = vld [vmem:[%s20426_s5 + $0x1b4] sm:$0xf0] }
 0x19e   :  { %3544 = vmatpush.bf16.msra.mxu2 %v12918_v46  ;;  %v17328_v46 = vld [vmem:[%s20426_s5 + $0x224] sm:$0xf] }
 0x19f   :  { %3519 = vmatmul.bf16.vlgmr.msra.gmra.mxu0 %v19158_v22  ;;  %3532 = vmatmul.bf16.vlgmr.msra.gmra.mxu1 %v19166_v37 }
 0x1a0   :  { %3563 = vmatpush.bf16.msrb.mxu0 %v12778_v20  ;;  %3576 = vmatpush.bf16.msrb.mxu1 %v12906_v10  ;;  %v12826_v20 = vor.u32 %v17300_v34, %v12823_v2  ;;  %v17296_v10 = vld [vmem:[%s20426_s5 + $0x124] sm:$0xf] }
 0x1a1   :  { %v12810_v32 = vor.u32 %v17296_v10, %v12807_v11  ;;  %v12717_v10 = vld [vmem:[%s20426_s5 + $0x68] sm:$0xf] }
 0x1a2   :  { %3589 = vmatpush.bf16.msrb.mxu2 %v13034_v61  ;;  %v12935_v61 = vld [vmem:[%s20426_s5 + $0x230] sm:$0xf0] }
 0x1a3   :  { %v12938_v35 = vor.u32 %v17328_v46, %v12935_v61  ;;  %v12845_v46 = vld [vmem:[%s20426_s5 + $0x168] sm:$0xf]  ;;  %v17307_v61 = vld [vmem:[%s20426_s5 + $0x174] sm:$0xf0] }
 0x1a4   :  { %3564 = vmatpush.bf16.msrb.mxu0 %v12762_v26  ;;  %3577 = vmatpush.bf16.msrb.mxu1 %v12890_v28  ;;  %v19245_v23 = vpop.f32.mrf.mxu3  ;;  %v2520_v7 = vpop.f32.mrf.mxu0  ;;  %v2506_v26 = vadd.f32 %v19077_v9, %v2493_v56  ;;  %v12791_v28 = vld [vmem:[%s20426_s5 + $0x110] sm:$0xf0]  ;;  %v13157_v9 = vld [vmem:[%s20426_s5 + $0x3e0] sm:$0xf]  ;;  %v12861_v56 = vld [vmem:[%s20426_s5 + $0x188] sm:$0xf] }
 0x1a5   :  { %v19243_v21 = vpop.f32.mrf.mxu2  ;;  %v2533_v33 = vpop.f32.mrf.mxu1  ;;  %v13158_v41 = vor.u32 %v17386_v8, %v13157_v9  ;;  %v12794_v48 = vor.u32 %v17292_v27, %v12791_v28  ;;  %v12846_v9 = vor.u32 %v17307_v61, %v12845_v46  ;;  %v17355_v8 = vld [vmem:[%s20426_s5 + $0x2f4] sm:$0xf0] }
 0x1a6   :  { %3590 = vmatpush.bf16.msrb.mxu2 %v13018_v40  ;;  %v12909_v40 = vld [vmem:[%s20426_s5 + $0x1e8] sm:$0xf]  ;;  %v2519_v47 = vadd.f32 %v2518_v53, %v2506_v26  ;;  %v12922_v53 = vor.u32 %v17324_v43, %v12919_v45 }
 0x1a7   :  { %3550 = vmatpush.bf16.msra.mxu3 %v13158_v41 }
 0x1a8   :  { %3565 = vmatpush.bf16.msrb.mxu0 %v12746_v15  ;;  %3578 = vmatpush.bf16.msrb.mxu1 %v12874_v42  ;;  %v17323_v15 = vld [vmem:[%s20426_s5 + $0x1f4] sm:$0xf0]  ;;  %v12666_v42 = vor.u32 %v17260_v14, %v12663_v19  ;;  %v2532_v55 = vadd.f32 %v19222_v13, %v2519_v47  ;;  %v17378_v13 = vld [vmem:[%s20426_s5 + $0x3ac] sm:$0xf0]  ;;  %v12685_v47 = vld [vmem:[%s20426_s5 + $0x28] sm:$0xf] }
 0x1a9   :  { %v12910_v50 = vor.u32 %v17323_v15, %v12909_v40  ;;  %v13126_v1 = vor.u32 %v17378_v13, %v13125_v62  ;;  %v17275_v14 = vld [vmem:[%s20426_s5 + $0x74] sm:$0xf0]  ;;  %v13077_v40 = vld [vmem:[%s20426_s5 + $0x340] sm:$0xf]  ;;  %v17366_v15 = vld [vmem:[%s20426_s5 + $0x34c] sm:$0xf0] }
 0x1aa   :  { %3591 = vmatpush.bf16.msrb.mxu2 %v13002_v24  ;;  %v12782_v24 = vor.u32 %v17291_v30, %v12781_v29  ;;  %v2545_v34 = vadd.f32 %v19243_v21, %v2532_v55  ;;  %v17374_v21 = vld [vmem:[%s20426_s5 + $0x38c] sm:$0xf0]  ;;  %v12718_v28 = vor.u32 %v17275_v14, %v12717_v10  ;;  %v17271_v29 = vld [vmem:[%s20426_s5 + $0x54] sm:$0xf0]  ;;  %v12829_v30 = vld [vmem:[%s20426_s5 + $0x148] sm:$0xf]  ;;  %v13078_v41 = vor.u32 %v17366_v15, %v13077_v40 }
 0x1ab   :  { %v13110_v5 = vor.u32 %v17374_v21, %v13109_v4  ;;  %v17299_v55 = vld [vmem:[%s20426_s5 + $0x134] sm:$0xf0]  ;;  %v12783_v4 = vld [vmem:[%s20426_s5 + $0xf8] sm:$0xf0]  ;;  %v17376_v15 = vld [vmem:[%s20426_s5 + $0x3a4] sm:$0xf] }
 0x1ac   :  { %3566 = vmatpush.bf16.msrb.mxu0 %v12730_v49  ;;  %3579 = vmatpush.bf16.msrb.mxu1 %v12858_v12  ;;  %v2559_v25 = vpop.f32.mrf.mxu3  ;;  %v12765_v49 = vld [vmem:[%s20426_s5 + $0xc8] sm:$0xf]  ;;  %v17382_v12 = vld [vmem:[%s20426_s5 + $0x3cc] sm:$0xf0]  ;;  %v2558_v6 = vadd.f32 %v19245_v23, %v2545_v34  ;;  %v17347_v34 = vld [vmem:[%s20426_s5 + $0x2b4] sm:$0xf0] }
 0x1ad   :  { %v2546_v31 = vpop.f32.mrf.mxu2  ;;  %v13142_v54 = vor.u32 %v17382_v12, %v13141_v0  ;;  %v17370_v23 = vld [vmem:[%s20426_s5 + $0x36c] sm:$0xf0]  ;;  %v17303_v25 = vld [vmem:[%s20426_s5 + $0x154] sm:$0xf0] }
 0x1ae   :  { %3592 = vmatpush.bf16.msrb.mxu2 %v12986_v60  ;;  %v12766_v60 = vor.u32 %v17287_v51, %v12765_v49  ;;  %v13037_v31 = vld [vmem:[%s20426_s5 + $0x2e8] sm:$0xf]  ;;  %v12830_v51 = vor.u32 %v17303_v25, %v12829_v30  ;;  %v17351_v0 = vld [vmem:[%s20426_s5 + $0x2d4] sm:$0xf0] }
 0x1af   :  { %3551 = vmatpush.bf16.msra.mxu3 %v13142_v54  ;;  %v13038_v45 = vor.u32 %v17355_v8, %v13037_v31  ;;  %v12813_v54 = vld [vmem:[%s20426_s5 + $0x128] sm:$0xf]  ;;  %v17339_v40 = vld [vmem:[%s20426_s5 + $0x274] sm:$0xf0] }
 0x1b0   :  { %3567 = vmatpush.bf16.msrb.mxu0 %v12714_v57  ;;  %3580 = vmatpush.bf16.msrb.mxu1 %v12842_v44  ;;  %v12749_v57 = vld [vmem:[%s20426_s5 + $0xa8] sm:$0xf] }
 0x1b1   :  { %v12877_v44 = vld [vmem:[%s20426_s5 + $0x1a8] sm:$0xf]  ;;  %v12750_v2 = vor.u32 %v17283_v59, %v12749_v57  ;;  %v17263_v59 = vld [vmem:[%s20426_s5 + $0x14] sm:$0xf0] }
 0x1b2   :  { %3593 = vmatpush.bf16.msrb.mxu2 %v12970_v3  ;;  %v12733_v3 = vld [vmem:[%s20426_s5 + $0x88] sm:$0xf] }
 0x1b3   :  { %3552 = vmatpush.bf16.msra.mxu3 %v13126_v1  ;;  %v12734_v7 = vor.u32 %v17279_v16, %v12733_v3  ;;  %v13005_v1 = vld [vmem:[%s20426_s5 + $0x2a8] sm:$0xf]  ;;  %v17289_v3 = vld [vmem:[%s20426_s5 + $0xec] sm:$0xf]  ;;  %v17358_v16 = vld [vmem:[%s20426_s5 + $0x30c] sm:$0xf0] }
 0x1b4   :  { %3568 = vmatpush.bf16.msrb.mxu0 %v12698_v38  ;;  %3581 = vmatpush.bf16.msrb.mxu1 %v12826_v20  ;;  %v12878_v38 = vor.u32 %v17315_v63, %v12877_v44  ;;  %v17311_v20 = vld [vmem:[%s20426_s5 + $0x194] sm:$0xf0]  ;;  %v12797_v44 = vld [vmem:[%s20426_s5 + $0x108] sm:$0xf] }
 0x1b5   :  { %v12862_v33 = vor.u32 %v17311_v20, %v12861_v56  ;;  %v17295_v63 = vld [vmem:[%s20426_s5 + $0x114] sm:$0xf0]  ;;  %v17384_v56 = vld [vmem:[%s20426_s5 + $0x3e4] sm:$0xf]  ;;  %v13159_v20 = vld [vmem:[%s20426_s5 + $0x3f0] sm:$0xf0] }
 0x1b6   :  { %3594 = vmatpush.bf16.msrb.mxu2 %v12954_v17  ;;  %v13093_v17 = vld [vmem:[%s20426_s5 + $0x360] sm:$0xf]  ;;  %v12798_v14 = vor.u32 %v17295_v63, %v12797_v44  ;;  %v17331_v44 = vld [vmem:[%s20426_s5 + $0x234] sm:$0xf0]  ;;  %v17273_v63 = vld [vmem:[%s20426_s5 + $0x6c] sm:$0xf] }
 0x1b7   :  { %3553 = vmatpush.bf16.msra.mxu3 %v13110_v5  ;;  %v13094_v26 = vor.u32 %v17370_v23, %v13093_v17  ;;  %v17321_v5 = vld [vmem:[%s20426_s5 + $0x1ec] sm:$0xf]  ;;  %v12786_v17 = vor.u32 %v17289_v3, %v12783_v4  ;;  %v12989_v23 = vld [vmem:[%s20426_s5 + $0x288] sm:$0xf]  ;;  %v13095_v3 = vld [vmem:[%s20426_s5 + $0x370] sm:$0xf0] }
 0x1b8   :  { %3569 = vmatpush.bf16.msrb.mxu0 %v12682_v18  ;;  %3582 = vmatpush.bf16.msrb.mxu1 %v12810_v32  ;;  %v12701_v32 = vld [vmem:[%s20426_s5 + $0x48] sm:$0xf] }
 0x1b9   :  { %v12702_v43 = vor.u32 %v17271_v29, %v12701_v32  ;;  %v17380_v32 = vld [vmem:[%s20426_s5 + $0x3c4] sm:$0xf]  ;;  %v12895_v29 = vld [vmem:[%s20426_s5 + $0x1d8] sm:$0xf0] }
 0x1ba   :  { %3595 = vmatpush.bf16.msrb.mxu2 %v12938_v35 }
 0x1bb   :  { %3554 = vmatpush.bf16.msra.mxu3 %v13094_v26  ;;  %v12767_v26 = vld [vmem:[%s20426_s5 + $0xd8] sm:$0xf0] }
 0x1bc   :  { %3570 = vmatpush.bf16.msrb.mxu0 %v12666_v42  ;;  %3583 = vmatpush.bf16.msrb.mxu1 %v12794_v48  ;;  %v2570_v11 = vpop.f32.mrf.mxu0  ;;  %v2583_v19 = vpop.f32.mrf.mxu1  ;;  %v17267_v48 = vld [vmem:[%s20426_s5 + $0x34] sm:$0xf0] }
 0x1bd   :  { %v2571_v18 = vadd.f32 %v2570_v11, %v2558_v6  ;;  %v12686_v62 = vor.u32 %v17267_v48, %v12685_v47  ;;  %v12911_v6 = vld [vmem:[%s20426_s5 + $0x1f8] sm:$0xf0]  ;;  %v13006_v11 = vor.u32 %v17347_v34, %v13005_v1 }
 0x1be   :  { %3596 = vmatpush.bf16.msrb.mxu2 %v12922_v53  ;;  %v17362_v53 = vld [vmem:[%s20426_s5 + $0x32c] sm:$0xf0]  ;;  %v12914_v61 = vor.u32 %v17321_v5, %v12911_v6  ;;  %v12879_v47 = vld [vmem:[%s20426_s5 + $0x1b8] sm:$0xf0]  ;;  %v17327_v5 = vld [vmem:[%s20426_s5 + $0x214] sm:$0xf0] }
 0x1bf   :  { %3571 = vmatmul.bf16.vlgmr.msrb.gmra.mxu0 %v19158_v22  ;;  %3584 = vmatmul.bf16.vlgmr.msrb.gmra.mxu1 %v19166_v37  ;;  %v2584_v27 = vadd.f32 %v2583_v19, %v2571_v18  ;;  %v13062_v57 = vor.u32 %v17362_v53, %v13061_v52  ;;  %v17343_v18 = vld [vmem:[%s20426_s5 + $0x294] sm:$0xf0]  ;;  %v17285_v19 = vld [vmem:[%s20426_s5 + $0xcc] sm:$0xf]  ;;  %v13111_v52 = vld [vmem:[%s20426_s5 + $0x390] sm:$0xf0] }
 0x1c0   :  { %3615 = vmatpush.bf16.msra.mxu0 %v12782_v24  ;;  %3628 = vmatpush.bf16.msra.mxu1 %v12910_v50  ;;  %v13021_v24 = vld [vmem:[%s20426_s5 + $0x2c8] sm:$0xf]  ;;  %v12990_v31 = vor.u32 %v17343_v18, %v12989_v23  ;;  %v12770_v8 = vor.u32 %v17285_v19, %v12767_v26  ;;  %v12719_v34 = vld [vmem:[%s20426_s5 + $0x78] sm:$0xf0]  ;;  %v17364_v23 = vld [vmem:[%s20426_s5 + $0x344] sm:$0xf] }
 0x1c1   :  { %vm2719_vm2 = vcmp.ge.f32.partialorder %v2584_v27, 0.0  ;;  %v2723_v35 = vmul.f32 0.01, %v2584_v27  ;;  %3555 = vmatpush.bf16.msra.mxu3 %v13078_v41  ;;  %v13022_v13 = vor.u32 %v17351_v0, %v13021_v24  ;;  %v17281_v41 = vld [vmem:[%s20426_s5 + $0xac] sm:$0xf]  ;;  %v12722_v6 = vor.u32 %v17273_v63, %v12719_v34 }
 0x1c2   :  { %v12957_v24 = vld [vmem:[%s20426_s5 + $0x248] sm:$0xf]  ;;  %v17335_v0 = vld [vmem:[%s20426_s5 + $0x254] sm:$0xf0]  ;;  %v13079_v18 = vld [vmem:[%s20426_s5 + $0x350] sm:$0xf0] }
 0x1c3   :  { %v2727_v42 = vsel %vm2719_vm2, %v2584_v27, %v2723_v35  ;;  %v13143_v27 = vld [vmem:[%s20426_s5 + $0x3d0] sm:$0xf0]  ;;  %v17301_v19 = vld [vmem:[%s20426_s5 + $0x14c] sm:$0xf]  ;;  %v592_v26 = vperm.slane %v19188_v39, 3 }
 0x1c4   :  { %3616 = vmatpush.bf16.msra.mxu0 %v12766_v60  ;;  %3629 = vmatpush.bf16.msra.mxu1 %v12894_v58  ;;  %v19421_v50 = vpack.c.bf16 %v2727_v42, %v2727_v42  ;;  %v19426_v12 = vpop.f32.mrf.mxu3  ;;  %v2572_v36 = vpop.f32.mrf.mxu0  ;;  %v12669_v58 = vld [vmem:[%s20426_s5 + $0x8] sm:$0xf]  ;;  %v13146_v30 = vor.u32 %v17380_v32, %v13143_v27  ;;  %v13127_v35 = vld [vmem:[%s20426_s5 + $0x3b0] sm:$0xf0]  ;;  %v12751_v42 = vld [vmem:[%s20426_s5 + $0xb8] sm:$0xf0] }
 0x1c5   :  { %v19419_v49 = vpop.f32.mrf.mxu2  ;;  %v2585_v60 = vpop.f32.mrf.mxu1  ;;  %3556 = vmatpush.bf16.msra.mxu3 %v13062_v57  ;;  %v12670_v10 = vor.u32 %v17263_v59, %v12669_v58  ;;  %v17372_v36 = vld [vmem:[%s20426_s5 + $0x384] sm:$0xf]  ;;  %v17309_v57 = vld [vmem:[%s20426_s5 + $0x18c] sm:$0xf]  ;;  %v12863_v58 = vld [vmem:[%s20426_s5 + $0x198] sm:$0xf0]  ;;  %v12958_v59 = vor.u32 %v17335_v0, %v12957_v24 }
 0x1c6   :  { %3545 = vmatmul.bf16.vlgmr.msra.gmra.mxu2 %v19421_v50  ;;  %v13114_v60 = vor.u32 %v17372_v36, %v13111_v52  ;;  %v12866_v1 = vor.u32 %v17309_v57, %v12863_v58  ;;  %v12671_v0 = vld [vmem:[%s20426_s5 + $0x18] sm:$0xf0]  ;;  %v17345_v36 = vld [vmem:[%s20426_s5 + $0x2ac] sm:$0xf] }
 0x1c7   :  { %3641 = vmatpush.bf16.msra.mxu2 %v13038_v45  ;;  %v17313_v45 = vld [vmem:[%s20426_s5 + $0x1ac] sm:$0xf]  ;;  %v13007_v52 = vld [vmem:[%s20426_s5 + $0x2b8] sm:$0xf0] }
 0x1c8   :  { %3617 = vmatpush.bf16.msra.mxu0 %v12750_v2  ;;  %3630 = vmatpush.bf16.msra.mxu1 %v12878_v38  ;;  %v12814_v2 = vor.u32 %v17299_v55, %v12813_v54  ;;  %v13045_v38 = vld [vmem:[%s20426_s5 + $0x300] sm:$0xf]  ;;  %v12882_v53 = vor.u32 %v17313_v45, %v12879_v47  ;;  %v17277_v54 = vld [vmem:[%s20426_s5 + $0x8c] sm:$0xf]  ;;  %v12735_v55 = vld [vmem:[%s20426_s5 + $0x98] sm:$0xf0] }
 0x1c9   :  { %v13046_v21 = vor.u32 %v17358_v16, %v13045_v38  ;;  %v17305_v38 = vld [vmem:[%s20426_s5 + $0x16c] sm:$0xf]  ;;  %v12847_v16 = vld [vmem:[%s20426_s5 + $0x178] sm:$0xf0] }
 0x1ca   :  { %v12991_v34 = vld [vmem:[%s20426_s5 + $0x298] sm:$0xf0] }
 0x1cb   :  { %3642 = vmatpush.bf16.msra.mxu2 %v13022_v13  ;;  %3557 = vmatpush.bf16.msra.mxu3 %v13046_v21  ;;  %v12941_v13 = vld [vmem:[%s20426_s5 + $0x228] sm:$0xf] }
 0x1cc   :  { %3618 = vmatpush.bf16.msra.mxu0 %v12734_v7  ;;  %3631 = vmatpush.bf16.msra.mxu1 %v12862_v33  ;;  %v13162_v7 = vor.u32 %v17384_v56, %v13159_v20  ;;  %v2611_v46 = vpop.f32.mrf.mxu3  ;;  %v12942_v21 = vor.u32 %v17331_v44, %v12941_v13  ;;  %v12925_v20 = vld [vmem:[%s20426_s5 + $0x208] sm:$0xf] }
 0x1cd   :  { %v2598_v33 = vpop.f32.mrf.mxu2  ;;  %v12831_v46 = vld [vmem:[%s20426_s5 + $0x158] sm:$0xf0]  ;;  %v12926_v32 = vor.u32 %v17327_v5, %v12925_v20 }
 0x1ce   :  { %v17353_v33 = vld [vmem:[%s20426_s5 + $0x2ec] sm:$0xf]  ;;  %v12834_v39 = vor.u32 %v17301_v19, %v12831_v46 }
 0x1cf   :  { %3602 = vmatpush.bf16.msrb.mxu3 %v13162_v7  ;;  %3643 = vmatpush.bf16.msra.mxu2 %v13006_v11  ;;  %v12703_v11 = vld [vmem:[%s20426_s5 + $0x58] sm:$0xf0] }
 0x1d0   :  { %3619 = vmatpush.bf16.msra.mxu0 %v12718_v28  ;;  %3632 = vmatpush.bf16.msra.mxu1 %v12846_v9  ;;  %v17317_v28 = vld [vmem:[%s20426_s5 + $0x1cc] sm:$0xf]  ;;  %v12973_v9 = vld [vmem:[%s20426_s5 + $0x268] sm:$0xf] }
 0x1d1   :  { %v12898_v25 = vor.u32 %v17317_v28, %v12895_v29  ;;  %v12974_v48 = vor.u32 %v17339_v40, %v12973_v9  ;;  %v17349_v9 = vld [vmem:[%s20426_s5 + $0x2cc] sm:$0xf]  ;;  %v13023_v40 = vld [vmem:[%s20426_s5 + $0x2d8] sm:$0xf0] }
 0x1d3   :  { %3603 = vmatpush.bf16.msrb.mxu3 %v13146_v30  ;;  %3644 = vmatpush.bf16.msra.mxu2 %v12990_v31  ;;  %v17265_v30 = vld [vmem:[%s20426_s5 + $0x2c] sm:$0xf]  ;;  %v12687_v31 = vld [vmem:[%s20426_s5 + $0x38] sm:$0xf0] }
 0x1d4   :  { %3620 = vmatpush.bf16.msra.mxu0 %v12702_v43  ;;  %3633 = vmatpush.bf16.msra.mxu1 %v12830_v51  ;;  %v13130_v43 = vor.u32 %v17376_v15, %v13127_v35  ;;  %v12754_v51 = vor.u32 %v17281_v41, %v12751_v42  ;;  %v17360_v15 = vld [vmem:[%s20426_s5 + $0x324] sm:$0xf]  ;;  %v13063_v35 = vld [vmem:[%s20426_s5 + $0x330] sm:$0xf0]  ;;  %v12815_v41 = vld [vmem:[%s20426_s5 + $0x138] sm:$0xf0]  ;;  %v12690_v47 = vor.u32 %v17265_v30, %v12687_v31 }
 0x1d5   :  { %v13066_v42 = vor.u32 %v17360_v15, %v13063_v35  ;;  %v17383_v15 = vld [vmem:[%s20426_s5 + $0x3d4] sm:$0xf0] }
 0x1d6   :  { %3597 = vmatmul.bf16.vlgmr.msrb.gmra.mxu2 %v19421_v50 }
 0x1d7   :  { %3604 = vmatpush.bf16.msrb.mxu3 %v13130_v43  ;;  %3645 = vmatpush.bf16.msra.mxu2 %v12974_v48  ;;  %v2597_v43 = vadd.f32 %v19419_v49, %v592_v26  ;;  %v13026_v48 = vor.u32 %v17349_v9, %v13023_v40  ;;  %v13149_v40 = vld [vmem:[%s20426_s5 + $0x3c8] sm:$0xf] }
 0x1d8   :  { %3621 = vmatpush.bf16.msra.mxu0 %v12686_v62  ;;  %3634 = vmatpush.bf16.msra.mxu1 %v12814_v2  ;;  %v12738_v62 = vor.u32 %v17277_v54, %v12735_v55  ;;  %v17368_v2 = vld [vmem:[%s20426_s5 + $0x364] sm:$0xf]  ;;  %v13047_v54 = vld [vmem:[%s20426_s5 + $0x310] sm:$0xf0]  ;;  %v17293_v55 = vld [vmem:[%s20426_s5 + $0x10c] sm:$0xf] }
 0x1d9   :  { %v13098_v4 = vor.u32 %v17368_v2, %v13095_v3  ;;  %v2610_v58 = vadd.f32 %v19426_v12, %v2597_v43  ;;  %v17337_v3 = vld [vmem:[%s20426_s5 + $0x26c] sm:$0xf]  ;;  %v13117_v43 = vld [vmem:[%s20426_s5 + $0x388] sm:$0xf] }
 0x1db   :  { %3605 = vmatpush.bf16.msrb.mxu3 %v13114_v60  ;;  %3646 = vmatpush.bf16.msra.mxu2 %v12958_v59  ;;  %v12799_v60 = vld [vmem:[%s20426_s5 + $0x118] sm:$0xf0] }
 0x1dc   :  { %3622 = vmatpush.bf16.msra.mxu0 %v12670_v10  ;;  %3635 = vmatpush.bf16.msra.mxu1 %v12798_v14  ;;  %v19582_v56 = vpop.f32.mrf.mxu0  ;;  %v19590_v7 = vpop.f32.mrf.mxu1  ;;  %v17269_v10 = vld [vmem:[%s20426_s5 + $0x4c] sm:$0xf]  ;;  %v12850_v14 = vor.u32 %v17305_v38, %v12847_v16  ;;  %v12802_v44 = vor.u32 %v17293_v55, %v12799_v60  ;;  %v12975_v38 = vld [vmem:[%s20426_s5 + $0x278] sm:$0xf0]  ;;  %v17367_v55 = vld [vmem:[%s20426_s5 + $0x354] sm:$0xf0] }
 0x1dd   :  { %v12706_v27 = vor.u32 %v17269_v10, %v12703_v11  ;;  %v2623_v2 = vadd.f32 %v19582_v56, %v2610_v58  ;;  %v12959_v56 = vld [vmem:[%s20426_s5 + $0x258] sm:$0xf0]  ;;  %v13069_v58 = vld [vmem:[%s20426_s5 + $0x328] sm:$0xf] }
 0x1df   :  { %3623 = vmatmul.bf16.vlgmr.msra.gmra.mxu0 %v19158_v22  ;;  %3636 = vmatmul.bf16.vlgmr.msra.gmra.mxu1 %v19166_v37  ;;  %v2636_v16 = vadd.f32 %v19590_v7, %v2623_v2  ;;  %v13167_v2 = vld [vmem:[%s20426_s5 + $0x3f8] sm:$0xf0] }
 0x1e0   :  { %3667 = vmatpush.bf16.msrb.mxu0 %v12786_v17  ;;  %3680 = vmatpush.bf16.msrb.mxu1 %v12914_v61  ;;  %v13039_v17 = vld [vmem:[%s20426_s5 + $0x2f8] sm:$0xf0]  ;;  %v13082_v61 = vor.u32 %v17364_v23, %v13079_v18 }
 0x1e1   :  { %3606 = vmatpush.bf16.msrb.mxu3 %v13098_v4  ;;  %3647 = vmatpush.bf16.msra.mxu2 %v12942_v21  ;;  %v13042_v28 = vor.u32 %v17353_v33, %v13039_v17  ;;  %v12978_v4 = vor.u32 %v17337_v3, %v12975_v38  ;;  %v17333_v21 = vld [vmem:[%s20426_s5 + $0x24c] sm:$0xf]  ;;  %v12927_v17 = vld [vmem:[%s20426_s5 + $0x218] sm:$0xf0] }
 0x1e2   :  { %v12962_v5 = vor.u32 %v17333_v21, %v12959_v56  ;;  %v17381_v38 = vld [vmem:[%s20426_s5 + $0x3cc] sm:$0xf]  ;;  %v13135_v56 = vld [vmem:[%s20426_s5 + $0x3b8] sm:$0xf0] }
 0x1e3   :  { %v17377_v21 = vld [vmem:[%s20426_s5 + $0x3ac] sm:$0xf] }
 0x1e4   :  { %3668 = vmatpush.bf16.msrb.mxu0 %v12770_v8  ;;  %3681 = vmatpush.bf16.msrb.mxu1 %v12898_v25  ;;  %v2661_v8 = vpop.f32.mrf.mxu3  ;;  %v17297_v25 = vld [vmem:[%s20426_s5 + $0x12c] sm:$0xf]  ;;  %v2624_v45 = vpop.f32.mrf.mxu0 }
 0x1e5   :  { %v2648_v29 = vpop.f32.mrf.mxu2  ;;  %3607 = vmatpush.bf16.msrb.mxu3 %v13082_v61  ;;  %3648 = vmatpush.bf16.msra.mxu2 %v12926_v32  ;;  %v2637_v24 = vpop.f32.mrf.mxu1  ;;  %v12818_v49 = vor.u32 %v17297_v25, %v12815_v41  ;;  %v13150_v25 = vor.u32 %v17383_v15, %v13149_v40  ;;  %v17379_v41 = vld [vmem:[%s20426_s5 + $0x3b4] sm:$0xf0]  ;;  %v13365_v15 = vld [vmem:[#allocation9 + $0x180] sm:$0xf] }
 0x1e6   :  { %v2649_v20 = vadd.f32 %v2648_v29, %v2636_v16  ;;  %v17387_v29 = vld [vmem:[%s20426_s5 + $0x3f4] sm:$0xf0]  ;;  %v13151_v16 = vld [vmem:[%s20426_s5 + $0x3d8] sm:$0xf0] }
 0x1e7   :  { %v17375_v45 = vld [vmem:[%s20426_s5 + $0x394] sm:$0xf0] }
 0x1e8   :  { %3669 = vmatpush.bf16.msrb.mxu0 %v12754_v51  ;;  %3682 = vmatpush.bf16.msrb.mxu1 %v12882_v53  ;;  %v17261_v51 = vld [vmem:[%s20426_s5 + $0xc] sm:$0xf]  ;;  %v17356_v53 = vld [vmem:[%s20426_s5 + $0x304] sm:$0xf] }
 0x1e9   :  { %3693 = vmatpush.bf16.msrb.mxu2 %v13042_v28  ;;  %3608 = vmatpush.bf16.msrb.mxu3 %v13066_v42  ;;  %v13050_v57 = vor.u32 %v17356_v53, %v13047_v54  ;;  %v12674_v59 = vor.u32 %v17261_v51, %v12671_v0  ;;  %v13165_v28 = vld [vmem:[%s20426_s5 + $0x3e8] sm:$0xf]  ;;  %v17371_v0 = vld [vmem:[%s20426_s5 + $0x374] sm:$0xf0] }
 0x1ea   :  { %3649 = vmatmul.bf16.vlgmr.msra.gmra.mxu2 %v19421_v50  ;;  %v13166_v9 = vor.u32 %v17387_v29, %v13165_v28  ;;  %v13101_v51 = vld [vmem:[%s20426_s5 + $0x368] sm:$0xf] }
 0x1eb   :  { %v13085_v54 = vld [vmem:[%s20426_s5 + $0x348] sm:$0xf] }
 0x1ec   :  { %3670 = vmatpush.bf16.msrb.mxu0 %v12738_v62  ;;  %3683 = vmatpush.bf16.msrb.mxu1 %v12866_v1  ;;  %v13010_v62 = vor.u32 %v17345_v36, %v13007_v52  ;;  %v2663_v63 = vpop.f32.mrf.mxu3  ;;  %v17341_v1 = vld [vmem:[%s20426_s5 + $0x28c] sm:$0xf]  ;;  %v13397_v28 = vld [vmem:[#allocation9 + $0x1c0] sm:$0xf] }
 0x1ed   :  { %3694 = vmatpush.bf16.msrb.mxu2 %v13026_v48  ;;  %v2650_v13 = vpop.f32.mrf.mxu2  ;;  %3609 = vmatpush.bf16.msrb.mxu3 %v13050_v57  ;;  %v12994_v12 = vor.u32 %v17341_v1, %v12991_v34  ;;  %v13118_v48 = vor.u32 %v17375_v45, %v13117_v43  ;;  %v13086_v57 = vor.u32 %v17367_v55, %v13085_v54  ;;  %v13053_v63 = vld [vmem:[%s20426_s5 + $0x308] sm:$0xf]  ;;  %v17359_v1 = vld [vmem:[%s20426_s5 + $0x314] sm:$0xf0]  ;;  %v17385_v34 = vld [vmem:[%s20426_s5 + $0x3ec] sm:$0xf] }
 0x1ee   :  { %v13170_v3 = vor.u32 %v17385_v34, %v13167_v2  ;;  %v17648_v29 = vld [vmem:[#allocation9 + $0x1dc] sm:$0xf0] }
 0x1ef   :  { %v13205_v2 = vld [vmem:[#allocation9 + $0x40] sm:$0xf] }
 0x1f0   :  { %3671 = vmatpush.bf16.msrb.mxu0 %v12722_v6  ;;  %3684 = vmatpush.bf16.msrb.mxu1 %v12850_v14  ;;  %v17329_v6 = vld [vmem:[%s20426_s5 + $0x22c] sm:$0xf] }
 0x1f1   :  { %3695 = vmatpush.bf16.msrb.mxu2 %v13010_v62  ;;  %v17325_v14 = vld [vmem:[%s20426_s5 + $0x20c] sm:$0xf] }
 0x1f2   :  { %v12930_v23 = vor.u32 %v17325_v14, %v12927_v17 }
 0x1f4   :  { %3672 = vmatpush.bf16.msrb.mxu0 %v12706_v27  ;;  %3685 = vmatpush.bf16.msrb.mxu1 %v12834_v39 }
 0x1f5   :  { %3696 = vmatpush.bf16.msrb.mxu2 %v12994_v12  ;;  %v13054_v12 = vor.u32 %v17359_v1, %v13053_v63  ;;  %v17704_v1 = vld [vmem:[#allocation9 + $0x39c] sm:$0xf0] }
 0x1f8   :  { %3673 = vmatpush.bf16.msrb.mxu0 %v12690_v47  ;;  %3686 = vmatpush.bf16.msrb.mxu1 %v12818_v49  ;;  %v19730_v47 = vld [vmem:[#allocation6] sm:$0xf]  ;;  %v13102_v49 = vor.u32 %v17371_v0, %v13101_v51 }
 0x1f9   :  { %3697 = vmatpush.bf16.msrb.mxu2 %v12978_v4  ;;  %v2863_v24 = vperm.slane %v19730_v47, 0  ;;  %v13154_v4 = vor.u32 %v17381_v38, %v13151_v16  ;;  %v2865_v51 = vperm.slane %v19730_v47, 2  ;;  %v17696_v16 = vld [vmem:[#allocation9 + $0x35c] sm:$0xf0] }
 0x1fc   :  { %3674 = vmatpush.bf16.msrb.mxu0 %v12674_v59  ;;  %3687 = vmatpush.bf16.msrb.mxu1 %v12802_v44  ;;  %v2674_v7 = vpop.f32.mrf.mxu0  ;;  %v2687_v10 = vpop.f32.mrf.mxu1  ;;  %v17363_v59 = vld [vmem:[%s20426_s5 + $0x334] sm:$0xf0] }
 0x1fd   :  { %3698 = vmatpush.bf16.msrb.mxu2 %v12962_v5  ;;  %v13070_v13 = vor.u32 %v17363_v59, %v13069_v58  ;;  %v17373_v5 = vld [vmem:[%s20426_s5 + $0x38c] sm:$0xf]  ;;  %v17712_v58 = vld [vmem:[#allocation9 + $0x3dc] sm:$0xf0] }
 0x1ff   :  { %3675 = vmatmul.bf16.vlgmr.msrb.gmra.mxu0 %v19158_v22  ;;  %3688 = vmatmul.bf16.vlgmr.msrb.gmra.mxu1 %v19166_v37  ;;  %v12943_v22 = vld [vmem:[%s20426_s5 + $0x238] sm:$0xf0]  ;;  %v2662_v37 = vadd.f32 %v2661_v8, %v2649_v20  ;;  %v13138_v20 = vor.u32 %v17377_v21, %v13135_v56  ;;  %v13173_v56 = vld [vmem:[#allocation9] sm:$0xf] }
 0x200   :  { %v12946_v11 = vor.u32 %v17329_v6, %v12943_v22  ;;  %v13119_v6 = vld [vmem:[%s20426_s5 + $0x398] sm:$0xf0] }
 0x201   :  { %v2675_v33 = vadd.f32 %v2674_v7, %v2662_v37  ;;  %v13122_v22 = vor.u32 %v17373_v5, %v13119_v6  ;;  %v2864_v37 = vperm.slane %v19730_v47, 1  ;;  %v17369_v7 = vld [vmem:[%s20426_s5 + $0x36c] sm:$0xf]  ;;  %v13557_v5 = vld [vmem:[#allocation9 + $0x300] sm:$0xf] }
 0x202   :  { %3699 = vmatpush.bf16.msrb.mxu2 %v12946_v11 }
 0x203   :  { %v2688_v18 = vadd.f32 %v2687_v10, %v2675_v33  ;;  %v13103_v10 = vld [vmem:[%s20426_s5 + $0x378] sm:$0xf0] }
 0x204   :  { %v2700_v19 = vpop.f32.mrf.mxu2  ;;  %v2713_v61 = vpop.f32.mrf.mxu3  ;;  %v13106_v33 = vor.u32 %v17369_v7, %v13103_v10  ;;  %v13655_v7 = vld [vmem:[#allocation9 + $0x3e0] sm:$0xf0] }
 0x205   :  { %v2701_v46 = vadd.f32 %v2700_v19, %v2688_v18  ;;  %v2676_v26 = vpop.f32.mrf.mxu0  ;;  %v2689_v32 = vpop.f32.mrf.mxu1  ;;  %v13087_v18 = vld [vmem:[%s20426_s5 + $0x358] sm:$0xf0] }
 0x206   :  { %3700 = vmatpush.bf16.msrb.mxu2 %v12930_v23  ;;  %v17365_v23 = vld [vmem:[%s20426_s5 + $0x34c] sm:$0xf]  ;;  %v13071_v26 = vld [vmem:[%s20426_s5 + $0x338] sm:$0xf0] }
 0x207   :  { %v2714_v27 = vadd.f32 %v2713_v61, %v2701_v46  ;;  %v13090_v46 = vor.u32 %v17365_v23, %v13087_v18  ;;  %v17361_v61 = vld [vmem:[%s20426_s5 + $0x32c] sm:$0xf]  ;;  %v13525_v23 = vld [vmem:[#allocation9 + $0x2c0] sm:$0xf] }
 0x208   :  { %v17680_v18 = vld [vmem:[#allocation9 + $0x2dc] sm:$0xf0] }
 0x209   :  { %vm2720_vm3 = vcmp.ge.f32.partialorder %v2714_v27, 0.0  ;;  %v2724_v30 = vmul.f32 0.01, %v2714_v27  ;;  %3701 = vmatmul.bf16.vlgmr.msrb.gmra.mxu2 %v19421_v50  ;;  %v13133_v50 = vld [vmem:[%s20426_s5 + $0x3a8] sm:$0xf] }
 0x20a   :  { %v13134_v42 = vor.u32 %v17379_v41, %v13133_v50  ;;  %v17632_v41 = vld [vmem:[#allocation9 + $0x15c] sm:$0xf0] }
 0x20b   :  { %v2728_v31 = vsel %vm2720_vm3, %v2714_v27, %v2724_v30  ;;  %v13074_v27 = vor.u32 %v17361_v61, %v13071_v26  ;;  %v13623_v61 = vld [vmem:[#allocation9 + $0x3a0] sm:$0xf0]  ;;  %v13526_v26 = vor.u32 %v17680_v18, %v13525_v23 }
 0x20c   :  { %v19709_v39 = vpack.c.bf16 %v2728_v31, %v2728_v31  ;;  %v2702_v8 = vpop.f32.mrf.mxu2  ;;  %v2715_v35 = vpop.f32.mrf.mxu3  ;;  %v17357_v31 = vld [vmem:[%s20426_s5 + $0x30c] sm:$0xf] }
 0x20d   :  { %v13398_v8 = vor.u32 %v17648_v29, %v13397_v28  ;;  %v17640_v35 = vld [vmem:[#allocation9 + $0x19c] sm:$0xf0]  ;;  %v17692_v29 = vld [vmem:[#allocation9 + $0x344] sm:$0xf] }
 0x20e   :  { %3558 = vmatmul.bf16.vlgmr.msra.gmra.mxu3 %v19709_v39  ;;  %v13366_v50 = vor.u32 %v17640_v35, %v13365_v15  ;;  %v17672_v28 = vld [vmem:[#allocation9 + $0x29c] sm:$0xf0]  ;;  %v17684_v15 = vld [vmem:[#allocation9 + $0x304] sm:$0xf] }
 0x20f   :  { %3654 = vmatpush.bf16.msra.mxu3 %v13166_v9  ;;  %v13055_v9 = vld [vmem:[%s20426_s5 + $0x318] sm:$0xf0]  ;;  %5190 = vmatpush.bf16.msra.mxu0 %v13398_v8  ;;  %v13461_v8 = vld [vmem:[#allocation9 + $0x240] sm:$0xf] }
 0x210   :  { %v13058_v40 = vor.u32 %v17357_v31, %v13055_v9 }
 0x213   :  { %3655 = vmatpush.bf16.msra.mxu3 %v13150_v25  ;;  %v13333_v25 = vld [vmem:[#allocation9 + $0x140] sm:$0xf]  ;;  %5191 = vmatpush.bf16.msra.mxu0 %v13366_v50 }
 0x217   :  { %3656 = vmatpush.bf16.msra.mxu3 %v13134_v42  ;;  %v13334_v42 = vor.u32 %v17632_v41, %v13333_v25  ;;  %v13559_v25 = vld [vmem:[#allocation9 + $0x320] sm:$0xf0]  ;;  %v2866_v41 = vperm.slane %v19730_v47, 3 }
 0x218   :  { %v17668_v47 = vld [vmem:[#allocation9 + $0x284] sm:$0xf] }
 0x219   :  { %5192 = vmatpush.bf16.msra.mxu0 %v13334_v42  ;;  %v13562_v42 = vor.u32 %v17684_v15, %v13559_v25  ;;  %v17752_v25 = vld [vmem:[#allocation9 + $0x51c] sm:$0xf0] }
 0x21b   :  { %3657 = vmatpush.bf16.msra.mxu3 %v13118_v48  ;;  %v13301_v48 = vld [vmem:[#allocation9 + $0x100] sm:$0xf] }
 0x21c   :  { %v3520_v36 = vpop.f32.mrf.mxu0  ;;  %v3533_v53 = vpop.f32.mrf.mxu1 }
 0x21d   :  { %v3521_v52 = vadd.f32 %v3520_v36, %v2863_v24  ;;  %v17624_v24 = vld [vmem:[#allocation9 + $0x11c] sm:$0xf0] }
 0x21e   :  { %3610 = vmatmul.bf16.vlgmr.msrb.gmra.mxu3 %v19709_v39  ;;  %v13302_v0 = vor.u32 %v17624_v24, %v13301_v48  ;;  %v13429_v48 = vld [vmem:[#allocation9 + $0x200] sm:$0xf] }
 0x21f   :  { %v19745_v60 = vadd.f32 %v3533_v53, %v3521_v52  ;;  %3658 = vmatpush.bf16.msra.mxu3 %v13102_v49  ;;  %v13269_v49 = vld [vmem:[#allocation9 + $0xc0] sm:$0xf] }
 0x220   :  { %5193 = vmatpush.bf16.msra.mxu0 %v13302_v0  ;;  %v17616_v52 = vld [vmem:[#allocation9 + $0xdc] sm:$0xf0] }
 0x221   :  { %v13653_v53 = vld [vmem:[#allocation9 + $0x3c0] sm:$0xf] }
 0x222   :  { %v13654_v59 = vor.u32 %v17712_v58, %v13653_v53  ;;  %v17656_v24 = vld [vmem:[#allocation9 + $0x21c] sm:$0xf0] }
 0x223   :  { %3659 = vmatpush.bf16.msra.mxu3 %v13086_v57  ;;  %v13270_v57 = vor.u32 %v17616_v52, %v13269_v49  ;;  %v13430_v0 = vor.u32 %v17656_v24, %v13429_v48  ;;  %v13527_v49 = vld [vmem:[#allocation9 + $0x2e0] sm:$0xf0] }
 0x224   :  { %v3522_v62 = vpop.f32.mrf.mxu0  ;;  %v3535_v44 = vpop.f32.mrf.mxu1  ;;  %5203 = vmatpush.bf16.msra.mxu1 %v13654_v59  ;;  %v17772_v52 = vld [vmem:[#allocation9 + $0x5c4] sm:$0xf] }
 0x225   :  { %5194 = vmatpush.bf16.msra.mxu0 %v13270_v57  ;;  %v13621_v44 = vld [vmem:[#allocation9 + $0x380] sm:$0xf]  ;;  %v13911_v57 = vld [vmem:[#allocation9 + $0x5e0] sm:$0xf0] }
 0x226   :  { %v13622_v34 = vor.u32 %v17704_v1, %v13621_v44  ;;  %v13914_v58 = vor.u32 %v17772_v52, %v13911_v57  ;;  %v13495_v59 = vld [vmem:[#allocation9 + $0x2a0] sm:$0xf0]  ;;  %v3731_v52 = vld [vmem:[%s20443_s6] sm:$0xff] }
 0x227   :  { %3660 = vmatpush.bf16.msra.mxu3 %v13070_v13  ;;  %v17608_v13 = vld [vmem:[#allocation9 + $0x9c] sm:$0xf0]  ;;  %v13879_v44 = vld [vmem:[#allocation9 + $0x5a0] sm:$0xf0] }
 0x228   :  { %5204 = vmatpush.bf16.msra.mxu1 %v13622_v34  ;;  %v17660_v34 = vld [vmem:[#allocation9 + $0x244] sm:$0xf] }
 0x229   :  { %v17716_v24 = vld [vmem:[#allocation9 + $0x404] sm:$0xf] }
 0x22b   :  { %3661 = vmatpush.bf16.msra.mxu3 %v13054_v12  ;;  %v17600_v12 = vld [vmem:[#allocation9 + $0x5c] sm:$0xf0] }
 0x22c   :  { %v13206_v38 = vor.u32 %v17600_v12, %v13205_v2  ;;  %v13463_v2 = vld [vmem:[#allocation9 + $0x260] sm:$0xf0] }
 0x22d   :  { %v17756_v12 = vld [vmem:[#allocation9 + $0x544] sm:$0xf] }
 0x22e   :  { %3662 = vmatmul.bf16.vlgmr.msra.gmra.mxu3 %v19709_v39 }
 0x22f   :  { %3706 = vmatpush.bf16.msrb.mxu3 %v13170_v3  ;;  %v13589_v3 = vld [vmem:[#allocation9 + $0x340] sm:$0xf] }
 0x230   :  { %v13590_v21 = vor.u32 %v17696_v16, %v13589_v3  ;;  %v13847_v16 = vld [vmem:[#allocation9 + $0x560] sm:$0xf0] }
 0x232   :  { %5205 = vmatpush.bf16.msra.mxu1 %v13590_v21  ;;  %v18703_v21 = vmov 3.0  }
 0x233   :  { %3707 = vmatpush.bf16.msrb.mxu3 %v13154_v4  ;;  %18347 = vrcp.f32 %v18703_v21  ;;  %v13685_v21 = vld [vmem:[#allocation9 + $0x400] sm:$0xf] }
 0x237   :  { %3708 = vmatpush.bf16.msrb.mxu3 %v13138_v20  ;;  %v17592_v20 = vld [vmem:[#allocation9 + $0x1c] sm:$0xf0] }
 0x239   :  { %v18348_v23 = vpop.eup %18347 }
 0x23a   :  { %vm3752_vm4 = vweird.f32 %v18348_v23 }
 0x23b   :  { %3709 = vmatpush.bf16.msrb.mxu3 %v13122_v22  ;;  %v17688_v22 = vld [vmem:[#allocation9 + $0x31c] sm:$0xf0] }
 0x23c   :  { %v3572_v11 = vpop.f32.mrf.mxu0  ;;  %v3585_v17 = vpop.f32.mrf.mxu1 }
 0x23d   :  { %v3573_v14 = vadd.f32 %v3572_v11, %v2864_v37  ;;  %v17708_v37 = vld [vmem:[#allocation9 + $0x3c4] sm:$0xf] }
 0x23f   :  { %v19798_v19 = vadd.f32 %v3585_v17, %v3573_v14  ;;  %3710 = vmatpush.bf16.msrb.mxu3 %v13106_v33  ;;  %v13174_v33 = vor.u32 %v17592_v20, %v13173_v56  ;;  %v13558_v14 = vor.u32 %v17688_v22, %v13557_v5  ;;  %v13658_v17 = vor.u32 %v17708_v37, %v13655_v7  ;;  %v17652_v56 = vld [vmem:[#allocation9 + $0x204] sm:$0xf]  ;;  %v13909_v37 = vld [vmem:[#allocation9 + $0x5c0] sm:$0xf] }
 0x240   :  { %v13431_v20 = vld [vmem:[#allocation9 + $0x220] sm:$0xf0]  ;;  %v17776_v7 = vld [vmem:[#allocation9 + $0x5dc] sm:$0xf0] }
 0x241   :  { %5206 = vmatpush.bf16.msra.mxu1 %v13558_v14  ;;  %v17748_v5 = vld [vmem:[#allocation9 + $0x504] sm:$0xf] }
 0x242   :  { %v13815_v22 = vld [vmem:[#allocation9 + $0x520] sm:$0xf0] }
 0x243   :  { %3711 = vmatpush.bf16.msrb.mxu3 %v13090_v46  ;;  %v17700_v46 = vld [vmem:[#allocation9 + $0x384] sm:$0xf] }
 0x244   :  { %v3574_v32 = vpop.f32.mrf.mxu0  ;;  %v3587_v30 = vpop.f32.mrf.mxu1  ;;  %v17740_v14 = vld [vmem:[#allocation9 + $0x4c4] sm:$0xf] }
 0x245   :  { %v13626_v32 = vor.u32 %v17700_v46, %v13623_v61  ;;  %v13591_v30 = vld [vmem:[#allocation9 + $0x360] sm:$0xf0]  ;;  %5207 = vmatpush.bf16.msra.mxu1 %v13526_v26  ;;  %v13877_v46 = vld [vmem:[#allocation9 + $0x580] sm:$0xf] }
 0x246   :  { %v13594_v9 = vor.u32 %v17692_v29, %v13591_v30  ;;  %v17768_v61 = vld [vmem:[#allocation9 + $0x59c] sm:$0xf0] }
 0x247   :  { %3712 = vmatpush.bf16.msrb.mxu3 %v13074_v27  ;;  %v13493_v27 = vld [vmem:[#allocation9 + $0x280] sm:$0xf]  ;;  %v13878_v26 = vor.u32 %v17768_v61, %v13877_v46  ;;  %v17780_v61 = vld [vmem:[#allocation9 + $0x604] sm:$0xf] }
 0x248   :  { %v13494_v31 = vor.u32 %v17672_v28, %v13493_v27  ;;  %v17732_v27 = vld [vmem:[#allocation9 + $0x484] sm:$0xf]  ;;  %v13845_v30 = vld [vmem:[#allocation9 + $0x540] sm:$0xf] }
 0x249   :  { %v3546_v43 = vpop.f32.mrf.mxu2  ;;  %v13751_v28 = vld [vmem:[#allocation9 + $0x4a0] sm:$0xf0] }
 0x24a   :  { %v19814_v45 = vadd.f32 %v3546_v43, %v19745_v60  ;;  %v13237_v60 = vld [vmem:[#allocation9 + $0x80] sm:$0xf]  ;;  %5208 = vmatpush.bf16.msra.mxu1 %v13494_v31  ;;  %v13754_v29 = vor.u32 %v17732_v27, %v13751_v28 }
 0x24b   :  { %3713 = vmatpush.bf16.msrb.mxu3 %v13058_v40  ;;  %v13238_v63 = vor.u32 %v17608_v13, %v13237_v60  ;;  %v17664_v40 = vld [vmem:[#allocation9 + $0x25c] sm:$0xf0]  ;;  %v13498_v13 = vor.u32 %v17668_v47, %v13495_v59 }
 0x24c   :  { %v13462_v35 = vor.u32 %v17664_v40, %v13461_v8  ;;  %v17724_v8 = vld [vmem:[#allocation9 + $0x444] sm:$0xf]  ;;  %v13749_v47 = vld [vmem:[#allocation9 + $0x480] sm:$0xf] }
 0x24d   :  { %5195 = vmatpush.bf16.msra.mxu0 %v13238_v63  ;;  %v13719_v40 = vld [vmem:[#allocation9 + $0x460] sm:$0xf0]  ;;  %v17736_v59 = vld [vmem:[#allocation9 + $0x49c] sm:$0xf0] }
 0x24e   :  { %3714 = vmatmul.bf16.vlgmr.msrb.gmra.mxu3 %v19709_v39  ;;  %5209 = vmatpush.bf16.msra.mxu1 %v13462_v35  ;;  %v13722_v15 = vor.u32 %v17724_v8, %v13719_v40  ;;  %v13813_v35 = vld [vmem:[#allocation9 + $0x500] sm:$0xf]  ;;  %v17761_v40 = vld [vmem:[#allocation9 + $0x564] sm:$0xf0] }
 0x24f   :  { %v3736_v27 = vld [vmem:[%s20444_s29 + $0x8] sm:$0xff] }
 0x251   :  { %v3548_v39 = vpop.f32.mrf.mxu2  ;;  %5196 = vmatpush.bf16.msra.mxu0 %v13206_v38  ;;  %v13466_v38 = vor.u32 %v17660_v34, %v13463_v2  ;;  %v13717_v34 = vld [vmem:[#allocation9 + $0x440] sm:$0xf] }
 0x252   :  { %5210 = vmatpush.bf16.msra.mxu1 %v13430_v0  ;;  %v17728_v2 = vld [vmem:[#allocation9 + $0x45c] sm:$0xf0] }
 0x255   :  { %5197 = vmatpush.bf16.msra.mxu0 %v13174_v33  ;;  %v13910_v33 = vor.u32 %v17776_v7, %v13909_v37  ;;  %v13885_v37 = vld [vmem:[#allocation9 + $0x588] sm:$0xf]  ;;  %v13941_v7 = vld [vmem:[#allocation9 + $0x600] sm:$0xf] }
 0x256   :  { %5268 = vmatpush.bf16.msrb.mxu1 %v13914_v58 }
 0x257   :  { %5216 = vmatpush.bf16.msra.mxu2 %v13910_v33  ;;  %v17784_v33 = vld [vmem:[#allocation9 + $0x61c] sm:$0xf0] }
 0x258   :  { %v13942_v46 = vor.u32 %v17784_v33, %v13941_v7 }
 0x259   :  { %v3598_v10 = vpop.f32.mrf.mxu2  ;;  %5255 = vmatpush.bf16.msrb.mxu0 %v13658_v17  ;;  %v13783_v17 = vld [vmem:[#allocation9 + $0x4e0] sm:$0xf0] }
 0x25a   :  { %v19818_v11 = vadd.f32 %v3598_v10, %v19798_v19  ;;  %v13818_v10 = vor.u32 %v17748_v5, %v13815_v22  ;;  %v13786_v18 = vor.u32 %v17740_v14, %v13783_v17  ;;  %v17644_v14 = vld [vmem:[#allocation9 + $0x1c4] sm:$0xf]  ;;  %5236 = vmatpush.bf16.msra.mxu3 %v13942_v46 }
 0x25b   :  { %5217 = vmatpush.bf16.msra.mxu2 %v13878_v26  ;;  %v13399_v17 = vld [vmem:[#allocation9 + $0x1e0] sm:$0xf0] }
 0x25c   :  { %v3624_v36 = vpop.f32.mrf.mxu0  ;;  %v3637_v55 = vpop.f32.mrf.mxu1  ;;  %v13943_v26 = vld [vmem:[#allocation9 + $0x620] sm:$0xf0]  ;;  %v13402_v28 = vor.u32 %v17644_v14, %v13399_v17  ;;  %v13725_v14 = vld [vmem:[#allocation9 + $0x448] sm:$0xf] }
 0x25d   :  { %v3625_v54 = vadd.f32 %v3624_v36, %v2865_v51  ;;  %5256 = vmatpush.bf16.msrb.mxu0 %v13626_v32  ;;  %v17676_v36 = vld [vmem:[#allocation9 + $0x2c4] sm:$0xf]  ;;  %v3748_v32 = vmul.f32 3.0, %v18348_v23  ;;  %v17729_v17 = vld [vmem:[#allocation9 + $0x464] sm:$0xf0] }
 0x25e   :  { %5242 = vmatpush.bf16.msrb.mxu3 %v13402_v28 }
 0x25f   :  { %v3638_v62 = vadd.f32 %v3637_v55, %v3625_v54  ;;  %v13530_v55 = vor.u32 %v17676_v36, %v13527_v49  ;;  %v13781_v36 = vld [vmem:[#allocation9 + $0x4c0] sm:$0xf] }
 0x260   :  { %v17744_v49 = vld [vmem:[#allocation9 + $0x4dc] sm:$0xf0] }
 0x261   :  { %v3600_v19 = vpop.f32.mrf.mxu2  ;;  %5257 = vmatpush.bf16.msrb.mxu0 %v13594_v9  ;;  %v3749_v9 = vsub.f32 1.0, %v3748_v32  ;;  %v3732_v32 = vld [vmem:[%s20443_s6 + $0x8] sm:$0xff] }
 0x262   :  { %v17760_v19 = vld [vmem:[#allocation9 + $0x55c] sm:$0xf0]  ;;  %v3740_v8 = vadd.f32 %v3736_v27, %v3732_v32 }
 0x263   :  { %v13846_v31 = vor.u32 %v17760_v19, %v13845_v30  ;;  %v3750_v48 = vmul.f32 %v18348_v23, %v3749_v9  ;;  %v13853_v9 = vld [vmem:[#allocation9 + $0x548] sm:$0xf] }
 0x264   :  { %v3626_v4 = vpop.f32.mrf.mxu0  ;;  %v3639_v6 = vpop.f32.mrf.mxu1 }
 0x265   :  { %5258 = vmatpush.bf16.msrb.mxu0 %v13562_v42  ;;  %v13850_v4 = vor.u32 %v17756_v12, %v13847_v16  ;;  %v13434_v6 = vor.u32 %v17652_v56, %v13431_v20  ;;  %5218 = vmatpush.bf16.msra.mxu2 %v13846_v31  ;;  %v3751_v58 = vadd.f32 %v18348_v23, %v3750_v48  ;;  %v17720_v56 = vld [vmem:[#allocation9 + $0x41c] sm:$0xf0] }
 0x266   :  { %v13718_v12 = vor.u32 %v17728_v2, %v13717_v34  ;;  %v13686_v20 = vor.u32 %v17720_v56, %v13685_v21  ;;  %v13854_v48 = vor.u32 %v17761_v40, %v13853_v9  ;;  %v13271_v21 = vld [vmem:[#allocation9 + $0xe0] sm:$0xf0]  ;;  %v3733_v56 = vld [vmem:[%s20443_s6 + $0x10] sm:$0xff] }
 0x267   :  { %v17621_v9 = vld [vmem:[#allocation9 + $0x10c] sm:$0xf] }
 0x268   :  { %v13311_v40 = vld [vmem:[#allocation9 + $0x128] sm:$0xf0] }
 0x269   :  { %5259 = vmatpush.bf16.msrb.mxu0 %v13530_v55 }
 0x26d   :  { %v3650_v50 = vpop.f32.mrf.mxu2  ;;  %5260 = vmatpush.bf16.msrb.mxu0 %v13498_v13  ;;  %v13750_v13 = vor.u32 %v17736_v59, %v13749_v47  ;;  %v13407_v47 = vld [vmem:[#allocation9 + $0x1e8] sm:$0xf0]  ;;  %v17620_v59 = vld [vmem:[#allocation9 + $0x104] sm:$0xf] }
 0x26e   :  { %v19821_v43 = vadd.f32 %v3650_v50, %v3638_v62  ;;  %v17764_v62 = vld [vmem:[#allocation9 + $0x584] sm:$0xf] }
 0x26f   :  { %v13882_v63 = vor.u32 %v17764_v62, %v13879_v44 }
 0x271   :  { %5269 = vmatpush.bf16.msrb.mxu1 %v13882_v63  ;;  %5261 = vmatpush.bf16.msrb.mxu0 %v13466_v38  ;;  %v19835_v63 = vsel %vm3752_vm4, %v18348_v23, %v3751_v58  ;;  %v13917_v38 = vld [vmem:[#allocation9 + $0x5c8] sm:$0xf]  ;;  %v17645_v58 = vld [vmem:[#allocation9 + $0x1cc] sm:$0xf] }
 0x272   :  { %v13410_v2 = vor.u32 %v17645_v58, %v13407_v47  ;;  %v13381_v58 = vld [vmem:[#allocation9 + $0x190] sm:$0xf] }
 0x275   :  { %v3652_v60 = vpop.f32.mrf.mxu2  ;;  %5270 = vmatpush.bf16.msrb.mxu1 %v13850_v4  ;;  %5262 = vmatpush.bf16.msrb.mxu0 %v13434_v6  ;;  %v17777_v4 = vld [vmem:[#allocation9 + $0x5e4] sm:$0xf0] }
 0x279   :  { %5271 = vmatpush.bf16.msrb.mxu1 %v13818_v10  ;;  %v13918_v10 = vor.u32 %v17777_v4, %v13917_v38  ;;  %v17612_v4 = vld [vmem:[#allocation9 + $0xc4] sm:$0xf] }
 0x27c   :  { %v3676_v51 = vpop.f32.mrf.mxu0  ;;  %v3689_v54 = vpop.f32.mrf.mxu1 }
 0x27d   :  { %v3677_v53 = vadd.f32 %v3676_v51, %v2866_v41  ;;  %5272 = vmatpush.bf16.msrb.mxu1 %v13786_v18  ;;  %v13814_v41 = vor.u32 %v17752_v25, %v13813_v35  ;;  %v13687_v51 = vld [vmem:[#allocation9 + $0x420] sm:$0xf0]  ;;  %v17769_v18 = vld [vmem:[#allocation9 + $0x5a4] sm:$0xf0] }
 0x27e   :  { %v13690_v0 = vor.u32 %v17716_v24, %v13687_v51  ;;  %v13886_v31 = vor.u32 %v17769_v18, %v13885_v37  ;;  %v13367_v35 = vld [vmem:[#allocation9 + $0x1a0] sm:$0xf0]  ;;  %v13821_v24 = vld [vmem:[#allocation9 + $0x508] sm:$0xf]  ;;  %v17629_v18 = vld [vmem:[#allocation9 + $0x14c] sm:$0xf] }
 0x27f   :  { %v19823_v39 = vadd.f32 %v3689_v54, %v3677_v53  ;;  %5219 = vmatpush.bf16.msra.mxu2 %v13814_v41  ;;  %v3735_v53 = vld [vmem:[%s20444_s29] sm:$0xff]  ;;  %v13782_v54 = vor.u32 %v17744_v49, %v13781_v36  ;;  %v13335_v36 = vld [vmem:[#allocation9 + $0x160] sm:$0xf0] }
 0x281   :  { %5273 = vmatpush.bf16.msrb.mxu1 %v13754_v29  ;;  %v13946_v29 = vor.u32 %v17780_v61, %v13943_v26  ;;  %v13343_v61 = vld [vmem:[#allocation9 + $0x168] sm:$0xf0]  ;;  %v17604_v26 = vld [vmem:[#allocation9 + $0x84] sm:$0xf] }
 0x283   :  { %5220 = vmatpush.bf16.msra.mxu2 %v13782_v54 }
 0x284   :  { %v3678_v1 = vpop.f32.mrf.mxu0  ;;  %v3691_v3 = vpop.f32.mrf.mxu1 }
 0x285   :  { %5274 = vmatpush.bf16.msrb.mxu1 %v13722_v15  ;;  %v17636_v15 = vld [vmem:[#allocation9 + $0x184] sm:$0xf] }
 0x287   :  { %5221 = vmatpush.bf16.msra.mxu2 %v13750_v13 }
 0x289   :  { %5275 = vmatpush.bf16.msrb.mxu1 %v13690_v0  ;;  %v17753_v0 = vld [vmem:[#allocation9 + $0x524] sm:$0xf0] }
 0x28a   :  { %v13822_v54 = vor.u32 %v17753_v0, %v13821_v24  ;;  %v13314_v0 = vor.u32 %v17621_v9, %v13311_v40 }
 0x28b   :  { %5222 = vmatpush.bf16.msra.mxu2 %v13718_v12  ;;  %v13757_v12 = vld [vmem:[#allocation9 + $0x488] sm:$0xf] }
 0x28c   :  { %v3702_v50 = vpop.f32.mrf.mxu2 }
 0x28d   :  { %v19826_v42 = vadd.f32 %v3702_v50, %v19823_v39  ;;  %v3739_v39 = vadd.f32 %v3735_v53, %v3731_v52  ;;  %v13370_v50 = vor.u32 %v17636_v15, %v13367_v35  ;;  %v17596_v15 = vld [vmem:[#allocation9 + $0x44] sm:$0xf] }
 0x28e   :  { %v13207_v35 = vld [vmem:[#allocation9 + $0x60] sm:$0xf0] }
 0x28f   :  { %5223 = vmatpush.bf16.msra.mxu2 %v13686_v20  ;;  %5243 = vmatpush.bf16.msrb.mxu3 %v13370_v50  ;;  %v3737_v20 = vld [vmem:[%s20444_s29 + $0x10] sm:$0xff]  ;;  %v17650_v50 = vld [vmem:[#allocation9 + $0x1ec] sm:$0xf0] }
 0x290   :  { %v3741_v46 = vadd.f32 %v3737_v20, %v3733_v56 }
 0x291   :  { %v3559_v55 = vpop.f32.mrf.mxu3 }
 0x292   :  { %v3560_v57 = vadd.f32 %v3559_v55, %v19814_v45  ;;  %v13789_v55 = vld [vmem:[#allocation9 + $0x4c8] sm:$0xf] }
 0x293   :  { %5288 = vmatpush.bf16.msrb.mxu2 %v13946_v29 }
 0x294   :  { %vm3719_vm5 = vcmp.ge.f32.partialorder %v3560_v57, 0.0  ;;  %v3723_v62 = vmul.f32 0.01, %v3560_v57  ;;  %v3704_v60 = vpop.f32.mrf.mxu2 }
 0x296   :  { %v3727_v44 = vsel %vm3719_vm5, %v3560_v57, %v3723_v62  ;;  %v17745_v57 = vld [vmem:[#allocation9 + $0x4e4] sm:$0xf0]  ;;  %v13303_v62 = vld [vmem:[#allocation9 + $0x120] sm:$0xf0] }
 0x297   :  { %v3743_v1 = vadd.f32 %v3739_v39, %v3727_v44  ;;  %v13306_v60 = vor.u32 %v17620_v59, %v13303_v62  ;;  %v13790_v34 = vor.u32 %v17745_v57, %v13789_v55  ;;  %v13175_v55 = vld [vmem:[#allocation9 + $0x20] sm:$0xf0]  ;;  %v13279_v57 = vld [vmem:[#allocation9 + $0xe8] sm:$0xf0] }
 0x299   :  { %v3754_v45 = vmul.f32 %v19835_v63, %v3743_v1  ;;  %v3561_v3 = vpop.f32.mrf.mxu3 }
 0x29a   :  { %v17637_v3 = vld [vmem:[#allocation9 + $0x18c] sm:$0xf] }
 0x29b   :  { %v3758_v16 = vfloor.f32 %v3754_v45  ;;  %v17737_v45 = vld [vmem:[#allocation9 + $0x4a4] sm:$0xf0] }
 0x29d   :  { %v19838_v5 = vadd.f32 %v3758_v16, %v3731_v52  ;;  %v3770_v6 = vadd.f32 %v3758_v16, %v3735_v53  ;;  %v19840_v22 = vadd.f32 %v3758_v16, %v3727_v44  ;;  %v13375_v16 = vld [vmem:[#allocation9 + $0x1a8] sm:$0xf0] }
 0x29e   :  { %v13378_v33 = vor.u32 %v17637_v3, %v13375_v16  ;;  %v17641_v3 = vld [vmem:[#allocation9 + $0x1a4] sm:$0xf0]  ;;  %v17605_v16 = vld [vmem:[#allocation9 + $0x8c] sm:$0xf] }
 0x29f   :  { %v19842_v23 = vpack.c.bf16 %v3770_v6, %v3770_v6  ;;  %v13274_v6 = vor.u32 %v17612_v4, %v13271_v21  ;;  %v13247_v4 = vld [vmem:[#allocation9 + $0xa8] sm:$0xf0]  ;;  %v13349_v21 = vld [vmem:[#allocation9 + $0x150] sm:$0xf] }
 0x2a1   :  { %v3611_v30 = vpop.f32.mrf.mxu3  ;;  %5198 = vmatmul.bf16.vlgmr.msra.gmra.mxu0 %v19842_v23 }
 0x2a2   :  { %v3612_v19 = vadd.f32 %v3611_v30, %v19818_v11  ;;  %5320 = vmatpush.bf16.msra.mxu0 %v13918_v10  ;;  %v17628_v11 = vld [vmem:[#allocation9 + $0x144] sm:$0xf]  ;;  %v13758_v10 = vor.u32 %v17737_v45, %v13757_v12  ;;  %v13726_v30 = vor.u32 %v17729_v17, %v13725_v14  ;;  %v13373_v45 = vld [vmem:[#allocation9 + $0x188] sm:$0xf]  ;;  %v13215_v14 = vld [vmem:[#allocation9 + $0x68] sm:$0xf0] }
 0x2a3   :  { %v13338_v49 = vor.u32 %v17628_v11, %v13335_v36  ;;  %v13405_v11 = vld [vmem:[#allocation9 + $0x1c8] sm:$0xf]  ;;  %v13317_v17 = vld [vmem:[#allocation9 + $0x110] sm:$0xf] }
 0x2a4   :  { %vm3720_vm6 = vcmp.ge.f32.partialorder %v3612_v19, 0.0  ;;  %v3724_v25 = vmul.f32 0.01, %v3612_v19  ;;  %v17649_v36 = vld [vmem:[#allocation9 + $0x1e4] sm:$0xf0] }
 0x2a5   :  { %5244 = vmatpush.bf16.msrb.mxu3 %v13338_v49 }
 0x2a6   :  { %v3728_v41 = vsel %vm3720_vm6, %v3612_v19, %v3724_v25  ;;  %5321 = vmatpush.bf16.msra.mxu0 %v13886_v31  ;;  %v13693_v19 = vld [vmem:[#allocation9 + $0x408] sm:$0xf]  ;;  %v13413_v25 = vld [vmem:[#allocation9 + $0x1d0] sm:$0xf] }
 0x2a7   :  { %v3744_v51 = vadd.f32 %v3740_v8, %v3728_v41  ;;  %v17721_v31 = vld [vmem:[#allocation9 + $0x424] sm:$0xf0] }
 0x2a9   :  { %v3755_v52 = vmul.f32 %v19835_v63, %v3744_v51  ;;  %v3613_v53 = vpop.f32.mrf.mxu3  ;;  %5245 = vmatpush.bf16.msrb.mxu3 %v13306_v60  ;;  %v13694_v51 = vor.u32 %v17721_v31, %v13693_v19  ;;  %v13669_v19 = vld [vmem:[#allocation9 + $0x3d0] sm:$0xf] }
 0x2aa   :  { %5322 = vmatpush.bf16.msra.mxu0 %v13854_v48  ;;  %v17613_v53 = vld [vmem:[#allocation9 + $0xcc] sm:$0xf]  ;;  %v17714_v31 = vld [vmem:[#allocation9 + $0x3ec] sm:$0xf0] }
 0x2ab   :  { %v3759_v39 = vfloor.f32 %v3755_v52  ;;  %v13414_v52 = vor.u32 %v17650_v50, %v13413_v25  ;;  %v13670_v25 = vor.u32 %v17714_v31, %v13669_v19  ;;  %v13253_v50 = vld [vmem:[#allocation9 + $0x90] sm:$0xf] }
 0x2ad   :  { %v19853_v13 = vadd.f32 %v3759_v39, %v3732_v32  ;;  %v3771_v44 = vadd.f32 %v3759_v39, %v3736_v27  ;;  %v19855_v1 = vadd.f32 %v3759_v39, %v3728_v41  ;;  %5246 = vmatpush.bf16.msrb.mxu3 %v13274_v6  ;;  %v13239_v32 = vld [vmem:[#allocation9 + $0xa0] sm:$0xf0]  ;;  %v13210_v41 = vor.u32 %v17596_v15, %v13207_v35  ;;  %v17642_v39 = vld [vmem:[#allocation9 + $0x1ac] sm:$0xf0]  ;;  %v13277_v15 = vld [vmem:[#allocation9 + $0xc8] sm:$0xf] }
 0x2ae   :  { %5323 = vmatpush.bf16.msra.mxu0 %v13822_v54  ;;  %v13242_v28 = vor.u32 %v17604_v26, %v13239_v32  ;;  %v17588_v54 = vld [vmem:[#allocation9 + $0x4] sm:$0xf]  ;;  %v13382_v12 = vor.u32 %v17642_v39, %v13381_v58  ;;  %v17634_v6 = vld [vmem:[#allocation9 + $0x16c] sm:$0xf0]  ;;  %v13309_v32 = vld [vmem:[#allocation9 + $0x108] sm:$0xf] }
 0x2af   :  { %v19857_v38 = vpack.c.bf16 %v3771_v44, %v3771_v44  ;;  %v13178_v47 = vor.u32 %v17588_v54, %v13175_v55  ;;  %v13406_v44 = vor.u32 %v17649_v36, %v13405_v11  ;;  %v17617_v35 = vld [vmem:[#allocation9 + $0xe4] sm:$0xf0]  ;;  %v13221_v58 = vld [vmem:[#allocation9 + $0x50] sm:$0xf] }
 0x2b0   :  { %v13278_v36 = vor.u32 %v17617_v35, %v13277_v15  ;;  %v17609_v54 = vld [vmem:[#allocation9 + $0xa4] sm:$0xf0]  ;;  %v17602_v39 = vld [vmem:[#allocation9 + $0x6c] sm:$0xf0] }
 0x2b1   :  { %v3663_v37 = vpop.f32.mrf.mxu3  ;;  %5211 = vmatmul.bf16.vlgmr.msra.gmra.mxu1 %v19857_v38  ;;  %5263 = vmatmul.bf16.vlgmr.msrb.gmra.mxu0 %v19857_v38 }
 0x2b2   :  { %v3664_v7 = vadd.f32 %v3663_v37, %v19821_v43  ;;  %5324 = vmatpush.bf16.msra.mxu0 %v13790_v34  ;;  %5346 = vmatpush.bf16.msra.mxu1 %v13410_v2  ;;  %v13346_v43 = vor.u32 %v17629_v18, %v13343_v61  ;;  %v13282_v2 = vor.u32 %v17613_v53, %v13279_v57  ;;  %v17626_v18 = vld [vmem:[#allocation9 + $0x12c] sm:$0xf0]  ;;  %v13245_v53 = vld [vmem:[#allocation9 + $0x88] sm:$0xf] }
 0x2b3   :  { %5247 = vmatpush.bf16.msrb.mxu3 %v13242_v28  ;;  %v13350_v37 = vor.u32 %v17634_v6, %v13349_v21  ;;  %v13318_v26 = vor.u32 %v17626_v18, %v13317_v17  ;;  %v17589_v28 = vld [vmem:[#allocation9 + $0xc] sm:$0xf]  ;;  %v13189_v21 = vld [vmem:[#allocation9 + $0x10] sm:$0xf]  ;;  %v13181_v18 = vld [vmem:[#allocation9 + $0x8] sm:$0xf] }
 0x2b4   :  { %vm3721_vm7 = vcmp.ge.f32.partialorder %v3664_v7, 0.0  ;;  %v3725_v27 = vmul.f32 0.01, %v3664_v7  ;;  %v17594_v6 = vld [vmem:[#allocation9 + $0x2c] sm:$0xf0] }
 0x2b5   :  { %v13190_v17 = vor.u32 %v17594_v6, %v13189_v21  ;;  %v17689_v21 = vld [vmem:[#allocation9 + $0x324] sm:$0xf0] }
 0x2b6   :  { %v3729_v29 = vsel %vm3721_vm7, %v3664_v7, %v3725_v27  ;;  %5325 = vmatpush.bf16.msra.mxu0 %v13758_v10  ;;  %5347 = vmatpush.bf16.msra.mxu1 %v13378_v33  ;;  %v13341_v7 = vld [vmem:[#allocation9 + $0x148] sm:$0xf]  ;;  %v17597_v33 = vld [vmem:[#allocation9 + $0x4c] sm:$0xf] }
 0x2b7   :  { %v3745_v8 = vadd.f32 %v3741_v46, %v3729_v29  ;;  %5248 = vmatpush.bf16.msrb.mxu3 %v13210_v41  ;;  %v17633_v10 = vld [vmem:[#allocation9 + $0x164] sm:$0xf0]  ;;  %v13218_v61 = vor.u32 %v17597_v33, %v13215_v14  ;;  %v17610_v41 = vld [vmem:[#allocation9 + $0xac] sm:$0xf0] }
 0x2b8   :  { %v13342_v46 = vor.u32 %v17633_v10, %v13341_v7  ;;  %v17625_v27 = vld [vmem:[#allocation9 + $0x124] sm:$0xf0]  ;;  %v13671_v7 = vld [vmem:[#allocation9 + $0x3f0] sm:$0xf0] }
 0x2b9   :  { %v3756_v48 = vmul.f32 %v19835_v63, %v3745_v8  ;;  %v3665_v24 = vpop.f32.mrf.mxu3  ;;  %v13310_v9 = vor.u32 %v17625_v27, %v13309_v32  ;;  %v17593_v32 = vld [vmem:[#allocation9 + $0x24] sm:$0xf0] }
 0x2ba   :  { %5326 = vmatpush.bf16.msra.mxu0 %v13726_v30  ;;  %5348 = vmatpush.bf16.msra.mxu1 %v13346_v43  ;;  %v13285_v30 = vld [vmem:[#allocation9 + $0xd0] sm:$0xf]  ;;  %v13661_v27 = vld [vmem:[#allocation9 + $0x3c8] sm:$0xf]  ;;  %v13182_v15 = vor.u32 %v17593_v32, %v13181_v18  ;;  %v17774_v18 = vld [vmem:[#allocation9 + $0x5d4] sm:$0xf] }
 0x2bb   :  { %v3760_v49 = vfloor.f32 %v3756_v48  ;;  %5249 = vmatpush.bf16.msrb.mxu3 %v13178_v47  ;;  %v17618_v43 = vld [vmem:[#allocation9 + $0xec] sm:$0xf0]  ;;  %v17681_v32 = vld [vmem:[#allocation9 + $0x2e4] sm:$0xf0] }
 0x2bc   :  { %v13286_v40 = vor.u32 %v17618_v43, %v13285_v30  ;;  %v13637_v48 = vld [vmem:[#allocation9 + $0x390] sm:$0xf]  ;;  %v13663_v30 = vld [vmem:[#allocation9 + $0x3e8] sm:$0xf0] }
 0x2bd   :  { %v19869_v59 = vadd.f32 %v3760_v49, %v3733_v56  ;;  %v3772_v62 = vadd.f32 %v3760_v49, %v3737_v20  ;;  %v19871_v60 = vadd.f32 %v3760_v49, %v3729_v29  ;;  %v13374_v56 = vor.u32 %v17641_v3, %v13373_v45  ;;  %v13183_v29 = vld [vmem:[#allocation9 + $0x28] sm:$0xf0]  ;;  %v3734_v24 = vld [vmem:[%s20443_s6 + $0x18] sm:$0xff]  ;;  %v13213_v45 = vld [vmem:[#allocation9 + $0x48] sm:$0xf] }
 0x2be   :  { %5327 = vmatpush.bf16.msra.mxu0 %v13694_v51  ;;  %5349 = vmatpush.bf16.msra.mxu1 %v13314_v0  ;;  %v13250_v20 = vor.u32 %v17605_v16, %v13247_v4  ;;  %v13186_v8 = vor.u32 %v17589_v28, %v13183_v29  ;;  %v3738_v51 = vld [vmem:[%s20444_s29 + $0x18] sm:$0xff]  ;;  %v17601_v3 = vld [vmem:[#allocation9 + $0x64] sm:$0xf0]  ;;  %v17709_v29 = vld [vmem:[#allocation9 + $0x3cc] sm:$0xf] }
 0x2bf   :  { %v19873_v34 = vpack.c.bf16 %v3772_v62, %v3772_v62  ;;  %v17706_v0 = vld [vmem:[#allocation9 + $0x3ac] sm:$0xf0]  ;;  %v3742_v55 = vadd.f32 %v3738_v51, %v3734_v24  ;;  %v13214_v14 = vor.u32 %v17601_v3, %v13213_v45  ;;  %v17713_v28 = vld [vmem:[#allocation9 + $0x3e4] sm:$0xf0]  ;;  %v13575_v45 = vld [vmem:[#allocation9 + $0x330] sm:$0xf0] }
 0x2c0   :  { %v13638_v57 = vor.u32 %v17706_v0, %v13637_v48  ;;  %v13605_v47 = vld [vmem:[#allocation9 + $0x350] sm:$0xf]  ;;  %v13662_v35 = vor.u32 %v17713_v28, %v13661_v27  ;;  %v17705_v48 = vld [vmem:[#allocation9 + $0x3a4] sm:$0xf0] }
 0x2c1   :  { %5224 = vmatmul.bf16.vlgmr.msra.gmra.mxu2 %v19873_v34  ;;  %5276 = vmatmul.bf16.vlgmr.msrb.gmra.mxu1 %v19873_v34  ;;  %v13541_v43 = vld [vmem:[#allocation9 + $0x2d0] sm:$0xf] }
 0x2c2   :  { %5398 = vmatpush.bf16.msrb.mxu0 %v13414_v52  ;;  %5294 = vmatpush.bf16.msra.mxu2 %v13406_v44  ;;  %v13254_v52 = vor.u32 %v17610_v41, %v13253_v50  ;;  %v17698_v44 = vld [vmem:[#allocation9 + $0x36c] sm:$0xf0]  ;;  %v13666_v50 = vor.u32 %v17709_v29, %v13663_v30  ;;  %v13629_v41 = vld [vmem:[#allocation9 + $0x388] sm:$0xf]  ;;  %v17677_v29 = vld [vmem:[#allocation9 + $0x2cc] sm:$0xf] }
 0x2c3   :  { %5328 = vmatmul.bf16.vlgmr.msra.gmra.mxu0 %v19873_v34  ;;  %5350 = vmatpush.bf16.msra.mxu1 %v13282_v2  ;;  %v13246_v2 = vor.u32 %v17609_v54, %v13245_v53  ;;  %v13606_v4 = vor.u32 %v17698_v44, %v13605_v47  ;;  %v13607_v53 = vld [vmem:[#allocation9 + $0x370] sm:$0xf0]  ;;  %v13630_v54 = vor.u32 %v17705_v48, %v13629_v41  ;;  %v13599_v44 = vld [vmem:[#allocation9 + $0x368] sm:$0xf0]  ;;  %v17673_v41 = vld [vmem:[#allocation9 + $0x2a4] sm:$0xf0] }
 0x2c4   :  { %v13535_v30 = vld [vmem:[#allocation9 + $0x2e8] sm:$0xf0] }
 0x2c6   :  { %5399 = vmatpush.bf16.msrb.mxu0 %v13382_v12  ;;  %5295 = vmatpush.bf16.msra.mxu2 %v13374_v56  ;;  %v13573_v56 = vld [vmem:[#allocation9 + $0x310] sm:$0xf] }
 0x2c7   :  { %5351 = vmatpush.bf16.msra.mxu1 %v13250_v20  ;;  %v17690_v20 = vld [vmem:[#allocation9 + $0x32c] sm:$0xf0] }
 0x2ca   :  { %5400 = vmatpush.bf16.msrb.mxu0 %v13350_v37  ;;  %5296 = vmatpush.bf16.msra.mxu2 %v13342_v46  ;;  %v17710_v37 = vld [vmem:[#allocation9 + $0x3d4] sm:$0xf] }
 0x2cb   :  { %5352 = vmatpush.bf16.msra.mxu1 %v13218_v61  ;;  %v13574_v61 = vor.u32 %v17690_v20, %v13573_v56  ;;  %v17685_v20 = vld [vmem:[#allocation9 + $0x30c] sm:$0xf] }
 0x2ce   :  { %5401 = vmatpush.bf16.msrb.mxu0 %v13318_v26  ;;  %5297 = vmatpush.bf16.msra.mxu2 %v13310_v9  ;;  %v13674_v26 = vor.u32 %v17710_v37, %v13671_v7  ;;  %v17682_v9 = vld [vmem:[#allocation9 + $0x2ec] sm:$0xf0]  ;;  %v13567_v37 = vld [vmem:[#allocation9 + $0x328] sm:$0xf0] }
 0x2cf   :  { %5353 = vmatpush.bf16.msra.mxu1 %v13186_v8  ;;  %v17702_v8 = vld [vmem:[#allocation9 + $0x394] sm:$0xf]  ;;  %v13445_v7 = vld [vmem:[#allocation9 + $0x210] sm:$0xf] }
 0x2d1   :  { %v3715_v11 = vpop.f32.mrf.mxu3 }
 0x2d2   :  { %v3716_v49 = vadd.f32 %v3715_v11, %v19826_v42  ;;  %5402 = vmatpush.bf16.msrb.mxu0 %v13286_v40  ;;  %5298 = vmatpush.bf16.msra.mxu2 %v13278_v36  ;;  %v13222_v42 = vor.u32 %v17602_v39, %v13221_v58  ;;  %v13639_v40 = vld [vmem:[#allocation9 + $0x3b0] sm:$0xf0]  ;;  %v13631_v11 = vld [vmem:[#allocation9 + $0x3a8] sm:$0xf0]  ;;  %v13509_v36 = vld [vmem:[#allocation9 + $0x290] sm:$0xf] }
 0x2d3   :  { %5411 = vmatpush.bf16.msrb.mxu1 %v13670_v25  ;;  %v13642_v0 = vor.u32 %v17702_v8, %v13639_v40  ;;  %v17697_v58 = vld [vmem:[#allocation9 + $0x364] sm:$0xf0]  ;;  %v17766_v40 = vld [vmem:[#allocation9 + $0x594] sm:$0xf] }
 0x2d4   :  { %vm3722_vm8 = vcmp.ge.f32.partialorder %v3716_v49, 0.0  ;;  %v3726_v62 = vmul.f32 0.01, %v3716_v49  ;;  %5354 = vmatmul.bf16.vlgmr.msra.gmra.mxu1 %v19842_v23 }
 0x2d6   :  { %v3730_v12 = vsel %vm3722_vm8, %v3716_v49, %v3726_v62  ;;  %5403 = vmatpush.bf16.msrb.mxu0 %v13254_v52  ;;  %5299 = vmatpush.bf16.msra.mxu2 %v13246_v2  ;;  %v17674_v49 = vld [vmem:[#allocation9 + $0x2ac] sm:$0xf0]  ;;  %v17694_v52 = vld [vmem:[#allocation9 + $0x354] sm:$0xf]  ;;  %v17693_v62 = vld [vmem:[#allocation9 + $0x34c] sm:$0xf] }
 0x2d7   :  { %v3746_v16 = vadd.f32 %v3742_v55, %v3730_v12  ;;  %5412 = vmatpush.bf16.msrb.mxu1 %v13638_v57  ;;  %v13597_v57 = vld [vmem:[#allocation9 + $0x348] sm:$0xf]  ;;  %v13510_v39 = vor.u32 %v17674_v49, %v13509_v36  ;;  %v13610_v47 = vor.u32 %v17694_v52, %v13607_v53  ;;  %v13477_v2 = vld [vmem:[#allocation9 + $0x250] sm:$0xf]  ;;  %v13479_v36 = vld [vmem:[#allocation9 + $0x270] sm:$0xf0] }
 0x2d8   :  { %v13598_v3 = vor.u32 %v17697_v58, %v13597_v57  ;;  %v17758_v52 = vld [vmem:[#allocation9 + $0x554] sm:$0xf]  ;;  %v17665_v57 = vld [vmem:[#allocation9 + $0x264] sm:$0xf0] }
 0x2d9   :  { %v3757_v10 = vmul.f32 %v19835_v63, %v3746_v16  ;;  %v3717_v33 = vpop.f32.mrf.mxu3  ;;  %v13602_v16 = vor.u32 %v17693_v62, %v13599_v44  ;;  %v13863_v53 = vld [vmem:[#allocation9 + $0x570] sm:$0xf0] }
 0x2da   :  { %5404 = vmatpush.bf16.msrb.mxu0 %v13222_v42  ;;  %5300 = vmatpush.bf16.msra.mxu2 %v13214_v14  ;;  %v17686_v42 = vld [vmem:[#allocation9 + $0x314] sm:$0xf]  ;;  %v13866_v62 = vor.u32 %v17758_v52, %v13863_v53 }
 0x2db   :  { %v3761_v46 = vfloor.f32 %v3757_v10  ;;  %5413 = vmatpush.bf16.msrb.mxu1 %v13606_v4  ;;  %v13565_v4 = vld [vmem:[#allocation9 + $0x308] sm:$0xf]  ;;  %v13578_v56 = vor.u32 %v17686_v42, %v13575_v45  ;;  %v17658_v10 = vld [vmem:[#allocation9 + $0x22c] sm:$0xf0]  ;;  %v17678_v33 = vld [vmem:[#allocation9 + $0x2d4] sm:$0xf] }
 0x2dc   :  { %v13543_v14 = vld [vmem:[#allocation9 + $0x2f0] sm:$0xf0]  ;;  %v13446_v27 = vor.u32 %v17658_v10, %v13445_v7  ;;  %v13949_v10 = vld [vmem:[#allocation9 + $0x608] sm:$0xf] }
 0x2dd   :  { %v19887_v19 = vadd.f32 %v3761_v46, %v3734_v24  ;;  %v3773_v31 = vadd.f32 %v3761_v46, %v3738_v51  ;;  %v19889_v63 = vadd.f32 %v3761_v46, %v3730_v12  ;;  %v13542_v24 = vor.u32 %v17682_v9, %v13541_v43  ;;  %v17701_v51 = vld [vmem:[#allocation9 + $0x38c] sm:$0xf]  ;;  %v17666_v12 = vld [vmem:[#allocation9 + $0x26c] sm:$0xf0]  ;;  %v13927_v46 = vld [vmem:[#allocation9 + $0x5f0] sm:$0xf0] }
 0x2de   :  { %5405 = vmatpush.bf16.msrb.mxu0 %v13190_v17  ;;  %5301 = vmatpush.bf16.msra.mxu2 %v13182_v15  ;;  %v13634_v55 = vor.u32 %v17701_v51, %v13631_v11  ;;  %v13478_v6 = vor.u32 %v17666_v12, %v13477_v2  ;;  %v13566_v17 = vor.u32 %v17689_v21, %v13565_v4  ;;  %v13511_v9 = vld [vmem:[#allocation9 + $0x2b0] sm:$0xf0]  ;;  %v13437_v21 = vld [vmem:[#allocation9 + $0x208] sm:$0xf] }
 0x2df   :  { %v19891_v25 = vpack.c.bf16 %v3773_v31, %v3773_v31  ;;  %5414 = vmatpush.bf16.msrb.mxu1 %v13574_v61  ;;  %v13570_v61 = vor.u32 %v17685_v20, %v13567_v37  ;;  %v13546_v28 = vor.u32 %v17678_v33, %v13543_v14  ;;  %v13930_v43 = vor.u32 %v17774_v18, %v13927_v46  ;;  %v17670_v31 = vld [vmem:[#allocation9 + $0x294] sm:$0xf]  ;;  %v13439_v37 = vld [vmem:[#allocation9 + $0x228] sm:$0xf0] }
 0x2e0   :  { %v13895_v15 = vld [vmem:[#allocation9 + $0x5b0] sm:$0xf0]  ;;  %v13514_v48 = vor.u32 %v17670_v31, %v13511_v9  ;;  %v17781_v18 = vld [vmem:[#allocation9 + $0x60c] sm:$0xf]  ;;  %v13925_v9 = vld [vmem:[#allocation9 + $0x5d0] sm:$0xf] }
 0x2e1   :  { %13971 = vmatmul.msk.bf16.vlgmr.msra.gmra.mxu3 %vm5186_vm9, %v19891_v25  ;;  %13972 = vmatmul.msk.bf16.vlgmr.msrb.gmra.mxu2 %vm5186_vm9, %v19891_v25  ;;  %v13898_v51 = vor.u32 %v17766_v40, %v13895_v15  ;;  %v17662_v11 = vld [vmem:[#allocation9 + $0x254] sm:$0xf]  ;;  %v13951_v46 = vld [vmem:[#allocation9 + $0x628] sm:$0xf0] }
 0x2e2   :  { %5463 = vmatpush.bf16.msra.mxu0 %v13674_v26  ;;  %5307 = vmatpush.bf16.msra.mxu3 %v13662_v35  ;;  %v13533_v26 = vld [vmem:[#allocation9 + $0x2c8] sm:$0xf]  ;;  %v13538_v35 = vor.u32 %v17677_v29, %v13535_v30  ;;  %v13482_v58 = vor.u32 %v17662_v11, %v13479_v36  ;;  %v17654_v44 = vld [vmem:[#allocation9 + $0x214] sm:$0xf]  ;;  %v17773_v29 = vld [vmem:[#allocation9 + $0x5cc] sm:$0xf]  ;;  %v13954_v31 = vor.u32 %v17781_v18, %v13951_v46 }
 0x2e3   :  { %5406 = vmatmul.bf16.vlgmr.msrb.gmra.mxu0 %v19842_v23  ;;  %5359 = vmatpush.bf16.msrb.mxu2 %v13666_v50  ;;  %v13534_v8 = vor.u32 %v17681_v32, %v13533_v26  ;;  %v13501_v50 = vld [vmem:[#allocation9 + $0x288] sm:$0xf]  ;;  %v13447_v2 = vld [vmem:[#allocation9 + $0x230] sm:$0xf0]  ;;  %v13901_v32 = vld [vmem:[#allocation9 + $0x598] sm:$0xf] }
 0x2e4   :  { %5415 = vmatpush.bf16.msrb.mxu1 %v13542_v24  ;;  %v17669_v24 = vld [vmem:[#allocation9 + $0x28c] sm:$0xf]  ;;  %v13502_v49 = vor.u32 %v17673_v41, %v13501_v50  ;;  %v17750_v12 = vld [vmem:[#allocation9 + $0x514] sm:$0xf]  ;;  %v13450_v20 = vor.u32 %v17654_v44, %v13447_v2  ;;  %v13869_v41 = vld [vmem:[#allocation9 + $0x558] sm:$0xf] }
 0x2e5   :  { %v13831_v45 = vld [vmem:[#allocation9 + $0x530] sm:$0xf0]  ;;  %v13887_v11 = vld [vmem:[#allocation9 + $0x5a8] sm:$0xf0]  ;;  %v13893_v36 = vld [vmem:[#allocation9 + $0x590] sm:$0xf] }
 0x2e6   :  { %5464 = vmatpush.bf16.msra.mxu0 %v13642_v0  ;;  %5308 = vmatpush.bf16.msra.mxu3 %v13630_v54  ;;  %v13503_v0 = vld [vmem:[#allocation9 + $0x2a8] sm:$0xf0]  ;;  %v17742_v7 = vld [vmem:[#allocation9 + $0x4d4] sm:$0xf]  ;;  %v13834_v33 = vor.u32 %v17750_v12, %v13831_v45  ;;  %v13861_v2 = vld [vmem:[#allocation9 + $0x550] sm:$0xf] }
 0x2e7   :  { %5360 = vmatpush.bf16.msrb.mxu2 %v13634_v55  ;;  %v13506_v54 = vor.u32 %v17669_v24, %v13503_v0  ;;  %v13469_v55 = vld [vmem:[#allocation9 + $0x248] sm:$0xf]  ;;  %v13799_v26 = vld [vmem:[#allocation9 + $0x4f0] sm:$0xf0]  ;;  %v13855_v44 = vld [vmem:[#allocation9 + $0x568] sm:$0xf0] }
 0x2e8   :  { %5416 = vmatpush.bf16.msrb.mxu1 %v13510_v39  ;;  %v17661_v39 = vld [vmem:[#allocation9 + $0x24c] sm:$0xf]  ;;  %v13470_v42 = vor.u32 %v17665_v57, %v13469_v55  ;;  %v13802_v40 = vor.u32 %v17742_v7, %v13799_v26  ;;  %v13767_v50 = vld [vmem:[#allocation9 + $0x4b0] sm:$0xf0]  ;;  %v13837_v57 = vld [vmem:[#allocation9 + $0x518] sm:$0xf] }
 0x2e9   :  { %v13735_v55 = vld [vmem:[#allocation9 + $0x470] sm:$0xf0]  ;;  %v17762_v12 = vld [vmem:[#allocation9 + $0x56c] sm:$0xf0]  ;;  %v17787_v7 = vld [vmem:[#allocation9 + $0x634] sm:$0xf0] }
 0x2ea   :  { %5465 = vmatpush.bf16.msra.mxu0 %v13610_v47  ;;  %5309 = vmatpush.bf16.msra.mxu3 %v13598_v3  ;;  %v13471_v47 = vld [vmem:[#allocation9 + $0x268] sm:$0xf0]  ;;  %v13933_v3 = vld [vmem:[#allocation9 + $0x5d8] sm:$0xf]  ;;  %v17647_v46 = vld [vmem:[#allocation9 + $0x1dc] sm:$0xf] }
 0x2eb   :  { %5361 = vmatpush.bf16.msrb.mxu2 %v13602_v16  ;;  %v17779_v16 = vld [vmem:[#allocation9 + $0x5f4] sm:$0xf0]  ;;  %v13474_v4 = vor.u32 %v17661_v39, %v13471_v47  ;;  %v13423_v26 = vld [vmem:[#allocation9 + $0x1f8] sm:$0xf0] }
 0x2ec   :  { %5417 = vmatpush.bf16.msrb.mxu1 %v13478_v6  ;;  %v17657_v6 = vld [vmem:[#allocation9 + $0x224] sm:$0xf0]  ;;  %v13934_v14 = vor.u32 %v17779_v16, %v13933_v3  ;;  %v17718_v3 = vld [vmem:[#allocation9 + $0x414] sm:$0xf] }
 0x2ed   :  { %v13703_v16 = vld [vmem:[#allocation9 + $0x430] sm:$0xf0] }
 0x2ee   :  { %5466 = vmatpush.bf16.msra.mxu0 %v13578_v56  ;;  %5310 = vmatpush.bf16.msra.mxu3 %v13566_v17  ;;  %v17653_v56 = vld [vmem:[#allocation9 + $0x20c] sm:$0xf]  ;;  %v17785_v17 = vld [vmem:[#allocation9 + $0x624] sm:$0xf0] }
 0x2ef   :  { %5362 = vmatpush.bf16.msrb.mxu2 %v13570_v61  ;;  %v13438_v61 = vor.u32 %v17657_v6, %v13437_v21  ;;  %v13950_v30 = vor.u32 %v17785_v17, %v13949_v10  ;;  %v17747_v21 = vld [vmem:[#allocation9 + $0x4f4] sm:$0xf0]  ;;  %v13823_v10 = vld [vmem:[#allocation9 + $0x528] sm:$0xf0]  ;;  %v13706_v17 = vor.u32 %v17718_v3, %v13703_v16  ;;  %v17623_v16 = vld [vmem:[#allocation9 + $0x11c] sm:$0xf] }
 0x2f0   :  { %5418 = vmatpush.bf16.msrb.mxu1 %v13446_v27  ;;  %v17771_v27 = vld [vmem:[#allocation9 + $0x5b4] sm:$0xf0] }
 0x2f1   :  { %5250 = vmatmul.bf16.vlgmr.msrb.gmra.mxu3 %v19842_v23  ;;  %5302 = vmatmul.bf16.vlgmr.msra.gmra.mxu2 %v19842_v23  ;;  %v13902_v15 = vor.u32 %v17771_v27, %v13901_v32  ;;  %v13773_v32 = vld [vmem:[#allocation9 + $0x498] sm:$0xf] }
 0x2f2   :  { %5467 = vmatpush.bf16.msra.mxu0 %v13546_v28  ;;  %5311 = vmatpush.bf16.msra.mxu3 %v13534_v8  ;;  %v13442_v28 = vor.u32 %v17653_v56, %v13439_v37  ;;  %v17778_v8 = vld [vmem:[#allocation9 + $0x5ec] sm:$0xf0]  ;;  %v13862_v56 = vor.u32 %v17762_v12, %v13861_v2  ;;  %v13965_v37 = vld [vmem:[#allocation9 + $0x618] sm:$0xf]  ;;  %v13727_v2 = vld [vmem:[#allocation9 + $0x468] sm:$0xf0] }
 0x2f3   :  { %5419 = vmatmul.bf16.vlgmr.msrb.gmra.mxu1 %v19857_v38  ;;  %5363 = vmatpush.bf16.msrb.mxu2 %v13538_v35  ;;  %v17734_v35 = vld [vmem:[#allocation9 + $0x494] sm:$0xf]  ;;  %v13926_v0 = vor.u32 %v17778_v8, %v13925_v9  ;;  %v17739_v27 = vld [vmem:[#allocation9 + $0x4b4] sm:$0xf0]  ;;  %v17746_v9 = vld [vmem:[#allocation9 + $0x4ec] sm:$0xf0]  ;;  %v13426_v8 = vor.u32 %v17647_v46, %v13423_v26 }
 0x2f4   :  { %5476 = vmatpush.bf16.msra.mxu1 %v13930_v43  ;;  %v13919_v43 = vld [vmem:[#allocation9 + $0x5e8] sm:$0xf0]  ;;  %v13770_v52 = vor.u32 %v17734_v35, %v13767_v50  ;;  %v13391_v35 = vld [vmem:[#allocation9 + $0x1b8] sm:$0xf0]  ;;  %v13741_v50 = vld [vmem:[#allocation9 + $0x458] sm:$0xf] }
 0x2f5   :  { %v13922_v24 = vor.u32 %v17773_v29, %v13919_v43  ;;  %v13791_v43 = vld [vmem:[#allocation9 + $0x4e8] sm:$0xf0]  ;;  %v13733_v12 = vld [vmem:[#allocation9 + $0x450] sm:$0xf]  ;;  %v17615_v46 = vld [vmem:[#allocation9 + $0xdc] sm:$0xf] }
 0x2f6   :  { %5468 = vmatpush.bf16.msra.mxu0 %v13514_v48  ;;  %5312 = vmatpush.bf16.msra.mxu3 %v13502_v49  ;;  %v17763_v48 = vld [vmem:[#allocation9 + $0x574] sm:$0xf0]  ;;  %v17770_v49 = vld [vmem:[#allocation9 + $0x5ac] sm:$0xf0] }
 0x2f7   :  { %5364 = vmatpush.bf16.msrb.mxu2 %v13506_v54  ;;  %v13870_v53 = vor.u32 %v17763_v48, %v13869_v41  ;;  %v17726_v54 = vld [vmem:[#allocation9 + $0x454] sm:$0xf]  ;;  %v13894_v47 = vor.u32 %v17770_v49, %v13893_v36  ;;  %v17731_v41 = vld [vmem:[#allocation9 + $0x474] sm:$0xf0]  ;;  %v17738_v36 = vld [vmem:[#allocation9 + $0x4ac] sm:$0xf0] }
 0x2f8   :  { %5477 = vmatpush.bf16.msra.mxu1 %v13898_v51  ;;  %v17765_v51 = vld [vmem:[#allocation9 + $0x58c] sm:$0xf]  ;;  %v17786_v26 = vld [vmem:[#allocation9 + $0x62c] sm:$0xf0] }
 0x2f9   :  { %v13890_v39 = vor.u32 %v17765_v51, %v13887_v11  ;;  %v13759_v51 = vld [vmem:[#allocation9 + $0x4a8] sm:$0xf0]  ;;  %v13765_v11 = vld [vmem:[#allocation9 + $0x490] sm:$0xf] }
 0x2fa   :  { %5469 = vmatpush.bf16.msra.mxu0 %v13482_v58  ;;  %5313 = vmatpush.bf16.msra.mxu3 %v13470_v42  ;;  %v17755_v58 = vld [vmem:[#allocation9 + $0x534] sm:$0xf0]  ;;  %v13738_v42 = vor.u32 %v17726_v54, %v13735_v55  ;;  %v13359_v54 = vld [vmem:[#allocation9 + $0x178] sm:$0xf0] }
 0x2fb   :  { %5365 = vmatpush.bf16.msrb.mxu2 %v13474_v4  ;;  %v13838_v45 = vor.u32 %v17755_v58, %v13837_v57  ;;  %v13805_v4 = vld [vmem:[#allocation9 + $0x4d8] sm:$0xf] }
 0x2fc   :  { %5478 = vmatpush.bf16.msra.mxu1 %v13866_v62  ;;  %v17757_v62 = vld [vmem:[#allocation9 + $0x54c] sm:$0xf]  ;;  %v13806_v18 = vor.u32 %v17747_v21, %v13805_v4  ;;  %v13709_v55 = vld [vmem:[#allocation9 + $0x418] sm:$0xf]  ;;  %v13327_v4 = vld [vmem:[#allocation9 + $0x138] sm:$0xf0] }
 0x2fd   :  { %v13858_v6 = vor.u32 %v17757_v62, %v13855_v44  ;;  %v17723_v57 = vld [vmem:[#allocation9 + $0x434] sm:$0xf0]  ;;  %v17783_v62 = vld [vmem:[#allocation9 + $0x61c] sm:$0xf] }
 0x2fe   :  { %5470 = vmatpush.bf16.msra.mxu0 %v13450_v20  ;;  %5314 = vmatpush.bf16.msra.mxu3 %v13438_v61  ;;  %v17749_v20 = vld [vmem:[#allocation9 + $0x50c] sm:$0xf]  ;;  %v13966_v61 = vor.u32 %v17787_v7, %v13965_v37  ;;  %v13967_v44 = vld [vmem:[#allocation9 + $0x638] sm:$0xf0]  ;;  %v13710_v3 = vor.u32 %v17723_v57, %v13709_v55 }
 0x2ff   :  { %5366 = vmatpush.bf16.msrb.mxu2 %v13442_v28  ;;  %v13826_v28 = vor.u32 %v17749_v20, %v13823_v10  ;;  %v13970_v21 = vor.u32 %v17783_v62, %v13967_v44  ;;  %v17717_v7 = vld [vmem:[#allocation9 + $0x40c] sm:$0xf]  ;;  %v13231_v62 = vld [vmem:[#allocation9 + $0x78] sm:$0xf0]  ;;  %v14109_v44 = vld [vmem:[#allocation7 + $0x100] sm:$0xf] }
 0x300   :  { %5479 = vmatpush.bf16.msra.mxu1 %v13834_v33  ;;  %v13829_v33 = vld [vmem:[#allocation9 + $0x510] sm:$0xf]  ;;  %v13695_v10 = vld [vmem:[#allocation9 + $0x428] sm:$0xf0] }
 0x301   :  { %5471 = vmatmul.bf16.vlgmr.msra.gmra.mxu0 %v19857_v38  ;;  %5315 = vmatmul.bf16.vlgmr.msra.gmra.mxu3 %v19857_v38 }
 0x302   :  { %5528 = vmatpush.bf16.msrb.mxu0 %v13934_v14  ;;  %5340 = vmatpush.bf16.msrb.mxu3 %v13950_v30  ;;  %v17754_v14 = vld [vmem:[#allocation9 + $0x52c] sm:$0xf0]  ;;  %v17741_v30 = vld [vmem:[#allocation9 + $0x4cc] sm:$0xf] }
 0x303   :  { %5392 = vmatpush.bf16.msra.mxu2 %v13954_v31  ;;  %v13830_v29 = vor.u32 %v17754_v14, %v13829_v33  ;;  %v13797_v31 = vld [vmem:[#allocation9 + $0x4d0] sm:$0xf]  ;;  %v13794_v48 = vor.u32 %v17741_v30, %v13791_v43  ;;  %v17646_v43 = vld [vmem:[#allocation9 + $0x1d4] sm:$0xf] }
 0x304   :  { %5480 = vmatpush.bf16.msra.mxu1 %v13802_v40  ;;  %5367 = vmatmul.bf16.vlgmr.msrb.gmra.mxu2 %v19857_v38  ;;  %v13774_v40 = vor.u32 %v17739_v27, %v13773_v32  ;;  %v13701_v33 = vld [vmem:[#allocation9 + $0x410] sm:$0xf]  ;;  %v13295_v32 = vld [vmem:[#allocation9 + $0xf8] sm:$0xf0]  ;;  %v14173_v27 = vld [vmem:[#allocation7 + $0x180] sm:$0xf] }
 0x305   :  { %v17722_v14 = vld [vmem:[#allocation9 + $0x42c] sm:$0xf0] }
 0x306   :  { %5529 = vmatpush.bf16.msrb.mxu0 %v13902_v15  ;;  %5372 = vmatpush.bf16.msra.mxu3 %v13922_v24  ;;  %v17639_v15 = vld [vmem:[#allocation9 + $0x19c] sm:$0xf]  ;;  %v13798_v24 = vor.u32 %v17746_v9, %v13797_v31  ;;  %v13702_v30 = vor.u32 %v17722_v14, %v13701_v33  ;;  %v13415_v9 = vld [vmem:[#allocation9 + $0x1f0] sm:$0xf0]  ;;  %v14461_v33 = vld [vmem:[#allocation7 + $0x3c0] sm:$0xf] }
 0x307   :  { %5424 = vmatpush.bf16.msrb.mxu2 %v13926_v0  ;;  %v17733_v0 = vld [vmem:[#allocation9 + $0x48c] sm:$0xf]  ;;  %v13394_v49 = vor.u32 %v17639_v15, %v13391_v35  ;;  %v13298_v15 = vor.u32 %v17615_v46, %v13295_v32  ;;  %v17512_v14 = vld [vmem:[#allocation7 + $0x3dc] sm:$0xf0]  ;;  %v13319_v46 = vld [vmem:[#allocation9 + $0x130] sm:$0xf0] }
 0x308   :  { %5481 = vmatpush.bf16.msra.mxu1 %v13770_v52  ;;  %v13742_v52 = vor.u32 %v17731_v41, %v13741_v50  ;;  %v13762_v58 = vor.u32 %v17733_v0, %v13759_v51  ;;  %v13421_v50 = vld [vmem:[#allocation9 + $0x1d8] sm:$0xf]  ;;  %v14141_v0 = vld [vmem:[#allocation7 + $0x140] sm:$0xf] }
 0x309   :  { %v17651_v41 = vld [vmem:[#allocation9 + $0x1f4] sm:$0xf0]  ;;  %v17432_v51 = vld [vmem:[#allocation7 + $0x15c] sm:$0xf0] }
 0x30a   :  { %5530 = vmatpush.bf16.msrb.mxu0 %v13870_v53  ;;  %5373 = vmatpush.bf16.msra.mxu3 %v13890_v39  ;;  %v17631_v53 = vld [vmem:[#allocation9 + $0x15c] sm:$0xf]  ;;  %v13766_v39 = vor.u32 %v17738_v36, %v13765_v11  ;;  %v13418_v11 = vor.u32 %v17646_v43, %v13415_v9  ;;  %v14142_v57 = vor.u32 %v17432_v51, %v14141_v0  ;;  %v17408_v43 = vld [vmem:[#allocation7 + $0x9c] sm:$0xf0] }
 0x30b   :  { %5425 = vmatpush.bf16.msrb.mxu2 %v13894_v47  ;;  %v17725_v47 = vld [vmem:[#allocation9 + $0x44c] sm:$0xf]  ;;  %v14429_v9 = vld [vmem:[#allocation7 + $0x380] sm:$0xf] }
 0x30c   :  { %5482 = vmatpush.bf16.msra.mxu1 %v13738_v42  ;;  %v17730_v42 = vld [vmem:[#allocation9 + $0x46c] sm:$0xf0]  ;;  %v13730_v20 = vor.u32 %v17725_v47, %v13727_v2  ;;  %v17599_v47 = vld [vmem:[#allocation9 + $0x5c] sm:$0xf]  ;;  %v17424_v2 = vld [vmem:[#allocation7 + $0x11c] sm:$0xf0] }
 0x30d   :  { %v13734_v37 = vor.u32 %v17730_v42, %v13733_v12  ;;  %v14013_v0 = vld [vmem:[#allocation7 + $0x40] sm:$0xf] }
 0x30e   :  { %5531 = vmatpush.bf16.msrb.mxu0 %v13838_v45  ;;  %5374 = vmatpush.bf16.msra.mxu3 %v13858_v6  ;;  %v13362_v45 = vor.u32 %v17631_v53, %v13359_v54  ;;  %v14205_v6 = vld [vmem:[#allocation7 + $0x1c0] sm:$0xf]  ;;  %v13383_v53 = vld [vmem:[#allocation9 + $0x1b0] sm:$0xf0] }
 0x30f   :  { %5426 = vmatpush.bf16.msrb.mxu2 %v13862_v56  ;;  %v17448_v56 = vld [vmem:[#allocation7 + $0x1dc] sm:$0xf0] }
 0x310   :  { %5483 = vmatpush.bf16.msra.mxu1 %v13706_v17  ;;  %v13330_v17 = vor.u32 %v17623_v16, %v13327_v4  ;;  %v13234_v16 = vor.u32 %v17599_v47, %v13231_v62  ;;  %v14110_v4 = vor.u32 %v17424_v2, %v14109_v44  ;;  %v17400_v51 = vld [vmem:[#allocation7 + $0x5c] sm:$0xf0]  ;;  %v13261_v47 = vld [vmem:[#allocation9 + $0x98] sm:$0xf] }
 0x311   :  { %13973 = vmatmul.msk.bf16.vlgmr.msrb.gmra.mxu3 %vm5186_vm9, %v19891_v25  ;;  %v17611_v62 = vld [vmem:[#allocation9 + $0xb4] sm:$0xf0] }
 0x312   :  { %5532 = vmatpush.bf16.msrb.mxu0 %v13806_v18  ;;  %5375 = vmatpush.bf16.msra.mxu3 %v13826_v28  ;;  %v14206_v18 = vor.u32 %v17448_v56, %v14205_v6  ;;  %v17440_v28 = vld [vmem:[#allocation7 + $0x19c] sm:$0xf0]  ;;  %v17635_v6 = vld [vmem:[#allocation9 + $0x174] sm:$0xf0]  ;;  %v17591_v56 = vld [vmem:[#allocation9 + $0x1c] sm:$0xf] }
 0x313   :  { %5427 = vmatpush.bf16.msrb.mxu2 %v13830_v29  ;;  %5484 = vmatmul.bf16.vlgmr.msra.gmra.mxu1 %v19873_v34  ;;  %v13698_v29 = vor.u32 %v17717_v7, %v13695_v10  ;;  %v14174_v35 = vor.u32 %v17440_v28, %v14173_v27  ;;  %v17416_v7 = vld [vmem:[#allocation7 + $0xdc] sm:$0xf0]  ;;  %v13325_v27 = vld [vmem:[#allocation9 + $0x118] sm:$0xf] }
 0x314   :  { %5548 = vmatpush.bf16.msrb.mxu1 %v13966_v61  ;;  %13974 = vmatmul.msk.bf16.vlgmr.msra.gmra.mxu2 %vm5186_vm9, %v19891_v25  ;;  %v13957_v61 = vld [vmem:[#allocation9 + $0x610] sm:$0xf]  ;;  %v17627_v28 = vld [vmem:[#allocation9 + $0x134] sm:$0xf0] }
 0x315   :  { %v13958_v31 = vor.u32 %v17786_v26, %v13957_v61 }
 0x316   :  { %5533 = vmatpush.bf16.msrb.mxu0 %v13774_v40  ;;  %5376 = vmatpush.bf16.msra.mxu3 %v13794_v48  ;;  %v13959_v40 = vld [vmem:[#allocation9 + $0x630] sm:$0xf0]  ;;  %v17607_v48 = vld [vmem:[#allocation9 + $0x9c] sm:$0xf] }
 0x317   :  { %5428 = vmatpush.bf16.msrb.mxu2 %v13798_v24  ;;  %v13263_v24 = vld [vmem:[#allocation9 + $0xb8] sm:$0xf0] }
 0x318   :  { %5554 = vmatpush.bf16.msra.mxu1 %v13426_v8  ;;  %v17782_v8 = vld [vmem:[#allocation9 + $0x614] sm:$0xf]  ;;  %v13266_v55 = vor.u32 %v17607_v48, %v13263_v24  ;;  %v17619_v48 = vld [vmem:[#allocation9 + $0xf4] sm:$0xf0] }
 0x319   :  { %v13962_v36 = vor.u32 %v17782_v8, %v13959_v40  ;;  %v17504_v8 = vld [vmem:[#allocation7 + $0x39c] sm:$0xf0]  ;;  %v13326_v40 = vor.u32 %v17627_v28, %v13325_v27  ;;  %v13197_v27 = vld [vmem:[#allocation9 + $0x18] sm:$0xf] }
 0x31a   :  { %5534 = vmatpush.bf16.msrb.mxu0 %v13742_v52  ;;  %5377 = vmatpush.bf16.msra.mxu3 %v13762_v58  ;;  %v17638_v52 = vld [vmem:[#allocation9 + $0x194] sm:$0xf]  ;;  %v13389_v58 = vld [vmem:[#allocation9 + $0x198] sm:$0xf]  ;;  %v14430_v24 = vor.u32 %v17504_v8, %v14429_v9  ;;  %v19930_v9 = vpack.c.bf16 %v19838_v5, %v19838_v5 }
 0x31b   :  { %5429 = vmatpush.bf16.msrb.mxu2 %v13766_v39  ;;  %v17643_v39 = vld [vmem:[#allocation9 + $0x1b4] sm:$0xf0]  ;;  %v13386_v12 = vor.u32 %v17638_v52, %v13383_v53  ;;  %v17606_v53 = vld [vmem:[#allocation9 + $0x94] sm:$0xf] }
 0x31c   :  { %5555 = vmatpush.bf16.msra.mxu1 %v13394_v49  ;;  %v13422_v49 = vor.u32 %v17651_v41, %v13421_v50  ;;  %v13390_v42 = vor.u32 %v17643_v39, %v13389_v58  ;;  %v13293_v41 = vld [vmem:[#allocation9 + $0xd8] sm:$0xf]  ;;  %v14014_v39 = vor.u32 %v17400_v51, %v14013_v0  ;;  %v17492_v51 = vld [vmem:[#allocation7 + $0x344] sm:$0xf] }
 0x31d   :  { %v13294_v52 = vor.u32 %v17619_v48, %v13293_v41  ;;  %v14301_v41 = vld [vmem:[#allocation7 + $0x280] sm:$0xf]  ;;  %v13645_v5 = vld [vmem:[#allocation9 + $0x398] sm:$0xf] }
 0x31e   :  { %5535 = vmatpush.bf16.msrb.mxu0 %v13710_v3  ;;  %5378 = vmatpush.bf16.msra.mxu3 %v13730_v20  ;;  %v19912_v54 = vpop.f32.mrf.mxu0  ;;  %v13351_v3 = vld [vmem:[#allocation9 + $0x170] sm:$0xf0]  ;;  %v13199_v20 = vld [vmem:[#allocation9 + $0x38] sm:$0xf0]  ;;  %v17472_v48 = vld [vmem:[#allocation7 + $0x29c] sm:$0xf0] }
 0x31f   :  { %5430 = vmatpush.bf16.msrb.mxu2 %v13734_v37  ;;  %v14077_v37 = vld [vmem:[#allocation7 + $0xc0] sm:$0xf]  ;;  %v13202_v26 = vor.u32 %v17591_v56, %v13199_v20  ;;  %v17598_v56 = vld [vmem:[#allocation9 + $0x54] sm:$0xf] }
 0x320   :  { %5556 = vmatpush.bf16.msra.mxu1 %v13362_v45  ;;  %v17630_v45 = vld [vmem:[#allocation9 + $0x154] sm:$0xf]  ;;  %v14078_v32 = vor.u32 %v17416_v7, %v14077_v37  ;;  %v17603_v7 = vld [vmem:[#allocation9 + $0x74] sm:$0xf0] }
 0x321   :  { %5536 = vmatmul.bf16.vlgmr.msrb.gmra.mxu0 %v19873_v34  ;;  %v13354_v10 = vor.u32 %v17630_v45, %v13351_v3  ;;  %v14365_v45 = vld [vmem:[#allocation7 + $0x300] sm:$0xf]  ;;  %v13223_v20 = vld [vmem:[#allocation9 + $0x70] sm:$0xf0] }
 0x322   :  { %5600 = vmatpush.bf16.msra.mxu0 %v13970_v21  ;;  %5379 = vmatpush.bf16.msra.mxu3 %v13698_v29  ;;  %v13357_v21 = vld [vmem:[#allocation9 + $0x158] sm:$0xf]  ;;  %v14462_v29 = vor.u32 %v17512_v14, %v14461_v33  ;;  %v14333_v14 = vld [vmem:[#allocation7 + $0x2c0] sm:$0xf] }
 0x323   :  { %5431 = vmatpush.bf16.msrb.mxu2 %v13702_v30  ;;  %13977 = vmatmul.msk.bf16.vlgmr.msrb.gmra.mxu1 %vm5186_vm9, %v19891_v25  ;;  %v14045_v30 = vld [vmem:[#allocation7 + $0x80] sm:$0xf] }
 0x324   :  { %5557 = vmatpush.bf16.msra.mxu1 %v13330_v17  ;;  %v13358_v17 = vor.u32 %v17635_v6, %v13357_v21  ;;  %v14046_v50 = vor.u32 %v17408_v43, %v14045_v30  ;;  %v14463_v21 = vld [vmem:[#allocation7 + $0x3e0] sm:$0xf0]  ;;  %v13262_v6 = vor.u32 %v17611_v62, %v13261_v47  ;;  %v17595_v30 = vld [vmem:[#allocation9 + $0x34] sm:$0xf0]  ;;  %v17464_v47 = vld [vmem:[#allocation7 + $0x25c] sm:$0xf0] }
 0x325   :  { %5380 = vmatmul.bf16.vlgmr.msra.gmra.mxu3 %v19873_v34  ;;  %v13677_v43 = vld [vmem:[#allocation9 + $0x3d8] sm:$0xf] }
 0x326   :  { %6609 = vmatpush.bf16.msrb.mxu0 %v14206_v18  ;;  %5444 = vmatpush.bf16.msrb.mxu3 %v13958_v31  ;;  %v17622_v18 = vld [vmem:[#allocation9 + $0x114] sm:$0xf]  ;;  %v5201_v61 = vpop.f32.mrf.mxu0 }
 0x327   :  { %5432 = vmatmul.bf16.vlgmr.msrb.gmra.mxu2 %v19873_v34  ;;  %v13322_v31 = vor.u32 %v17622_v18, %v13319_v46  ;;  %v17480_v18 = vld [vmem:[#allocation7 + $0x2dc] sm:$0xf0]  ;;  %v14431_v46 = vld [vmem:[#allocation7 + $0x3a0] sm:$0xf0] }
 0x328   :  { %5558 = vmatpush.bf16.msra.mxu1 %v13298_v15  ;;  %5496 = vmatpush.bf16.msra.mxu2 %v13962_v36  ;;  %v17614_v15 = vld [vmem:[#allocation9 + $0xd4] sm:$0xf]  ;;  %v14397_v36 = vld [vmem:[#allocation7 + $0x340] sm:$0xf]  ;;  %v14334_v8 = vor.u32 %v17480_v18, %v14333_v14  ;;  %v17572_v14 = vld [vmem:[#allocation7 + $0x5c4] sm:$0xf] }
 0x32a   :  { %6610 = vmatpush.bf16.msrb.mxu0 %v14174_v35  ;;  %5450 = vmatpush.bf16.msra.mxu3 %v13418_v11  ;;  %v13287_v35 = vld [vmem:[#allocation9 + $0xf0] sm:$0xf0] }
 0x32b   :  { %v13290_v11 = vor.u32 %v17614_v15, %v13287_v35  ;;  %v17711_v15 = vld [vmem:[#allocation9 + $0x3dc] sm:$0xf] }
 0x32c   :  { %5502 = vmatpush.bf16.msrb.mxu2 %v13422_v49  ;;  %5559 = vmatpush.bf16.msra.mxu1 %v13266_v55  ;;  %v17496_v49 = vld [vmem:[#allocation7 + $0x35c] sm:$0xf0]  ;;  %v13255_v55 = vld [vmem:[#allocation9 + $0xb0] sm:$0xf0]  ;;  %v13679_v35 = vld [vmem:[#allocation9 + $0x3f8] sm:$0xf0] }
 0x32d   :  { %v14398_v2 = vor.u32 %v17496_v49, %v14397_v36  ;;  %v13258_v3 = vor.u32 %v17606_v53, %v13255_v55  ;;  %v13682_v36 = vor.u32 %v17711_v15, %v13679_v35  ;;  %v17707_v49 = vld [vmem:[#allocation9 + $0x3b4] sm:$0xf0]  ;;  %v17703_v53 = vld [vmem:[#allocation9 + $0x39c] sm:$0xf] }
 0x32e   :  { %6611 = vmatpush.bf16.msrb.mxu0 %v14142_v57  ;;  %5451 = vmatpush.bf16.msra.mxu3 %v13386_v12  ;;  %v5212_v57 = vpop.f32.mrf.mxu1  ;;  %v19919_v58 = vpop.f32.mrf.mxu0  ;;  %v13981_v12 = vld [vmem:[#allocation7] sm:$0xf]  ;;  %v13647_v55 = vld [vmem:[#allocation9 + $0x3b8] sm:$0xf0]  ;;  %v13646_v62 = vor.u32 %v17707_v49, %v13645_v5  ;;  %v14271_v49 = vld [vmem:[#allocation7 + $0x260] sm:$0xf0] }
 0x32f   :  { %v19924_v44 = vadd.f32 %v5212_v57, %v19912_v54  ;;  %v13229_v54 = vld [vmem:[#allocation9 + $0x58] sm:$0xf] }
 0x330   :  { %5503 = vmatpush.bf16.msrb.mxu2 %v13390_v42  ;;  %5560 = vmatpush.bf16.msra.mxu1 %v13234_v16  ;;  %v17392_v42 = vld [vmem:[#allocation7 + $0x1c] sm:$0xf0]  ;;  %v13230_v61 = vor.u32 %v17603_v7, %v13229_v54  ;;  %v17476_v7 = vld [vmem:[#allocation7 + $0x2c4] sm:$0xf] }
 0x331   :  { %13978 = vmatmul.msk.bf16.vlgmr.msra.gmra.mxu0 %vm5186_vm9, %v19891_v25  ;;  %v17488_v16 = vld [vmem:[#allocation7 + $0x31c] sm:$0xf0]  ;;  %v13982_v37 = vor.u32 %v17392_v42, %v13981_v12  ;;  %v14367_v12 = vld [vmem:[#allocation7 + $0x320] sm:$0xf0] }
 0x332   :  { %6612 = vmatpush.bf16.msrb.mxu0 %v14110_v4  ;;  %5452 = vmatpush.bf16.msra.mxu3 %v13354_v10  ;;  %v17508_v4 = vld [vmem:[#allocation7 + $0x3c4] sm:$0xf]  ;;  %v14366_v10 = vor.u32 %v17488_v16, %v14365_v45  ;;  %v13650_v45 = vor.u32 %v17703_v53, %v13647_v55  ;;  %v17699_v16 = vld [vmem:[#allocation9 + $0x374] sm:$0xf0]  ;;  %v17456_v54 = vld [vmem:[#allocation7 + $0x21c] sm:$0xf0] }
 0x333   :  { %v14466_v33 = vor.u32 %v17508_v4, %v14463_v21  ;;  %v14655_v53 = vld [vmem:[#allocation7 + $0x560] sm:$0xf0] }
 0x334   :  { %5504 = vmatpush.bf16.msrb.mxu2 %v13358_v17  ;;  %5561 = vmatpush.bf16.msra.mxu1 %v13202_v26  ;;  %v13226_v17 = vor.u32 %v17598_v56, %v13223_v20  ;;  %v17590_v26 = vld [vmem:[#allocation9 + $0x14] sm:$0xf]  ;;  %v13615_v56 = vld [vmem:[#allocation9 + $0x378] sm:$0xf0] }
 0x335   :  { %13975 = vmatmul.msk.bf16.vlgmr.msrb.gmra.mxu3 %vm5186_vm9, %v19891_v25 }
 0x336   :  { %6613 = vmatpush.bf16.msrb.mxu0 %v14078_v32  ;;  %5453 = vmatpush.bf16.msra.mxu3 %v13322_v31  ;;  %v13191_v32 = vld [vmem:[#allocation9 + $0x30] sm:$0xf0]  ;;  %v5214_v28 = vpop.f32.mrf.mxu1  ;;  %v17715_v31 = vld [vmem:[#allocation9 + $0x3f4] sm:$0xf0] }
 0x337   :  { %5562 = vmatmul.bf16.vlgmr.msra.gmra.mxu1 %v19842_v23  ;;  %13976 = vmatmul.msk.bf16.vlgmr.msra.gmra.mxu2 %vm5186_vm9, %v19891_v25  ;;  %v17500_v25 = vld [vmem:[#allocation7 + $0x384] sm:$0xf]  ;;  %v13678_v0 = vor.u32 %v17715_v31, %v13677_v43 }
 0x338   :  { %6622 = vmatpush.bf16.msrb.mxu1 %v14462_v29  ;;  %5505 = vmatpush.bf16.msrb.mxu2 %v13326_v40  ;;  %v5266_v29 = vpop.f32.mrf.mxu0  ;;  %v14434_v40 = vor.u32 %v17500_v25, %v14431_v46  ;;  %v13581_v25 = vld [vmem:[#allocation9 + $0x318] sm:$0xf]  ;;  %v14303_v31 = vld [vmem:[#allocation7 + $0x2a0] sm:$0xf0] }
 0x339   :  { %v17691_v46 = vld [vmem:[#allocation9 + $0x334] sm:$0xf0]  ;;  %v17468_v29 = vld [vmem:[#allocation7 + $0x284] sm:$0xf] }
 0x33a   :  { %6614 = vmatpush.bf16.msrb.mxu0 %v14046_v50  ;;  %5454 = vmatpush.bf16.msra.mxu3 %v13290_v11  ;;  %v13194_v50 = vor.u32 %v17590_v26, %v13191_v32  ;;  %v14399_v11 = vld [vmem:[#allocation7 + $0x360] sm:$0xf0]  ;;  %v17687_v26 = vld [vmem:[#allocation9 + $0x31c] sm:$0xf]  ;;  %v13582_v43 = vor.u32 %v17691_v46, %v13581_v25 }
 0x33b   :  { %v14402_v57 = vor.u32 %v17492_v51, %v14399_v11  ;;  %v13583_v32 = vld [vmem:[#allocation9 + $0x338] sm:$0xf0]  ;;  %v19944_v51 = vpack.c.bf16 %v19853_v13, %v19853_v13  ;;  %v17540_v25 = vld [vmem:[#allocation7 + $0x4c4] sm:$0xf] }
 0x33c   :  { %6623 = vmatpush.bf16.msrb.mxu1 %v14430_v24  ;;  %5506 = vmatpush.bf16.msrb.mxu2 %v13294_v52  ;;  %v13198_v24 = vor.u32 %v17595_v30, %v13197_v27  ;;  %v14302_v52 = vor.u32 %v17472_v48, %v14301_v41  ;;  %v13586_v35 = vor.u32 %v17687_v26, %v13583_v32  ;;  %v17683_v41 = vld [vmem:[#allocation9 + $0x2f4] sm:$0xf0]  ;;  %v14591_v26 = vld [vmem:[#allocation7 + $0x4e0] sm:$0xf0] }
 0x33d   :  { %v13453_v32 = vld [vmem:[#allocation9 + $0x218] sm:$0xf] }
 0x33e   :  { %6615 = vmatpush.bf16.msrb.mxu0 %v14014_v39  ;;  %5455 = vmatpush.bf16.msra.mxu3 %v13258_v3  ;;  %v14269_v39 = vld [vmem:[#allocation7 + $0x240] sm:$0xf]  ;;  %v19933_v42 = vpop.f32.mrf.mxu1  ;;  %v13613_v3 = vld [vmem:[#allocation9 + $0x358] sm:$0xf] }
 0x33f   :  { %v14270_v21 = vor.u32 %v17464_v47, %v14269_v39  ;;  %v17675_v39 = vld [vmem:[#allocation9 + $0x2b4] sm:$0xf0]  ;;  %v17671_v47 = vld [vmem:[#allocation9 + $0x29c] sm:$0xf] }
 0x340   :  { %6624 = vmatpush.bf16.msrb.mxu1 %v14398_v2  ;;  %5507 = vmatpush.bf16.msrb.mxu2 %v13262_v6  ;;  %v17484_v2 = vld [vmem:[#allocation7 + $0x304] sm:$0xf]  ;;  %v19936_v4 = vpop.f32.mrf.mxu0  ;;  %v17695_v6 = vld [vmem:[#allocation9 + $0x35c] sm:$0xf] }
 0x341   :  { %v14370_v20 = vor.u32 %v17484_v2, %v14367_v12  ;;  %v13618_v18 = vor.u32 %v17695_v6, %v13615_v56  ;;  %v14623_v6 = vld [vmem:[#allocation7 + $0x520] sm:$0xf0]  ;;  %v13485_v56 = vld [vmem:[#allocation9 + $0x258] sm:$0xf] }
 0x342   :  { %6616 = vmatpush.bf16.msrb.mxu0 %v13982_v37  ;;  %5456 = vmatpush.bf16.msra.mxu3 %v13226_v17  ;;  %v14237_v37 = vld [vmem:[#allocation7 + $0x200] sm:$0xf]  ;;  %v14719_v17 = vld [vmem:[#allocation7 + $0x5e0] sm:$0xf0] }
 0x343   :  { %v14722_v28 = vor.u32 %v17572_v14, %v14719_v17  ;;  %v13487_v14 = vld [vmem:[#allocation9 + $0x278] sm:$0xf0] }
 0x344   :  { %6625 = vmatpush.bf16.msrb.mxu1 %v14366_v10  ;;  %5508 = vmatpush.bf16.msrb.mxu2 %v13230_v61  ;;  %v13614_v10 = vor.u32 %v17699_v16, %v13613_v3  ;;  %v14238_v61 = vor.u32 %v17456_v54, %v14237_v37  ;;  %v14239_v3 = vld [vmem:[#allocation7 + $0x220] sm:$0xf0]  ;;  %v17667_v37 = vld [vmem:[#allocation9 + $0x274] sm:$0xf0]  ;;  %v14725_v54 = vld [vmem:[#allocation7 + $0x5c8] sm:$0xf] }
 0x345   :  { %6617 = vmatmul.bf16.vlgmr.msrb.gmra.mxu0 %v19930_v9  ;;  %v13486_v46 = vor.u32 %v17667_v37, %v13485_v56  ;;  %v17560_v37 = vld [vmem:[#allocation7 + $0x55c] sm:$0xf0] }
 0x346   :  { %6674 = vmatpush.bf16.msra.mxu0 %v14466_v33  ;;  %5457 = vmatpush.bf16.msra.mxu3 %v13194_v50  ;;  %v14335_v33 = vld [vmem:[#allocation7 + $0x2e0] sm:$0xf0]  ;;  %v5279_v15 = vpop.f32.mrf.mxu1  ;;  %v13549_v50 = vld [vmem:[#allocation9 + $0x2d8] sm:$0xf] }
 0x347   :  { %v14338_v27 = vor.u32 %v17476_v7, %v14335_v33  ;;  %v13550_v5 = vor.u32 %v17683_v41, %v13549_v50  ;;  %v17577_v7 = vld [vmem:[#allocation7 + $0x5e4] sm:$0xf0]  ;;  %v17663_v33 = vld [vmem:[#allocation9 + $0x25c] sm:$0xf]  ;;  %v14594_v15 = vor.u32 %v17540_v25, %v14591_v26  ;;  %v17576_v50 = vld [vmem:[#allocation7 + $0x5dc] sm:$0xf0] }
 0x348   :  { %6626 = vmatpush.bf16.msrb.mxu1 %v14334_v8  ;;  %5509 = vmatpush.bf16.msrb.mxu2 %v13198_v24  ;;  %v17564_v8 = vld [vmem:[#allocation7 + $0x584] sm:$0xf]  ;;  %v5331_v48 = vpop.f32.mrf.mxu0  ;;  %v17679_v24 = vld [vmem:[#allocation9 + $0x2dc] sm:$0xf]  ;;  %v17545_v25 = vld [vmem:[#allocation7 + $0x4e4] sm:$0xf0] }
 0x349   :  { %5458 = vmatmul.bf16.vlgmr.msra.gmra.mxu3 %v19842_v23 }
 0x34a   :  { %6675 = vmatpush.bf16.msra.mxu0 %v14434_v40  ;;  %5515 = vmatpush.bf16.msrb.mxu3 %v13678_v0  ;;  %v14687_v40 = vld [vmem:[#allocation7 + $0x5a0] sm:$0xf0]  ;;  %v13551_v0 = vld [vmem:[#allocation9 + $0x2f8] sm:$0xf0] }
 0x34b   :  { %5510 = vmatmul.bf16.vlgmr.msrb.gmra.mxu2 %v19842_v23  ;;  %v5225_v23 = vpop.f32.mrf.mxu2  ;;  %v14690_v11 = vor.u32 %v17564_v8, %v14687_v40  ;;  %v13554_v55 = vor.u32 %v17679_v24, %v13551_v0  ;;  %v17775_v8 = vld [vmem:[#allocation9 + $0x5dc] sm:$0xf]  ;;  %v17532_v24 = vld [vmem:[#allocation7 + $0x484] sm:$0xf] }
 0x34c   :  { %5567 = vmatpush.bf16.msra.mxu2 %v13682_v36  ;;  %6627 = vmatpush.bf16.msrb.mxu1 %v14302_v52  ;;  %v19940_v30 = vadd.f32 %v5225_v23, %v19924_v44  ;;  %v14306_v44 = vor.u32 %v17468_v29, %v14303_v31  ;;  %v17460_v36 = vld [vmem:[#allocation7 + $0x244] sm:$0xf]  ;;  %v17659_v23 = vld [vmem:[#allocation9 + $0x234] sm:$0xf0]  ;;  %v17569_v29 = vld [vmem:[#allocation7 + $0x5a4] sm:$0xf0] }
 0x34d   :  { %v17556_v52 = vld [vmem:[#allocation7 + $0x544] sm:$0xf]  ;;  %v14274_v2 = vor.u32 %v17460_v36, %v14271_v49  ;;  %v13455_v31 = vld [vmem:[#allocation9 + $0x238] sm:$0xf0]  ;;  %v13454_v41 = vor.u32 %v17659_v23, %v13453_v32  ;;  %v14661_v36 = vld [vmem:[#allocation7 + $0x548] sm:$0xf] }
 0x34e   :  { %6676 = vmatpush.bf16.msra.mxu0 %v14402_v57  ;;  %5516 = vmatpush.bf16.msrb.mxu3 %v13646_v62  ;;  %v13517_v57 = vld [vmem:[#allocation9 + $0x298] sm:$0xf]  ;;  %v13519_v62 = vld [vmem:[#allocation9 + $0x2b8] sm:$0xf0]  ;;  %v14658_v12 = vor.u32 %v17556_v52, %v14655_v53  ;;  %v14559_v0 = vld [vmem:[#allocation7 + $0x4a0] sm:$0xf0] }
 0x34f   :  { %v13518_v16 = vor.u32 %v17675_v39, %v13517_v57  ;;  %v13935_v40 = vld [vmem:[#allocation9 + $0x5f8] sm:$0xf0]  ;;  %v14562_v57 = vor.u32 %v17532_v24, %v14559_v0  ;;  %v14685_v39 = vld [vmem:[#allocation7 + $0x580] sm:$0xf] }
 0x350   :  { %5568 = vmatpush.bf16.msra.mxu2 %v13650_v45  ;;  %6628 = vmatpush.bf16.msrb.mxu1 %v14270_v21  ;;  %v17452_v45 = vld [vmem:[#allocation7 + $0x204] sm:$0xf]  ;;  %v17767_v53 = vld [vmem:[#allocation9 + $0x59c] sm:$0xf] }
 0x351   :  { %v17548_v21 = vld [vmem:[#allocation7 + $0x504] sm:$0xf]  ;;  %v14242_v17 = vor.u32 %v17452_v45, %v14239_v3  ;;  %v14629_v45 = vld [vmem:[#allocation7 + $0x508] sm:$0xf]  ;;  %v17751_v32 = vld [vmem:[#allocation9 + $0x51c] sm:$0xf] }
 0x352   :  { %6677 = vmatpush.bf16.msra.mxu0 %v14370_v20  ;;  %5517 = vmatpush.bf16.msrb.mxu3 %v13614_v10  ;;  %v13522_v20 = vor.u32 %v17671_v47, %v13519_v62  ;;  %v19947_v10 = vpop.f32.mrf.mxu1  ;;  %v17568_v47 = vld [vmem:[#allocation7 + $0x59c] sm:$0xf0]  ;;  %v17553_v3 = vld [vmem:[#allocation7 + $0x524] sm:$0xf0]  ;;  %v13839_v23 = vld [vmem:[#allocation9 + $0x538] sm:$0xf0] }
 0x353   :  { %v5227_v13 = vpop.f32.mrf.mxu2  ;;  %v17743_v0 = vld [vmem:[#allocation9 + $0x4dc] sm:$0xf] }
 0x354   :  { %5569 = vmatpush.bf16.msra.mxu2 %v13618_v18  ;;  %6629 = vmatpush.bf16.msrb.mxu1 %v14238_v61  ;;  %v14626_v18 = vor.u32 %v17548_v21, %v14623_v6  ;;  %v14726_v61 = vor.u32 %v17577_v7, %v14725_v54  ;;  %v17524_v13 = vld [vmem:[#allocation7 + $0x444] sm:$0xf]  ;;  %v17759_v21 = vld [vmem:[#allocation9 + $0x55c] sm:$0xf]  ;;  %v14630_v7 = vor.u32 %v17553_v3, %v14629_v45  ;;  %v17536_v45 = vld [vmem:[#allocation7 + $0x49c] sm:$0xf0] }
 0x355   :  { %v13871_v6 = vld [vmem:[#allocation9 + $0x578] sm:$0xf0] }
 0x356   :  { %6678 = vmatpush.bf16.msra.mxu0 %v14338_v27  ;;  %5518 = vmatpush.bf16.msrb.mxu3 %v13582_v43  ;;  %v13490_v27 = vor.u32 %v17663_v33, %v13487_v14  ;;  %v17655_v43 = vld [vmem:[#allocation9 + $0x21c] sm:$0xf]  ;;  %v17516_v33 = vld [vmem:[#allocation7 + $0x404] sm:$0xf] }
 0x357   :  { %6630 = vmatmul.bf16.vlgmr.msrb.gmra.mxu1 %v19944_v51  ;;  %v14495_v14 = vld [vmem:[#allocation7 + $0x420] sm:$0xf0] }
 0x358   :  { %6687 = vmatpush.bf16.msra.mxu1 %v14722_v28  ;;  %5570 = vmatpush.bf16.msra.mxu2 %v13586_v35  ;;  %v14693_v28 = vld [vmem:[#allocation7 + $0x588] sm:$0xf]  ;;  %v14717_v35 = vld [vmem:[#allocation7 + $0x5c0] sm:$0xf] }
 0x359   :  { %v14694_v48 = vor.u32 %v17569_v29, %v14693_v28  ;;  %v14718_v52 = vor.u32 %v17576_v50, %v14717_v35  ;;  %v14621_v28 = vld [vmem:[#allocation7 + $0x500] sm:$0xf]  ;;  %v13842_v50 = vor.u32 %v17751_v32, %v13839_v23 }
 0x35a   :  { %6679 = vmatpush.bf16.msra.mxu0 %v14306_v44  ;;  %5519 = vmatpush.bf16.msrb.mxu3 %v13550_v5  ;;  %v13458_v44 = vor.u32 %v17655_v43, %v13455_v31  ;;  %v17561_v5 = vld [vmem:[#allocation7 + $0x564] sm:$0xf0]  ;;  %v5357_v49 = vpop.f32.mrf.mxu1  ;;  %v17552_v29 = vld [vmem:[#allocation7 + $0x51c] sm:$0xf0] }
 0x35b   :  { %v14662_v62 = vor.u32 %v17561_v5, %v14661_v36  ;;  %v14622_v24 = vor.u32 %v17552_v29, %v14621_v28  ;;  %v14589_v36 = vld [vmem:[#allocation7 + $0x4c0] sm:$0xf]  ;;  %v19961_v49 = vpack.c.bf16 %v19869_v59, %v19869_v59  ;;  %v14119_v28 = vld [vmem:[#allocation7 + $0x128] sm:$0xf0] }
 0x35c   :  { %6688 = vmatpush.bf16.msra.mxu1 %v14690_v11  ;;  %5571 = vmatpush.bf16.msra.mxu2 %v13554_v55  ;;  %v13938_v11 = vor.u32 %v17775_v8, %v13935_v40  ;;  %v13903_v55 = vld [vmem:[#allocation9 + $0x5b8] sm:$0xf0]  ;;  %v17445_v40 = vld [vmem:[#allocation7 + $0x1cc] sm:$0xf]  ;;  %v17544_v5 = vld [vmem:[#allocation7 + $0x4dc] sm:$0xf0] }
 0x35d   :  { %v14557_v59 = vld [vmem:[#allocation7 + $0x480] sm:$0xf] }
 0x35e   :  { %6680 = vmatpush.bf16.msra.mxu0 %v14274_v2  ;;  %5520 = vmatpush.bf16.msrb.mxu3 %v13518_v16  ;;  %v14527_v2 = vld [vmem:[#allocation7 + $0x460] sm:$0xf0]  ;;  %v14686_v16 = vor.u32 %v17568_v47, %v14685_v39  ;;  %v14533_v39 = vld [vmem:[#allocation7 + $0x448] sm:$0xf] }
 0x35f   :  { %v14530_v56 = vor.u32 %v17524_v13, %v14527_v2  ;;  %v17529_v47 = vld [vmem:[#allocation7 + $0x464] sm:$0xf0]  ;;  %v17735_v13 = vld [vmem:[#allocation9 + $0x49c] sm:$0xf] }
 0x360   :  { %6689 = vmatpush.bf16.msra.mxu1 %v14658_v12  ;;  %5572 = vmatpush.bf16.msra.mxu2 %v13522_v20  ;;  %v13906_v12 = vor.u32 %v17767_v53, %v13903_v55  ;;  %v14653_v20 = vld [vmem:[#allocation7 + $0x540] sm:$0xf]  ;;  %v19951_v54 = vpop.f32.mrf.mxu0  ;;  %v17437_v53 = vld [vmem:[#allocation7 + $0x18c] sm:$0xf]  ;;  %v13775_v2 = vld [vmem:[#allocation9 + $0x4b8] sm:$0xf0] }
 0x361   :  { %v14654_v26 = vor.u32 %v17560_v37, %v14653_v20  ;;  %v14183_v55 = vld [vmem:[#allocation7 + $0x1a8] sm:$0xf0]  ;;  %v13778_v20 = vor.u32 %v17735_v13, %v13775_v2  ;;  %v14501_v37 = vld [vmem:[#allocation7 + $0x408] sm:$0xf]  ;;  %v14207_v13 = vld [vmem:[#allocation7 + $0x1e0] sm:$0xf0] }
 0x362   :  { %6681 = vmatpush.bf16.msra.mxu0 %v14242_v17  ;;  %5521 = vmatpush.bf16.msrb.mxu3 %v13486_v46  ;;  %v14597_v17 = vld [vmem:[#allocation7 + $0x4c8] sm:$0xf] }
 0x363   :  { %v14757_v46 = vld [vmem:[#allocation7 + $0x608] sm:$0xf]  ;;  %v14598_v31 = vor.u32 %v17545_v25, %v14597_v17  ;;  %v13743_v17 = vld [vmem:[#allocation9 + $0x478] sm:$0xf0]  ;;  %v14759_v25 = vld [vmem:[#allocation7 + $0x628] sm:$0xf0] }
 0x364   :  { %6690 = vmatpush.bf16.msra.mxu1 %v14626_v18  ;;  %5573 = vmatpush.bf16.msra.mxu2 %v13490_v27  ;;  %v13874_v18 = vor.u32 %v17759_v21, %v13871_v6  ;;  %v14498_v27 = vor.u32 %v17516_v33, %v14495_v14  ;;  %v19954_v43 = vpop.f32.mrf.mxu2  ;;  %v14534_v21 = vor.u32 %v17529_v47, %v14533_v39  ;;  %v17429_v6 = vld [vmem:[#allocation7 + $0x14c] sm:$0xf]  ;;  %v17727_v33 = vld [vmem:[#allocation9 + $0x45c] sm:$0xf]  ;;  %v17442_v39 = vld [vmem:[#allocation7 + $0x1ac] sm:$0xf0] }
 0x365   :  { %6682 = vmatmul.bf16.vlgmr.msra.gmra.mxu0 %v19944_v51  ;;  %v14558_v14 = vor.u32 %v17536_v45, %v14557_v59  ;;  %v17580_v45 = vld [vmem:[#allocation7 + $0x604] sm:$0xf] }
 0x366   :  { %6739 = vmatpush.bf16.msrb.mxu0 %v14726_v61  ;;  %5522 = vmatpush.bf16.msrb.mxu3 %v13454_v41  ;;  %v17585_v61 = vld [vmem:[#allocation7 + $0x624] sm:$0xf0] }
 0x367   :  { %v14758_v8 = vor.u32 %v17585_v61, %v14757_v46  ;;  %v14565_v41 = vld [vmem:[#allocation7 + $0x488] sm:$0xf]  ;;  %v14525_v61 = vld [vmem:[#allocation7 + $0x440] sm:$0xf] }
 0x368   :  { %6691 = vmatpush.bf16.msra.mxu1 %v14594_v15  ;;  %5574 = vmatpush.bf16.msra.mxu2 %v13458_v44  ;;  %v14215_v15 = vld [vmem:[#allocation7 + $0x1e8] sm:$0xf0]  ;;  %v13807_v44 = vld [vmem:[#allocation9 + $0x4f8] sm:$0xf0] }
 0x369   :  { %5523 = vmatmul.bf16.vlgmr.msrb.gmra.mxu3 %v19857_v38 }
 0x36a   :  { %6740 = vmatpush.bf16.msrb.mxu0 %v14694_v48  ;;  %5580 = vmatpush.bf16.msra.mxu3 %v13938_v11  ;;  %v17537_v48 = vld [vmem:[#allocation7 + $0x4a4] sm:$0xf0]  ;;  %v14218_v11 = vor.u32 %v17445_v40, %v14215_v15  ;;  %v17450_v40 = vld [vmem:[#allocation7 + $0x1ec] sm:$0xf0] }
 0x36b   :  { %5575 = vmatmul.bf16.vlgmr.msra.gmra.mxu2 %v19857_v38  ;;  %v5238_v38 = vpop.f32.mrf.mxu3 }
 0x36c   :  { %6635 = vmatpush.bf16.msrb.mxu2 %v14718_v52  ;;  %6692 = vmatpush.bf16.msra.mxu1 %v14562_v57  ;;  %v19957_v35 = vadd.f32 %v5238_v38, %v19940_v30  ;;  %v5409_v52 = vpop.f32.mrf.mxu0  ;;  %v14566_v30 = vor.u32 %v17537_v48, %v14565_v41  ;;  %v13810_v57 = vor.u32 %v17743_v0, %v13807_v44  ;;  %v13711_v41 = vld [vmem:[#allocation9 + $0x438] sm:$0xf0]  ;;  %v17520_v0 = vld [vmem:[#allocation7 + $0x41c] sm:$0xf0]  ;;  %v17413_v44 = vld [vmem:[#allocation7 + $0xcc] sm:$0xf] }
 0x36d   :  { %v13746_v38 = vor.u32 %v17727_v33, %v13743_v17  ;;  %v17584_v52 = vld [vmem:[#allocation7 + $0x61c] sm:$0xf0]  ;;  %v17434_v33 = vld [vmem:[#allocation7 + $0x16c] sm:$0xf0] }
 0x36e   :  { %6741 = vmatpush.bf16.msrb.mxu0 %v14662_v62  ;;  %5581 = vmatpush.bf16.msra.mxu3 %v13906_v12  ;;  %v14590_v62 = vor.u32 %v17544_v5, %v14589_v36  ;;  %v14186_v12 = vor.u32 %v17437_v53, %v14183_v55  ;;  %v14087_v5 = vld [vmem:[#allocation7 + $0xe8] sm:$0xf0] }
 0x370   :  { %6636 = vmatpush.bf16.msrb.mxu2 %v14686_v16  ;;  %6693 = vmatpush.bf16.msra.mxu1 %v14530_v56  ;;  %v5292_v16 = vpop.f32.mrf.mxu2  ;;  %v14151_v56 = vld [vmem:[#allocation7 + $0x168] sm:$0xf0]  ;;  %v5420_v32 = vpop.f32.mrf.mxu1 }
 0x371   :  { %v14154_v46 = vor.u32 %v17429_v6, %v14151_v56  ;;  %v19965_v29 = vadd.f32 %v5420_v32, %v19951_v54  ;;  %v14749_v54 = vld [vmem:[#allocation7 + $0x600] sm:$0xf]  ;;  %v19974_v16 = vpack.c.bf16 %v19887_v19, %v19887_v19  ;;  %v17449_v56 = vld [vmem:[#allocation7 + $0x1e4] sm:$0xf0]  ;;  %v17436_v19 = vld [vmem:[#allocation7 + $0x184] sm:$0xf] }
 0x372   :  { %6742 = vmatpush.bf16.msrb.mxu0 %v14630_v7  ;;  %5582 = vmatpush.bf16.msra.mxu3 %v13874_v18  ;;  %v17521_v7 = vld [vmem:[#allocation7 + $0x424] sm:$0xf0]  ;;  %v17581_v18 = vld [vmem:[#allocation7 + $0x60c] sm:$0xf]  ;;  %v14750_v59 = vor.u32 %v17584_v52, %v14749_v54  ;;  %v14477_v54 = vld [vmem:[#allocation7 + $0x3d0] sm:$0xf] }
 0x373   :  { %v5240_v3 = vpop.f32.mrf.mxu3  ;;  %v14502_v23 = vor.u32 %v17521_v7, %v14501_v37  ;;  %v14055_v37 = vld [vmem:[#allocation7 + $0xa8] sm:$0xf0]  ;;  %v14157_v7 = vld [vmem:[#allocation7 + $0x150] sm:$0xf] }
 0x374   :  { %6637 = vmatpush.bf16.msrb.mxu2 %v14654_v26  ;;  %6694 = vmatpush.bf16.msra.mxu1 %v14498_v27  ;;  %v17528_v26 = vld [vmem:[#allocation7 + $0x45c] sm:$0xf0]  ;;  %v17421_v27 = vld [vmem:[#allocation7 + $0x10c] sm:$0xf]  ;;  %v14751_v3 = vld [vmem:[#allocation7 + $0x620] sm:$0xf0] }
 0x375   :  { %v14526_v15 = vor.u32 %v17528_v26, %v14525_v61  ;;  %v14122_v48 = vor.u32 %v17421_v27, %v14119_v28  ;;  %v14754_v17 = vor.u32 %v17580_v45, %v14751_v3  ;;  %v14181_v61 = vld [vmem:[#allocation7 + $0x188] sm:$0xf]  ;;  %v17397_v27 = vld [vmem:[#allocation7 + $0x4c] sm:$0xf]  ;;  %v17514_v52 = vld [vmem:[#allocation7 + $0x3ec] sm:$0xf0] }
 0x376   :  { %6743 = vmatpush.bf16.msrb.mxu0 %v14598_v31  ;;  %5583 = vmatpush.bf16.msra.mxu3 %v13842_v50  ;;  %v14762_v31 = vor.u32 %v17581_v18, %v14759_v25  ;;  %v17719_v50 = vld [vmem:[#allocation9 + $0x41c] sm:$0xf]  ;;  %v14175_v18 = vld [vmem:[#allocation7 + $0x1a0] sm:$0xf0]  ;;  %v14023_v28 = vld [vmem:[#allocation7 + $0x68] sm:$0xf0] }
 0x377   :  { %6695 = vmatmul.bf16.vlgmr.msra.gmra.mxu1 %v19961_v49  ;;  %v13714_v55 = vor.u32 %v17719_v50, %v13711_v41  ;;  %v14143_v50 = vld [vmem:[#allocation7 + $0x160] sm:$0xf0]  ;;  %v14026_v41 = vor.u32 %v17397_v27, %v14023_v28 }
 0x378   :  { %6759 = vmatpush.bf16.msrb.mxu1 %v14758_v8  ;;  %6638 = vmatpush.bf16.msrb.mxu2 %v14622_v24  ;;  %v14221_v8 = vld [vmem:[#allocation7 + $0x1d0] sm:$0xf]  ;;  %v14493_v24 = vld [vmem:[#allocation7 + $0x400] sm:$0xf]  ;;  %v19968_v53 = vpop.f32.mrf.mxu2  ;;  %v17404_v27 = vld [vmem:[#allocation7 + $0x84] sm:$0xf] }
 0x379   :  { %v14222_v36 = vor.u32 %v17450_v40, %v14221_v8  ;;  %v14494_v47 = vor.u32 %v17520_v0, %v14493_v24  ;;  %v14125_v8 = vld [vmem:[#allocation7 + $0x110] sm:$0xf]  ;;  %v17433_v0 = vld [vmem:[#allocation7 + $0x164] sm:$0xf0]  ;;  %v14047_v28 = vld [vmem:[#allocation7 + $0xa0] sm:$0xf0] }
 0x37a   :  { %6744 = vmatpush.bf16.msrb.mxu0 %v14566_v30  ;;  %5584 = vmatpush.bf16.msra.mxu3 %v13810_v57  ;;  %v14189_v57 = vld [vmem:[#allocation7 + $0x190] sm:$0xf] }
 0x37b   :  { %v14190_v6 = vor.u32 %v17442_v39, %v14189_v57  ;;  %v17426_v40 = vld [vmem:[#allocation7 + $0x12c] sm:$0xf0]  ;;  %v14111_v57 = vld [vmem:[#allocation7 + $0x120] sm:$0xf0] }
 0x37c   :  { %6765 = vmatpush.bf16.msra.mxu1 %v14218_v11  ;;  %6639 = vmatpush.bf16.msrb.mxu2 %v14590_v62  ;;  %v5251_v11 = vpop.f32.mrf.mxu3  ;;  %v17444_v62 = vld [vmem:[#allocation7 + $0x1c4] sm:$0xf]  ;;  %v14126_v24 = vor.u32 %v17426_v40, %v14125_v8  ;;  %v17409_v8 = vld [vmem:[#allocation7 + $0xa4] sm:$0xf0] }
 0x37d   :  { %v5265_v30 = vadd.f32 %v19919_v58, %v5251_v11  ;;  %v14213_v58 = vld [vmem:[#allocation7 + $0x1c8] sm:$0xf]  ;;  %v13991_v11 = vld [vmem:[#allocation7 + $0x28] sm:$0xf0] }
 0x37e   :  { %6745 = vmatpush.bf16.msrb.mxu0 %v14534_v21  ;;  %5585 = vmatpush.bf16.msra.mxu3 %v13778_v20  ;;  %v5422_v21 = vpop.f32.mrf.mxu1  ;;  %v17405_v20 = vld [vmem:[#allocation7 + $0x8c] sm:$0xf]  ;;  %v14214_v25 = vor.u32 %v17449_v56, %v14213_v58  ;;  %v19982_v26 = vpop.f32.mrf.mxu0  ;;  %v17506_v56 = vld [vmem:[#allocation7 + $0x3ac] sm:$0xf0] }
 0x37f   :  { %v5278_v2 = vadd.f32 %v19933_v42, %v5265_v30  ;;  %v14210_v42 = vor.u32 %v17444_v62, %v14207_v13  ;;  %v17418_v30 = vld [vmem:[#allocation7 + $0xec] sm:$0xf0]  ;;  %v14478_v13 = vor.u32 %v17514_v52, %v14477_v54  ;;  %v17510_v54 = vld [vmem:[#allocation7 + $0x3d4] sm:$0xf] }
 0x380   :  { %6766 = vmatpush.bf16.msra.mxu1 %v14186_v12  ;;  %6640 = vmatpush.bf16.msrb.mxu2 %v14558_v14  ;;  %v14090_v12 = vor.u32 %v17413_v44, %v14087_v5  ;;  %v17389_v44 = vld [vmem:[#allocation7 + $0xc] sm:$0xf]  ;;  %v14093_v5 = vld [vmem:[#allocation7 + $0xd0] sm:$0xf]  ;;  %v14479_v52 = vld [vmem:[#allocation7 + $0x3f0] sm:$0xf0] }
 0x381   :  { %v19977_v14 = vadd.f32 %v19954_v43, %v5278_v2  ;;  %v14158_v43 = vor.u32 %v17434_v33, %v14157_v7  ;;  %v14117_v2 = vld [vmem:[#allocation7 + $0x108] sm:$0xf]  ;;  %v14094_v3 = vor.u32 %v17418_v30, %v14093_v5  ;;  %v14061_v21 = vld [vmem:[#allocation7 + $0x90] sm:$0xf]  ;;  %v17412_v7 = vld [vmem:[#allocation7 + $0xc4] sm:$0xf] }
 0x382   :  { %6746 = vmatpush.bf16.msrb.mxu0 %v14502_v23  ;;  %5586 = vmatpush.bf16.msra.mxu3 %v13746_v38  ;;  %v17441_v23 = vld [vmem:[#allocation7 + $0x1a4] sm:$0xf0]  ;;  %v5305_v38 = vpop.f32.mrf.mxu2  ;;  %v14079_v33 = vld [vmem:[#allocation7 + $0xe0] sm:$0xf0] }
 0x384   :  { %6767 = vmatpush.bf16.msra.mxu1 %v14154_v46  ;;  %6641 = vmatpush.bf16.msrb.mxu2 %v14526_v15  ;;  %v14058_v46 = vor.u32 %v17405_v20, %v14055_v37  ;;  %v5253_v32 = vpop.f32.mrf.mxu3  ;;  %v17428_v15 = vld [vmem:[#allocation7 + $0x144] sm:$0xf] }
 0x385   :  { %6747 = vmatmul.bf16.vlgmr.msrb.gmra.mxu0 %v19961_v49  ;;  %v14413_v32 = vld [vmem:[#allocation7 + $0x350] sm:$0xf] }
 0x386   :  { %6811 = vmatpush.bf16.msra.mxu0 %v14762_v31  ;;  %5587 = vmatpush.bf16.msra.mxu3 %v13714_v55  ;;  %v14178_v31 = vor.u32 %v17436_v19, %v14175_v18  ;;  %v17420_v55 = vld [vmem:[#allocation7 + $0x104] sm:$0xf]  ;;  %v5474_v62 = vpop.f32.mrf.mxu0  ;;  %v14085_v18 = vld [vmem:[#allocation7 + $0xc8] sm:$0xf] }
 0x387   :  { %14781 = vmatmul.msk.bf16.vlgmr.msrb.gmra.mxu1 %vm5186_vm9, %v19974_v16  ;;  %v14114_v58 = vor.u32 %v17420_v55, %v14111_v57  ;;  %v14021_v55 = vld [vmem:[#allocation7 + $0x48] sm:$0xf]  ;;  %v14349_v62 = vld [vmem:[#allocation7 + $0x2d0] sm:$0xf] }
 0x388   :  { %6768 = vmatpush.bf16.msra.mxu1 %v14122_v48  ;;  %6642 = vmatpush.bf16.msrb.mxu2 %v14494_v47  ;;  %v14149_v48 = vld [vmem:[#allocation7 + $0x148] sm:$0xf]  ;;  %v13994_v47 = vor.u32 %v17389_v44, %v13991_v11  ;;  %v17394_v44 = vld [vmem:[#allocation7 + $0x2c] sm:$0xf0]  ;;  %v17396_v11 = vld [vmem:[#allocation7 + $0x44] sm:$0xf] }
 0x389   :  { %5588 = vmatmul.bf16.vlgmr.msra.gmra.mxu3 %v19873_v34  ;;  %v14182_v34 = vor.u32 %v17441_v23, %v14181_v61  ;;  %v14150_v39 = vor.u32 %v17433_v0, %v14149_v48  ;;  %v14029_v61 = vld [vmem:[#allocation7 + $0x50] sm:$0xf]  ;;  %v17401_v57 = vld [vmem:[#allocation7 + $0x64] sm:$0xf0] }
 0x38a   :  { %6817 = vmatpush.bf16.msrb.mxu0 %v14222_v36  ;;  %6655 = vmatpush.bf16.msrb.mxu3 %v14750_v59  ;;  %v14146_v36 = vor.u32 %v17428_v15, %v14143_v50  ;;  %v5368_v45 = vpop.f32.mrf.mxu2  ;;  %v17402_v23 = vld [vmem:[#allocation7 + $0x6c] sm:$0xf0] }
 0x38b   :  { %6643 = vmatmul.bf16.vlgmr.msrb.gmra.mxu2 %v19961_v49  ;;  %v19987_v37 = vadd.f32 %v5368_v45, %v19947_v10  ;;  %v14030_v50 = vor.u32 %v17402_v23, %v14029_v61  ;;  %v14381_v48 = vld [vmem:[#allocation7 + $0x310] sm:$0xf]  ;;  %v17502_v45 = vld [vmem:[#allocation7 + $0x394] sm:$0xf] }
 0x38c   :  { %6769 = vmatpush.bf16.msra.mxu1 %v14090_v12  ;;  %6707 = vmatpush.bf16.msra.mxu2 %v14754_v17  ;;  %v17425_v12 = vld [vmem:[#allocation7 + $0x124] sm:$0xf0]  ;;  %v5316_v59 = vpop.f32.mrf.mxu3 }
 0x38d   :  { %v5317_v20 = vadd.f32 %v5316_v59, %v19968_v53  ;;  %v14118_v17 = vor.u32 %v17425_v12, %v14117_v2  ;;  %v14082_v53 = vor.u32 %v17412_v7, %v14079_v33  ;;  %v14482_v2 = vor.u32 %v17510_v54, %v14479_v52  ;;  %v17388_v12 = vld [vmem:[#allocation7 + $0x4] sm:$0xf] }
 0x38e   :  { %6818 = vmatpush.bf16.msrb.mxu0 %v14190_v6  ;;  %6661 = vmatpush.bf16.msra.mxu3 %v14210_v42  ;;  %v14445_v6 = vld [vmem:[#allocation7 + $0x390] sm:$0xf]  ;;  %v13983_v59 = vld [vmem:[#allocation7 + $0x20] sm:$0xf0] }
 0x38f   :  { %v17410_v42 = vld [vmem:[#allocation7 + $0xac] sm:$0xf0]  ;;  %v14446_v19 = vor.u32 %v17506_v56, %v14445_v6  ;;  %v17513_v6 = vld [vmem:[#allocation7 + $0x3e4] sm:$0xf0] }
 0x390   :  { %6713 = vmatpush.bf16.msrb.mxu2 %v14214_v25  ;;  %6770 = vmatpush.bf16.msra.mxu1 %v14058_v46  ;;  %v17417_v25 = vld [vmem:[#allocation7 + $0xe4] sm:$0xf0]  ;;  %v19992_v46 = vadd.f32 %v19936_v4, %v5317_v20  ;;  %v14062_v10 = vor.u32 %v17410_v42, %v14061_v21  ;;  %v19997_v40 = vpop.f32.mrf.mxu1 }
 0x391   :  { %v14086_v38 = vor.u32 %v17417_v25, %v14085_v18  ;;  %v14469_v21 = vld [vmem:[#allocation7 + $0x3c8] sm:$0xf]  ;;  %v14471_v18 = vld [vmem:[#allocation7 + $0x3e8] sm:$0xf0] }
 0x392   :  { %6819 = vmatpush.bf16.msrb.mxu0 %v14158_v43  ;;  %6662 = vmatpush.bf16.msra.mxu3 %v14178_v31  ;;  %v17498_v43 = vld [vmem:[#allocation7 + $0x36c] sm:$0xf0]  ;;  %v14053_v31 = vld [vmem:[#allocation7 + $0x88] sm:$0xf]  ;;  %v5370_v0 = vpop.f32.mrf.mxu2  ;;  %v14470_v61 = vor.u32 %v17513_v6, %v14469_v21 }
 0x393   :  { %v14414_v4 = vor.u32 %v17498_v43, %v14413_v32  ;;  %v14054_v5 = vor.u32 %v17409_v8, %v14053_v31  ;;  %v13989_v20 = vld [vmem:[#allocation7 + $0x8] sm:$0xf]  ;;  %v14317_v32 = vld [vmem:[#allocation7 + $0x290] sm:$0xf]  ;;  %v17486_v0 = vld [vmem:[#allocation7 + $0x314] sm:$0xf] }
 0x394   :  { %6714 = vmatpush.bf16.msrb.mxu2 %v14182_v34  ;;  %6771 = vmatpush.bf16.msra.mxu1 %v14026_v41  ;;  %v5318_v15 = vpop.f32.mrf.mxu3  ;;  %v14050_v34 = vor.u32 %v17404_v27, %v14047_v28  ;;  %v13997_v41 = vld [vmem:[#allocation7 + $0x10] sm:$0xf]  ;;  %v17393_v42 = vld [vmem:[#allocation7 + $0x24] sm:$0xf0]  ;;  %v17494_v27 = vld [vmem:[#allocation7 + $0x354] sm:$0xf] }
 0x395   :  { %14782 = vmatmul.msk.bf16.vlgmr.msra.gmra.mxu0 %vm5186_vm9, %v19974_v16  ;;  %v17474_v43 = vld [vmem:[#allocation7 + $0x2ac] sm:$0xf0]  ;;  %v13990_v23 = vor.u32 %v17393_v42, %v13989_v20  ;;  %v14415_v28 = vld [vmem:[#allocation7 + $0x370] sm:$0xf0]  ;;  %v17505_v31 = vld [vmem:[#allocation7 + $0x3a4] sm:$0xf0] }
 0x396   :  { %6820 = vmatpush.bf16.msrb.mxu0 %v14126_v24  ;;  %6663 = vmatpush.bf16.msra.mxu3 %v14146_v36  ;;  %v17490_v24 = vld [vmem:[#allocation7 + $0x32c] sm:$0xf0]  ;;  %v14015_v36 = vld [vmem:[#allocation7 + $0x60] sm:$0xf0]  ;;  %v17501_v15 = vld [vmem:[#allocation7 + $0x38c] sm:$0xf] }
 0x397   :  { %v14382_v30 = vor.u32 %v17490_v24, %v14381_v48  ;;  %v17466_v48 = vld [vmem:[#allocation7 + $0x26c] sm:$0xf0]  ;;  %v14373_v21 = vld [vmem:[#allocation7 + $0x308] sm:$0xf]  ;;  %v17485_v42 = vld [vmem:[#allocation7 + $0x30c] sm:$0xf] }
 0x398   :  { %6715 = vmatpush.bf16.msrb.mxu2 %v14150_v39  ;;  %6772 = vmatpush.bf16.msra.mxu1 %v13994_v47  ;;  %v13998_v39 = vor.u32 %v17394_v44, %v13997_v41  ;;  %v14018_v47 = vor.u32 %v17396_v11, %v14015_v36  ;;  %v5487_v7 = vpop.f32.mrf.mxu1  ;;  %v14285_v41 = vld [vmem:[#allocation7 + $0x250] sm:$0xf]  ;;  %v14383_v44 = vld [vmem:[#allocation7 + $0x330] sm:$0xf0]  ;;  %v14405_v36 = vld [vmem:[#allocation7 + $0x348] sm:$0xf] }
 0x399   :  { %14779 = vmatmul.msk.bf16.vlgmr.msrb.gmra.mxu3 %vm5186_vm9, %v19974_v16  ;;  %v17489_v6 = vld [vmem:[#allocation7 + $0x324] sm:$0xf0]  ;;  %v14375_v7 = vld [vmem:[#allocation7 + $0x328] sm:$0xf0] }
 0x39a   :  { %6821 = vmatpush.bf16.msrb.mxu0 %v14094_v3  ;;  %6664 = vmatpush.bf16.msra.mxu3 %v14114_v58  ;;  %v14022_v3 = vor.u32 %v17401_v57, %v14021_v55  ;;  %v14447_v58 = vld [vmem:[#allocation7 + $0x3b0] sm:$0xf0]  ;;  %v17493_v55 = vld [vmem:[#allocation7 + $0x34c] sm:$0xf] }
 0x39b   :  { %6773 = vmatmul.bf16.vlgmr.msra.gmra.mxu1 %v19930_v9  ;;  %14780 = vmatmul.msk.bf16.vlgmr.msra.gmra.mxu2 %vm5186_vm9, %v19974_v16  ;;  %v14407_v57 = vld [vmem:[#allocation7 + $0x368] sm:$0xf0] }
 0x39c   :  { %6830 = vmatpush.bf16.msrb.mxu1 %v14478_v13  ;;  %6716 = vmatpush.bf16.msrb.mxu2 %v14118_v17  ;;  %v17482_v13 = vld [vmem:[#allocation7 + $0x2ec] sm:$0xf0]  ;;  %v5342_v33 = vpop.f32.mrf.mxu3  ;;  %v13986_v17 = vor.u32 %v17388_v12, %v13983_v59  ;;  %v14351_v59 = vld [vmem:[#allocation7 + $0x2f0] sm:$0xf0] }
 0x39d   :  { %v14350_v56 = vor.u32 %v17482_v13, %v14349_v62  ;;  %v20002_v25 = vadd.f32 %v5342_v33, %v19992_v46  ;;  %v14318_v46 = vor.u32 %v17474_v43, %v14317_v32  ;;  %v14253_v62 = vld [vmem:[#allocation7 + $0x210] sm:$0xf]  ;;  %v14703_v32 = vld [vmem:[#allocation7 + $0x5b0] sm:$0xf0]  ;;  %v14378_v43 = vor.u32 %v17485_v42, %v14375_v7 }
 0x39e   :  { %6822 = vmatpush.bf16.msrb.mxu0 %v14062_v10  ;;  %6665 = vmatpush.bf16.msra.mxu3 %v14082_v53  ;;  %v20004_v10 = vpop.f32.mrf.mxu2  ;;  %v14450_v53 = vor.u32 %v17502_v45, %v14447_v58  ;;  %v20007_v8 = vpop.f32.mrf.mxu0  ;;  %v17458_v13 = vld [vmem:[#allocation7 + $0x22c] sm:$0xf0]  ;;  %v17574_v45 = vld [vmem:[#allocation7 + $0x5d4] sm:$0xf]  ;;  %v14410_v58 = vor.u32 %v17493_v55, %v14407_v57  ;;  %v17469_v55 = vld [vmem:[#allocation7 + $0x28c] sm:$0xf] }
 0x39f   :  { %v14254_v20 = vor.u32 %v17458_v13, %v14253_v62  ;;  %v14311_v57 = vld [vmem:[#allocation7 + $0x2a8] sm:$0xf0]  ;;  %v14255_v62 = vld [vmem:[#allocation7 + $0x230] sm:$0xf0] }
 0x3a0   :  { %6831 = vmatpush.bf16.msrb.mxu1 %v14446_v19  ;;  %6717 = vmatpush.bf16.msrb.mxu2 %v14086_v38  ;;  %v17509_v19 = vld [vmem:[#allocation7 + $0x3cc] sm:$0xf]  ;;  %v20010_v54 = vpop.f32.mrf.mxu1 }
 0x3a1   :  { %v14474_v38 = vor.u32 %v17509_v19, %v14471_v18  ;;  %v17470_v19 = vld [vmem:[#allocation7 + $0x294] sm:$0xf]  ;;  %v14374_v18 = vor.u32 %v17489_v6, %v14373_v21 }
 0x3a2   :  { %6823 = vmatpush.bf16.msrb.mxu0 %v14030_v50  ;;  %6666 = vmatpush.bf16.msra.mxu3 %v14050_v34  ;;  %v14439_v50 = vld [vmem:[#allocation7 + $0x3a8] sm:$0xf0]  ;;  %v14418_v34 = vor.u32 %v17494_v27, %v14415_v28  ;;  %v17481_v27 = vld [vmem:[#allocation7 + $0x2e4] sm:$0xf0] }
 0x3a3   :  { %v14442_v11 = vor.u32 %v17501_v15, %v14439_v50 }
 0x3a4   :  { %6832 = vmatpush.bf16.msrb.mxu1 %v14414_v4  ;;  %6718 = vmatpush.bf16.msrb.mxu2 %v14054_v5  ;;  %v14437_v4 = vld [vmem:[#allocation7 + $0x388] sm:$0xf]  ;;  %v5344_v52 = vpop.f32.mrf.mxu3 }
 0x3a5   :  { %v14438_v24 = vor.u32 %v17505_v31, %v14437_v4  ;;  %v17497_v5 = vld [vmem:[#allocation7 + $0x364] sm:$0xf0]  ;;  %v17477_v4 = vld [vmem:[#allocation7 + $0x2cc] sm:$0xf] }
 0x3a6   :  { %6824 = vmatpush.bf16.msrb.mxu0 %v13998_v39  ;;  %6667 = vmatpush.bf16.msra.mxu3 %v14018_v47  ;;  %v5396_v39 = vpop.f32.mrf.mxu2  ;;  %v14386_v47 = vor.u32 %v17486_v0, %v14383_v44  ;;  %v14406_v12 = vor.u32 %v17497_v5, %v14405_v36  ;;  %v14343_v31 = vld [vmem:[#allocation7 + $0x2e8] sm:$0xf0]  ;;  %v14287_v0 = vld [vmem:[#allocation7 + $0x270] sm:$0xf0]  ;;  %v14309_v5 = vld [vmem:[#allocation7 + $0x288] sm:$0xf] }
 0x3a7   :  { %v17558_v44 = vld [vmem:[#allocation7 + $0x554] sm:$0xf]  ;;  %v14346_v36 = vor.u32 %v17477_v4, %v14343_v31  ;;  %v17473_v52 = vld [vmem:[#allocation7 + $0x2a4] sm:$0xf0]  ;;  %v14247_v4 = vld [vmem:[#allocation7 + $0x228] sm:$0xf0] }
 0x3a8   :  { %6833 = vmatpush.bf16.msrb.mxu1 %v14382_v30  ;;  %6719 = vmatpush.bf16.msrb.mxu2 %v14022_v3  ;;  %v14286_v30 = vor.u32 %v17466_v48, %v14285_v41  ;;  %v14735_v3 = vld [vmem:[#allocation7 + $0x5f0] sm:$0xf0]  ;;  %v5552_v28 = vpop.f32.mrf.mxu1  ;;  %v14310_v13 = vor.u32 %v17473_v52, %v14309_v5  ;;  %v17573_v31 = vld [vmem:[#allocation7 + $0x5cc] sm:$0xf]  ;;  %v14677_v5 = vld [vmem:[#allocation7 + $0x558] sm:$0xf] }
 0x3a9   :  { %6825 = vmatmul.bf16.vlgmr.msrb.gmra.mxu0 %v19930_v9  ;;  %v17462_v41 = vld [vmem:[#allocation7 + $0x254] sm:$0xf]  ;;  %v17453_v28 = vld [vmem:[#allocation7 + $0x20c] sm:$0xf]  ;;  %v17563_v52 = vld [vmem:[#allocation7 + $0x574] sm:$0xf0] }
 0x3aa   :  { %6882 = vmatpush.bf16.msra.mxu0 %v14482_v2  ;;  %6668 = vmatpush.bf16.msra.mxu3 %v13986_v17  ;;  %v17478_v2 = vld [vmem:[#allocation7 + $0x2d4] sm:$0xf]  ;;  %v14738_v17 = vor.u32 %v17574_v45, %v14735_v3  ;;  %v14314_v45 = vor.u32 %v17469_v55, %v14311_v57  ;;  %v17465_v3 = vld [vmem:[#allocation7 + $0x264] sm:$0xf0] }
 0x3ab   :  { %v14354_v33 = vor.u32 %v17478_v2, %v14351_v59  ;;  %v17550_v2 = vld [vmem:[#allocation7 + $0x514] sm:$0xf]  ;;  %v14277_v59 = vld [vmem:[#allocation7 + $0x248] sm:$0xf] }
 0x3ac   :  { %6834 = vmatpush.bf16.msrb.mxu1 %v14350_v56  ;;  %6720 = vmatpush.bf16.msrb.mxu2 %v13990_v23  ;;  %v5539_v56 = vpop.f32.mrf.mxu0  ;;  %v14341_v23 = vld [vmem:[#allocation7 + $0x2c8] sm:$0xf] }
 0x3ad   :  { %6669 = vmatmul.bf16.vlgmr.msra.gmra.mxu3 %v19930_v9  ;;  %v17461_v56 = vld [vmem:[#allocation7 + $0x24c] sm:$0xf] }
 0x3ae   :  { %6883 = vmatpush.bf16.msra.mxu0 %v14450_v53  ;;  %6726 = vmatpush.bf16.msrb.mxu3 %v14470_v61  ;;  %v14319_v53 = vld [vmem:[#allocation7 + $0x2b0] sm:$0xf0]  ;;  %v5433_v15 = vpop.f32.mrf.mxu2 }
 0x3af   :  { %6721 = vmatmul.bf16.vlgmr.msrb.gmra.mxu2 %v19930_v9  ;;  %v17566_v61 = vld [vmem:[#allocation7 + $0x594] sm:$0xf]  ;;  %v14322_v50 = vor.u32 %v17470_v19, %v14319_v53  ;;  %v20015_v48 = vadd.f32 %v5433_v15, %v19965_v29  ;;  %v14290_v29 = vor.u32 %v17462_v41, %v14287_v0  ;;  %v14278_v19 = vor.u32 %v17465_v3, %v14277_v59  ;;  %v17570_v59 = vld [vmem:[#allocation7 + $0x5ac] sm:$0xf0] }
 0x3b0   :  { %6778 = vmatpush.bf16.msra.mxu2 %v14474_v38  ;;  %6835 = vmatpush.bf16.msrb.mxu1 %v14318_v46  ;;  %v5381_v38 = vpop.f32.mrf.mxu3  ;;  %v14607_v53 = vld [vmem:[#allocation7 + $0x4f0] sm:$0xf0] }
 0x3b1   :  { %v5382_v46 = vadd.f32 %v5381_v38, %v19987_v37  ;;  %v17534_v0 = vld [vmem:[#allocation7 + $0x494] sm:$0xf] }
 0x3b2   :  { %6884 = vmatpush.bf16.msra.mxu0 %v14418_v34  ;;  %6727 = vmatpush.bf16.msrb.mxu3 %v14438_v24  ;;  %v14706_v34 = vor.u32 %v17566_v61, %v14703_v32  ;;  %v14342_v24 = vor.u32 %v17481_v27, %v14341_v23  ;;  %v14245_v61 = vld [vmem:[#allocation7 + $0x208] sm:$0xf]  ;;  %v14709_v23 = vld [vmem:[#allocation7 + $0x598] sm:$0xf]  ;;  %v17526_v3 = vld [vmem:[#allocation7 + $0x454] sm:$0xf] }
 0x3b3   :  { %v20019_v37 = vadd.f32 %v20004_v10, %v5382_v46  ;;  %v14741_v10 = vld [vmem:[#allocation7 + $0x5d8] sm:$0xf]  ;;  %v17457_v32 = vld [vmem:[#allocation7 + $0x224] sm:$0xf0]  ;;  %v14727_v46 = vld [vmem:[#allocation7 + $0x5e8] sm:$0xf0] }
 0x3b4   :  { %6779 = vmatpush.bf16.msra.mxu2 %v14442_v11  ;;  %6836 = vmatpush.bf16.msrb.mxu1 %v14286_v30  ;;  %v14671_v11 = vld [vmem:[#allocation7 + $0x570] sm:$0xf0]  ;;  %v20021_v30 = vpop.f32.mrf.mxu0  ;;  %v20023_v21 = vpop.f32.mrf.mxu1  ;;  %v17571_v27 = vld [vmem:[#allocation7 + $0x5b4] sm:$0xf0]  ;;  %v14246_v41 = vor.u32 %v17457_v32, %v14245_v61 }
 0x3b5   :  { %v14674_v39 = vor.u32 %v17558_v44, %v14671_v11  ;;  %v14575_v44 = vld [vmem:[#allocation7 + $0x4b0] sm:$0xf0]  ;;  %v14250_v11 = vor.u32 %v17453_v28, %v14247_v4  ;;  %v14773_v28 = vld [vmem:[#allocation7 + $0x618] sm:$0xf] }
 0x3b6   :  { %6885 = vmatpush.bf16.msra.mxu0 %v14386_v47  ;;  %6728 = vmatpush.bf16.msrb.mxu3 %v14406_v12  ;;  %v17454_v47 = vld [vmem:[#allocation7 + $0x214] sm:$0xf]  ;;  %v5435_v42 = vpop.f32.mrf.mxu2 }
 0x3b7   :  { %v14639_v12 = vld [vmem:[#allocation7 + $0x530] sm:$0xf0]  ;;  %v14258_v7 = vor.u32 %v17454_v47, %v14255_v62  ;;  %v14695_v47 = vld [vmem:[#allocation7 + $0x5a8] sm:$0xf0] }
 0x3b8   :  { %6780 = vmatpush.bf16.msra.mxu2 %v14410_v58  ;;  %6837 = vmatpush.bf16.msrb.mxu1 %v14254_v20  ;;  %v17579_v58 = vld [vmem:[#allocation7 + $0x5f4] sm:$0xf0]  ;;  %v5383_v6 = vpop.f32.mrf.mxu3  ;;  %v14279_v20 = vld [vmem:[#allocation7 + $0x268] sm:$0xf0]  ;;  %v17518_v61 = vld [vmem:[#allocation7 + $0x414] sm:$0xf] }
 0x3b9   :  { %v14645_v6 = vld [vmem:[#allocation7 + $0x518] sm:$0xf]  ;;  %v14511_v32 = vld [vmem:[#allocation7 + $0x430] sm:$0xf0] }
 0x3ba   :  { %6886 = vmatpush.bf16.msra.mxu0 %v14354_v33  ;;  %6729 = vmatpush.bf16.msrb.mxu3 %v14374_v18  ;;  %v14642_v33 = vor.u32 %v17550_v2, %v14639_v12  ;;  %v14742_v18 = vor.u32 %v17579_v58, %v14741_v10  ;;  %v14578_v2 = vor.u32 %v17534_v0, %v14575_v44  ;;  %v14701_v12 = vld [vmem:[#allocation7 + $0x590] sm:$0xf]  ;;  %v14543_v10 = vld [vmem:[#allocation7 + $0x470] sm:$0xf0]  ;;  %v17447_v44 = vld [vmem:[#allocation7 + $0x1dc] sm:$0xf] }
 0x3bb   :  { %6838 = vmatmul.bf16.vlgmr.msrb.gmra.mxu1 %v19944_v51  ;;  %v14702_v42 = vor.u32 %v17570_v59, %v14701_v12  ;;  %v17546_v12 = vld [vmem:[#allocation7 + $0x4ec] sm:$0xf0] }
 0x3bc   :  { %6895 = vmatpush.bf16.msra.mxu1 %v14738_v17  ;;  %6781 = vmatpush.bf16.msra.mxu2 %v14378_v43  ;;  %v17542_v17 = vld [vmem:[#allocation7 + $0x4d4] sm:$0xf]  ;;  %v14282_v43 = vor.u32 %v17461_v56, %v14279_v20  ;;  %v5604_v38 = vpop.f32.mrf.mxu0  ;;  %v5565_v55 = vpop.f32.mrf.mxu1  ;;  %v17555_v56 = vld [vmem:[#allocation7 + $0x534] sm:$0xf0] }
 0x3bd   :  { %v14610_v15 = vor.u32 %v17542_v17, %v14607_v53  ;;  %v14546_v17 = vor.u32 %v17526_v3, %v14543_v10  ;;  %v14646_v53 = vor.u32 %v17555_v56, %v14645_v6  ;;  %v17587_v38 = vld [vmem:[#allocation7 + $0x634] sm:$0xf0]  ;;  %v14199_v3 = vld [vmem:[#allocation7 + $0x1b8] sm:$0xf0] }
 0x3be   :  { %6887 = vmatpush.bf16.msra.mxu0 %v14322_v50  ;;  %6730 = vmatpush.bf16.msrb.mxu3 %v14342_v24  ;;  %v14733_v50 = vld [vmem:[#allocation7 + $0x5d0] sm:$0xf]  ;;  %v14710_v24 = vor.u32 %v17571_v27, %v14709_v23  ;;  %v17547_v27 = vld [vmem:[#allocation7 + $0x4f4] sm:$0xf0]  ;;  %v14774_v0 = vor.u32 %v17587_v38, %v14773_v28 }
 0x3bf   :  { %v17531_v6 = vld [vmem:[#allocation7 + $0x474] sm:$0xf0] }
 0x3c0   :  { %6896 = vmatpush.bf16.msra.mxu1 %v14706_v34  ;;  %6782 = vmatpush.bf16.msra.mxu2 %v14346_v36  ;;  %v17578_v34 = vld [vmem:[#allocation7 + $0x5ec] sm:$0xf0]  ;;  %v14730_v36 = vor.u32 %v17573_v31, %v14727_v46  ;;  %v5446_v57 = vpop.f32.mrf.mxu3  ;;  %v14631_v46 = vld [vmem:[#allocation7 + $0x528] sm:$0xf0]  ;;  %v14517_v28 = vld [vmem:[#allocation7 + $0x418] sm:$0xf] }
 0x3c1   :  { %v20027_v62 = vadd.f32 %v5446_v57, %v20015_v48  ;;  %v17557_v48 = vld [vmem:[#allocation7 + $0x54c] sm:$0xf]  ;;  %v17523_v38 = vld [vmem:[#allocation7 + $0x434] sm:$0xf0] }
 0x3c2   :  { %6888 = vmatpush.bf16.msra.mxu0 %v14290_v29  ;;  %6731 = vmatpush.bf16.msrb.mxu3 %v14310_v13  ;;  %v14734_v29 = vor.u32 %v17578_v34, %v14733_v50  ;;  %v20029_v13 = vpop.f32.mrf.mxu2  ;;  %v14514_v50 = vor.u32 %v17518_v61, %v14511_v32  ;;  %v14637_v34 = vld [vmem:[#allocation7 + $0x510] sm:$0xf]  ;;  %v17431_v32 = vld [vmem:[#allocation7 + $0x15c] sm:$0xf] }
 0x3c4   :  { %6897 = vmatpush.bf16.msra.mxu1 %v14674_v39  ;;  %6783 = vmatpush.bf16.msra.mxu2 %v14314_v45  ;;  %v17565_v39 = vld [vmem:[#allocation7 + $0x58c] sm:$0xf]  ;;  %v14678_v45 = vor.u32 %v17563_v52, %v14677_v5  ;;  %v6618_v20 = vpop.f32.mrf.mxu0  ;;  %v14581_v5 = vld [vmem:[#allocation7 + $0x498] sm:$0xf] }
 0x3c5   :  { %v14698_v58 = vor.u32 %v17565_v39, %v14695_v47  ;;  %v17539_v52 = vld [vmem:[#allocation7 + $0x4b4] sm:$0xf0]  ;;  %v14599_v39 = vld [vmem:[#allocation7 + $0x4e8] sm:$0xf0] }
 0x3c6   :  { %6889 = vmatpush.bf16.msra.mxu0 %v14258_v7  ;;  %6732 = vmatpush.bf16.msrb.mxu3 %v14278_v19  ;;  %v14663_v7 = vld [vmem:[#allocation7 + $0x568] sm:$0xf0]  ;;  %v14669_v19 = vld [vmem:[#allocation7 + $0x550] sm:$0xf]  ;;  %v14582_v59 = vor.u32 %v17539_v52, %v14581_v5  ;;  %v15013_v52 = vld [vmem:[#allocation10 + $0x1c0] sm:$0xf] }
 0x3c7   :  { %v14666_v23 = vor.u32 %v17557_v48, %v14663_v7  ;;  %v14567_v48 = vld [vmem:[#allocation7 + $0x4a8] sm:$0xf0] }
 0x3c8   :  { %6898 = vmatpush.bf16.msra.mxu1 %v14642_v33  ;;  %6784 = vmatpush.bf16.msra.mxu2 %v14282_v43  ;;  %v20033_v33 = vadd.f32 %v6618_v20, %v19957_v35  ;;  %v14613_v43 = vld [vmem:[#allocation7 + $0x4d8] sm:$0xf]  ;;  %v5448_v4 = vpop.f32.mrf.mxu3  ;;  %v17549_v35 = vld [vmem:[#allocation7 + $0x50c] sm:$0xf] }
 0x3c9   :  { %6890 = vmatmul.bf16.vlgmr.msra.gmra.mxu0 %v19944_v51  ;;  %v17525_v4 = vld [vmem:[#allocation7 + $0x44c] sm:$0xf] }
 0x3ca   :  { %6947 = vmatpush.bf16.msrb.mxu0 %v14742_v18  ;;  %6733 = vmatpush.bf16.msrb.mxu3 %v14246_v41  ;;  %v17562_v18 = vld [vmem:[#allocation7 + $0x56c] sm:$0xf0] }
 0x3cb   :  { %v14670_v31 = vor.u32 %v17562_v18, %v14669_v19  ;;  %v17554_v41 = vld [vmem:[#allocation7 + $0x52c] sm:$0xf0] }
 0x3cc   :  { %6899 = vmatpush.bf16.msra.mxu1 %v14610_v15  ;;  %6785 = vmatpush.bf16.msra.mxu2 %v14250_v11  ;;  %v5500_v15 = vpop.f32.mrf.mxu2  ;;  %v14231_v11 = vld [vmem:[#allocation7 + $0x1f8] sm:$0xf0]  ;;  %v6620_v55 = vpop.f32.mrf.mxu0  ;;  %v14638_v57 = vor.u32 %v17554_v41, %v14637_v34  ;;  %v14573_v18 = vld [vmem:[#allocation7 + $0x490] sm:$0xf] }
 0x3cd   :  { %6734 = vmatmul.bf16.vlgmr.msrb.gmra.mxu3 %v19944_v51  ;;  %v14234_v47 = vor.u32 %v17447_v44, %v14231_v11  ;;  %v14541_v34 = vld [vmem:[#allocation7 + $0x450] sm:$0xf]  ;;  %v17423_v44 = vld [vmem:[#allocation7 + $0x11c] sm:$0xf]  ;;  %v17848_v55 = vld [vmem:[#allocation10 + $0x1dc] sm:$0xf0] }
 0x3ce   :  { %6948 = vmatpush.bf16.msrb.mxu0 %v14710_v24  ;;  %6791 = vmatpush.bf16.msra.mxu3 %v14730_v36  ;;  %v14614_v24 = vor.u32 %v17547_v27, %v14613_v43  ;;  %v14634_v36 = vor.u32 %v17549_v35, %v14631_v46  ;;  %v14167_v43 = vld [vmem:[#allocation7 + $0x178] sm:$0xf0]  ;;  %v14535_v35 = vld [vmem:[#allocation7 + $0x468] sm:$0xf0]  ;;  %v17530_v41 = vld [vmem:[#allocation7 + $0x46c] sm:$0xf0] }
 0x3cf   :  { %6786 = vmatmul.bf16.vlgmr.msra.gmra.mxu2 %v19944_v51  ;;  %v14775_v46 = vld [vmem:[#allocation7 + $0x638] sm:$0xf0] }
 0x3d0   :  { %6843 = vmatpush.bf16.msrb.mxu2 %v14734_v29  ;;  %6900 = vmatpush.bf16.msra.mxu1 %v14578_v2  ;;  %v17541_v29 = vld [vmem:[#allocation7 + $0x4cc] sm:$0xf]  ;;  %v14605_v2 = vld [vmem:[#allocation7 + $0x4d0] sm:$0xf]  ;;  %v5459_v56 = vpop.f32.mrf.mxu3  ;;  %v14135_v11 = vld [vmem:[#allocation7 + $0x138] sm:$0xf0] }
 0x3d1   :  { %v14602_v10 = vor.u32 %v17541_v29, %v14599_v39  ;;  %v14606_v20 = vor.u32 %v17546_v12, %v14605_v2  ;;  %v5473_v7 = vadd.f32 %v19982_v26, %v5459_v56  ;;  %v17583_v26 = vld [vmem:[#allocation7 + $0x61c] sm:$0xf]  ;;  %v14542_v29 = vor.u32 %v17530_v41, %v14541_v34  ;;  %v17517_v39 = vld [vmem:[#allocation7 + $0x40c] sm:$0xf]  ;;  %v14509_v12 = vld [vmem:[#allocation7 + $0x410] sm:$0xf] }
 0x3d2   :  { %6949 = vmatpush.bf16.msrb.mxu0 %v14678_v45  ;;  %6792 = vmatpush.bf16.msra.mxu3 %v14698_v58  ;;  %v17439_v45 = vld [vmem:[#allocation7 + $0x19c] sm:$0xf]  ;;  %v14549_v58 = vld [vmem:[#allocation7 + $0x458] sm:$0xf]  ;;  %v14778_v5 = vor.u32 %v17583_v26, %v14775_v46  ;;  %v14138_v2 = vor.u32 %v17423_v44, %v14135_v11  ;;  %v14981_v56 = vld [vmem:[#allocation10 + $0x180] sm:$0xf] }
 0x3d3   :  { %v14202_v19 = vor.u32 %v17439_v45, %v14199_v3  ;;  %v14550_v61 = vor.u32 %v17531_v6, %v14549_v58  ;;  %v15014_v45 = vor.u32 %v17848_v55, %v15013_v52  ;;  %v14103_v3 = vld [vmem:[#allocation7 + $0xf8] sm:$0xf0]  ;;  %v17586_v58 = vld [vmem:[#allocation7 + $0x62c] sm:$0xf0]  ;;  %v17438_v46 = vld [vmem:[#allocation7 + $0x194] sm:$0xf] }
 0x3d4   :  { %6844 = vmatpush.bf16.msrb.mxu2 %v14702_v42  ;;  %6901 = vmatpush.bf16.msra.mxu1 %v14546_v17  ;;  %v17533_v42 = vld [vmem:[#allocation7 + $0x48c] sm:$0xf]  ;;  %v20038_v17 = vpop.f32.mrf.mxu2  ;;  %v6631_v15 = vpop.f32.mrf.mxu1  ;;  %v14197_v41 = vld [vmem:[#allocation7 + $0x198] sm:$0xf]  ;;  %v14917_v55 = vld [vmem:[#allocation10 + $0x100] sm:$0xf] }
 0x3d5   :  { %v14570_v27 = vor.u32 %v17533_v42, %v14567_v48  ;;  %v17446_v48 = vld [vmem:[#allocation7 + $0x1d4] sm:$0xf]  ;;  %v17443_v11 = vld [vmem:[#allocation7 + $0x1b4] sm:$0xf0] }
 0x3d6   :  { %6950 = vmatpush.bf16.msrb.mxu0 %v14646_v53  ;;  %6793 = vmatpush.bf16.msra.mxu3 %v14666_v23  ;;  %v17538_v53 = vld [vmem:[#allocation7 + $0x4ac] sm:$0xf0]  ;;  %v5486_v23 = vadd.f32 %v19997_v40, %v5473_v7  ;;  %v20045_v40 = vadd.f32 %v6631_v15, %v20033_v33  ;;  %v14223_v7 = vld [vmem:[#allocation7 + $0x1f0] sm:$0xf0] }
 0x3d7   :  { %v17522_v33 = vld [vmem:[#allocation7 + $0x42c] sm:$0xf0]  ;;  %v14191_v15 = vld [vmem:[#allocation7 + $0x1b0] sm:$0xf0] }
 0x3d8   :  { %6845 = vmatpush.bf16.msrb.mxu2 %v14670_v31  ;;  %6902 = vmatpush.bf16.msra.mxu1 %v14514_v50  ;;  %v14574_v31 = vor.u32 %v17538_v53, %v14573_v18  ;;  %v14170_v50 = vor.u32 %v17431_v32, %v14167_v43  ;;  %v14510_v42 = vor.u32 %v17522_v33, %v14509_v12  ;;  %v14767_v32 = vld [vmem:[#allocation7 + $0x630] sm:$0xf0]  ;;  %v14229_v43 = vld [vmem:[#allocation7 + $0x1d8] sm:$0xf] }
 0x3d9   :  { %v14194_v52 = vor.u32 %v17438_v46, %v14191_v15  ;;  %v17435_v33 = vld [vmem:[#allocation7 + $0x174] sm:$0xf0] }
 0x3da   :  { %6951 = vmatpush.bf16.msrb.mxu0 %v14614_v24  ;;  %6794 = vmatpush.bf16.msra.mxu3 %v14634_v36  ;;  %v20042_v24 = vadd.f32 %v20029_v13, %v5486_v23  ;;  %v14538_v36 = vor.u32 %v17525_v4, %v14535_v35  ;;  %v14226_v4 = vor.u32 %v17446_v48, %v14223_v7  ;;  %v17832_v35 = vld [vmem:[#allocation10 + $0x15c] sm:$0xf0] }
 0x3db   :  { %6903 = vmatmul.bf16.vlgmr.msra.gmra.mxu1 %v19961_v49 }
 0x3dc   :  { %6967 = vmatpush.bf16.msrb.mxu1 %v14774_v0  ;;  %6846 = vmatpush.bf16.msrb.mxu2 %v14638_v57  ;;  %v14518_v0 = vor.u32 %v17523_v38, %v14517_v28  ;;  %v5461_v57 = vpop.f32.mrf.mxu3  ;;  %v5513_v13 = vpop.f32.mrf.mxu2  ;;  %v17407_v28 = vld [vmem:[#allocation7 + $0x9c] sm:$0xf] }
 0x3dd   :  { %v14071_v38 = vld [vmem:[#allocation7 + $0xb8] sm:$0xf0]  ;;  %v17824_v57 = vld [vmem:[#allocation10 + $0x11c] sm:$0xf0] }
 0x3de   :  { %6952 = vmatpush.bf16.msrb.mxu0 %v14582_v59  ;;  %6795 = vmatpush.bf16.msra.mxu3 %v14602_v10  ;;  %v17415_v59 = vld [vmem:[#allocation7 + $0xdc] sm:$0xf]  ;;  %v14765_v10 = vld [vmem:[#allocation7 + $0x610] sm:$0xf]  ;;  %v14074_v34 = vor.u32 %v17407_v28, %v14071_v38  ;;  %v14918_v12 = vor.u32 %v17824_v57, %v14917_v55  ;;  %v17904_v28 = vld [vmem:[#allocation10 + $0x39c] sm:$0xf0] }
 0x3df   :  { %v14106_v18 = vor.u32 %v17415_v59, %v14103_v3  ;;  %v14766_v53 = vor.u32 %v17586_v58, %v14765_v10  ;;  %v17391_v59 = vld [vmem:[#allocation7 + $0x1c] sm:$0xf]  ;;  %v14885_v10 = vld [vmem:[#allocation10 + $0xc0] sm:$0xf] }
 0x3e0   :  { %6973 = vmatpush.bf16.msra.mxu1 %v14234_v47  ;;  %6847 = vmatpush.bf16.msrb.mxu2 %v14606_v20  ;;  %v14503_v47 = vld [vmem:[#allocation7 + $0x428] sm:$0xf0]  ;;  %v17840_v20 = vld [vmem:[#allocation10 + $0x19c] sm:$0xf0] }
 0x3e1   :  { %v14506_v6 = vor.u32 %v17517_v39, %v14503_v47  ;;  %v14982_v23 = vor.u32 %v17840_v20, %v14981_v56  ;;  %v14159_v39 = vld [vmem:[#allocation7 + $0x170] sm:$0xf0]  ;;  %v14198_v47 = vor.u32 %v17443_v11, %v14197_v41  ;;  %v15269_v58 = vld [vmem:[#allocation10 + $0x3c0] sm:$0xf]  ;;  %v17419_v41 = vld [vmem:[#allocation7 + $0xf4] sm:$0xf0] }
 0x3e2   :  { %6953 = vmatpush.bf16.msrb.mxu0 %v14550_v61  ;;  %6796 = vmatpush.bf16.msra.mxu3 %v14570_v27  ;;  %v17582_v61 = vld [vmem:[#allocation7 + $0x614] sm:$0xf]  ;;  %v17451_v27 = vld [vmem:[#allocation7 + $0x1f4] sm:$0xf0]  ;;  %v17816_v56 = vld [vmem:[#allocation10 + $0xdc] sm:$0xf0] }
 0x3e3   :  { %v14770_v26 = vor.u32 %v17582_v61, %v14767_v32  ;;  %v17422_v20 = vld [vmem:[#allocation7 + $0x114] sm:$0xf]  ;;  %v17427_v61 = vld [vmem:[#allocation7 + $0x134] sm:$0xf0]  ;;  %v14886_v32 = vor.u32 %v17816_v56, %v14885_v10  ;;  %v17808_v38 = vld [vmem:[#allocation10 + $0x9c] sm:$0xf0] }
 0x3e4   :  { %6974 = vmatpush.bf16.msra.mxu1 %v14202_v19  ;;  %6848 = vmatpush.bf16.msrb.mxu2 %v14574_v31  ;;  %v6633_v19 = vpop.f32.mrf.mxu1  ;;  %v14949_v31 = vld [vmem:[#allocation10 + $0x140] sm:$0xf] }
 0x3e5   :  { %v14950_v44 = vor.u32 %v17832_v35, %v14949_v31  ;;  %v14095_v31 = vld [vmem:[#allocation7 + $0xf0] sm:$0xf0]  ;;  %v17896_v55 = vld [vmem:[#allocation10 + $0x35c] sm:$0xf0] }
 0x3e6   :  { %6954 = vmatpush.bf16.msrb.mxu0 %v14518_v0  ;;  %6797 = vmatpush.bf16.msra.mxu3 %v14538_v36  ;;  %v20051_v0 = vpop.f32.mrf.mxu0  ;;  %v17399_v36 = vld [vmem:[#allocation7 + $0x5c] sm:$0xf]  ;;  %v17800_v57 = vld [vmem:[#allocation10 + $0x5c] sm:$0xf0] }
 0x3e7   :  { %v17792_v10 = vld [vmem:[#allocation10 + $0x1c] sm:$0xf0] }
 0x3e8   :  { %6975 = vmatpush.bf16.msra.mxu1 %v14170_v50  ;;  %6849 = vmatpush.bf16.msrb.mxu2 %v14542_v29  ;;  %v14230_v50 = vor.u32 %v17451_v27, %v14229_v43  ;;  %v17430_v29 = vld [vmem:[#allocation7 + $0x154] sm:$0xf]  ;;  %v15237_v27 = vld [vmem:[#allocation10 + $0x380] sm:$0xf] }
 0x3e9   :  { %6955 = vmatmul.bf16.vlgmr.msrb.gmra.mxu0 %v19961_v49  ;;  %v14162_v3 = vor.u32 %v17430_v29, %v14159_v39  ;;  %v14063_v29 = vld [vmem:[#allocation7 + $0xb0] sm:$0xf0] }
 0x3ea   :  { %7019 = vmatpush.bf16.msra.mxu0 %v14778_v5  ;;  %6798 = vmatpush.bf16.msra.mxu3 %v14506_v6  ;;  %v14039_v5 = vld [vmem:[#allocation7 + $0x78] sm:$0xf0]  ;;  %v17912_v6 = vld [vmem:[#allocation10 + $0x3dc] sm:$0xf0] }
 0x3eb   :  { %14785 = vmatmul.msk.bf16.vlgmr.msrb.gmra.mxu1 %vm5186_vm9, %v19974_v16  ;;  %v14042_v13 = vor.u32 %v17399_v36, %v14039_v5  ;;  %v14821_v5 = vld [vmem:[#allocation10 + $0x40] sm:$0xf] }
 0x3ec   :  { %6976 = vmatpush.bf16.msra.mxu1 %v14138_v2  ;;  %6850 = vmatpush.bf16.msrb.mxu2 %v14510_v42  ;;  %v14165_v2 = vld [vmem:[#allocation7 + $0x158] sm:$0xf]  ;;  %v14127_v42 = vld [vmem:[#allocation7 + $0x130] sm:$0xf0]  ;;  %v5524_v35 = vpop.f32.mrf.mxu3 }
 0x3ed   :  { %6799 = vmatmul.bf16.vlgmr.msra.gmra.mxu3 %v19961_v49  ;;  %v14166_v48 = vor.u32 %v17435_v33, %v14165_v2  ;;  %v14130_v43 = vor.u32 %v17422_v20, %v14127_v42  ;;  %v20057_v46 = vadd.f32 %v5524_v35, %v20038_v17  ;;  %v17406_v17 = vld [vmem:[#allocation7 + $0x94] sm:$0xf]  ;;  %v17411_v2 = vld [vmem:[#allocation7 + $0xb4] sm:$0xf0]  ;;  %v17908_v42 = vld [vmem:[#allocation10 + $0x3c4] sm:$0xf] }
 0x3ee   :  { %8228 = vmatpush.bf16.msrb.mxu0 %v15014_v45  ;;  %6863 = vmatpush.bf16.msrb.mxu3 %v14766_v53  ;;  %v14007_v45 = vld [vmem:[#allocation7 + $0x38] sm:$0xf0]  ;;  %v6685_v19 = vpop.f32.mrf.mxu0  ;;  %v14133_v53 = vld [vmem:[#allocation7 + $0x118] sm:$0xf]  ;;  %v5576_v15 = vpop.f32.mrf.mxu2  ;;  %v14066_v33 = vor.u32 %v17406_v17, %v14063_v29  ;;  %v15109_v17 = vld [vmem:[#allocation10 + $0x280] sm:$0xf] }
 0x3ef   :  { %6851 = vmatmul.bf16.vlgmr.msrb.gmra.mxu2 %v19961_v49  ;;  %v14010_v7 = vor.u32 %v17391_v59, %v14007_v45  ;;  %v14789_v59 = vld [vmem:[#allocation10] sm:$0xf]  ;;  %v14485_v35 = vld [vmem:[#allocation7 + $0x3d8] sm:$0xf] }
 0x3f0   :  { %6977 = vmatpush.bf16.msra.mxu1 %v14106_v18  ;;  %6915 = vmatpush.bf16.msra.mxu2 %v14770_v26  ;;  %v15270_v18 = vor.u32 %v17912_v6, %v15269_v58  ;;  %v14134_v26 = vor.u32 %v17427_v61, %v14133_v53  ;;  %v15173_v45 = vld [vmem:[#allocation10 + $0x300] sm:$0xf]  ;;  %v17398_v58 = vld [vmem:[#allocation7 + $0x54] sm:$0xf]  ;;  %v17403_v53 = vld [vmem:[#allocation7 + $0x74] sm:$0xf0]  ;;  %v14790_v61 = vor.u32 %v17792_v10, %v14789_v59 }
 0x3f1   :  { %v14031_v6 = vld [vmem:[#allocation7 + $0x70] sm:$0xf0]  ;;  %v17872_v29 = vld [vmem:[#allocation10 + $0x29c] sm:$0xf0] }
 0x3f2   :  { %8229 = vmatpush.bf16.msrb.mxu0 %v14982_v23  ;;  %6869 = vmatpush.bf16.msra.mxu3 %v14226_v4  ;;  %v14853_v23 = vld [vmem:[#allocation10 + $0x80] sm:$0xf]  ;;  %v17414_v4 = vld [vmem:[#allocation7 + $0xd4] sm:$0xf] }
 0x3f3   :  { %v14854_v11 = vor.u32 %v17808_v38, %v14853_v23  ;;  %v14098_v36 = vor.u32 %v17414_v4, %v14095_v31  ;;  %v17880_v23 = vld [vmem:[#allocation10 + $0x2dc] sm:$0xf0]  ;;  %v17900_v38 = vld [vmem:[#allocation10 + $0x384] sm:$0xf] }
 0x3f4   :  { %6921 = vmatpush.bf16.msrb.mxu2 %v14230_v50  ;;  %6978 = vmatpush.bf16.msra.mxu1 %v14074_v34  ;;  %v15238_v50 = vor.u32 %v17904_v28, %v15237_v27  ;;  %v14101_v34 = vld [vmem:[#allocation7 + $0xd8] sm:$0xf]  ;;  %v5526_v56 = vpop.f32.mrf.mxu3  ;;  %v17390_v27 = vld [vmem:[#allocation7 + $0x14] sm:$0xf]  ;;  %v15239_v31 = vld [vmem:[#allocation10 + $0x3a0] sm:$0xf0] }
 0x3f5   :  { %v14102_v39 = vor.u32 %v17419_v41, %v14101_v34  ;;  %v13999_v28 = vld [vmem:[#allocation7 + $0x30] sm:$0xf0]  ;;  %v14005_v34 = vld [vmem:[#allocation7 + $0x18] sm:$0xf] }
 0x3f6   :  { %8230 = vmatpush.bf16.msrb.mxu0 %v14950_v44  ;;  %6870 = vmatpush.bf16.msra.mxu3 %v14194_v52  ;;  %v20060_v44 = vadd.f32 %v5576_v15, %v20023_v21  ;;  %v15205_v52 = vld [vmem:[#allocation10 + $0x340] sm:$0xf]  ;;  %v17395_v41 = vld [vmem:[#allocation7 + $0x34] sm:$0xf0] }
 0x3f7   :  { %v15206_v21 = vor.u32 %v17896_v55, %v15205_v52  ;;  %v20071_v52 = vpack.c.bf16 %v19840_v22, %v19840_v22  ;;  %v15242_v55 = vor.u32 %v17900_v38, %v15239_v31  ;;  %v15110_v22 = vor.u32 %v17872_v29, %v15109_v17  ;;  %v15143_v38 = vld [vmem:[#allocation10 + $0x2e0] sm:$0xf0] }
 0x3f8   :  { %6922 = vmatpush.bf16.msrb.mxu2 %v14198_v47  ;;  %6979 = vmatpush.bf16.msra.mxu1 %v14042_v13  ;;  %v20065_v47 = vpop.f32.mrf.mxu1  ;;  %v14069_v13 = vld [vmem:[#allocation7 + $0x98] sm:$0xf]  ;;  %v15527_v31 = vld [vmem:[#allocation10 + $0x5e0] sm:$0xf0] }
 0x3f9   :  { %14786 = vmatmul.msk.bf16.vlgmr.msra.gmra.mxu0 %vm5186_vm9, %v19974_v16  ;;  %v14070_v20 = vor.u32 %v17411_v2, %v14069_v13  ;;  %v15207_v13 = vld [vmem:[#allocation10 + $0x360] sm:$0xf0] }
 0x3fa   :  { %8231 = vmatpush.bf16.msrb.mxu0 %v14918_v12  ;;  %6871 = vmatpush.bf16.msra.mxu3 %v14162_v3  ;;  %v14822_v12 = vor.u32 %v17800_v57, %v14821_v5  ;;  %v17888_v3 = vld [vmem:[#allocation10 + $0x31c] sm:$0xf0]  ;;  %v14487_v5 = vld [vmem:[#allocation7 + $0x3f8] sm:$0xf0]  ;;  %v17964_v17 = vld [vmem:[#allocation10 + $0x584] sm:$0xf] }
 0x3fb   :  { %v15174_v19 = vor.u32 %v17888_v3, %v15173_v45  ;;  %v17503_v45 = vld [vmem:[#allocation7 + $0x39c] sm:$0xf]  ;;  %v15495_v29 = vld [vmem:[#allocation10 + $0x5a0] sm:$0xf0] }
 0x3fc   :  { %6923 = vmatpush.bf16.msrb.mxu2 %v14166_v48  ;;  %6980 = vmatpush.bf16.msra.mxu1 %v14010_v7  ;;  %v15271_v48 = vld [vmem:[#allocation10 + $0x3e0] sm:$0xf0]  ;;  %v5578_v7 = vpop.f32.mrf.mxu2  ;;  %v14455_v3 = vld [vmem:[#allocation7 + $0x3b8] sm:$0xf0] }
 0x3fd   :  { %14783 = vmatmul.msk.bf16.vlgmr.msrb.gmra.mxu3 %vm5186_vm9, %v19974_v16  ;;  %v14458_v7 = vor.u32 %v17503_v45, %v14455_v3  ;;  %v17479_v3 = vld [vmem:[#allocation7 + $0x2dc] sm:$0xf] }
 0x3fe   :  { %8232 = vmatpush.bf16.msrb.mxu0 %v14886_v32  ;;  %6872 = vmatpush.bf16.msra.mxu3 %v14130_v43  ;;  %v14034_v32 = vor.u32 %v17398_v58, %v14031_v6  ;;  %v15141_v43 = vld [vmem:[#allocation10 + $0x2c0] sm:$0xf] }
 0x3ff   :  { %6981 = vmatmul.bf16.vlgmr.msra.gmra.mxu1 %v19930_v9  ;;  %14784 = vmatmul.msk.bf16.vlgmr.msra.gmra.mxu2 %vm5186_vm9, %v19974_v16  ;;  %v15274_v16 = vor.u32 %v17908_v42, %v15271_v48  ;;  %v15077_v58 = vld [vmem:[#allocation10 + $0x240] sm:$0xf]  ;;  %v15175_v42 = vld [vmem:[#allocation10 + $0x320] sm:$0xf0] }
 0x400   :  { %8241 = vmatpush.bf16.msrb.mxu1 %v15270_v18  ;;  %6924 = vmatpush.bf16.msrb.mxu2 %v14134_v26  ;;  %v14037_v18 = vld [vmem:[#allocation7 + $0x58] sm:$0xf]  ;;  %v6698_v15 = vpop.f32.mrf.mxu1  ;;  %v17864_v6 = vld [vmem:[#allocation10 + $0x25c] sm:$0xf0] }
 0x401   :  { %v14038_v4 = vor.u32 %v17403_v53, %v14037_v18  ;;  %v17515_v26 = vld [vmem:[#allocation7 + $0x3f4] sm:$0xf0]  ;;  %v15078_v53 = vor.u32 %v17864_v6, %v15077_v58 }
 0x402   :  { %8233 = vmatpush.bf16.msrb.mxu0 %v14854_v11  ;;  %6873 = vmatpush.bf16.msra.mxu3 %v14098_v36  ;;  %v14002_v11 = vor.u32 %v17390_v27, %v13999_v28  ;;  %v17511_v36 = vld [vmem:[#allocation7 + $0x3dc] sm:$0xf]  ;;  %v14486_v57 = vor.u32 %v17515_v26, %v14485_v35  ;;  %v20074_v59 = vpop.f32.mrf.mxu0  ;;  %v17499_v18 = vld [vmem:[#allocation7 + $0x374] sm:$0xf0]  ;;  %v17876_v27 = vld [vmem:[#allocation10 + $0x2c4] sm:$0xf] }
 0x403   :  { %v14490_v2 = vor.u32 %v17511_v36, %v14487_v5  ;;  %v14389_v26 = vld [vmem:[#allocation7 + $0x318] sm:$0xf]  ;;  %v17868_v5 = vld [vmem:[#allocation10 + $0x284] sm:$0xf] }
 0x404   :  { %8242 = vmatpush.bf16.msrb.mxu1 %v15238_v50  ;;  %6925 = vmatpush.bf16.msrb.mxu2 %v14102_v39  ;;  %v15142_v50 = vor.u32 %v17880_v23, %v15141_v43  ;;  %v14006_v39 = vor.u32 %v17395_v41, %v14005_v34  ;;  %v15045_v23 = vld [vmem:[#allocation10 + $0x200] sm:$0xf]  ;;  %v17491_v15 = vld [vmem:[#allocation7 + $0x334] sm:$0xf0]  ;;  %v17487_v41 = vld [vmem:[#allocation7 + $0x31c] sm:$0xf] }
 0x406   :  { %8234 = vmatpush.bf16.msrb.mxu0 %v14822_v12  ;;  %6874 = vmatpush.bf16.msra.mxu3 %v14066_v33  ;;  %v14453_v12 = vld [vmem:[#allocation7 + $0x398] sm:$0xf] }
 0x407   :  { %v17507_v33 = vld [vmem:[#allocation7 + $0x3b4] sm:$0xf0] }
 0x408   :  { %8243 = vmatpush.bf16.msrb.mxu1 %v15206_v21  ;;  %6926 = vmatpush.bf16.msrb.mxu2 %v14070_v20  ;;  %v17892_v21 = vld [vmem:[#allocation10 + $0x344] sm:$0xf]  ;;  %v14454_v56 = vor.u32 %v17507_v33, %v14453_v12  ;;  %v20077_v48 = vpop.f32.mrf.mxu1  ;;  %v17483_v12 = vld [vmem:[#allocation7 + $0x2f4] sm:$0xf0]  ;;  %v20082_v33 = vpack.c.bf16 %v19855_v1, %v19855_v1 }
 0x409   :  { %v15210_v10 = vor.u32 %v17892_v21, %v15207_v13  ;;  %v17884_v20 = vld [vmem:[#allocation10 + $0x304] sm:$0xf] }
 0x40a   :  { %8235 = vmatpush.bf16.msrb.mxu0 %v14790_v61  ;;  %6875 = vmatpush.bf16.msra.mxu3 %v14034_v32  ;;  %v17495_v61 = vld [vmem:[#allocation7 + $0x35c] sm:$0xf]  ;;  %v15178_v43 = vor.u32 %v17884_v20, %v15175_v42  ;;  %v17860_v20 = vld [vmem:[#allocation10 + $0x244] sm:$0xf] }
 0x40b   :  { %v14423_v32 = vld [vmem:[#allocation7 + $0x378] sm:$0xf0]  ;;  %v17956_v1 = vld [vmem:[#allocation10 + $0x544] sm:$0xf] }
 0x40c   :  { %8244 = vmatpush.bf16.msrb.mxu1 %v15174_v19  ;;  %6927 = vmatpush.bf16.msrb.mxu2 %v14038_v4  ;;  %v14421_v19 = vld [vmem:[#allocation7 + $0x358] sm:$0xf]  ;;  %v17972_v4 = vld [vmem:[#allocation10 + $0x5c4] sm:$0xf]  ;;  %v14426_v35 = vor.u32 %v17495_v61, %v14423_v32  ;;  %v17471_v61 = vld [vmem:[#allocation7 + $0x29c] sm:$0xf] }
 0x40d   :  { %8236 = vmatmul.bf16.vlgmr.msrb.gmra.mxu0 %v20071_v52  ;;  %v14422_v28 = vor.u32 %v17499_v18, %v14421_v19  ;;  %v15530_v36 = vor.u32 %v17972_v4, %v15527_v31  ;;  %v15463_v19 = vld [vmem:[#allocation10 + $0x560] sm:$0xf0]  ;;  %v14325_v18 = vld [vmem:[#allocation7 + $0x298] sm:$0xf]  ;;  %v14327_v32 = vld [vmem:[#allocation7 + $0x2b8] sm:$0xf0] }
 0x40e   :  { %8293 = vmatpush.bf16.msra.mxu0 %v15274_v16  ;;  %6876 = vmatpush.bf16.msra.mxu3 %v14002_v11  ;;  %v17856_v16 = vld [vmem:[#allocation10 + $0x21c] sm:$0xf0]  ;;  %v14391_v11 = vld [vmem:[#allocation7 + $0x338] sm:$0xf0]  ;;  %v6644_v45 = vpop.f32.mrf.mxu2  ;;  %v15431_v4 = vld [vmem:[#allocation10 + $0x520] sm:$0xf0] }
 0x40f   :  { %v15046_v34 = vor.u32 %v17856_v16, %v15045_v23  ;;  %v14394_v13 = vor.u32 %v17487_v41, %v14391_v11  ;;  %v20088_v58 = vadd.f32 %v6644_v45, %v20045_v40  ;;  %v15466_v23 = vor.u32 %v17956_v1, %v15463_v19  ;;  %v17852_v16 = vld [vmem:[#allocation10 + $0x204] sm:$0xf]  ;;  %v14293_v31 = vld [vmem:[#allocation7 + $0x258] sm:$0xf]  ;;  %v17977_v41 = vld [vmem:[#allocation10 + $0x5e4] sm:$0xf0] }
 0x410   :  { %8245 = vmatpush.bf16.msrb.mxu1 %v15142_v50  ;;  %6928 = vmatpush.bf16.msrb.mxu2 %v14006_v39  ;;  %v6750_v50 = vpop.f32.mrf.mxu0  ;;  %v5589_v39 = vpop.f32.mrf.mxu3  ;;  %v15501_v45 = vld [vmem:[#allocation10 + $0x588] sm:$0xf]  ;;  %v17976_v1 = vld [vmem:[#allocation10 + $0x5dc] sm:$0xf0] }
 0x411   :  { %6877 = vmatmul.bf16.vlgmr.msra.gmra.mxu3 %v19930_v9  ;;  %v6763_v21 = vpop.f32.mrf.mxu1  ;;  %v17467_v50 = vld [vmem:[#allocation7 + $0x274] sm:$0xf0] }
 0x412   :  { %8294 = vmatpush.bf16.msra.mxu0 %v15242_v55  ;;  %6934 = vmatpush.bf16.msrb.mxu3 %v14486_v57  ;;  %v14390_v55 = vor.u32 %v17491_v15, %v14389_v26  ;;  %v15111_v57 = vld [vmem:[#allocation10 + $0x2a0] sm:$0xf0]  ;;  %v14330_v15 = vor.u32 %v17471_v61, %v14327_v32 }
 0x413   :  { %6929 = vmatmul.bf16.vlgmr.msrb.gmra.mxu2 %v19930_v9  ;;  %v15146_v9 = vor.u32 %v17876_v27, %v15143_v38  ;;  %v15114_v6 = vor.u32 %v17868_v5, %v15111_v57  ;;  %v15047_v27 = vld [vmem:[#allocation10 + $0x220] sm:$0xf0]  ;;  %v14295_v5 = vld [vmem:[#allocation7 + $0x278] sm:$0xf0] }
 0x414   :  { %6986 = vmatpush.bf16.msra.mxu2 %v14490_v2  ;;  %8246 = vmatpush.bf16.msrb.mxu1 %v15110_v22  ;;  %v14357_v2 = vld [vmem:[#allocation7 + $0x2d8] sm:$0xf]  ;;  %v20085_v22 = vadd.f32 %v5589_v39, %v20060_v44  ;;  %v17948_v38 = vld [vmem:[#allocation10 + $0x504] sm:$0xf] }
 0x415   :  { %v14358_v42 = vor.u32 %v17483_v12, %v14357_v2  ;;  %v15434_v57 = vor.u32 %v17948_v38, %v15431_v4  ;;  %v15399_v21 = vld [vmem:[#allocation10 + $0x4e0] sm:$0xf0]  ;;  %v17459_v2 = vld [vmem:[#allocation7 + $0x234] sm:$0xf0]  ;;  %v17567_v4 = vld [vmem:[#allocation7 + $0x59c] sm:$0xf] }
 0x416   :  { %8295 = vmatpush.bf16.msra.mxu0 %v15210_v10  ;;  %6935 = vmatpush.bf16.msrb.mxu3 %v14454_v56  ;;  %v14359_v10 = vld [vmem:[#allocation7 + $0x2f8] sm:$0xf0]  ;;  %v15498_v56 = vor.u32 %v17964_v17, %v15495_v29  ;;  %v17940_v17 = vld [vmem:[#allocation10 + $0x4c4] sm:$0xf]  ;;  %v14294_v29 = vor.u32 %v17467_v50, %v14293_v31  ;;  %v17968_v50 = vld [vmem:[#allocation10 + $0x59c] sm:$0xf0] }
 0x417   :  { %v14362_v44 = vor.u32 %v17479_v3, %v14359_v10  ;;  %v17969_v3 = vld [vmem:[#allocation10 + $0x5a4] sm:$0xf0]  ;;  %v14263_v10 = vld [vmem:[#allocation7 + $0x238] sm:$0xf0] }
 0x418   :  { %6987 = vmatpush.bf16.msra.mxu2 %v14458_v7  ;;  %8247 = vmatpush.bf16.msrb.mxu1 %v15078_v53  ;;  %v15079_v7 = vld [vmem:[#allocation10 + $0x260] sm:$0xf0]  ;;  %v17475_v53 = vld [vmem:[#allocation7 + $0x2b4] sm:$0xf0]  ;;  %v20091_v40 = vpop.f32.mrf.mxu0  ;;  %v14711_v31 = vld [vmem:[#allocation7 + $0x5b8] sm:$0xf0] }
 0x419   :  { %v6774_v26 = vpop.f32.mrf.mxu1 }
 0x41a   :  { %8296 = vmatpush.bf16.msra.mxu0 %v15178_v43  ;;  %6936 = vmatpush.bf16.msrb.mxu3 %v14422_v28  ;;  %v15082_v43 = vor.u32 %v17860_v20, %v15079_v7  ;;  %v14326_v28 = vor.u32 %v17475_v53, %v14325_v18  ;;  %v20094_v11 = vadd.f32 %v6774_v26, %v20019_v37  ;;  %v17455_v37 = vld [vmem:[#allocation7 + $0x21c] sm:$0xf]  ;;  %v15525_v7 = vld [vmem:[#allocation10 + $0x5c0] sm:$0xf]  ;;  %v17932_v18 = vld [vmem:[#allocation10 + $0x484] sm:$0xf] }
 0x41b   :  { %v15367_v53 = vld [vmem:[#allocation10 + $0x4a0] sm:$0xf0]  ;;  %v15526_v38 = vor.u32 %v17976_v1, %v15525_v7  ;;  %v17551_v1 = vld [vmem:[#allocation7 + $0x51c] sm:$0xf] }
 0x41c   :  { %6988 = vmatpush.bf16.msra.mxu2 %v14426_v35  ;;  %8248 = vmatpush.bf16.msrb.mxu1 %v15046_v34  ;;  %v5591_v35 = vpop.f32.mrf.mxu3  ;;  %v15533_v34 = vld [vmem:[#allocation10 + $0x5c8] sm:$0xf]  ;;  %v15370_v26 = vor.u32 %v17932_v18, %v15367_v53  ;;  %v15429_v18 = vld [vmem:[#allocation10 + $0x500] sm:$0xf] }
 0x41d   :  { %v15534_v39 = vor.u32 %v17977_v41, %v15533_v34  ;;  %v17924_v41 = vld [vmem:[#allocation10 + $0x444] sm:$0xf] }
 0x41e   :  { %8297 = vmatpush.bf16.msra.mxu0 %v15146_v9  ;;  %6937 = vmatpush.bf16.msrb.mxu3 %v14390_v55  ;;  %v6646_v9 = vpop.f32.mrf.mxu2  ;;  %v15050_v55 = vor.u32 %v17852_v16, %v15047_v27  ;;  %v15469_v16 = vld [vmem:[#allocation10 + $0x548] sm:$0xf] }
 0x41f   :  { %8249 = vmatmul.bf16.vlgmr.msrb.gmra.mxu1 %v20082_v33  ;;  %v17961_v27 = vld [vmem:[#allocation10 + $0x564] sm:$0xf0]  ;;  %v15335_v9 = vld [vmem:[#allocation10 + $0x460] sm:$0xf0] }
 0x420   :  { %8306 = vmatpush.bf16.msra.mxu1 %v15530_v36  ;;  %6989 = vmatpush.bf16.msra.mxu2 %v14394_v13  ;;  %v17463_v36 = vld [vmem:[#allocation7 + $0x25c] sm:$0xf]  ;;  %v14261_v13 = vld [vmem:[#allocation7 + $0x218] sm:$0xf]  ;;  %v6815_v20 = vpop.f32.mrf.mxu0  ;;  %v15470_v34 = vor.u32 %v17961_v27, %v15469_v16  ;;  %v15373_v16 = vld [vmem:[#allocation10 + $0x488] sm:$0xf] }
 0x421   :  { %v14298_v12 = vor.u32 %v17463_v36, %v14295_v5  ;;  %v14262_v19 = vor.u32 %v17459_v2, %v14261_v13  ;;  %v6776_v32 = vpop.f32.mrf.mxu1  ;;  %v14714_v36 = vor.u32 %v17567_v4, %v14711_v31  ;;  %v15437_v5 = vld [vmem:[#allocation10 + $0x508] sm:$0xf]  ;;  %v17960_v13 = vld [vmem:[#allocation10 + $0x55c] sm:$0xf0]  ;;  %v17543_v4 = vld [vmem:[#allocation7 + $0x4dc] sm:$0xf] }
 0x422   :  { %8298 = vmatpush.bf16.msra.mxu0 %v15114_v6  ;;  %6938 = vmatpush.bf16.msrb.mxu3 %v14358_v42  ;;  %v17575_v6 = vld [vmem:[#allocation7 + $0x5dc] sm:$0xf]  ;;  %v15402_v42 = vor.u32 %v17940_v17, %v15399_v21  ;;  %v15461_v21 = vld [vmem:[#allocation10 + $0x540] sm:$0xf]  ;;  %v15565_v20 = vld [vmem:[#allocation10 + $0x608] sm:$0xf] }
 0x423   :  { %v14679_v17 = vld [vmem:[#allocation7 + $0x578] sm:$0xf0]  ;;  %v15462_v7 = vor.u32 %v17960_v13, %v15461_v21  ;;  %v17845_v32 = vld [vmem:[#allocation10 + $0x1cc] sm:$0xf]  ;;  %v17937_v27 = vld [vmem:[#allocation10 + $0x4a4] sm:$0xf0] }
 0x424   :  { %8307 = vmatpush.bf16.msra.mxu1 %v15498_v56  ;;  %6990 = vmatpush.bf16.msra.mxu2 %v14362_v44  ;;  %v14743_v56 = vld [vmem:[#allocation7 + $0x5f8] sm:$0xf0]  ;;  %v15502_v44 = vor.u32 %v17969_v3, %v15501_v45  ;;  %v6657_v61 = vpop.f32.mrf.mxu3  ;;  %v17916_v45 = vld [vmem:[#allocation10 + $0x404] sm:$0xf] }
 0x425   :  { %v15303_v3 = vld [vmem:[#allocation10 + $0x420] sm:$0xf0]  ;;  %v14615_v31 = vld [vmem:[#allocation7 + $0x4f8] sm:$0xf0] }
 0x426   :  { %8299 = vmatpush.bf16.msra.mxu0 %v15082_v43  ;;  %6939 = vmatpush.bf16.msrb.mxu3 %v14326_v28  ;;  %v14266_v43 = vor.u32 %v17455_v37, %v14263_v10  ;;  %v20098_v28 = vadd.f32 %v6657_v61, %v20088_v58  ;;  %v20100_v35 = vpop.f32.mrf.mxu2  ;;  %v17953_v58 = vld [vmem:[#allocation10 + $0x524] sm:$0xf0]  ;;  %v17535_v21 = vld [vmem:[#allocation7 + $0x49c] sm:$0xf] }
 0x427   :  { %v15405_v37 = vld [vmem:[#allocation10 + $0x4c8] sm:$0xf]  ;;  %v14583_v13 = vld [vmem:[#allocation7 + $0x4b8] sm:$0xf0] }
 0x428   :  { %8308 = vmatpush.bf16.msra.mxu1 %v15466_v23  ;;  %6991 = vmatpush.bf16.msra.mxu2 %v14330_v15  ;;  %v14746_v23 = vor.u32 %v17575_v6, %v14743_v56  ;;  %v15493_v15 = vld [vmem:[#allocation10 + $0x580] sm:$0xf]  ;;  %v17945_v56 = vld [vmem:[#allocation10 + $0x4e4] sm:$0xf0] }
 0x429   :  { %v15406_v53 = vor.u32 %v17945_v56, %v15405_v37  ;;  %v17829_v56 = vld [vmem:[#allocation10 + $0x14c] sm:$0xf] }
 0x42a   :  { %8300 = vmatpush.bf16.msra.mxu0 %v15050_v55  ;;  %6940 = vmatpush.bf16.msrb.mxu3 %v14294_v29  ;;  %v15494_v55 = vor.u32 %v17968_v50, %v15493_v15  ;;  %v6826_v29 = vpop.f32.mrf.mxu0  ;;  %v15397_v50 = vld [vmem:[#allocation10 + $0x4c0] sm:$0xf] }
 0x42b   :  { %v20104_v2 = vadd.f32 %v6826_v29, %v20027_v62 }
 0x42c   :  { %8309 = vmatpush.bf16.msra.mxu1 %v15434_v57  ;;  %6992 = vmatpush.bf16.msra.mxu2 %v14298_v12  ;;  %v17559_v57 = vld [vmem:[#allocation7 + $0x55c] sm:$0xf]  ;;  %v15438_v12 = vor.u32 %v17953_v58, %v15437_v5  ;;  %v6659_v10 = vpop.f32.mrf.mxu3  ;;  %v14991_v5 = vld [vmem:[#allocation10 + $0x1a8] sm:$0xf0] }
 0x42d   :  { %8301 = vmatmul.bf16.vlgmr.msra.gmra.mxu0 %v20082_v33  ;;  %v14682_v6 = vor.u32 %v17559_v57, %v14679_v17  ;;  %v15341_v57 = vld [vmem:[#allocation10 + $0x448] sm:$0xf] }
 0x42e   :  { %8358 = vmatpush.bf16.msrb.mxu0 %v15534_v39  ;;  %6941 = vmatpush.bf16.msrb.mxu3 %v14262_v19  ;;  %v15338_v39 = vor.u32 %v17924_v41, %v15335_v9  ;;  %v14647_v19 = vld [vmem:[#allocation7 + $0x538] sm:$0xf0]  ;;  %v6711_v62 = vpop.f32.mrf.mxu2  ;;  %v20109_v41 = vpack.c.bf16 %v19871_v60, %v19871_v60  ;;  %v15374_v9 = vor.u32 %v17937_v27, %v15373_v16  ;;  %v17929_v17 = vld [vmem:[#allocation10 + $0x464] sm:$0xf0]  ;;  %v17821_v16 = vld [vmem:[#allocation10 + $0x10c] sm:$0xf] }
 0x430   :  { %8310 = vmatpush.bf16.msra.mxu1 %v15402_v42  ;;  %6993 = vmatpush.bf16.msra.mxu2 %v14266_v43  ;;  %v17985_v42 = vld [vmem:[#allocation10 + $0x624] sm:$0xf0]  ;;  %v15023_v43 = vld [vmem:[#allocation10 + $0x1e8] sm:$0xf0] }
 0x431   :  { %6942 = vmatmul.bf16.vlgmr.msrb.gmra.mxu3 %v19944_v51  ;;  %v15566_v61 = vor.u32 %v17985_v42, %v15565_v20  ;;  %v15026_v15 = vor.u32 %v17845_v32, %v15023_v43  ;;  %v14959_v20 = vld [vmem:[#allocation10 + $0x168] sm:$0xf0]  ;;  %v14586_v42 = vor.u32 %v17535_v21, %v14583_v13  ;;  %v17842_v21 = vld [vmem:[#allocation10 + $0x1ac] sm:$0xf0] }
 0x432   :  { %8359 = vmatpush.bf16.msrb.mxu0 %v15502_v44  ;;  %6999 = vmatpush.bf16.msra.mxu3 %v14746_v23  ;;  %v15306_v44 = vor.u32 %v17916_v45, %v15303_v3  ;;  %v14650_v23 = vor.u32 %v17551_v1, %v14647_v19  ;;  %v15365_v45 = vld [vmem:[#allocation10 + $0x480] sm:$0xf]  ;;  %v17527_v1 = vld [vmem:[#allocation7 + $0x45c] sm:$0xf] }
 0x433   :  { %6994 = vmatmul.bf16.vlgmr.msra.gmra.mxu2 %v19944_v51  ;;  %v17952_v51 = vld [vmem:[#allocation10 + $0x51c] sm:$0xf0] }
 0x434   :  { %8254 = vmatpush.bf16.msrb.mxu2 %v15526_v38  ;;  %8311 = vmatpush.bf16.msra.mxu1 %v15370_v26  ;;  %v15430_v38 = vor.u32 %v17952_v51, %v15429_v18  ;;  %v6828_v26 = vpop.f32.mrf.mxu0  ;;  %v6670_v58 = vpop.f32.mrf.mxu3  ;;  %v17936_v3 = vld [vmem:[#allocation10 + $0x49c] sm:$0xf0]  ;;  %v17981_v18 = vld [vmem:[#allocation10 + $0x60c] sm:$0xf] }
 0x435   :  { %v6671_v29 = vadd.f32 %v6670_v58, %v19977_v14  ;;  %v15309_v14 = vld [vmem:[#allocation10 + $0x408] sm:$0xf]  ;;  %v15366_v62 = vor.u32 %v17936_v3, %v15365_v45  ;;  %v15567_v51 = vld [vmem:[#allocation10 + $0x628] sm:$0xf0]  ;;  %v17850_v26 = vld [vmem:[#allocation10 + $0x1ec] sm:$0xf0] }
 0x436   :  { %8360 = vmatpush.bf16.msrb.mxu0 %v15470_v34  ;;  %7000 = vmatpush.bf16.msra.mxu3 %v14714_v36  ;;  %v17944_v34 = vld [vmem:[#allocation10 + $0x4dc] sm:$0xf0]  ;;  %v17837_v36 = vld [vmem:[#allocation10 + $0x18c] sm:$0xf]  ;;  %v6722_v60 = vpop.f32.mrf.mxu2 }
 0x437   :  { %v6684_v37 = vadd.f32 %v20051_v0, %v6671_v29  ;;  %v20115_v10 = vadd.f32 %v6722_v60, %v20002_v25  ;;  %v14962_v25 = vor.u32 %v17829_v56, %v14959_v20  ;;  %v17844_v60 = vld [vmem:[#allocation10 + $0x1c4] sm:$0xf]  ;;  %v15021_v20 = vld [vmem:[#allocation10 + $0x1c8] sm:$0xf] }
 0x438   :  { %8255 = vmatpush.bf16.msrb.mxu2 %v15494_v55  ;;  %8312 = vmatpush.bf16.msra.mxu1 %v15338_v39  ;;  %v14618_v55 = vor.u32 %v17543_v4, %v14615_v31  ;;  %v15398_v39 = vor.u32 %v17944_v34, %v15397_v50  ;;  %v6839_v0 = vpop.f32.mrf.mxu1  ;;  %v15570_v4 = vor.u32 %v17981_v18, %v15567_v51  ;;  %v15029_v31 = vld [vmem:[#allocation10 + $0x1d0] sm:$0xf]  ;;  %v17519_v50 = vld [vmem:[#allocation7 + $0x41c] sm:$0xf]  ;;  %v15559_v56 = vld [vmem:[#allocation10 + $0x620] sm:$0xf0] }
 0x439   :  { %v6697_v19 = vadd.f32 %v20065_v47, %v6684_v37  ;;  %v20122_v43 = vadd.f32 %v6839_v0, %v20104_v2  ;;  %v14927_v47 = vld [vmem:[#allocation10 + $0x128] sm:$0xf0]  ;;  %v14519_v34 = vld [vmem:[#allocation7 + $0x438] sm:$0xf0]  ;;  %v17920_v2 = vld [vmem:[#allocation10 + $0x41c] sm:$0xf0]  ;;  %v15030_v58 = vor.u32 %v17850_v26, %v15029_v31 }
 0x43a   :  { %8361 = vmatpush.bf16.msrb.mxu0 %v15438_v12  ;;  %7001 = vmatpush.bf16.msra.mxu3 %v14682_v6  ;;  %v14994_v12 = vor.u32 %v17837_v36, %v14991_v5  ;;  %v15342_v6 = vor.u32 %v17929_v17, %v15341_v57  ;;  %v15301_v36 = vld [vmem:[#allocation10 + $0x400] sm:$0xf]  ;;  %v17813_v5 = vld [vmem:[#allocation10 + $0xcc] sm:$0xf]  ;;  %v14522_v29 = vor.u32 %v17519_v50, %v14519_v34  ;;  %v17834_v18 = vld [vmem:[#allocation10 + $0x16c] sm:$0xf0] }
 0x43b   :  { %v20119_v32 = vadd.f32 %v20100_v35, %v6697_v19  ;;  %v15557_v57 = vld [vmem:[#allocation10 + $0x600] sm:$0xf]  ;;  %v15302_v13 = vor.u32 %v17920_v2, %v15301_v36  ;;  %v14863_v19 = vld [vmem:[#allocation10 + $0xa8] sm:$0xf0]  ;;  %v17836_v0 = vld [vmem:[#allocation10 + $0x184] sm:$0xf] }
 0x43c   :  { %8256 = vmatpush.bf16.msrb.mxu2 %v15462_v7  ;;  %8313 = vmatpush.bf16.msra.mxu1 %v15306_v44  ;;  %v17921_v7 = vld [vmem:[#allocation10 + $0x424] sm:$0xf0]  ;;  %v14551_v44 = vld [vmem:[#allocation7 + $0x478] sm:$0xf0]  ;;  %v6672_v27 = vpop.f32.mrf.mxu3  ;;  %v17984_v17 = vld [vmem:[#allocation10 + $0x61c] sm:$0xf0] }
 0x43d   :  { %v15558_v37 = vor.u32 %v17984_v17, %v15557_v57  ;;  %v17797_v27 = vld [vmem:[#allocation10 + $0x4c] sm:$0xf]  ;;  %v14933_v31 = vld [vmem:[#allocation10 + $0x110] sm:$0xf]  ;;  %v14951_v50 = vld [vmem:[#allocation10 + $0x160] sm:$0xf0] }
 0x43e   :  { %8362 = vmatpush.bf16.msrb.mxu0 %v15406_v53  ;;  %7002 = vmatpush.bf16.msra.mxu3 %v14650_v23  ;;  %v15333_v53 = vld [vmem:[#allocation10 + $0x440] sm:$0xf]  ;;  %v15310_v23 = vor.u32 %v17921_v7, %v15309_v14  ;;  %v6724_v35 = vpop.f32.mrf.mxu2  ;;  %v17849_v7 = vld [vmem:[#allocation10 + $0x1e4] sm:$0xf0]  ;;  %v17826_v26 = vld [vmem:[#allocation10 + $0x12c] sm:$0xf0] }
 0x43f   :  { %8314 = vmatmul.bf16.vlgmr.msra.gmra.mxu1 %v20109_v41  ;;  %v14957_v35 = vld [vmem:[#allocation10 + $0x148] sm:$0xf]  ;;  %v17789_v2 = vld [vmem:[#allocation10 + $0xc] sm:$0xf]  ;;  %v15285_v57 = vld [vmem:[#allocation10 + $0x3d0] sm:$0xf] }
 0x440   :  { %8378 = vmatpush.bf16.msrb.mxu1 %v15566_v61  ;;  %8257 = vmatpush.bf16.msrb.mxu2 %v15430_v38  ;;  %v17928_v61 = vld [vmem:[#allocation10 + $0x45c] sm:$0xf0]  ;;  %v14554_v38 = vor.u32 %v17527_v1, %v14551_v44  ;;  %v6841_v45 = vpop.f32.mrf.mxu1  ;;  %v17805_v1 = vld [vmem:[#allocation10 + $0x8c] sm:$0xf]  ;;  %v14965_v44 = vld [vmem:[#allocation10 + $0x150] sm:$0xf] }
 0x441   :  { %v17833_v36 = vld [vmem:[#allocation10 + $0x164] sm:$0xf0]  ;;  %v17914_v17 = vld [vmem:[#allocation10 + $0x3ec] sm:$0xf0] }
 0x442   :  { %8363 = vmatpush.bf16.msrb.mxu0 %v15374_v9  ;;  %7003 = vmatpush.bf16.msra.mxu3 %v14618_v55  ;;  %v14930_v9 = vor.u32 %v17821_v16, %v14927_v47  ;;  %v14895_v55 = vld [vmem:[#allocation10 + $0xe8] sm:$0xf0]  ;;  %v14966_v16 = vor.u32 %v17834_v18, %v14965_v44  ;;  %v17841_v47 = vld [vmem:[#allocation10 + $0x1a4] sm:$0xf0]  ;;  %v15286_v45 = vor.u32 %v17914_v17, %v15285_v57  ;;  %v14823_v57 = vld [vmem:[#allocation10 + $0x60] sm:$0xf0] }
 0x443   :  { %v14898_v3 = vor.u32 %v17813_v5, %v14895_v55  ;;  %v14799_v5 = vld [vmem:[#allocation10 + $0x28] sm:$0xf0]  ;;  %v14901_v55 = vld [vmem:[#allocation10 + $0xd0] sm:$0xf] }
 0x444   :  { %8384 = vmatpush.bf16.msra.mxu1 %v15026_v15  ;;  %8258 = vmatpush.bf16.msrb.mxu2 %v15398_v39  ;;  %v15334_v15 = vor.u32 %v17928_v61, %v15333_v53  ;;  %v14997_v39 = vld [vmem:[#allocation10 + $0x190] sm:$0xf]  ;;  %v14866_v53 = vor.u32 %v17805_v1, %v14863_v19  ;;  %v14989_v61 = vld [vmem:[#allocation10 + $0x188] sm:$0xf]  ;;  %v17812_v19 = vld [vmem:[#allocation10 + $0xc4] sm:$0xf] }
 0x445   :  { %v14998_v14 = vor.u32 %v17842_v21, %v14997_v39  ;;  %v14990_v34 = vor.u32 %v17841_v47, %v14989_v61  ;;  %v17820_v39 = vld [vmem:[#allocation10 + $0x104] sm:$0xf]  ;;  %v17810_v1 = vld [vmem:[#allocation10 + $0xac] sm:$0xf0] }
 0x446   :  { %8364 = vmatpush.bf16.msrb.mxu0 %v15342_v6  ;;  %7004 = vmatpush.bf16.msra.mxu3 %v14586_v42  ;;  %v17980_v6 = vld [vmem:[#allocation10 + $0x604] sm:$0xf]  ;;  %v20127_v42 = vpack.c.bf16 %v19889_v63, %v19889_v63  ;;  %v15022_v63 = vor.u32 %v17849_v7, %v15021_v20  ;;  %v14869_v20 = vld [vmem:[#allocation10 + $0x90] sm:$0xf] }
 0x447   :  { %v15562_v51 = vor.u32 %v17980_v6, %v15559_v56  ;;  %v14919_v21 = vld [vmem:[#allocation10 + $0x120] sm:$0xf0]  ;;  %v17906_v7 = vld [vmem:[#allocation10 + $0x3ac] sm:$0xf0] }
 0x448   :  { %8385 = vmatpush.bf16.msra.mxu1 %v14994_v12  ;;  %8259 = vmatpush.bf16.msrb.mxu2 %v15366_v62  ;;  %v15015_v12 = vld [vmem:[#allocation10 + $0x1e0] sm:$0xf0]  ;;  %v14922_v56 = vor.u32 %v17820_v39, %v14919_v21  ;;  %v17910_v39 = vld [vmem:[#allocation10 + $0x3d4] sm:$0xf] }
 0x449   :  { %v15018_v62 = vor.u32 %v17844_v60, %v15015_v12  ;;  %v14802_v60 = vor.u32 %v17789_v2, %v14799_v5  ;;  %v15189_v2 = vld [vmem:[#allocation10 + $0x310] sm:$0xf]  ;;  %v15287_v21 = vld [vmem:[#allocation10 + $0x3f0] sm:$0xf0] }
 0x44a   :  { %8365 = vmatpush.bf16.msrb.mxu0 %v15310_v23  ;;  %7005 = vmatpush.bf16.msra.mxu3 %v14554_v38  ;;  %v20132_v23 = vpop.f32.mrf.mxu0  ;;  %v14831_v38 = vld [vmem:[#allocation10 + $0x68] sm:$0xf0]  ;;  %v17890_v5 = vld [vmem:[#allocation10 + $0x32c] sm:$0xf0] }
 0x44c   :  { %8386 = vmatpush.bf16.msra.mxu1 %v14962_v25  ;;  %8260 = vmatpush.bf16.msrb.mxu2 %v15334_v15  ;;  %v14983_v25 = vld [vmem:[#allocation10 + $0x1a0] sm:$0xf0] }
 0x44d   :  { %8366 = vmatmul.bf16.vlgmr.msrb.gmra.mxu0 %v20109_v41  ;;  %v17828_v15 = vld [vmem:[#allocation10 + $0x144] sm:$0xf] }
 0x44e   :  { %8430 = vmatpush.bf16.msra.mxu0 %v15570_v4  ;;  %7006 = vmatpush.bf16.msra.mxu3 %v14522_v29  ;;  %v14986_v4 = vor.u32 %v17836_v0, %v14983_v25  ;;  %v17818_v29 = vld [vmem:[#allocation10 + $0xec] sm:$0xf0] }
 0x44f   :  { %15589 = vmatmul.msk.bf16.vlgmr.msrb.gmra.mxu1 %vm5186_vm9, %v20127_v42  ;;  %v14902_v6 = vor.u32 %v17818_v29, %v14901_v55  ;;  %v17796_v55 = vld [vmem:[#allocation10 + $0x44] sm:$0xf] }
 0x450   :  { %8387 = vmatpush.bf16.msra.mxu1 %v14930_v9  ;;  %8261 = vmatpush.bf16.msrb.mxu2 %v15302_v13  ;;  %v14934_v9 = vor.u32 %v17826_v26, %v14933_v31  ;;  %v14958_v13 = vor.u32 %v17833_v36, %v14957_v35  ;;  %v6735_v44 = vpop.f32.mrf.mxu3  ;;  %v17802_v31 = vld [vmem:[#allocation10 + $0x6c] sm:$0xf0]  ;;  %v14855_v26 = vld [vmem:[#allocation10 + $0xa0] sm:$0xf0] }
 0x451   :  { %7007 = vmatmul.bf16.vlgmr.msra.gmra.mxu3 %v19961_v49  ;;  %v14834_v49 = vor.u32 %v17797_v27, %v14831_v38  ;;  %v14837_v27 = vld [vmem:[#allocation10 + $0x50] sm:$0xf] }
 0x452   :  { %8436 = vmatpush.bf16.msrb.mxu0 %v15030_v58  ;;  %8274 = vmatpush.bf16.msrb.mxu3 %v15558_v37  ;;  %v14954_v58 = vor.u32 %v17828_v15, %v14951_v50  ;;  %v6893_v12 = vpop.f32.mrf.mxu0  ;;  %v17825_v37 = vld [vmem:[#allocation10 + $0x124] sm:$0xf0]  ;;  %v6787_v0 = vpop.f32.mrf.mxu2  ;;  %v15221_v38 = vld [vmem:[#allocation10 + $0x350] sm:$0xf]  ;;  %v14838_v35 = vor.u32 %v17802_v31, %v14837_v27  ;;  %v15279_v27 = vld [vmem:[#allocation10 + $0x3e8] sm:$0xf0] }
 0x453   :  { %8262 = vmatmul.bf16.vlgmr.msrb.gmra.mxu2 %v20109_v41  ;;  %v20141_v61 = vadd.f32 %v6787_v0, %v20094_v11  ;;  %v14805_v36 = vld [vmem:[#allocation10 + $0x10] sm:$0xf]  ;;  %v14829_v12 = vld [vmem:[#allocation10 + $0x48] sm:$0xf] }
 0x454   :  { %8388 = vmatpush.bf16.msra.mxu1 %v14898_v3  ;;  %8326 = vmatpush.bf16.msra.mxu2 %v15562_v51  ;;  %v14925_v3 = vld [vmem:[#allocation10 + $0x108] sm:$0xf]  ;;  %v20138_v51 = vadd.f32 %v6735_v44, %v20115_v10  ;;  %v17804_v10 = vld [vmem:[#allocation10 + $0x84] sm:$0xf]  ;;  %v15125_v31 = vld [vmem:[#allocation10 + $0x290] sm:$0xf] }
 0x455   :  { %v14926_v18 = vor.u32 %v17825_v37, %v14925_v3  ;;  %v14826_v37 = vor.u32 %v17796_v55, %v14823_v57  ;;  %v15277_v44 = vld [vmem:[#allocation10 + $0x3c8] sm:$0xf]  ;;  %v15093_v55 = vld [vmem:[#allocation10 + $0x250] sm:$0xf] }
 0x456   :  { %8437 = vmatpush.bf16.msrb.mxu0 %v14998_v14  ;;  %8280 = vmatpush.bf16.msra.mxu3 %v15018_v62  ;;  %v15253_v14 = vld [vmem:[#allocation10 + $0x390] sm:$0xf]  ;;  %v14887_v62 = vld [vmem:[#allocation10 + $0xe0] sm:$0xf0] }
 0x457   :  { %v15254_v25 = vor.u32 %v17906_v7, %v15253_v14  ;;  %v14890_v47 = vor.u32 %v17812_v19, %v14887_v62  ;;  %v17788_v14 = vld [vmem:[#allocation10 + $0x4] sm:$0xf]  ;;  %v15255_v62 = vld [vmem:[#allocation10 + $0x3b0] sm:$0xf0]  ;;  %v17866_v57 = vld [vmem:[#allocation10 + $0x26c] sm:$0xf0] }
 0x458   :  { %8332 = vmatpush.bf16.msrb.mxu2 %v15022_v63  ;;  %8389 = vmatpush.bf16.msra.mxu1 %v14866_v53  ;;  %v14893_v63 = vld [vmem:[#allocation10 + $0xc8] sm:$0xf]  ;;  %v20146_v50 = vpop.f32.mrf.mxu1  ;;  %v6737_v17 = vpop.f32.mrf.mxu3  ;;  %v14791_v7 = vld [vmem:[#allocation10 + $0x20] sm:$0xf0] }
 0x459   :  { %v17817_v53 = vld [vmem:[#allocation10 + $0xe4] sm:$0xf0] }
 0x45a   :  { %8438 = vmatpush.bf16.msrb.mxu0 %v14966_v16  ;;  %8281 = vmatpush.bf16.msra.mxu3 %v14986_v4  ;;  %v14870_v16 = vor.u32 %v17810_v1, %v14869_v20  ;;  %v17898_v4 = vld [vmem:[#allocation10 + $0x36c] sm:$0xf0]  ;;  %v14894_v15 = vor.u32 %v17817_v53, %v14893_v63  ;;  %v15290_v20 = vor.u32 %v17910_v39, %v15287_v21  ;;  %v17902_v1 = vld [vmem:[#allocation10 + $0x394] sm:$0xf]  ;;  %v14797_v63 = vld [vmem:[#allocation10 + $0x8] sm:$0xf] }
 0x45b   :  { %v15222_v11 = vor.u32 %v17898_v4, %v15221_v38  ;;  %v17793_v53 = vld [vmem:[#allocation10 + $0x24] sm:$0xf0]  ;;  %v15258_v38 = vor.u32 %v17902_v1, %v15255_v62  ;;  %v15191_v39 = vld [vmem:[#allocation10 + $0x330] sm:$0xf0] }
 0x45c   :  { %8333 = vmatpush.bf16.msrb.mxu2 %v14990_v34  ;;  %8390 = vmatpush.bf16.msra.mxu1 %v14834_v49  ;;  %v14861_v34 = vld [vmem:[#allocation10 + $0x88] sm:$0xf]  ;;  %v15159_v1 = vld [vmem:[#allocation10 + $0x2f0] sm:$0xf0] }
 0x45d   :  { %15590 = vmatmul.msk.bf16.vlgmr.msra.gmra.mxu0 %vm5186_vm9, %v20127_v42  ;;  %v17809_v49 = vld [vmem:[#allocation10 + $0xa4] sm:$0xf0]  ;;  %v15543_v62 = vld [vmem:[#allocation10 + $0x5f0] sm:$0xf0] }
 0x45e   :  { %8439 = vmatpush.bf16.msrb.mxu0 %v14934_v9  ;;  %8282 = vmatpush.bf16.msra.mxu3 %v14954_v58  ;;  %v14858_v9 = vor.u32 %v17804_v10, %v14855_v26  ;;  %v17794_v58 = vld [vmem:[#allocation10 + $0x2c] sm:$0xf0]  ;;  %v14862_v29 = vor.u32 %v17809_v49, %v14861_v34  ;;  %v14798_v26 = vor.u32 %v17793_v53, %v14797_v63  ;;  %v15245_v49 = vld [vmem:[#allocation10 + $0x388] sm:$0xf]  ;;  %v17885_v53 = vld [vmem:[#allocation10 + $0x30c] sm:$0xf] }
 0x45f   :  { %v14806_v3 = vor.u32 %v17794_v58, %v14805_v36  ;;  %v17874_v10 = vld [vmem:[#allocation10 + $0x2ac] sm:$0xf0] }
 0x460   :  { %8334 = vmatpush.bf16.msrb.mxu2 %v14958_v13  ;;  %8391 = vmatpush.bf16.msra.mxu1 %v14802_v60  ;;  %v6789_v13 = vpop.f32.mrf.mxu2  ;;  %v15190_v60 = vor.u32 %v17890_v5, %v15189_v2  ;;  %v6906_v0 = vpop.f32.mrf.mxu1  ;;  %v15126_v36 = vor.u32 %v17874_v10, %v15125_v31  ;;  %v17901_v2 = vld [vmem:[#allocation10 + $0x38c] sm:$0xf]  ;;  %v15127_v31 = vld [vmem:[#allocation10 + $0x2b0] sm:$0xf0] }
 0x461   :  { %15587 = vmatmul.msk.bf16.vlgmr.msrb.gmra.mxu3 %vm5186_vm9, %v20127_v42  ;;  %v15247_v5 = vld [vmem:[#allocation10 + $0x3a8] sm:$0xf0]  ;;  %v17889_v0 = vld [vmem:[#allocation10 + $0x324] sm:$0xf0]  ;;  %v17966_v10 = vld [vmem:[#allocation10 + $0x594] sm:$0xf] }
 0x462   :  { %8440 = vmatpush.bf16.msrb.mxu0 %v14902_v6  ;;  %8283 = vmatpush.bf16.msra.mxu3 %v14922_v56  ;;  %v15157_v6 = vld [vmem:[#allocation10 + $0x2d0] sm:$0xf]  ;;  %v15250_v13 = vor.u32 %v17901_v2, %v15247_v5  ;;  %v17877_v5 = vld [vmem:[#allocation10 + $0x2cc] sm:$0xf] }
 0x463   :  { %8392 = vmatmul.bf16.vlgmr.msra.gmra.mxu1 %v20071_v52  ;;  %15588 = vmatmul.msk.bf16.vlgmr.msra.gmra.mxu2 %vm5186_vm9, %v20127_v42  ;;  %v17882_v56 = vld [vmem:[#allocation10 + $0x2ec] sm:$0xf0] }
 0x464   :  { %8449 = vmatpush.bf16.msrb.mxu1 %v15286_v45  ;;  %8335 = vmatpush.bf16.msrb.mxu2 %v14926_v18  ;;  %v17801_v45 = vld [vmem:[#allocation10 + $0x64] sm:$0xf0] }
 0x465   :  { %v14830_v19 = vor.u32 %v17801_v45, %v14829_v12  ;;  %v17913_v18 = vld [vmem:[#allocation10 + $0x3e4] sm:$0xf0]  ;;  %v15094_v45 = vor.u32 %v17866_v57, %v15093_v55 }
 0x466   :  { %8441 = vmatpush.bf16.msrb.mxu0 %v14870_v16  ;;  %8284 = vmatpush.bf16.msra.mxu3 %v14890_v47  ;;  %v14794_v16 = vor.u32 %v17788_v14, %v14791_v7  ;;  %v17909_v47 = vld [vmem:[#allocation10 + $0x3cc] sm:$0xf]  ;;  %v15278_v4 = vor.u32 %v17913_v18, %v15277_v44  ;;  %v17897_v12 = vld [vmem:[#allocation10 + $0x364] sm:$0xf0]  ;;  %v17878_v14 = vld [vmem:[#allocation10 + $0x2d4] sm:$0xf] }
 0x467   :  { %v15282_v34 = vor.u32 %v17909_v47, %v15279_v27  ;;  %v15181_v18 = vld [vmem:[#allocation10 + $0x308] sm:$0xf]  ;;  %v15162_v47 = vor.u32 %v17878_v14, %v15159_v1  ;;  %v17854_v14 = vld [vmem:[#allocation10 + $0x214] sm:$0xf]  ;;  %v5603_v1 = vadd.f32 %v20021_v30, %v20085_v22 }
 0x468   :  { %8450 = vmatpush.bf16.msrb.mxu1 %v15254_v25  ;;  %8336 = vmatpush.bf16.msrb.mxu2 %v14894_v15  ;;  %v15158_v25 = vor.u32 %v17882_v56, %v15157_v6  ;;  %v17894_v15 = vld [vmem:[#allocation10 + $0x354] sm:$0xf]  ;;  %v20154_v21 = vpop.f32.mrf.mxu1  ;;  %v15061_v56 = vld [vmem:[#allocation10 + $0x210] sm:$0xf] }
 0x469   :  { %v17942_v22 = vld [vmem:[#allocation10 + $0x4d4] sm:$0xf] }
 0x46a   :  { %8442 = vmatpush.bf16.msrb.mxu0 %v14838_v35  ;;  %8285 = vmatpush.bf16.msra.mxu3 %v14858_v9  ;;  %v17905_v35 = vld [vmem:[#allocation10 + $0x3a4] sm:$0xf0]  ;;  %v20151_v9 = vpop.f32.mrf.mxu0 }
 0x46b   :  { %v15246_v17 = vor.u32 %v17905_v35, %v15245_v49  ;;  %v15149_v49 = vld [vmem:[#allocation10 + $0x2c8] sm:$0xf] }
 0x46c   :  { %8451 = vmatpush.bf16.msrb.mxu1 %v15222_v11  ;;  %8337 = vmatpush.bf16.msrb.mxu2 %v14862_v29  ;;  %v15223_v11 = vld [vmem:[#allocation10 + $0x370] sm:$0xf0]  ;;  %v17881_v35 = vld [vmem:[#allocation10 + $0x2e4] sm:$0xf0] }
 0x46d   :  { %v15226_v58 = vor.u32 %v17894_v15, %v15223_v11  ;;  %v17886_v29 = vld [vmem:[#allocation10 + $0x314] sm:$0xf] }
 0x46e   :  { %8443 = vmatpush.bf16.msrb.mxu0 %v14806_v3  ;;  %8286 = vmatpush.bf16.msra.mxu3 %v14826_v37  ;;  %v17893_v3 = vld [vmem:[#allocation10 + $0x34c] sm:$0xf]  ;;  %v15194_v6 = vor.u32 %v17886_v29, %v15191_v39  ;;  %v17862_v29 = vld [vmem:[#allocation10 + $0x254] sm:$0xf]  ;;  %v15150_v39 = vor.u32 %v17881_v35, %v15149_v49  ;;  %v17857_v49 = vld [vmem:[#allocation10 + $0x224] sm:$0xf0] }
 0x46f   :  { %v15215_v37 = vld [vmem:[#allocation10 + $0x368] sm:$0xf0] }
 0x470   :  { %8452 = vmatpush.bf16.msrb.mxu1 %v15190_v60  ;;  %8338 = vmatpush.bf16.msrb.mxu2 %v14830_v19  ;;  %v15213_v60 = vld [vmem:[#allocation10 + $0x348] sm:$0xf]  ;;  %v17974_v19 = vld [vmem:[#allocation10 + $0x5d4] sm:$0xf]  ;;  %v15218_v44 = vor.u32 %v17893_v3, %v15215_v37  ;;  %v6800_v15 = vpop.f32.mrf.mxu3  ;;  %v6971_v11 = vpop.f32.mrf.mxu1  ;;  %v17869_v37 = vld [vmem:[#allocation10 + $0x28c] sm:$0xf] }
 0x471   :  { %8444 = vmatmul.bf16.vlgmr.msrb.gmra.mxu0 %v20071_v52  ;;  %v15214_v7 = vor.u32 %v17897_v12, %v15213_v60  ;;  %v15546_v27 = vor.u32 %v17974_v19, %v15543_v62  ;;  %v17958_v60 = vld [vmem:[#allocation10 + $0x554] sm:$0xf]  ;;  %v17873_v3 = vld [vmem:[#allocation10 + $0x2a4] sm:$0xf0] }
 0x472   :  { %8501 = vmatpush.bf16.msra.mxu0 %v15290_v20  ;;  %8287 = vmatpush.bf16.msra.mxu3 %v14794_v16  ;;  %v17858_v20 = vld [vmem:[#allocation10 + $0x22c] sm:$0xf0]  ;;  %v15183_v16 = vld [vmem:[#allocation10 + $0x328] sm:$0xf0]  ;;  %v6852_v2 = vpop.f32.mrf.mxu2  ;;  %v15479_v12 = vld [vmem:[#allocation10 + $0x570] sm:$0xf0] }
 0x473   :  { %v15062_v63 = vor.u32 %v17858_v20, %v15061_v56  ;;  %v20161_v55 = vadd.f32 %v6852_v2, %v20122_v43  ;;  %v15482_v20 = vor.u32 %v17958_v60, %v15479_v12  ;;  %v17950_v62 = vld [vmem:[#allocation10 + $0x514] sm:$0xf]  ;;  %v15517_v2 = vld [vmem:[#allocation10 + $0x598] sm:$0xf]  ;;  %v15541_v60 = vld [vmem:[#allocation10 + $0x5d0] sm:$0xf] }
 0x474   :  { %8453 = vmatpush.bf16.msrb.mxu1 %v15158_v25  ;;  %8339 = vmatpush.bf16.msrb.mxu2 %v14798_v26  ;;  %v6958_v25 = vpop.f32.mrf.mxu0  ;;  %v15511_v26 = vld [vmem:[#allocation10 + $0x5b0] sm:$0xf0]  ;;  %v17978_v12 = vld [vmem:[#allocation10 + $0x5ec] sm:$0xf0] }
 0x475   :  { %8288 = vmatmul.bf16.vlgmr.msra.gmra.mxu3 %v20071_v52  ;;  %v15415_v11 = vld [vmem:[#allocation10 + $0x4f0] sm:$0xf0] }
 0x476   :  { %8502 = vmatpush.bf16.msra.mxu0 %v15258_v38  ;;  %8345 = vmatpush.bf16.msrb.mxu3 %v15278_v4  ;;  %v17870_v38 = vld [vmem:[#allocation10 + $0x294] sm:$0xf]  ;;  %v15182_v4 = vor.u32 %v17889_v0, %v15181_v18  ;;  %v15085_v18 = vld [vmem:[#allocation10 + $0x248] sm:$0xf] }
 0x477   :  { %8340 = vmatmul.bf16.vlgmr.msrb.gmra.mxu2 %v20071_v52  ;;  %v15130_v57 = vor.u32 %v17870_v38, %v15127_v31  ;;  %v15087_v31 = vld [vmem:[#allocation10 + $0x268] sm:$0xf0] }
 0x478   :  { %8397 = vmatpush.bf16.msra.mxu2 %v15282_v34  ;;  %8454 = vmatpush.bf16.msrb.mxu1 %v15126_v36  ;;  %v15186_v34 = vor.u32 %v17885_v53, %v15183_v16  ;;  %v20158_v36 = vadd.f32 %v6800_v15, %v20141_v61  ;;  %v6802_v0 = vpop.f32.mrf.mxu3  ;;  %v17865_v53 = vld [vmem:[#allocation10 + $0x264] sm:$0xf0]  ;;  %v15549_v16 = vld [vmem:[#allocation10 + $0x5d8] sm:$0xf] }
 0x47a   :  { %8503 = vmatpush.bf16.msra.mxu0 %v15226_v58  ;;  %8346 = vmatpush.bf16.msrb.mxu3 %v15246_v17  ;;  %v15151_v58 = vld [vmem:[#allocation10 + $0x2e8] sm:$0xf0]  ;;  %v15514_v17 = vor.u32 %v17966_v10, %v15511_v26  ;;  %v6854_v38 = vpop.f32.mrf.mxu2  ;;  %v15086_v26 = vor.u32 %v17865_v53, %v15085_v18  ;;  %v17970_v53 = vld [vmem:[#allocation10 + $0x5ac] sm:$0xf0] }
 0x47b   :  { %v15154_v61 = vor.u32 %v17877_v5, %v15151_v58  ;;  %v17971_v5 = vld [vmem:[#allocation10 + $0x5b4] sm:$0xf0]  ;;  %v17853_v58 = vld [vmem:[#allocation10 + $0x20c] sm:$0xf]  ;;  %v15351_v38 = vld [vmem:[#allocation10 + $0x470] sm:$0xf0] }
 0x47c   :  { %8398 = vmatpush.bf16.msra.mxu2 %v15250_v13  ;;  %8455 = vmatpush.bf16.msrb.mxu1 %v15094_v45  ;;  %v15095_v13 = vld [vmem:[#allocation10 + $0x270] sm:$0xf0]  ;;  %v15117_v45 = vld [vmem:[#allocation10 + $0x288] sm:$0xf]  ;;  %v20164_v43 = vpop.f32.mrf.mxu0  ;;  %v6982_v25 = vpop.f32.mrf.mxu1  ;;  %v15503_v18 = vld [vmem:[#allocation10 + $0x5a8] sm:$0xf0] }
 0x47d   :  { %v15098_v56 = vor.u32 %v17862_v29, %v15095_v13  ;;  %v15118_v19 = vor.u32 %v17873_v3, %v15117_v45  ;;  %v15535_v29 = vld [vmem:[#allocation10 + $0x5e8] sm:$0xf0]  ;;  %v15418_v13 = vor.u32 %v17942_v22, %v15415_v11  ;;  %v15518_v45 = vor.u32 %v17971_v5, %v15517_v2  ;;  %v17934_v3 = vld [vmem:[#allocation10 + $0x494] sm:$0xf]  ;;  %v15477_v11 = vld [vmem:[#allocation10 + $0x550] sm:$0xf] }
 0x47e   :  { %8504 = vmatpush.bf16.msra.mxu0 %v15194_v6  ;;  %8347 = vmatpush.bf16.msrb.mxu3 %v15214_v7  ;;  %v15119_v6 = vld [vmem:[#allocation10 + $0x2a8] sm:$0xf0]  ;;  %v15063_v7 = vld [vmem:[#allocation10 + $0x230] sm:$0xf0]  ;;  %v15421_v5 = vld [vmem:[#allocation10 + $0x4d8] sm:$0xf] }
 0x47f   :  { %v15066_v10 = vor.u32 %v17854_v14, %v15063_v7  ;;  %v15485_v7 = vld [vmem:[#allocation10 + $0x558] sm:$0xf]  ;;  %v15471_v22 = vld [vmem:[#allocation10 + $0x568] sm:$0xf0]  ;;  %v15319_v2 = vld [vmem:[#allocation10 + $0x430] sm:$0xf0] }
 0x480   :  { %8399 = vmatpush.bf16.msra.mxu2 %v15218_v44  ;;  %8456 = vmatpush.bf16.msrb.mxu1 %v15062_v63  ;;  %v15447_v44 = vld [vmem:[#allocation10 + $0x530] sm:$0xf0]  ;;  %v15122_v63 = vor.u32 %v17869_v37, %v15119_v6  ;;  %v6865_v6 = vpop.f32.mrf.mxu3 }
 0x481   :  { %v15450_v30 = vor.u32 %v17950_v62, %v15447_v44  ;;  %v15383_v37 = vld [vmem:[#allocation10 + $0x4b0] sm:$0xf0]  ;;  %v15542_v62 = vor.u32 %v17978_v12, %v15541_v60  ;;  %v17965_v44 = vld [vmem:[#allocation10 + $0x58c] sm:$0xf] }
 0x482   :  { %8505 = vmatpush.bf16.msra.mxu0 %v15162_v47  ;;  %8348 = vmatpush.bf16.msrb.mxu3 %v15182_v4  ;;  %v17979_v47 = vld [vmem:[#allocation10 + $0x5f4] sm:$0xf0]  ;;  %v17861_v4 = vld [vmem:[#allocation10 + $0x24c] sm:$0xf]  ;;  %v20174_v0 = vpop.f32.mrf.mxu2 }
 0x483   :  { %8457 = vmatmul.bf16.vlgmr.msrb.gmra.mxu1 %v20082_v33  ;;  %v15550_v15 = vor.u32 %v17979_v47, %v15549_v16  ;;  %v15090_v35 = vor.u32 %v17861_v4, %v15087_v31  ;;  %v17926_v47 = vld [vmem:[#allocation10 + $0x454] sm:$0xf]  ;;  %v15506_v4 = vor.u32 %v17965_v44, %v15503_v18  ;;  %v15453_v31 = vld [vmem:[#allocation10 + $0x518] sm:$0xf]  ;;  %v17949_v60 = vld [vmem:[#allocation10 + $0x50c] sm:$0xf]  ;;  %v5538_v44 = vadd.f32 %v20007_v8, %v20057_v46 }
 0x484   :  { %8514 = vmatpush.bf16.msra.mxu1 %v15546_v27  ;;  %8400 = vmatpush.bf16.msra.mxu2 %v15186_v34  ;;  %v20168_v27 = vadd.f32 %v6982_v25, %v5603_v1  ;;  %v15053_v34 = vld [vmem:[#allocation10 + $0x208] sm:$0xf]  ;;  %v17963_v1 = vld [vmem:[#allocation10 + $0x574] sm:$0xf0]  ;;  %v15386_v25 = vor.u32 %v17934_v3, %v15383_v37  ;;  %v15439_v12 = vld [vmem:[#allocation10 + $0x528] sm:$0xf0] }
 0x485   :  { %v15486_v16 = vor.u32 %v17963_v1, %v15485_v7  ;;  %v15445_v3 = vld [vmem:[#allocation10 + $0x510] sm:$0xf]  ;;  %v15442_v7 = vor.u32 %v17949_v60, %v15439_v12  ;;  %v15389_v1 = vld [vmem:[#allocation10 + $0x498] sm:$0xf]  ;;  %v5551_v46 = vadd.f32 %v20010_v54, %v5538_v44  ;;  %v17925_v12 = vld [vmem:[#allocation10 + $0x44c] sm:$0xf] }
 0x486   :  { %8506 = vmatpush.bf16.msra.mxu0 %v15130_v57  ;;  %8349 = vmatpush.bf16.msrb.mxu3 %v15150_v39  ;;  %v15055_v57 = vld [vmem:[#allocation10 + $0x228] sm:$0xf0]  ;;  %v7023_v39 = vpop.f32.mrf.mxu0  ;;  %v17954_v37 = vld [vmem:[#allocation10 + $0x52c] sm:$0xf0]  ;;  %v15325_v60 = vld [vmem:[#allocation10 + $0x418] sm:$0xf] }
 0x487   :  { %v17987_v39 = vld [vmem:[#allocation10 + $0x634] sm:$0xf0]  ;;  %v15446_v18 = vor.u32 %v17954_v37, %v15445_v3  ;;  %v15343_v3 = vld [vmem:[#allocation10 + $0x468] sm:$0xf0]  ;;  %v17983_v37 = vld [vmem:[#allocation10 + $0x61c] sm:$0xf] }
 0x488   :  { %8515 = vmatpush.bf16.msra.mxu1 %v15514_v17  ;;  %8401 = vmatpush.bf16.msra.mxu2 %v15154_v61  ;;  %v17973_v17 = vld [vmem:[#allocation10 + $0x5cc] sm:$0xf]  ;;  %v15054_v61 = vor.u32 %v17857_v49, %v15053_v34  ;;  %v17962_v34 = vld [vmem:[#allocation10 + $0x56c] sm:$0xf0]  ;;  %v17923_v54 = vld [vmem:[#allocation10 + $0x434] sm:$0xf0] }
 0x489   :  { %v15538_v14 = vor.u32 %v17973_v17, %v15535_v29  ;;  %v17947_v17 = vld [vmem:[#allocation10 + $0x4f4] sm:$0xf0]  ;;  %v17823_v44 = vld [vmem:[#allocation10 + $0x11c] sm:$0xf] }
 0x48a   :  { %8507 = vmatpush.bf16.msra.mxu0 %v15098_v56  ;;  %8350 = vmatpush.bf16.msrb.mxu3 %v15118_v19  ;;  %v6984_v56 = vpop.f32.mrf.mxu1  ;;  %v20172_v19 = vadd.f32 %v6865_v6, %v20161_v55  ;;  %v17955_v55 = vld [vmem:[#allocation10 + $0x534] sm:$0xf0]  ;;  %v15422_v6 = vor.u32 %v17947_v17, %v15421_v5  ;;  %v15381_v5 = vld [vmem:[#allocation10 + $0x490] sm:$0xf] }
 0x48b   :  { %v15454_v49 = vor.u32 %v17955_v55, %v15453_v31  ;;  %v15581_v29 = vld [vmem:[#allocation10 + $0x618] sm:$0xf]  ;;  %v17839_v31 = vld [vmem:[#allocation10 + $0x19c] sm:$0xf] }
 0x48c   :  { %8516 = vmatpush.bf16.msra.mxu1 %v15482_v20  ;;  %8402 = vmatpush.bf16.msra.mxu2 %v15122_v63  ;;  %v15058_v20 = vor.u32 %v17853_v58, %v15055_v57  ;;  %v15509_v63 = vld [vmem:[#allocation10 + $0x590] sm:$0xf]  ;;  %v6867_v58 = vpop.f32.mrf.mxu3  ;;  %v15582_v56 = vor.u32 %v17987_v39, %v15581_v29  ;;  %v15007_v55 = vld [vmem:[#allocation10 + $0x1b8] sm:$0xf0] }
 0x48d   :  { %v17938_v58 = vld [vmem:[#allocation10 + $0x4ac] sm:$0xf0]  ;;  %v17831_v39 = vld [vmem:[#allocation10 + $0x15c] sm:$0xf] }
 0x48e   :  { %8508 = vmatpush.bf16.msra.mxu0 %v15066_v10  ;;  %8351 = vmatpush.bf16.msrb.mxu3 %v15086_v26  ;;  %v15510_v10 = vor.u32 %v17970_v53, %v15509_v63  ;;  %v20177_v26 = vpop.f32.mrf.mxu0  ;;  %v15407_v63 = vld [vmem:[#allocation10 + $0x4e8] sm:$0xf0] }
 0x490   :  { %8517 = vmatpush.bf16.msra.mxu1 %v15450_v30  ;;  %8403 = vmatpush.bf16.msra.mxu2 %v15090_v35  ;;  %v17957_v30 = vld [vmem:[#allocation10 + $0x54c] sm:$0xf]  ;;  %v17918_v35 = vld [vmem:[#allocation10 + $0x414] sm:$0xf] }
 0x491   :  { %8509 = vmatmul.bf16.vlgmr.msra.gmra.mxu0 %v20082_v33  ;;  %v15474_v57 = vor.u32 %v17957_v30, %v15471_v22  ;;  %v15357_v22 = vld [vmem:[#allocation10 + $0x458] sm:$0xf] }
 0x492   :  { %8566 = vmatpush.bf16.msrb.mxu0 %v15550_v15  ;;  %8352 = vmatpush.bf16.msrb.mxu3 %v15054_v61  ;;  %v15354_v15 = vor.u32 %v17926_v47, %v15351_v38  ;;  %v6919_v61 = vpop.f32.mrf.mxu2  ;;  %v15413_v47 = vld [vmem:[#allocation10 + $0x4d0] sm:$0xf] }
 0x493   :  { %v17946_v38 = vld [vmem:[#allocation10 + $0x4ec] sm:$0xf0] }
 0x494   :  { %8518 = vmatpush.bf16.msra.mxu1 %v15418_v13  ;;  %8404 = vmatpush.bf16.msra.mxu2 %v15058_v20  ;;  %v15478_v13 = vor.u32 %v17962_v34, %v15477_v11  ;;  %v17847_v20 = vld [vmem:[#allocation10 + $0x1dc] sm:$0xf]  ;;  %v15414_v11 = vor.u32 %v17946_v38, %v15413_v47  ;;  %v17933_v34 = vld [vmem:[#allocation10 + $0x48c] sm:$0xf] }
 0x495   :  { %8353 = vmatmul.bf16.vlgmr.msrb.gmra.mxu3 %v20082_v33  ;;  %v15311_v47 = vld [vmem:[#allocation10 + $0x428] sm:$0xf0] }
 0x496   :  { %8567 = vmatpush.bf16.msrb.mxu0 %v15518_v45  ;;  %8410 = vmatpush.bf16.msra.mxu3 %v15538_v14  ;;  %v15322_v45 = vor.u32 %v17918_v35, %v15319_v2  ;;  %v15039_v14 = vld [vmem:[#allocation10 + $0x1f8] sm:$0xf0]  ;;  %v8239_v53 = vpop.f32.mrf.mxu0  ;;  %v15010_v2 = vor.u32 %v17839_v31, %v15007_v55  ;;  %v17922_v31 = vld [vmem:[#allocation10 + $0x42c] sm:$0xf0] }
 0x497   :  { %8405 = vmatmul.bf16.vlgmr.msra.gmra.mxu2 %v20082_v33  ;;  %v17815_v55 = vld [vmem:[#allocation10 + $0xdc] sm:$0xf] }
 0x498   :  { %8462 = vmatpush.bf16.msrb.mxu2 %v15542_v62  ;;  %8519 = vmatpush.bf16.msra.mxu1 %v15386_v25  ;;  %v17939_v62 = vld [vmem:[#allocation10 + $0x4b4] sm:$0xf0]  ;;  %v17941_v25 = vld [vmem:[#allocation10 + $0x4cc] sm:$0xf] }
 0x499   :  { %v15410_v30 = vor.u32 %v17941_v25, %v15407_v63  ;;  %v15346_v25 = vor.u32 %v17925_v12, %v15343_v3 }
 0x49a   :  { %8568 = vmatpush.bf16.msrb.mxu0 %v15486_v16  ;;  %8411 = vmatpush.bf16.msra.mxu3 %v15506_v4  ;;  %v15042_v16 = vor.u32 %v17847_v20, %v15039_v14  ;;  %v15390_v4 = vor.u32 %v17939_v62, %v15389_v1  ;;  %v6930_v35 = vpop.f32.mrf.mxu2  ;;  %v15349_v20 = vld [vmem:[#allocation10 + $0x450] sm:$0xf]  ;;  %v15326_v62 = vor.u32 %v17923_v54, %v15325_v60  ;;  %v17838_v60 = vld [vmem:[#allocation10 + $0x194] sm:$0xf] }
 0x49b   :  { %v20186_v17 = vadd.f32 %v6930_v35, %v5551_v46  ;;  %v17930_v14 = vld [vmem:[#allocation10 + $0x46c] sm:$0xf0]  ;;  %v14999_v54 = vld [vmem:[#allocation10 + $0x1b0] sm:$0xf0] }
 0x49c   :  { %8463 = vmatpush.bf16.msrb.mxu2 %v15510_v10  ;;  %8520 = vmatpush.bf16.msra.mxu1 %v15354_v15  ;;  %v6878_v10 = vpop.f32.mrf.mxu3  ;;  %v17931_v15 = vld [vmem:[#allocation10 + $0x474] sm:$0xf0]  ;;  %v15350_v53 = vor.u32 %v17930_v14, %v15349_v20  ;;  %v17830_v20 = vld [vmem:[#allocation10 + $0x154] sm:$0xf] }
 0x49d   :  { %v6879_v8 = vadd.f32 %v6878_v10, %v20042_v24  ;;  %v15358_v29 = vor.u32 %v17931_v15, %v15357_v22  ;;  %v15573_v10 = vld [vmem:[#allocation10 + $0x610] sm:$0xf]  ;;  %v17982_v15 = vld [vmem:[#allocation10 + $0x614] sm:$0xf] }
 0x49e   :  { %8569 = vmatpush.bf16.msrb.mxu0 %v15454_v49  ;;  %8412 = vmatpush.bf16.msra.mxu3 %v15474_v57  ;;  %v15375_v49 = vld [vmem:[#allocation10 + $0x4a8] sm:$0xf0]  ;;  %v14967_v14 = vld [vmem:[#allocation10 + $0x170] sm:$0xf0] }
 0x49f   :  { %v6892_v57 = vadd.f32 %v20132_v23, %v6879_v8  ;;  %v15378_v24 = vor.u32 %v17933_v34, %v15375_v49  ;;  %v8250_v23 = vpop.f32.mrf.mxu1  ;;  %v15575_v8 = vld [vmem:[#allocation10 + $0x630] sm:$0xf0] }
 0x4a0   :  { %8464 = vmatpush.bf16.msrb.mxu2 %v15478_v13  ;;  %8521 = vmatpush.bf16.msra.mxu1 %v15322_v45  ;;  %v14975_v13 = vld [vmem:[#allocation10 + $0x178] sm:$0xf0]  ;;  %v15382_v45 = vor.u32 %v17938_v58, %v15381_v5  ;;  %v20193_v1 = vadd.f32 %v8250_v23, %v20177_v26  ;;  %v15031_v34 = vld [vmem:[#allocation10 + $0x1f0] sm:$0xf0]  ;;  %v15037_v5 = vld [vmem:[#allocation10 + $0x1d8] sm:$0xf]  ;;  %v15002_v23 = vor.u32 %v17838_v60, %v14999_v54 }
 0x4a1   :  { %v6905_v61 = vadd.f32 %v20146_v50, %v6892_v57  ;;  %v14943_v50 = vld [vmem:[#allocation10 + $0x138] sm:$0xf0]  ;;  %v17851_v58 = vld [vmem:[#allocation10 + $0x1f4] sm:$0xf0]  ;;  %v15578_v57 = vor.u32 %v17982_v15, %v15575_v8  ;;  %v17806_v54 = vld [vmem:[#allocation10 + $0x94] sm:$0xf] }
 0x4a2   :  { %8570 = vmatpush.bf16.msrb.mxu0 %v15422_v6  ;;  %8413 = vmatpush.bf16.msra.mxu3 %v15442_v7  ;;  %v15583_v6 = vld [vmem:[#allocation10 + $0x638] sm:$0xf0]  ;;  %v6932_v38 = vpop.f32.mrf.mxu2 }
 0x4a3   :  { %8522 = vmatmul.bf16.vlgmr.msra.gmra.mxu1 %v20109_v41  ;;  %v20190_v7 = vadd.f32 %v20174_v0, %v6905_v61  ;;  %v15586_v63 = vor.u32 %v17983_v37, %v15583_v6  ;;  %v15317_v0 = vld [vmem:[#allocation10 + $0x410] sm:$0xf]  ;;  %v14911_v26 = vld [vmem:[#allocation10 + $0xf8] sm:$0xf0]  ;;  %v15005_v61 = vld [vmem:[#allocation10 + $0x198] sm:$0xf] }
 0x4a4   :  { %8586 = vmatpush.bf16.msrb.mxu1 %v15582_v56  ;;  %8465 = vmatpush.bf16.msrb.mxu2 %v15446_v18  ;;  %v14978_v56 = vor.u32 %v17831_v39, %v14975_v13  ;;  %v6880_v18 = vpop.f32.mrf.mxu3  ;;  %v15318_v46 = vor.u32 %v17922_v31, %v15317_v0  ;;  %v14914_v35 = vor.u32 %v17815_v55, %v14911_v26  ;;  %v14879_v39 = vld [vmem:[#allocation10 + $0xb8] sm:$0xf0]  ;;  %v14935_v0 = vld [vmem:[#allocation10 + $0x130] sm:$0xf0]  ;;  %v14941_v55 = vld [vmem:[#allocation10 + $0x118] sm:$0xf] }
 0x4a5   :  { %v17799_v37 = vld [vmem:[#allocation10 + $0x5c] sm:$0xf]  ;;  %v15709_v18 = vld [vmem:[#allocation13 + $0xe0] sm:$0xf]  ;;  %v17827_v26 = vld [vmem:[#allocation10 + $0x134] sm:$0xf0] }
 0x4a6   :  { %8571 = vmatpush.bf16.msrb.mxu0 %v15390_v4  ;;  %8414 = vmatpush.bf16.msra.mxu3 %v15410_v30  ;;  %v14946_v4 = vor.u32 %v17823_v44, %v14943_v50  ;;  %v17986_v30 = vld [vmem:[#allocation10 + $0x62c] sm:$0xf0]  ;;  %v14847_v6 = vld [vmem:[#allocation10 + $0x78] sm:$0xf0]  ;;  %v14973_v44 = vld [vmem:[#allocation10 + $0x158] sm:$0xf] }
 0x4a7   :  { %v8252_v49 = vpop.f32.mrf.mxu1  ;;  %v17835_v50 = vld [vmem:[#allocation10 + $0x174] sm:$0xf0] }
 0x4a8   :  { %8592 = vmatpush.bf16.msra.mxu1 %v15042_v16  ;;  %8466 = vmatpush.bf16.msrb.mxu2 %v15414_v11  ;;  %v17917_v16 = vld [vmem:[#allocation10 + $0x40c] sm:$0xf]  ;;  %v17846_v11 = vld [vmem:[#allocation10 + $0x1d4] sm:$0xf]  ;;  %v14974_v38 = vor.u32 %v17835_v50, %v14973_v44  ;;  %v14845_v44 = vld [vmem:[#allocation10 + $0x58] sm:$0xf] }
 0x4a9   :  { %v15314_v22 = vor.u32 %v17917_v16, %v15311_v47  ;;  %v15034_v13 = vor.u32 %v17846_v11, %v15031_v34  ;;  %v14970_v16 = vor.u32 %v17830_v20, %v14967_v14  ;;  %v17814_v11 = vld [vmem:[#allocation10 + $0xd4] sm:$0xf]  ;;  %v17803_v50 = vld [vmem:[#allocation10 + $0x74] sm:$0xf0] }
 0x4aa   :  { %8572 = vmatpush.bf16.msrb.mxu0 %v15358_v29  ;;  %8415 = vmatpush.bf16.msra.mxu3 %v15378_v24  ;;  %v17807_v29 = vld [vmem:[#allocation10 + $0x9c] sm:$0xf]  ;;  %v15038_v24 = vor.u32 %v17851_v58, %v15037_v5  ;;  %v20199_v3 = vpop.f32.mrf.mxu0  ;;  %v14903_v34 = vld [vmem:[#allocation10 + $0xf0] sm:$0xf0]  ;;  %v15677_v5 = vld [vmem:[#allocation13 + $0xa0] sm:$0xf] }
 0x4ab   :  { %v14882_v12 = vor.u32 %v17807_v29, %v14879_v39  ;;  %v18010_v29 = vld [vmem:[#allocation13 + $0xac] sm:$0xf0]  ;;  %v17798_v20 = vld [vmem:[#allocation10 + $0x54] sm:$0xf] }
 0x4ac   :  { %8593 = vmatpush.bf16.msra.mxu1 %v15010_v2  ;;  %8467 = vmatpush.bf16.msrb.mxu2 %v15382_v45  ;;  %v15574_v2 = vor.u32 %v17986_v30, %v15573_v10  ;;  %v17843_v45 = vld [vmem:[#allocation10 + $0x1b4] sm:$0xf0]  ;;  %v15693_v10 = vld [vmem:[#allocation13 + $0xc0] sm:$0xf]  ;;  %v14839_v14 = vld [vmem:[#allocation10 + $0x70] sm:$0xf0] }
 0x4ae   :  { %8573 = vmatpush.bf16.msrb.mxu0 %v15326_v62  ;;  %8416 = vmatpush.bf16.msra.mxu3 %v15346_v25  ;;  %v14850_v62 = vor.u32 %v17799_v37, %v14847_v6  ;;  %v17791_v25 = vld [vmem:[#allocation10 + $0x1c] sm:$0xf]  ;;  %v15661_v37 = vld [vmem:[#allocation13 + $0x80] sm:$0xf] }
 0x4b0   :  { %8594 = vmatpush.bf16.msra.mxu1 %v14978_v56  ;;  %8468 = vmatpush.bf16.msrb.mxu2 %v15350_v53  ;;  %v15006_v56 = vor.u32 %v17843_v45, %v15005_v61  ;;  %v18018_v53 = vld [vmem:[#allocation13 + $0xec] sm:$0xf0] }
 0x4b1   :  { %8574 = vmatmul.bf16.vlgmr.msrb.gmra.mxu0 %v20109_v41  ;;  %v15710_v47 = vor.u32 %v18018_v53, %v15709_v18  ;;  %v14877_v61 = vld [vmem:[#allocation10 + $0x98] sm:$0xf]  ;;  %v15645_v18 = vld [vmem:[#allocation13 + $0x60] sm:$0xf]  ;;  %v14842_v53 = vor.u32 %v17798_v20, %v14839_v14 }
 0x4b2   :  { %8638 = vmatpush.bf16.msra.mxu0 %v15586_v63  ;;  %8417 = vmatpush.bf16.msra.mxu3 %v15314_v22  ;;  %v14815_v63 = vld [vmem:[#allocation10 + $0x38] sm:$0xf0]  ;;  %v8304_v30 = vpop.f32.mrf.mxu0  ;;  %v18014_v22 = vld [vmem:[#allocation13 + $0xcc] sm:$0xf0]  ;;  %v15597_v14 = vld [vmem:[#allocation13] sm:$0xf] }
 0x4b3   :  { %15593 = vmatmul.msk.bf16.vlgmr.msrb.gmra.mxu1 %vm5186_vm9, %v20127_v42  ;;  %v14818_v31 = vor.u32 %v17791_v25, %v14815_v63  ;;  %v15694_v8 = vor.u32 %v18014_v22, %v15693_v10  ;;  %v17811_v45 = vld [vmem:[#allocation10 + $0xb4] sm:$0xf0]  ;;  %v15295_v10 = vld [vmem:[#allocation10 + $0x3f8] sm:$0xf0]  ;;  %v15629_v30 = vld [vmem:[#allocation13 + $0x40] sm:$0xf] }
 0x4b4   :  { %8595 = vmatpush.bf16.msra.mxu1 %v14946_v4  ;;  %8469 = vmatpush.bf16.msrb.mxu2 %v15318_v46  ;;  %v17822_v4 = vld [vmem:[#allocation10 + $0x114] sm:$0xf]  ;;  %v14942_v46 = vor.u32 %v17827_v26, %v14941_v55  ;;  %v6943_v49 = vpop.f32.mrf.mxu3  ;;  %v18002_v63 = vld [vmem:[#allocation13 + $0x6c] sm:$0xf0]  ;;  %v17911_v26 = vld [vmem:[#allocation10 + $0x3dc] sm:$0xf] }
 0x4b5   :  { %8418 = vmatmul.bf16.vlgmr.msra.gmra.mxu3 %v20109_v41  ;;  %v14938_v15 = vor.u32 %v17822_v4, %v14935_v0  ;;  %v20205_v58 = vadd.f32 %v6943_v49, %v20186_v17  ;;  %v15646_v4 = vor.u32 %v18002_v63, %v15645_v18  ;;  %v17795_v0 = vld [vmem:[#allocation10 + $0x34] sm:$0xf0]  ;;  %v17895_v18 = vld [vmem:[#allocation10 + $0x35c] sm:$0xf] }
 0x4b6   :  { %8482 = vmatpush.bf16.msrb.mxu3 %v15574_v2  ;;  %10256 = vmatpush.bf16.msrb.mxu0 %v15710_v47  ;;  %v17819_v2 = vld [vmem:[#allocation10 + $0xf4] sm:$0xf0]  ;;  %v14807_v47 = vld [vmem:[#allocation10 + $0x30] sm:$0xf0] }
 0x4b7   :  { %8470 = vmatmul.bf16.vlgmr.msrb.gmra.mxu2 %v20109_v41  ;;  %v17915_v55 = vld [vmem:[#allocation10 + $0x3f4] sm:$0xf0] }
 0x4b8   :  { %8596 = vmatpush.bf16.msra.mxu1 %v14914_v35  ;;  %8534 = vmatpush.bf16.msra.mxu2 %v15578_v57  ;;  %v14909_v35 = vld [vmem:[#allocation10 + $0xd8] sm:$0xf]  ;;  %v6995_v57 = vpop.f32.mrf.mxu2 }
 0x4b9   :  { %v20208_v39 = vadd.f32 %v6995_v57, %v20168_v27  ;;  %v14910_v60 = vor.u32 %v17819_v2, %v14909_v35  ;;  %v18006_v27 = vld [vmem:[#allocation13 + $0x8c] sm:$0xf0] }
 0x4ba   :  { %8488 = vmatpush.bf16.msra.mxu3 %v15034_v13  ;;  %10257 = vmatpush.bf16.msrb.mxu0 %v15694_v8  ;;  %v14906_v13 = vor.u32 %v17814_v11, %v14903_v34  ;;  %v15837_v8 = vld [vmem:[#allocation13 + $0x1e0] sm:$0xf]  ;;  %v17907_v57 = vld [vmem:[#allocation10 + $0x3b4] sm:$0xf0] }
 0x4bc   :  { %8540 = vmatpush.bf16.msrb.mxu2 %v15038_v24  ;;  %8597 = vmatpush.bf16.msra.mxu1 %v14882_v12  ;;  %v15678_v24 = vor.u32 %v18010_v29, %v15677_v5  ;;  %v14871_v12 = vld [vmem:[#allocation10 + $0xb0] sm:$0xf0]  ;;  %v20213_v17 = vpop.f32.mrf.mxu1  ;;  %v15261_v5 = vld [vmem:[#allocation10 + $0x398] sm:$0xf]  ;;  %v15298_v29 = vor.u32 %v17911_v26, %v15295_v10  ;;  %v15199_v26 = vld [vmem:[#allocation10 + $0x338] sm:$0xf0] }
 0x4bd   :  { %v14874_v6 = vor.u32 %v17806_v54, %v14871_v12  ;;  %v15263_v54 = vld [vmem:[#allocation10 + $0x3b8] sm:$0xf0] }
 0x4be   :  { %8489 = vmatpush.bf16.msra.mxu3 %v15002_v23  ;;  %10258 = vmatpush.bf16.msrb.mxu0 %v15678_v24  ;;  %v15662_v23 = vor.u32 %v18006_v27, %v15661_v37  ;;  %v15613_v24 = vld [vmem:[#allocation13 + $0x20] sm:$0xf] }
 0x4c0   :  { %8541 = vmatpush.bf16.msrb.mxu2 %v15006_v56  ;;  %8598 = vmatpush.bf16.msra.mxu1 %v14850_v62  ;;  %v14878_v56 = vor.u32 %v17811_v45, %v14877_v61  ;;  %v6945_v62 = vpop.f32.mrf.mxu3  ;;  %v6997_v25 = vpop.f32.mrf.mxu2  ;;  %v15821_v61 = vld [vmem:[#allocation13 + $0x1c0] sm:$0xf]  ;;  %v18046_v45 = vld [vmem:[#allocation13 + $0x1cc] sm:$0xf0] }
 0x4c1   :  { %15594 = vmatmul.msk.bf16.vlgmr.msra.gmra.mxu0 %vm5186_vm9, %v20127_v42  ;;  %v15822_v27 = vor.u32 %v18046_v45, %v15821_v61  ;;  %v17990_v62 = vld [vmem:[#allocation13 + $0xc] sm:$0xf0]  ;;  %v15231_v25 = vld [vmem:[#allocation10 + $0x378] sm:$0xf0] }
 0x4c2   :  { %8490 = vmatpush.bf16.msra.mxu3 %v14970_v16  ;;  %10259 = vmatpush.bf16.msrb.mxu0 %v15662_v23  ;;  %v17790_v16 = vld [vmem:[#allocation10 + $0x14] sm:$0xf]  ;;  %v15229_v23 = vld [vmem:[#allocation10 + $0x358] sm:$0xf]  ;;  %v15598_v63 = vor.u32 %v17990_v62, %v15597_v14  ;;  %v17871_v45 = vld [vmem:[#allocation10 + $0x29c] sm:$0xf] }
 0x4c3   :  { %v14810_v11 = vor.u32 %v17790_v16, %v14807_v47  ;;  %v18030_v61 = vld [vmem:[#allocation13 + $0x14c] sm:$0xf0]  ;;  %v15741_v62 = vld [vmem:[#allocation13 + $0x120] sm:$0xf] }
 0x4c4   :  { %8542 = vmatpush.bf16.msrb.mxu2 %v14974_v38  ;;  %8599 = vmatpush.bf16.msra.mxu1 %v14818_v31  ;;  %v14813_v38 = vld [vmem:[#allocation10 + $0x18] sm:$0xf]  ;;  %v8317_v22 = vpop.f32.mrf.mxu1 }
 0x4c5   :  { %15591 = vmatmul.msk.bf16.vlgmr.msrb.gmra.mxu3 %vm5186_vm9, %v20127_v42  ;;  %v15293_v31 = vld [vmem:[#allocation10 + $0x3d8] sm:$0xf]  ;;  %v14814_v35 = vor.u32 %v17795_v0, %v14813_v38  ;;  %v15789_v0 = vld [vmem:[#allocation13 + $0x180] sm:$0xf] }
 0x4c6   :  { %8491 = vmatpush.bf16.msra.mxu3 %v14938_v15  ;;  %10260 = vmatpush.bf16.msrb.mxu0 %v15646_v4  ;;  %v17998_v15 = vld [vmem:[#allocation13 + $0x4c] sm:$0xf0]  ;;  %v15294_v2 = vor.u32 %v17915_v55, %v15293_v31  ;;  %v15234_v4 = vor.u32 %v17895_v18, %v15231_v25  ;;  %v17887_v55 = vld [vmem:[#allocation10 + $0x31c] sm:$0xf] }
 0x4c7   :  { %8600 = vmatmul.bf16.vlgmr.msra.gmra.mxu1 %v20071_v52  ;;  %15592 = vmatmul.msk.bf16.vlgmr.msra.gmra.mxu2 %vm5186_vm9, %v20127_v42  ;;  %v14846_v42 = vor.u32 %v17803_v50, %v14845_v44  ;;  %v15630_v34 = vor.u32 %v17998_v15, %v15629_v30  ;;  %v15805_v44 = vld [vmem:[#allocation13 + $0x1a0] sm:$0xf]  ;;  %v15197_v38 = vld [vmem:[#allocation10 + $0x318] sm:$0xf] }
 0x4c8   :  { %8543 = vmatpush.bf16.msrb.mxu2 %v14942_v46  ;;  %v18050_v46 = vld [vmem:[#allocation13 + $0x1ec] sm:$0xf0] }
 0x4c9   :  { %v15838_v49 = vor.u32 %v18050_v46, %v15837_v8  ;;  %v18038_v31 = vld [vmem:[#allocation13 + $0x18c] sm:$0xf0]  ;;  %v15773_v46 = vld [vmem:[#allocation13 + $0x160] sm:$0xf] }
 0x4ca   :  { %8492 = vmatpush.bf16.msra.mxu3 %v14906_v13  ;;  %v17903_v13 = vld [vmem:[#allocation10 + $0x39c] sm:$0xf]  ;;  %10261 = vmatpush.bf16.msrb.mxu0 %v15630_v34  ;;  %v20217_v37 = vpop.f32.mrf.mxu0  ;;  %v15790_v10 = vor.u32 %v18038_v31, %v15789_v0  ;;  %v15165_v15 = vld [vmem:[#allocation10 + $0x2d8] sm:$0xf] }
 0x4cb   :  { %10269 = vmatpush.bf16.msrb.mxu1 %v15838_v49  ;;  %v15266_v20 = vor.u32 %v17903_v13, %v15263_v54  ;;  %v17883_v8 = vld [vmem:[#allocation10 + $0x2f4] sm:$0xf0]  ;;  %v17855_v31 = vld [vmem:[#allocation10 + $0x21c] sm:$0xf] }
 0x4cc   :  { %8544 = vmatpush.bf16.msrb.mxu2 %v14910_v60  ;;  %v17994_v60 = vld [vmem:[#allocation13 + $0x2c] sm:$0xf0]  ;;  %v20220_v50 = vpop.f32.mrf.mxu1  ;;  %v15166_v13 = vor.u32 %v17883_v8, %v15165_v15 }
 0x4cd   :  { %v15614_v12 = vor.u32 %v17994_v60, %v15613_v24  ;;  %v15133_v24 = vld [vmem:[#allocation10 + $0x298] sm:$0xf] }
 0x4ce   :  { %8493 = vmatpush.bf16.msra.mxu3 %v14874_v6  ;;  %v15262_v6 = vor.u32 %v17907_v57, %v15261_v5  ;;  %v17875_v54 = vld [vmem:[#allocation10 + $0x2b4] sm:$0xf0] }
 0x4cf   :  { %10270 = vmatpush.bf16.msrb.mxu1 %v15822_v27  ;;  %10262 = vmatpush.bf16.msrb.mxu0 %v15614_v12  ;;  %v15757_v12 = vld [vmem:[#allocation13 + $0x140] sm:$0xf]  ;;  %v15135_v27 = vld [vmem:[#allocation10 + $0x2b8] sm:$0xf0]  ;;  %v17867_v14 = vld [vmem:[#allocation10 + $0x274] sm:$0xf0] }
 0x4d0   :  { %8545 = vmatpush.bf16.msrb.mxu2 %v14878_v56  ;;  %v17899_v56 = vld [vmem:[#allocation10 + $0x374] sm:$0xf0] }
 0x4d1   :  { %v15230_v47 = vor.u32 %v17899_v56, %v15229_v23  ;;  %v15134_v56 = vor.u32 %v17875_v54, %v15133_v24  ;;  %v18082_v8 = vld [vmem:[#allocation13 + $0x2ec] sm:$0xf0]  ;;  %v17967_v24 = vld [vmem:[#allocation10 + $0x59c] sm:$0xf] }
 0x4d2   :  { %8494 = vmatpush.bf16.msra.mxu3 %v14842_v53  ;;  %v18042_v53 = vld [vmem:[#allocation13 + $0x1ac] sm:$0xf0]  ;;  %v8369_v30 = vpop.f32.mrf.mxu0 }
 0x4d3   :  { %v15806_v16 = vor.u32 %v18042_v53, %v15805_v44  ;;  %10263 = vmatpush.bf16.msrb.mxu0 %v15598_v63  ;;  %v18026_v44 = vld [vmem:[#allocation13 + $0x12c] sm:$0xf0]  ;;  %v17863_v63 = vld [vmem:[#allocation10 + $0x25c] sm:$0xf] }
 0x4d4   :  { %8546 = vmatpush.bf16.msrb.mxu2 %v14846_v42  ;;  %v17891_v42 = vld [vmem:[#allocation10 + $0x334] sm:$0xf0]  ;;  %v7008_v34 = vpop.f32.mrf.mxu3  ;;  %v8382_v49 = vpop.f32.mrf.mxu1  ;;  %v15103_v53 = vld [vmem:[#allocation10 + $0x278] sm:$0xf0] }
 0x4d5   :  { %10271 = vmatpush.bf16.msrb.mxu1 %v15806_v16  ;;  %v15198_v22 = vor.u32 %v17891_v42, %v15197_v38  ;;  %v20224_v57 = vadd.f32 %v7008_v34, %v20208_v39  ;;  %v15138_v39 = vor.u32 %v17871_v45, %v15135_v27  ;;  %v15742_v16 = vor.u32 %v18026_v44, %v15741_v62  ;;  %v17859_v42 = vld [vmem:[#allocation10 + $0x234] sm:$0xf0]  ;;  %v17975_v30 = vld [vmem:[#allocation10 + $0x5dc] sm:$0xf]  ;;  %v15949_v45 = vld [vmem:[#allocation13 + $0x2c0] sm:$0xf] }
 0x4d6   :  { %8495 = vmatpush.bf16.msra.mxu3 %v14810_v11  ;;  %v18034_v11 = vld [vmem:[#allocation13 + $0x16c] sm:$0xf0]  ;;  %v15106_v0 = vor.u32 %v17863_v63, %v15103_v53  ;;  %v15933_v62 = vld [vmem:[#allocation13 + $0x2a0] sm:$0xf] }
 0x4d7   :  { %v15774_v5 = vor.u32 %v18034_v11, %v15773_v46  ;;  %v20230_v11 = vld [vmem:[#allocation12] sm:$0xff]  ;;  %v18078_v27 = vld [vmem:[#allocation13 + $0x2cc] sm:$0xf0] }
 0x4d8   :  { %8547 = vmatpush.bf16.msrb.mxu2 %v14814_v35  ;;  %v17879_v35 = vld [vmem:[#allocation10 + $0x2dc] sm:$0xf]  ;;  %v18074_v44 = vld [vmem:[#allocation13 + $0x2ac] sm:$0xf0] }
 0x4d9   :  { %8496 = vmatmul.bf16.vlgmr.msra.gmra.mxu3 %v20071_v52  ;;  %10272 = vmatpush.bf16.msrb.mxu1 %v15790_v10  ;;  %v15071_v10 = vld [vmem:[#allocation10 + $0x238] sm:$0xf0] }
 0x4da   :  { %8553 = vmatpush.bf16.msrb.mxu3 %v15294_v2  ;;  %v15167_v2 = vld [vmem:[#allocation10 + $0x2f8] sm:$0xf0]  ;;  %v20226_v23 = vpop.f32.mrf.mxu0 }
 0x4db   :  { %8548 = vmatmul.bf16.vlgmr.msrb.gmra.mxu2 %v20071_v52  ;;  %v15202_v52 = vor.u32 %v17887_v55, %v15199_v26  ;;  %v15170_v60 = vor.u32 %v17879_v35, %v15167_v2  ;;  %v15725_v55 = vld [vmem:[#allocation13 + $0x100] sm:$0xf]  ;;  %v18022_v26 = vld [vmem:[#allocation13 + $0x10c] sm:$0xf0]  ;;  %v15074_v35 = vor.u32 %v17855_v31, %v15071_v10 }
 0x4dc   :  { %8605 = vmatpush.bf16.msra.mxu2 %v15298_v29  ;;  %v8263_v29 = vpop.f32.mrf.mxu2  ;;  %v7010_v18 = vpop.f32.mrf.mxu3  ;;  %v15726_v15 = vor.u32 %v18022_v26, %v15725_v55  ;;  %v16221_v26 = vld [vmem:[#allocation13 + $0x4e0] sm:$0xf]  ;;  %v18146_v10 = vld [vmem:[#allocation13 + $0x4ec] sm:$0xf0] }
 0x4dd   :  { %10273 = vmatpush.bf16.msrb.mxu1 %v15774_v5  ;;  %v8264_v49 = vadd.f32 %v8263_v29, %v20193_v1  ;;  %v17959_v29 = vld [vmem:[#allocation10 + $0x55c] sm:$0xf] }
 0x4de   :  { %8554 = vmatpush.bf16.msrb.mxu3 %v15262_v6  ;;  %v15758_v6 = vor.u32 %v18030_v61, %v15757_v12  ;;  %v8654_v61 = vperm.slane %v20230_v11, 0 }
 0x4e0   :  { %8606 = vmatpush.bf16.msra.mxu2 %v15266_v20  ;;  %v15101_v20 = vld [vmem:[#allocation10 + $0x258] sm:$0xf]  ;;  %v20228_v25 = vpop.f32.mrf.mxu1 }
 0x4e1   :  { %10274 = vmatpush.bf16.msrb.mxu1 %v15758_v6  ;;  %v15102_v38 = vor.u32 %v17867_v14, %v15101_v20  ;;  %v15487_v20 = vld [vmem:[#allocation10 + $0x578] sm:$0xf0] }
 0x4e2   :  { %8555 = vmatpush.bf16.msrb.mxu3 %v15230_v47  ;;  %v8434_v46 = vpop.f32.mrf.mxu0 }
 0x4e3   :  { %v18066_v46 = vld [vmem:[#allocation13 + $0x26c] sm:$0xf0] }
 0x4e4   :  { %8607 = vmatpush.bf16.msra.mxu2 %v15234_v4  ;;  %v8265_v47 = vpop.f32.mrf.mxu2  ;;  %v15069_v4 = vld [vmem:[#allocation10 + $0x218] sm:$0xf]  ;;  %v8276_v5 = vpop.f32.mrf.mxu3 }
 0x4e5   :  { %10275 = vmatpush.bf16.msrb.mxu1 %v15742_v16  ;;  %v15070_v34 = vor.u32 %v17859_v42, %v15069_v4  ;;  %v8277_v12 = vadd.f32 %v8276_v5, %v8264_v49  ;;  %v17951_v16 = vld [vmem:[#allocation10 + $0x51c] sm:$0xf]  ;;  %v15917_v42 = vld [vmem:[#allocation13 + $0x280] sm:$0xf] }
 0x4e6   :  { %8556 = vmatpush.bf16.msrb.mxu3 %v15198_v22  ;;  %v15551_v22 = vld [vmem:[#allocation10 + $0x5f8] sm:$0xf0]  ;;  %v16205_v49 = vld [vmem:[#allocation13 + $0x4c0] sm:$0xf] }
 0x4e7   :  { %v15554_v2 = vor.u32 %v17975_v30, %v15551_v22  ;;  %v15455_v47 = vld [vmem:[#allocation10 + $0x538] sm:$0xf0] }
 0x4e8   :  { %8608 = vmatpush.bf16.msra.mxu2 %v15202_v52  ;;  %v15965_v52 = vld [vmem:[#allocation13 + $0x2e0] sm:$0xf]  ;;  %v15458_v30 = vor.u32 %v17951_v16, %v15455_v47  ;;  %v17943_v22 = vld [vmem:[#allocation10 + $0x4dc] sm:$0xf] }
 0x4e9   :  { %10276 = vmatpush.bf16.msrb.mxu1 %v15726_v15  ;;  %v15966_v54 = vor.u32 %v18082_v8, %v15965_v52  ;;  %v15423_v15 = vld [vmem:[#allocation10 + $0x4f8] sm:$0xf0]  ;;  %v15901_v8 = vld [vmem:[#allocation13 + $0x260] sm:$0xf] }
 0x4ea   :  { %8557 = vmatpush.bf16.msrb.mxu3 %v15166_v13  ;;  %v8395_v13 = vpop.f32.mrf.mxu1  ;;  %v16173_v47 = vld [vmem:[#allocation13 + $0x480] sm:$0xf] }
 0x4ec   :  { %8609 = vmatpush.bf16.msra.mxu2 %v15170_v60  ;;  %v15519_v60 = vld [vmem:[#allocation10 + $0x5b8] sm:$0xf0]  ;;  %v20234_v6 = vpop.f32.mrf.mxu2  ;;  %v8278_v53 = vpop.f32.mrf.mxu3 }
 0x4ed   :  { %v15522_v1 = vor.u32 %v17967_v24, %v15519_v60  ;;  %v17935_v24 = vld [vmem:[#allocation10 + $0x49c] sm:$0xf]  ;;  %v18058_v53 = vld [vmem:[#allocation13 + $0x22c] sm:$0xf0] }
 0x4ee   :  { %8558 = vmatpush.bf16.msrb.mxu3 %v15134_v56  ;;  %v8644_v56 = vadd.f32 %v8277_v12, %v20098_v28  ;;  %v20238_v18 = vpop.f32.mrf.mxu0  ;;  %v15490_v28 = vor.u32 %v17959_v29, %v15487_v20  ;;  %v15391_v60 = vld [vmem:[#allocation10 + $0x4b8] sm:$0xf0] }
 0x4ef   :  { %v15394_v20 = vor.u32 %v17935_v24, %v15391_v60  ;;  %v18110_v24 = vld [vmem:[#allocation13 + $0x3cc] sm:$0xf0] }
 0x4f0   :  { %8610 = vmatpush.bf16.msra.mxu2 %v15138_v39  ;;  %v15950_v39 = vor.u32 %v18078_v27, %v15949_v45  ;;  %v8670_v14 = vadd.f32 %v8654_v61, %v8644_v56  ;;  %v15885_v61 = vld [vmem:[#allocation13 + $0x240] sm:$0xf]  ;;  %v18062_v45 = vld [vmem:[#allocation13 + $0x24c] sm:$0xf0] }
 0x4f1   :  { %v16189_v56 = vld [vmem:[#allocation13 + $0x4a0] sm:$0xf] }
 0x4f2   :  { %8559 = vmatpush.bf16.msrb.mxu3 %v15102_v38  ;;  %vm8678_vm10 = vcmp.ge.f32.partialorder %v8670_v14, 0.0  ;;  %v8686_v63 = vmul.f32 0.01, %v8670_v14  ;;  %v15934_v38 = vor.u32 %v18074_v44, %v15933_v62  ;;  %v15359_v62 = vld [vmem:[#allocation10 + $0x478] sm:$0xf0]  ;;  %v15886_v44 = vor.u32 %v18062_v45, %v15885_v61 }
 0x4f3   :  { %v18126_v61 = vld [vmem:[#allocation13 + $0x44c] sm:$0xf0]  ;;  %v16349_v45 = vld [vmem:[#allocation13 + $0x5e0] sm:$0xf] }
 0x4f4   :  { %8611 = vmatpush.bf16.msra.mxu2 %v15106_v0  ;;  %v8694_v4 = vsel %vm8678_vm10, %v8670_v14, %v8686_v63  ;;  %v18070_v0 = vld [vmem:[#allocation13 + $0x28c] sm:$0xf0]  ;;  %v8330_v55 = vpop.f32.mrf.mxu2  ;;  %v17927_v14 = vld [vmem:[#allocation10 + $0x45c] sm:$0xf] }
 0x4f5   :  { %v20241_v31 = vpack.c.bf16 %v8694_v4, %v8694_v4  ;;  %v15918_v52 = vor.u32 %v18070_v0, %v15917_v42  ;;  %v15362_v42 = vor.u32 %v17927_v14, %v15359_v62  ;;  %v18106_v14 = vld [vmem:[#allocation13 + $0x3ac] sm:$0xf0]  ;;  %v16125_v62 = vld [vmem:[#allocation13 + $0x420] sm:$0xf] }
 0x4f6   :  { %8560 = vmatpush.bf16.msrb.mxu3 %v15070_v34  ;;  %v8447_v34 = vpop.f32.mrf.mxu0 }
 0x4f7   :  { %10264 = vmatmul.bf16.vlgmr.msrb.gmra.mxu0 %v20241_v31 }
 0x4f8   :  { %8612 = vmatpush.bf16.msra.mxu2 %v15074_v35  ;;  %v18142_v35 = vld [vmem:[#allocation13 + $0x4cc] sm:$0xf0]  ;;  %v8289_v13 = vpop.f32.mrf.mxu3 }
 0x4f9   :  { %8561 = vmatmul.bf16.vlgmr.msrb.gmra.mxu3 %v20082_v33  ;;  %v16206_v5 = vor.u32 %v18142_v35, %v16205_v49  ;;  %v8303_v12 = vadd.f32 %v20199_v3, %v8289_v13  ;;  %v8655_v3 = vperm.slane %v20230_v11, 1  ;;  %v16077_v13 = vld [vmem:[#allocation13 + $0x3c0] sm:$0xf] }
 0x4fa   :  { %8618 = vmatpush.bf16.msra.mxu3 %v15554_v2  ;;  %v15426_v2 = vor.u32 %v17943_v22, %v15423_v15  ;;  %v18114_v22 = vld [vmem:[#allocation13 + $0x3ec] sm:$0xf0]  ;;  %v15853_v15 = vld [vmem:[#allocation13 + $0x200] sm:$0xf] }
 0x4fb   :  { %8613 = vmatmul.bf16.vlgmr.msra.gmra.mxu2 %v20082_v33  ;;  %v16222_v33 = vor.u32 %v18146_v10, %v16221_v26  ;;  %v8316_v29 = vadd.f32 %v20213_v17, %v8303_v12  ;;  %v17919_v26 = vld [vmem:[#allocation10 + $0x41c] sm:$0xf]  ;;  %v16141_v12 = vld [vmem:[#allocation13 + $0x440] sm:$0xf] }
 0x4fc   :  { %10282 = vmatpush.bf16.msrb.mxu2 %v15966_v54  ;;  %v15902_v54 = vor.u32 %v18066_v46, %v15901_v8  ;;  %v20245_v27 = vpop.f32.mrf.mxu2  ;;  %v15327_v10 = vld [vmem:[#allocation10 + $0x438] sm:$0xf0]  ;;  %v18054_v8 = vld [vmem:[#allocation13 + $0x20c] sm:$0xf0]  ;;  %v16157_v46 = vld [vmem:[#allocation13 + $0x460] sm:$0xf] }
 0x4fd   :  { %10308 = vmatpush.bf16.msra.mxu0 %v16222_v33  ;;  %v8329_v63 = vadd.f32 %v20234_v6, %v8316_v29  ;;  %v16093_v33 = vld [vmem:[#allocation13 + $0x3e0] sm:$0xf]  ;;  %v15330_v34 = vor.u32 %v17919_v26, %v15327_v10  ;;  %v16078_v29 = vor.u32 %v18110_v24, %v16077_v13 }
 0x4fe   :  { %8619 = vmatpush.bf16.msra.mxu3 %v15522_v1  ;;  %v18138_v1 = vld [vmem:[#allocation13 + $0x4ac] sm:$0xf0]  ;;  %v16094_v35 = vor.u32 %v18114_v22, %v16093_v33  ;;  %v15711_v33 = vld [vmem:[#allocation13 + $0xf0] sm:$0xf0]  ;;  %v16029_v22 = vld [vmem:[#allocation13 + $0x360] sm:$0xf] }
 0x4ff   :  { %v8645_v4 = vadd.f32 %v8329_v63, %v20119_v32  ;;  %v18130_v32 = vld [vmem:[#allocation13 + $0x46c] sm:$0xf0]  ;;  %v16333_v63 = vld [vmem:[#allocation13 + $0x5c0] sm:$0xf] }
 0x500   :  { %10283 = vmatpush.bf16.msrb.mxu2 %v15950_v39  ;;  %v16190_v39 = vor.u32 %v18138_v1, %v16189_v56  ;;  %v8458_v16 = vpop.f32.mrf.mxu1  ;;  %v8291_v55 = vpop.f32.mrf.mxu3  ;;  %v16158_v49 = vor.u32 %v18130_v32, %v16157_v46  ;;  %v16142_v56 = vor.u32 %v18126_v61, %v16141_v12  ;;  %v18178_v1 = vld [vmem:[#allocation13 + $0x5ec] sm:$0xf0]  ;;  %v6749_v61 = vadd.f32 %v20074_v59, %v20138_v51 }
 0x501   :  { %10309 = vmatpush.bf16.msra.mxu0 %v16206_v5  ;;  %v20252_v17 = vadd.f32 %v8458_v16, %v20238_v18  ;;  %v15854_v5 = vor.u32 %v18054_v8, %v15853_v15  ;;  %v16317_v55 = vld [vmem:[#allocation13 + $0x5a0] sm:$0xf]  ;;  %v18098_v15 = vld [vmem:[#allocation13 + $0x36c] sm:$0xf0] }
 0x502   :  { %8620 = vmatpush.bf16.msra.mxu3 %v15490_v28  ;;  %v15869_v28 = vld [vmem:[#allocation13 + $0x220] sm:$0xf]  ;;  %v18166_v46 = vld [vmem:[#allocation13 + $0x58c] sm:$0xf0]  ;;  %v6762_v59 = vadd.f32 %v20077_v48, %v6749_v61  ;;  %v15839_v61 = vld [vmem:[#allocation13 + $0x1f0] sm:$0xf0] }
 0x503   :  { %v15870_v6 = vor.u32 %v18058_v53, %v15869_v28  ;;  %v18174_v53 = vld [vmem:[#allocation13 + $0x5cc] sm:$0xf0]  ;;  %v16301_v8 = vld [vmem:[#allocation13 + $0x580] sm:$0xf] }
 0x504   :  { %10284 = vmatpush.bf16.msrb.mxu2 %v15934_v38  ;;  %v18134_v38 = vld [vmem:[#allocation13 + $0x48c] sm:$0xf0] }
 0x505   :  { %10310 = vmatpush.bf16.msra.mxu0 %v16190_v39  ;;  %v16174_v0 = vor.u32 %v18134_v38, %v16173_v47  ;;  %v16061_v39 = vld [vmem:[#allocation13 + $0x3a0] sm:$0xf]  ;;  %v16334_v47 = vor.u32 %v18174_v53, %v16333_v63  ;;  %v18162_v12 = vld [vmem:[#allocation13 + $0x56c] sm:$0xf0] }
 0x506   :  { %8621 = vmatpush.bf16.msra.mxu3 %v15458_v30  ;;  %v8671_v30 = vadd.f32 %v8655_v3, %v8645_v4  ;;  %v16062_v16 = vor.u32 %v18106_v14, %v16061_v39  ;;  %v16045_v38 = vld [vmem:[#allocation13 + $0x380] sm:$0xf]  ;;  %v18102_v4 = vld [vmem:[#allocation13 + $0x38c] sm:$0xf0]  ;;  %v15679_v39 = vld [vmem:[#allocation13 + $0xb0] sm:$0xf0] }
 0x507   :  { %v16046_v10 = vor.u32 %v18102_v4, %v16045_v38  ;;  %v18158_v53 = vld [vmem:[#allocation13 + $0x54c] sm:$0xf0]  ;;  %v18004_v38 = vld [vmem:[#allocation13 + $0x84] sm:$0xf] }
 0x508   :  { %10285 = vmatpush.bf16.msrb.mxu2 %v15918_v52  ;;  %v8343_v52 = vpop.f32.mrf.mxu2  ;;  %vm8679_vm11 = vcmp.ge.f32.partialorder %v8671_v30, 0.0  ;;  %v8687_v18 = vmul.f32 0.01, %v8671_v30  ;;  %v8460_v60 = vpop.f32.mrf.mxu1  ;;  %v18154_v48 = vld [vmem:[#allocation13 + $0x52c] sm:$0xf0] }
 0x509   :  { %10311 = vmatpush.bf16.msra.mxu0 %v16174_v0  ;;  %v18118_v0 = vld [vmem:[#allocation13 + $0x40c] sm:$0xf0]  ;;  %v16285_v60 = vld [vmem:[#allocation13 + $0x560] sm:$0xf] }
 0x50a   :  { %8622 = vmatpush.bf16.msra.mxu3 %v15426_v2  ;;  %v8695_v2 = vsel %vm8679_vm11, %v8671_v30, %v8687_v18  ;;  %v18016_v30 = vld [vmem:[#allocation13 + $0xe4] sm:$0xf]  ;;  %v16302_v18 = vor.u32 %v18166_v46, %v16301_v8  ;;  %v16237_v46 = vld [vmem:[#allocation13 + $0x500] sm:$0xf] }
 0x50b   :  { %v15714_v52 = vor.u32 %v18016_v30, %v15711_v33  ;;  %v18000_v33 = vld [vmem:[#allocation13 + $0x64] sm:$0xf] }
 0x50c   :  { %10286 = vmatpush.bf16.msrb.mxu2 %v15902_v54  ;;  %v20254_v54 = vpack.c.bf16 %v8695_v2, %v8695_v2  ;;  %v16013_v2 = vld [vmem:[#allocation13 + $0x340] sm:$0xf] }
 0x50d   :  { %10312 = vmatpush.bf16.msra.mxu0 %v16158_v49  ;;  %v16030_v49 = vor.u32 %v18098_v15, %v16029_v22  ;;  %v15647_v22 = vld [vmem:[#allocation13 + $0x70] sm:$0xf0] }
 0x50e   :  { %8623 = vmatpush.bf16.msra.mxu3 %v15394_v20  ;;  %10277 = vmatmul.bf16.vlgmr.msrb.gmra.mxu1 %v20254_v54  ;;  %v16350_v20 = vor.u32 %v18178_v1, %v16349_v45  ;;  %v20258_v3 = vpop.f32.mrf.mxu0  ;;  %v16286_v1 = vor.u32 %v18162_v12, %v16285_v60  ;;  %v15631_v60 = vld [vmem:[#allocation13 + $0x50] sm:$0xf0]  ;;  %v18048_v12 = vld [vmem:[#allocation13 + $0x1e4] sm:$0xf] }
 0x510   :  { %10287 = vmatpush.bf16.msrb.mxu2 %v15886_v44  ;;  %10321 = vmatpush.bf16.msra.mxu1 %v16350_v20  ;;  %v18122_v44 = vld [vmem:[#allocation13 + $0x42c] sm:$0xf0] }
 0x511   :  { %10313 = vmatpush.bf16.msra.mxu0 %v16142_v56  ;;  %v16126_v28 = vor.u32 %v18122_v44, %v16125_v62  ;;  %v15997_v62 = vld [vmem:[#allocation13 + $0x320] sm:$0xf]  ;;  %v18090_v44 = vld [vmem:[#allocation13 + $0x32c] sm:$0xf0] }
 0x512   :  { %8624 = vmatpush.bf16.msra.mxu3 %v15362_v42  ;;  %v16109_v42 = vld [vmem:[#allocation13 + $0x400] sm:$0xf]  ;;  %v15998_v4 = vor.u32 %v18090_v44, %v15997_v62  ;;  %v15615_v44 = vld [vmem:[#allocation13 + $0x30] sm:$0xf0] }
 0x513   :  { %v16110_v26 = vor.u32 %v18118_v0, %v16109_v42  ;;  %v15981_v0 = vld [vmem:[#allocation13 + $0x300] sm:$0xf] }
 0x514   :  { %10288 = vmatpush.bf16.msrb.mxu2 %v15870_v6  ;;  %10322 = vmatpush.bf16.msra.mxu1 %v16334_v47 }
 0x515   :  { %10314 = vmatpush.bf16.msra.mxu0 %v16126_v28  ;;  %v16269_v28 = vld [vmem:[#allocation13 + $0x540] sm:$0xf] }
 0x516   :  { %8625 = vmatpush.bf16.msra.mxu3 %v15330_v34  ;;  %v8512_v32 = vpop.f32.mrf.mxu0  ;;  %v18012_v34 = vld [vmem:[#allocation13 + $0xc4] sm:$0xf]  ;;  %v16270_v47 = vor.u32 %v18158_v53, %v16269_v28  ;;  %v15823_v28 = vld [vmem:[#allocation13 + $0x1d0] sm:$0xf0] }
 0x517   :  { %v18150_v32 = vld [vmem:[#allocation13 + $0x50c] sm:$0xf0] }
 0x518   :  { %10289 = vmatpush.bf16.msrb.mxu2 %v15854_v5  ;;  %v18094_v5 = vld [vmem:[#allocation13 + $0x34c] sm:$0xf0]  ;;  %v8354_v24 = vpop.f32.mrf.mxu3 }
 0x519   :  { %8626 = vmatmul.bf16.vlgmr.msra.gmra.mxu3 %v20109_v41  ;;  %v18170_v41 = vld [vmem:[#allocation13 + $0x5ac] sm:$0xf0]  ;;  %10315 = vmatpush.bf16.msra.mxu0 %v16110_v26  ;;  %v8355_v45 = vadd.f32 %v8354_v24, %v20245_v27  ;;  %v16014_v20 = vor.u32 %v18094_v5, %v16013_v2  ;;  %v8656_v27 = vperm.slane %v20230_v11, 2  ;;  %v17996_v5 = vld [vmem:[#allocation13 + $0x44] sm:$0xf] }
 0x51a   :  { %10295 = vmatpush.bf16.msrb.mxu3 %v16094_v35  ;;  %v16318_v6 = vor.u32 %v18170_v41, %v16317_v55  ;;  %v15695_v35 = vld [vmem:[#allocation13 + $0xd0] sm:$0xf0]  ;;  %v20263_v56 = vpop.f32.mrf.mxu2  ;;  %v18086_v55 = vld [vmem:[#allocation13 + $0x30c] sm:$0xf0] }
 0x51b   :  { %v15698_v13 = vor.u32 %v18012_v34, %v15695_v35  ;;  %v8368_v14 = vadd.f32 %v20217_v37, %v8355_v45  ;;  %v15663_v37 = vld [vmem:[#allocation13 + $0x90] sm:$0xf0]  ;;  %v15982_v15 = vor.u32 %v18086_v55, %v15981_v0  ;;  %v16477_v35 = vld [vmem:[#allocation13 + $0x6e0] sm:$0xf]  ;;  %v18210_v2 = vld [vmem:[#allocation13 + $0x6ec] sm:$0xf0]  ;;  %v15634_v45 = vor.u32 %v17996_v5, %v15631_v60 }
 0x51c   :  { %10323 = vmatpush.bf16.msra.mxu1 %v16318_v6  ;;  %v15666_v26 = vor.u32 %v18004_v38, %v15663_v37  ;;  %v16478_v24 = vor.u32 %v18210_v2, %v16477_v35  ;;  %v17988_v38 = vld [vmem:[#allocation13 + $0x4] sm:$0xf]  ;;  %v15599_v37 = vld [vmem:[#allocation13 + $0x10] sm:$0xf0]  ;;  %v6814_v2 = vadd.f32 %v20091_v40, %v20158_v36 }
 0x51d   :  { %10360 = vmatpush.bf16.msrb.mxu0 %v15714_v52  ;;  %v8381_v51 = vadd.f32 %v20220_v50, %v8368_v14  ;;  %v15650_v52 = vor.u32 %v18000_v33, %v15647_v22  ;;  %v15807_v0 = vld [vmem:[#allocation13 + $0x1b0] sm:$0xf0]  ;;  %v15602_v55 = vor.u32 %v17988_v38, %v15599_v37  ;;  %v8407_v33 = vadd.f32 %v20263_v56, %v20228_v25  ;;  %v18242_v37 = vld [vmem:[#allocation13 + $0x7ec] sm:$0xf0] }
 0x51e   :  { %10296 = vmatpush.bf16.msrb.mxu3 %v16078_v29  ;;  %v18008_v29 = vld [vmem:[#allocation13 + $0xa4] sm:$0xf]  ;;  %10334 = vmatpush.bf16.msra.mxu2 %v16478_v24  ;;  %v15775_v35 = vld [vmem:[#allocation13 + $0x170] sm:$0xf0]  ;;  %v8657_v24 = vperm.slane %v20230_v11, 3 }
 0x51f   :  { %v15682_v63 = vor.u32 %v18008_v29, %v15679_v39  ;;  %v8646_v42 = vadd.f32 %v8381_v51, %v6762_v59  ;;  %v16461_v29 = vld [vmem:[#allocation13 + $0x6c0] sm:$0xf]  ;;  %v17992_v39 = vld [vmem:[#allocation13 + $0x24] sm:$0xf] }
 0x520   :  { %10324 = vmatpush.bf16.msra.mxu1 %v16302_v18  ;;  %v8356_v41 = vpop.f32.mrf.mxu3  ;;  %v15618_v53 = vor.u32 %v17992_v39, %v15615_v44 }
 0x521   :  { %10361 = vmatpush.bf16.msrb.mxu0 %v15698_v13  ;;  %v8672_v6 = vadd.f32 %v8656_v27, %v8646_v42  ;;  %v16445_v27 = vld [vmem:[#allocation13 + $0x6a0] sm:$0xf]  ;;  %v18040_v42 = vld [vmem:[#allocation13 + $0x1a4] sm:$0xf] }
 0x522   :  { %10297 = vmatpush.bf16.msrb.mxu3 %v16062_v16  ;;  %v20269_v16 = vpop.f32.mrf.mxu1  ;;  %v8408_v50 = vpop.f32.mrf.mxu2 }
 0x523   :  { %vm8680_vm12 = vcmp.ge.f32.partialorder %v8672_v6, 0.0  ;;  %v8688_v8 = vmul.f32 0.01, %v8672_v6 }
 0x524   :  { %10325 = vmatpush.bf16.msra.mxu1 %v16286_v1  ;;  %v15842_v1 = vor.u32 %v18048_v12, %v15839_v61  ;;  %v16397_v12 = vld [vmem:[#allocation13 + $0x640] sm:$0xf]  ;;  %v18190_v61 = vld [vmem:[#allocation13 + $0x64c] sm:$0xf0] }
 0x525   :  { %10362 = vmatpush.bf16.msrb.mxu0 %v15682_v63  ;;  %v8696_v34 = vsel %vm8680_vm12, %v8672_v6, %v8688_v8  ;;  %v18044_v63 = vld [vmem:[#allocation13 + $0x1c4] sm:$0xf] }
 0x526   :  { %10298 = vmatpush.bf16.msrb.mxu3 %v16046_v10  ;;  %v16253_v10 = vld [vmem:[#allocation13 + $0x520] sm:$0xf]  ;;  %v20271_v13 = vpack.c.bf16 %v8696_v34, %v8696_v34  ;;  %v15826_v59 = vor.u32 %v18044_v63, %v15823_v28  ;;  %v18036_v6 = vld [vmem:[#allocation13 + $0x184] sm:$0xf]  ;;  %v18186_v63 = vld [vmem:[#allocation13 + $0x62c] sm:$0xf0] }
 0x527   :  { %v16254_v30 = vor.u32 %v18154_v48, %v16253_v10  ;;  %v16429_v10 = vld [vmem:[#allocation13 + $0x680] sm:$0xf]  ;;  %v18198_v48 = vld [vmem:[#allocation13 + $0x68c] sm:$0xf0]  ;;  %v18032_v34 = vld [vmem:[#allocation13 + $0x164] sm:$0xf] }
 0x528   :  { %10326 = vmatpush.bf16.msra.mxu1 %v16270_v47  ;;  %10290 = vmatmul.bf16.vlgmr.msrb.gmra.mxu2 %v20271_v13  ;;  %v18202_v47 = vld [vmem:[#allocation13 + $0x6ac] sm:$0xf0]  ;;  %v16430_v50 = vor.u32 %v18198_v48, %v16429_v10  ;;  %v15778_v25 = vor.u32 %v18032_v34, %v15775_v35  ;;  %v18024_v28 = vld [vmem:[#allocation13 + $0x124] sm:$0xf]  ;;  %v15727_v48 = vld [vmem:[#allocation13 + $0x110] sm:$0xf0] }
 0x529   :  { %10363 = vmatpush.bf16.msrb.mxu0 %v15666_v26  ;;  %v15810_v26 = vor.u32 %v18040_v42, %v15807_v0  ;;  %v8658_v34 = vperm.slane %v20230_v11, 4 }
 0x52a   :  { %10299 = vmatpush.bf16.msrb.mxu3 %v16030_v49  ;;  %v8525_v18 = vpop.f32.mrf.mxu1  ;;  %v16238_v49 = vor.u32 %v18150_v32, %v16237_v46  ;;  %v16413_v32 = vld [vmem:[#allocation13 + $0x660] sm:$0xf] }
 0x52b   :  { %v18194_v18 = vld [vmem:[#allocation13 + $0x66c] sm:$0xf0] }
 0x52c   :  { %10327 = vmatpush.bf16.msra.mxu1 %v16254_v30  ;;  %v15791_v30 = vld [vmem:[#allocation13 + $0x190] sm:$0xf0] }
 0x52d   :  { %10364 = vmatpush.bf16.msrb.mxu0 %v15650_v52  ;;  %v15794_v22 = vor.u32 %v18036_v6, %v15791_v30  ;;  %v18080_v6 = vld [vmem:[#allocation13 + $0x2e4] sm:$0xf] }
 0x52e   :  { %10300 = vmatpush.bf16.msrb.mxu3 %v16014_v20  ;;  %v18206_v20 = vld [vmem:[#allocation13 + $0x6cc] sm:$0xf0]  ;;  %v20274_v14 = vpop.f32.mrf.mxu0 }
 0x52f   :  { %v16462_v62 = vor.u32 %v18206_v20, %v16461_v29  ;;  %v15759_v29 = vld [vmem:[#allocation13 + $0x150] sm:$0xf0] }
 0x530   :  { %10328 = vmatpush.bf16.msra.mxu1 %v16238_v49  ;;  %v16414_v49 = vor.u32 %v18194_v18, %v16413_v32  ;;  %v18238_v32 = vld [vmem:[#allocation13 + $0x7cc] sm:$0xf0] }
 0x531   :  { %10365 = vmatpush.bf16.msrb.mxu0 %v15634_v45  ;;  %10335 = vmatpush.bf16.msra.mxu2 %v16462_v62  ;;  %v18028_v45 = vld [vmem:[#allocation13 + $0x144] sm:$0xf] }
 0x532   :  { %10301 = vmatpush.bf16.msrb.mxu3 %v15998_v4  ;;  %v20276_v51 = vpop.f32.mrf.mxu1  ;;  %v16446_v4 = vor.u32 %v18202_v47, %v16445_v27  ;;  %v15762_v39 = vor.u32 %v18028_v45, %v15759_v29  ;;  %v15935_v45 = vld [vmem:[#allocation13 + $0x2b0] sm:$0xf0] }
 0x533   :  { %v16223_v29 = vld [vmem:[#allocation13 + $0x4f0] sm:$0xf0] }
 0x534   :  { %10373 = vmatpush.bf16.msrb.mxu1 %v15842_v1  ;;  %v16398_v1 = vor.u32 %v18190_v61, %v16397_v12  ;;  %v18072_v61 = vld [vmem:[#allocation13 + $0x2a4] sm:$0xf] }
 0x535   :  { %10366 = vmatpush.bf16.msrb.mxu0 %v15618_v53  ;;  %10336 = vmatpush.bf16.msra.mxu2 %v16446_v4  ;;  %v15743_v53 = vld [vmem:[#allocation13 + $0x130] sm:$0xf0]  ;;  %v16605_v4 = vld [vmem:[#allocation13 + $0x7e0] sm:$0xf] }
 0x536   :  { %10302 = vmatpush.bf16.msrb.mxu3 %v15982_v15  ;;  %v8577_v41 = vpop.f32.mrf.mxu0  ;;  %v15746_v47 = vor.u32 %v18024_v28, %v15743_v53  ;;  %v16606_v0 = vor.u32 %v18242_v37, %v16605_v4  ;;  %v18140_v28 = vld [vmem:[#allocation13 + $0x4c4] sm:$0xf]  ;;  %v15919_v4 = vld [vmem:[#allocation13 + $0x290] sm:$0xf0] }
 0x537   :  { %v18020_v41 = vld [vmem:[#allocation13 + $0x104] sm:$0xf] }
 0x538   :  { %10374 = vmatpush.bf16.msrb.mxu1 %v15826_v59  ;;  %v8419_v15 = vpop.f32.mrf.mxu3 }
 0x539   :  { %10367 = vmatpush.bf16.msrb.mxu0 %v15602_v55  ;;  %10337 = vmatpush.bf16.msra.mxu2 %v16430_v50  ;;  %v8420_v8 = vadd.f32 %v8419_v15, %v8407_v33  ;;  %v16365_v55 = vld [vmem:[#allocation13 + $0x600] sm:$0xf]  ;;  %v15967_v50 = vld [vmem:[#allocation13 + $0x2f0] sm:$0xf0]  ;;  %v15730_v33 = vor.u32 %v18020_v41, %v15727_v48  ;;  %v18064_v48 = vld [vmem:[#allocation13 + $0x264] sm:$0xf] }
 0x53a   :  { %v8590_v52 = vpop.f32.mrf.mxu1  ;;  %v8471_v46 = vpop.f32.mrf.mxu2  ;;  %10347 = vmatpush.bf16.msra.mxu3 %v16606_v0  ;;  %v18226_v0 = vld [vmem:[#allocation13 + $0x76c] sm:$0xf0] }
 0x53b   :  { %v8433_v5 = vadd.f32 %v20226_v23, %v8420_v8  ;;  %v16381_v23 = vld [vmem:[#allocation13 + $0x620] sm:$0xf]  ;;  %v8472_v30 = vadd.f32 %v8471_v46, %v20252_v17 }
 0x53c   :  { %10375 = vmatpush.bf16.msrb.mxu1 %v15810_v26  ;;  %v16382_v27 = vor.u32 %v18186_v63, %v16381_v23  ;;  %v18182_v26 = vld [vmem:[#allocation13 + $0x60c] sm:$0xf0]  ;;  %v16589_v8 = vld [vmem:[#allocation13 + $0x7c0] sm:$0xf] }
 0x53d   :  { %10338 = vmatpush.bf16.msra.mxu2 %v16414_v49  ;;  %v8647_v56 = vadd.f32 %v8433_v5, %v6814_v2  ;;  %v16366_v10 = vor.u32 %v18182_v26, %v16365_v55  ;;  %v16590_v35 = vor.u32 %v18238_v32, %v16589_v8  ;;  %v18076_v2 = vld [vmem:[#allocation13 + $0x2c4] sm:$0xf]  ;;  %v15951_v5 = vld [vmem:[#allocation13 + $0x2d0] sm:$0xf0]  ;;  %v16573_v46 = vld [vmem:[#allocation13 + $0x7a0] sm:$0xf] }
 0x53e   :  { %v20284_v60 = vpop.f32.mrf.mxu0  ;;  %v18136_v26 = vld [vmem:[#allocation13 + $0x4a4] sm:$0xf]  ;;  %v18222_v32 = vld [vmem:[#allocation13 + $0x74c] sm:$0xf0] }
 0x53f   :  { %v8673_v20 = vadd.f32 %v8657_v24, %v8647_v56  ;;  %v15954_v24 = vor.u32 %v18076_v2, %v15951_v5  ;;  %10348 = vmatpush.bf16.msra.mxu3 %v16590_v35  ;;  %v18132_v8 = vld [vmem:[#allocation13 + $0x484] sm:$0xf]  ;;  %v15887_v2 = vld [vmem:[#allocation13 + $0x250] sm:$0xf0] }
 0x540   :  { %10376 = vmatpush.bf16.msrb.mxu1 %v15794_v22  ;;  %v8421_v62 = vpop.f32.mrf.mxu3  ;;  %v15970_v22 = vor.u32 %v18080_v6, %v15967_v50  ;;  %v15903_v6 = vld [vmem:[#allocation13 + $0x270] sm:$0xf0]  ;;  %v18060_v35 = vld [vmem:[#allocation13 + $0x244] sm:$0xf] }
 0x541   :  { %10339 = vmatpush.bf16.msra.mxu2 %v16398_v1  ;;  %vm8681_vm13 = vcmp.ge.f32.partialorder %v8673_v20, 0.0  ;;  %v8689_v40 = vmul.f32 0.01, %v8673_v20  ;;  %v18144_v1 = vld [vmem:[#allocation13 + $0x4e4] sm:$0xf]  ;;  %v15906_v50 = vor.u32 %v18064_v48, %v15903_v6 }
 0x542   :  { %v8473_v36 = vpop.f32.mrf.mxu2  ;;  %v16127_v48 = vld [vmem:[#allocation13 + $0x430] sm:$0xf0]  ;;  %v18172_v6 = vld [vmem:[#allocation13 + $0x5c4] sm:$0xf] }
 0x543   :  { %v8697_v59 = vsel %vm8681_vm13, %v8673_v20, %v8689_v40  ;;  %v15938_v20 = vor.u32 %v18072_v61, %v15935_v45  ;;  %v16557_v40 = vld [vmem:[#allocation13 + $0x780] sm:$0xf]  ;;  %v18230_v36 = vld [vmem:[#allocation13 + $0x78c] sm:$0xf0]  ;;  %v16159_v45 = vld [vmem:[#allocation13 + $0x470] sm:$0xf0] }
 0x544   :  { %10377 = vmatpush.bf16.msrb.mxu1 %v15778_v25  ;;  %v20286_v44 = vpop.f32.mrf.mxu1  ;;  %v20288_v38 = vpack.c.bf16 %v8697_v59, %v8697_v59  ;;  %v18234_v25 = vld [vmem:[#allocation13 + $0x7ac] sm:$0xf0]  ;;  %v16558_v53 = vor.u32 %v18230_v36, %v16557_v40  ;;  %v16143_v40 = vld [vmem:[#allocation13 + $0x450] sm:$0xf0]  ;;  %v16493_v36 = vld [vmem:[#allocation13 + $0x700] sm:$0xf] }
 0x545   :  { %10340 = vmatpush.bf16.msra.mxu2 %v16382_v27  ;;  %v16574_v12 = vor.u32 %v18234_v25, %v16573_v46  ;;  %v16207_v27 = vld [vmem:[#allocation13 + $0x4d0] sm:$0xf0]  ;;  %v18218_v46 = vld [vmem:[#allocation13 + $0x72c] sm:$0xf0] }
 0x546   :  { %v8642_v42 = vpop.f32.mrf.mxu0  ;;  %10303 = vmatmul.bf16.vlgmr.msrb.gmra.mxu3 %v20288_v38  ;;  %v16210_v55 = vor.u32 %v18140_v28, %v16207_v27  ;;  %v16095_v27 = vld [vmem:[#allocation13 + $0x3f0] sm:$0xf0] }
 0x547   :  { %10349 = vmatpush.bf16.msra.mxu3 %v16574_v12  ;;  %v16541_v42 = vld [vmem:[#allocation13 + $0x760] sm:$0xf]  ;;  %v18128_v12 = vld [vmem:[#allocation13 + $0x464] sm:$0xf] }
 0x548   :  { %10378 = vmatpush.bf16.msrb.mxu1 %v15762_v39  ;;  %v8484_v15 = vpop.f32.mrf.mxu3  ;;  %v16542_v41 = vor.u32 %v18226_v0, %v16541_v42 }
 0x549   :  { %v8485_v18 = vadd.f32 %v8484_v15, %v8472_v30  ;;  %10341 = vmatpush.bf16.msra.mxu2 %v16366_v10  ;;  %v16191_v10 = vld [vmem:[#allocation13 + $0x4b0] sm:$0xf0] }
 0x54a   :  { %v20293_v49 = vpop.f32.mrf.mxu2 }
 0x54b   :  { %v8648_v17 = vadd.f32 %v8485_v18, %v20172_v19  ;;  %v16226_v19 = vor.u32 %v18144_v1, %v16223_v29  ;;  %10350 = vmatpush.bf16.msra.mxu3 %v16558_v53  ;;  %v16175_v18 = vld [vmem:[#allocation13 + $0x490] sm:$0xf0]  ;;  %v18056_v1 = vld [vmem:[#allocation13 + $0x224] sm:$0xf] }
 0x54c   :  { %10379 = vmatpush.bf16.msrb.mxu1 %v15746_v47  ;;  %v8603_v52 = vpop.f32.mrf.mxu1  ;;  %v18068_v47 = vld [vmem:[#allocation13 + $0x284] sm:$0xf]  ;;  %v15871_v29 = vld [vmem:[#allocation13 + $0x230] sm:$0xf0] }
 0x54d   :  { %10386 = vmatpush.bf16.msrb.mxu2 %v15970_v22  ;;  %v8674_v56 = vadd.f32 %v8658_v34, %v8648_v17  ;;  %v15922_v37 = vor.u32 %v18068_v47, %v15919_v4  ;;  %v16194_v52 = vor.u32 %v18136_v26, %v16191_v10  ;;  %v16509_v17 = vld [vmem:[#allocation13 + $0x720] sm:$0xf]  ;;  %v18112_v53 = vld [vmem:[#allocation13 + $0x3e4] sm:$0xf]  ;;  %v16351_v47 = vld [vmem:[#allocation13 + $0x5f0] sm:$0xf0] }
 0x54e   :  { %v16510_v61 = vor.u32 %v18218_v46, %v16509_v17  ;;  %v16098_v4 = vor.u32 %v18112_v53, %v16095_v27  ;;  %v18120_v10 = vld [vmem:[#allocation13 + $0x424] sm:$0xf]  ;;  %v15717_v17 = vld [vmem:[#allocation13 + $0xe8] sm:$0xf]  ;;  %v18019_v46 = vld [vmem:[#allocation13 + $0xf4] sm:$0xf0] }
 0x54f   :  { %vm8682_vm14 = vcmp.ge.f32.partialorder %v8674_v56, 0.0  ;;  %v8690_v39 = vmul.f32 0.01, %v8674_v56  ;;  %10351 = vmatpush.bf16.msra.mxu3 %v16542_v41 }
 0x550   :  { %10380 = vmatpush.bf16.msrb.mxu1 %v15730_v33  ;;  %v8486_v62 = vpop.f32.mrf.mxu3  ;;  %v16525_v33 = vld [vmem:[#allocation13 + $0x740] sm:$0xf] }
 0x551   :  { %10387 = vmatpush.bf16.msrb.mxu2 %v15954_v24  ;;  %v8698_v23 = vsel %vm8682_vm14, %v8674_v56, %v8690_v39  ;;  %v16526_v34 = vor.u32 %v18222_v32, %v16525_v33  ;;  %v15890_v24 = vor.u32 %v18060_v35, %v15887_v2  ;;  %v16178_v56 = vor.u32 %v18132_v8, %v16175_v18  ;;  %v18124_v62 = vld [vmem:[#allocation13 + $0x444] sm:$0xf]  ;;  %v16319_v2 = vld [vmem:[#allocation13 + $0x5b0] sm:$0xf0] }
 0x552   :  { %v8538_v63 = vpop.f32.mrf.mxu2  ;;  %v20296_v59 = vpack.c.bf16 %v8698_v23, %v8698_v23  ;;  %v15874_v39 = vor.u32 %v18056_v1, %v15871_v29  ;;  %v18214_v23 = vld [vmem:[#allocation13 + $0x70c] sm:$0xf0]  ;;  %v16146_v26 = vor.u32 %v18124_v62, %v16143_v40  ;;  %v18108_v33 = vld [vmem:[#allocation13 + $0x3c4] sm:$0xf]  ;;  %v16130_v8 = vor.u32 %v18120_v10, %v16127_v48  ;;  %v16047_v29 = vld [vmem:[#allocation13 + $0x390] sm:$0xf0] }
 0x553   :  { %10352 = vmatpush.bf16.msra.mxu3 %v16526_v34  ;;  %v16162_v63 = vor.u32 %v18128_v12, %v16159_v45  ;;  %v16494_v28 = vor.u32 %v18214_v23, %v16493_v36  ;;  %v18116_v18 = vld [vmem:[#allocation13 + $0x404] sm:$0xf]  ;;  %v16111_v34 = vld [vmem:[#allocation13 + $0x410] sm:$0xf0]  ;;  %v15669_v10 = vld [vmem:[#allocation13 + $0x88] sm:$0xf] }
 0x554   :  { %10316 = vmatmul.bf16.vlgmr.msra.gmra.mxu0 %v20296_v59  ;;  %v18168_v35 = vld [vmem:[#allocation13 + $0x5a4] sm:$0xf]  ;;  %v16303_v45 = vld [vmem:[#allocation13 + $0x590] sm:$0xf0]  ;;  %v18007_v48 = vld [vmem:[#allocation13 + $0x94] sm:$0xf0] }
 0x555   :  { %10388 = vmatpush.bf16.msrb.mxu2 %v15938_v20  ;;  %10412 = vmatpush.bf16.msra.mxu0 %v16226_v19  ;;  %v18176_v19 = vld [vmem:[#allocation13 + $0x5e4] sm:$0xf]  ;;  %v16287_v23 = vld [vmem:[#allocation13 + $0x570] sm:$0xf0] }
 0x556   :  { %v16354_v41 = vor.u32 %v18176_v19, %v16351_v47  ;;  %v18164_v12 = vld [vmem:[#allocation13 + $0x584] sm:$0xf]  ;;  %v18011_v19 = vld [vmem:[#allocation13 + $0xb4] sm:$0xf0] }
 0x557   :  { %10353 = vmatpush.bf16.msra.mxu3 %v16510_v61  ;;  %v15718_v61 = vor.u32 %v18019_v46, %v15717_v17  ;;  %v18100_v1 = vld [vmem:[#allocation13 + $0x384] sm:$0xf]  ;;  %v16306_v62 = vor.u32 %v18164_v12, %v16303_v45 }
 0x558   :  { %v18160_v40 = vld [vmem:[#allocation13 + $0x564] sm:$0xf] }
 0x559   :  { %10389 = vmatpush.bf16.msrb.mxu2 %v15922_v37  ;;  %10413 = vmatpush.bf16.msra.mxu0 %v16210_v55  ;;  %v18052_v37 = vld [vmem:[#allocation13 + $0x204] sm:$0xf]  ;;  %v16290_v27 = vor.u32 %v18160_v40, %v16287_v23  ;;  %v18051_v40 = vld [vmem:[#allocation13 + $0x1f4] sm:$0xf0]  ;;  %v20325_v23 = vld [vmem:[#allocation15] sm:$0xf] }
 0x55a   :  { %v18156_v47 = vld [vmem:[#allocation13 + $0x544] sm:$0xf] }
 0x55b   :  { %10354 = vmatpush.bf16.msra.mxu3 %v16494_v28  ;;  %v18148_v46 = vld [vmem:[#allocation13 + $0x504] sm:$0xf] }
 0x55c   :  { %v8497_v30 = vpop.f32.mrf.mxu3  ;;  %v18084_v45 = vld [vmem:[#allocation13 + $0x304] sm:$0xf] }
 0x55d   :  { %v8511_v22 = vadd.f32 %v20258_v3, %v8497_v30  ;;  %10390 = vmatpush.bf16.msrb.mxu2 %v15906_v50  ;;  %v8659_v3 = vperm.slane %v20230_v11, 5  ;;  %10414 = vmatpush.bf16.msra.mxu0 %v16194_v52  ;;  %v16335_v30 = vld [vmem:[#allocation13 + $0x5d0] sm:$0xf0] }
 0x55e   :  { %v20300_v15 = vpop.f32.mrf.mxu2  ;;  %v16338_v32 = vor.u32 %v18172_v6, %v16335_v30 }
 0x55f   :  { %v8524_v5 = vadd.f32 %v20269_v16, %v8511_v22  ;;  %10399 = vmatpush.bf16.msrb.mxu3 %v16098_v4  ;;  %v16079_v22 = vld [vmem:[#allocation13 + $0x3d0] sm:$0xf0]  ;;  %v6957_v4 = vadd.f32 %v20151_v9, %v20205_v58  ;;  %v20320_v9 = vld [vmem:[#allocation12] sm:$0xff] }
 0x560   :  { %v16082_v52 = vor.u32 %v18108_v33, %v16079_v22  ;;  %v8660_v58 = vperm.slane %v20320_v9, 6  ;;  %v18152_v33 = vld [vmem:[#allocation13 + $0x524] sm:$0xf] }
 0x561   :  { %v8537_v25 = vadd.f32 %v20293_v49, %v8524_v5  ;;  %10391 = vmatpush.bf16.msrb.mxu2 %v15890_v24  ;;  %10415 = vmatpush.bf16.msra.mxu0 %v16178_v56  ;;  %v18104_v5 = vld [vmem:[#allocation13 + $0x3a4] sm:$0xf]  ;;  %v16063_v24 = vld [vmem:[#allocation13 + $0x3b0] sm:$0xf0]  ;;  %v16322_v56 = vor.u32 %v18168_v35, %v16319_v2  ;;  %v6970_v22 = vadd.f32 %v20154_v21, %v6957_v4  ;;  %v18003_v35 = vld [vmem:[#allocation13 + $0x74] sm:$0xf0] }
 0x562   :  { %v17995_v4 = vld [vmem:[#allocation13 + $0x34] sm:$0xf0] }
 0x563   :  { %v8649_v20 = vadd.f32 %v8537_v25, %v20190_v7  ;;  %v15855_v7 = vld [vmem:[#allocation13 + $0x210] sm:$0xf0]  ;;  %10400 = vmatpush.bf16.msrb.mxu3 %v16082_v52  ;;  %v16066_v25 = vor.u32 %v18104_v5, %v16063_v24 }
 0x564   :  { %v8499_v16 = vpop.f32.mrf.mxu3  ;;  %v15858_v0 = vor.u32 %v18052_v37, %v15855_v7  ;;  %10368 = vmatmul.bf16.vlgmr.msrb.gmra.mxu0 %v20241_v31 }
 0x565   :  { %v8675_v49 = vadd.f32 %v8659_v3, %v8649_v20  ;;  %10392 = vmatpush.bf16.msrb.mxu2 %v15874_v39  ;;  %10416 = vmatpush.bf16.msra.mxu0 %v16162_v63  ;;  %v16114_v3 = vor.u32 %v18116_v18, %v16111_v34  ;;  %v15701_v20 = vld [vmem:[#allocation13 + $0xc8] sm:$0xf]  ;;  %v18015_v39 = vld [vmem:[#allocation13 + $0xd4] sm:$0xf0]  ;;  %v16050_v16 = vor.u32 %v18100_v1, %v16047_v29  ;;  %v18088_v18 = vld [vmem:[#allocation13 + $0x324] sm:$0xf] }
 0x566   :  { %v8551_v11 = vpop.f32.mrf.mxu2  ;;  %v15702_v36 = vor.u32 %v18015_v39, %v15701_v20  ;;  %v15685_v63 = vld [vmem:[#allocation13 + $0xa8] sm:$0xf]  ;;  %v15999_v34 = vld [vmem:[#allocation13 + $0x330] sm:$0xf0]  ;;  %v17999_v20 = vld [vmem:[#allocation13 + $0x54] sm:$0xf0] }
 0x567   :  { %vm8683_vm15 = vcmp.ge.f32.partialorder %v8675_v49, 0.0  ;;  %v8691_v42 = vmul.f32 0.01, %v8675_v49  ;;  %10401 = vmatpush.bf16.msrb.mxu3 %v16066_v25  ;;  %v16031_v11 = vld [vmem:[#allocation13 + $0x370] sm:$0xf0]  ;;  %v16002_v2 = vor.u32 %v18088_v18, %v15999_v34 }
 0x568   :  { %v16239_v25 = vld [vmem:[#allocation13 + $0x510] sm:$0xf0]  ;;  %v15637_v29 = vld [vmem:[#allocation13 + $0x48] sm:$0xf] }
 0x569   :  { %v8699_v55 = vsel %vm8683_vm15, %v8675_v49, %v8691_v42  ;;  %10393 = vmatpush.bf16.msrb.mxu2 %v15858_v0  ;;  %10417 = vmatpush.bf16.msra.mxu0 %v16146_v26  ;;  %v18096_v49 = vld [vmem:[#allocation13 + $0x364] sm:$0xf]  ;;  %v15686_v0 = vor.u32 %v18011_v19, %v15685_v63  ;;  %v15983_v1 = vld [vmem:[#allocation13 + $0x310] sm:$0xf0]  ;;  %v15845_v39 = vld [vmem:[#allocation13 + $0x1e8] sm:$0xf]  ;;  %v15638_v63 = vor.u32 %v17999_v20, %v15637_v29 }
 0x56a   :  { %v20307_v50 = vpack.c.bf16 %v8699_v55, %v8699_v55  ;;  %v16034_v28 = vor.u32 %v18096_v49, %v16031_v11  ;;  %v16271_v55 = vld [vmem:[#allocation13 + $0x550] sm:$0xf0]  ;;  %v18092_v26 = vld [vmem:[#allocation13 + $0x344] sm:$0xf]  ;;  %v18139_v29 = vld [vmem:[#allocation13 + $0x4b4] sm:$0xf0] }
 0x56b   :  { %10402 = vmatpush.bf16.msrb.mxu3 %v16050_v16  ;;  %v15986_v16 = vor.u32 %v18084_v45, %v15983_v1  ;;  %v18204_v19 = vld [vmem:[#allocation13 + $0x6c4] sm:$0xf]  ;;  %v18035_v45 = vld [vmem:[#allocation13 + $0x174] sm:$0xf0]  ;;  %v16197_v1 = vld [vmem:[#allocation13 + $0x4a8] sm:$0xf] }
 0x56c   :  { %10329 = vmatmul.bf16.vlgmr.msra.gmra.mxu1 %v20307_v50 }
 0x56d   :  { %10425 = vmatpush.bf16.msra.mxu1 %v16354_v41  ;;  %10418 = vmatpush.bf16.msra.mxu0 %v16130_v8  ;;  %v16015_v41 = vld [vmem:[#allocation13 + $0x350] sm:$0xf0]  ;;  %v15670_v8 = vor.u32 %v18007_v48, %v15669_v10  ;;  %v18200_v10 = vld [vmem:[#allocation13 + $0x6a4] sm:$0xf] }
 0x56e   :  { %v16018_v6 = vor.u32 %v18092_v26, %v16015_v41  ;;  %v16447_v48 = vld [vmem:[#allocation13 + $0x6b0] sm:$0xf0] }
 0x56f   :  { %10403 = vmatpush.bf16.msrb.mxu3 %v16034_v28  ;;  %v16450_v18 = vor.u32 %v18200_v10, %v16447_v48  ;;  %v16383_v10 = vld [vmem:[#allocation13 + $0x630] sm:$0xf0]  ;;  %v15749_v48 = vld [vmem:[#allocation13 + $0x128] sm:$0xf] }
 0x571   :  { %10426 = vmatpush.bf16.msra.mxu1 %v16338_v32  ;;  %10419 = vmatpush.bf16.msra.mxu0 %v16114_v3  ;;  %v16255_v32 = vld [vmem:[#allocation13 + $0x530] sm:$0xf0]  ;;  %v18208_v3 = vld [vmem:[#allocation13 + $0x6e4] sm:$0xf] }
 0x572   :  { %v16258_v17 = vor.u32 %v18152_v33, %v16255_v32  ;;  %v18043_v33 = vld [vmem:[#allocation13 + $0x1b4] sm:$0xf0] }
 0x573   :  { %10404 = vmatpush.bf16.msrb.mxu3 %v16018_v6 }
 0x574   :  { %10420 = vmatmul.bf16.vlgmr.msra.gmra.mxu0 %v20296_v59  ;;  %v20316_v42 = vpop.f32.mrf.mxu0 }
 0x575   :  { %10427 = vmatpush.bf16.msra.mxu1 %v16322_v56  ;;  %10464 = vmatpush.bf16.msrb.mxu0 %v15718_v61  ;;  %v16479_v61 = vld [vmem:[#allocation13 + $0x6f0] sm:$0xf0] }
 0x576   :  { %v16482_v11 = vor.u32 %v18208_v3, %v16479_v61  ;;  %v18143_v3 = vld [vmem:[#allocation13 + $0x4d4] sm:$0xf0]  ;;  %v15781_v61 = vld [vmem:[#allocation13 + $0x168] sm:$0xf] }
 0x577   :  { %10405 = vmatpush.bf16.msrb.mxu3 %v16002_v2 }
 0x579   :  { %10428 = vmatpush.bf16.msra.mxu1 %v16306_v62  ;;  %10465 = vmatpush.bf16.msrb.mxu0 %v15702_v36  ;;  %v16242_v36 = vor.u32 %v18148_v46, %v16239_v25  ;;  %v18039_v46 = vld [vmem:[#allocation13 + $0x194] sm:$0xf0]  ;;  %v16213_v25 = vld [vmem:[#allocation13 + $0x4c8] sm:$0xf] }
 0x57b   :  { %10406 = vmatpush.bf16.msrb.mxu3 %v15986_v16 }
 0x57c   :  { %v8562_v53 = vpop.f32.mrf.mxu3  ;;  %10381 = vmatmul.bf16.vlgmr.msrb.gmra.mxu1 %v20254_v54 }
 0x57d   :  { %v8563_v37 = vadd.f32 %v8562_v53, %v20300_v15  ;;  %10429 = vmatpush.bf16.msra.mxu1 %v16290_v27  ;;  %v16274_v15 = vor.u32 %v18156_v47, %v16271_v55  ;;  %10466 = vmatpush.bf16.msrb.mxu0 %v15686_v0  ;;  %v15846_v53 = vor.u32 %v18051_v40, %v15845_v39  ;;  %v16463_v27 = vld [vmem:[#allocation13 + $0x6d0] sm:$0xf0]  ;;  %v15621_v47 = vld [vmem:[#allocation13 + $0x28] sm:$0xf]  ;;  %v18047_v0 = vld [vmem:[#allocation13 + $0x1d4] sm:$0xf0] }
 0x57e   :  { %v20314_v7 = vpop.f32.mrf.mxu2  ;;  %v8968_v55 = vperm.slane %v20325_v23, 0  ;;  %v16466_v26 = vor.u32 %v18204_v19, %v16463_v27  ;;  %v15622_v41 = vor.u32 %v17995_v4, %v15621_v47  ;;  %v15765_v19 = vld [vmem:[#allocation13 + $0x148] sm:$0xf]  ;;  %v18135_v47 = vld [vmem:[#allocation13 + $0x494] sm:$0xf0]  ;;  %v8661_v4 = vperm.slane %v20320_v9, 7 }
 0x57f   :  { %v8576_v30 = vadd.f32 %v20274_v14, %v8563_v37  ;;  %v15653_v14 = vld [vmem:[#allocation13 + $0x68] sm:$0xf]  ;;  %v8615_v20 = vadd.f32 %v20314_v7, %v20286_v44  ;;  %v7022_v44 = vadd.f32 %v20164_v43, %v20224_v57  ;;  %v18240_v57 = vld [vmem:[#allocation13 + $0x7e4] sm:$0xf] }
 0x580   :  { %v15654_v12 = vor.u32 %v18003_v35, %v15653_v14  ;;  %v15829_v37 = vld [vmem:[#allocation13 + $0x1c8] sm:$0xf] }
 0x581   :  { %v8589_v52 = vadd.f32 %v20276_v51, %v8576_v30  ;;  %10430 = vmatpush.bf16.msra.mxu1 %v16274_v15  ;;  %10467 = vmatpush.bf16.msrb.mxu0 %v15670_v8  ;;  %v10267_v51 = vpop.f32.mrf.mxu0  ;;  %v15830_v6 = vor.u32 %v18047_v0, %v15829_v37  ;;  %v15605_v30 = vld [vmem:[#allocation13 + $0x8] sm:$0xf]  ;;  %v10266_v8 = vadd.f32 %v20316_v42, %v8968_v55 }
 0x582   :  { %v15813_v15 = vld [vmem:[#allocation13 + $0x1a8] sm:$0xf]  ;;  %v18192_v51 = vld [vmem:[#allocation13 + $0x664] sm:$0xf] }
 0x583   :  { %v8650_v5 = vadd.f32 %v8589_v52, %v6970_v22  ;;  %v16229_v22 = vld [vmem:[#allocation13 + $0x4e8] sm:$0xf]  ;;  %v18147_v52 = vld [vmem:[#allocation13 + $0x4f4] sm:$0xf0]  ;;  %v15814_v35 = vor.u32 %v18043_v33, %v15813_v15  ;;  %v18180_v33 = vld [vmem:[#allocation13 + $0x604] sm:$0xf] }
 0x584   :  { %v8564_v24 = vpop.f32.mrf.mxu3  ;;  %v16230_v2 = vor.u32 %v18147_v52, %v16229_v22  ;;  %v16181_v27 = vld [vmem:[#allocation13 + $0x488] sm:$0xf]  ;;  %v16367_v22 = vld [vmem:[#allocation13 + $0x610] sm:$0xf0] }
 0x585   :  { %v8676_v56 = vadd.f32 %v8660_v58, %v8650_v5  ;;  %10431 = vmatpush.bf16.msra.mxu1 %v16258_v17  ;;  %10468 = vmatpush.bf16.msrb.mxu0 %v15654_v12  ;;  %v17991_v58 = vld [vmem:[#allocation13 + $0x14] sm:$0xf0]  ;;  %v18196_v5 = vld [vmem:[#allocation13 + $0x684] sm:$0xf]  ;;  %v16431_v24 = vld [vmem:[#allocation13 + $0x690] sm:$0xf0] }
 0x586   :  { %v8616_v21 = vpop.f32.mrf.mxu2  ;;  %v15606_v34 = vor.u32 %v17991_v58, %v15605_v30  ;;  %v15797_v17 = vld [vmem:[#allocation13 + $0x188] sm:$0xf]  ;;  %v16415_v12 = vld [vmem:[#allocation13 + $0x670] sm:$0xf0]  ;;  %v18131_v58 = vld [vmem:[#allocation13 + $0x474] sm:$0xf0] }
 0x587   :  { %vm8684_vm0 = vcmp.ge.f32.partialorder %v8676_v56, 0.0  ;;  %v8692_v62 = vmul.f32 0.01, %v8676_v56  ;;  %v15798_v42 = vor.u32 %v18039_v46, %v15797_v17  ;;  %v16214_v21 = vor.u32 %v18143_v3, %v16213_v25  ;;  %v16165_v30 = vld [vmem:[#allocation13 + $0x468] sm:$0xf] }
 0x588   :  { %v15733_v52 = vld [vmem:[#allocation13 + $0x108] sm:$0xf]  ;;  %v18127_v46 = vld [vmem:[#allocation13 + $0x454] sm:$0xf0] }
 0x589   :  { %v8700_v49 = vsel %vm8684_vm0, %v8676_v56, %v8692_v62  ;;  %10432 = vmatpush.bf16.msra.mxu1 %v16242_v36  ;;  %10469 = vmatpush.bf16.msrb.mxu0 %v15638_v63  ;;  %v16434_v56 = vor.u32 %v18196_v5, %v16431_v24  ;;  %v16418_v62 = vor.u32 %v18192_v51, %v16415_v12  ;;  %v16399_v63 = vld [vmem:[#allocation13 + $0x650] sm:$0xf0]  ;;  %v16149_v5 = vld [vmem:[#allocation13 + $0x448] sm:$0xf]  ;;  %v18179_v3 = vld [vmem:[#allocation13 + $0x5f4] sm:$0xf0] }
 0x58a   :  { %v20327_v28 = vpack.c.bf16 %v8700_v49, %v8700_v49  ;;  %v15782_v36 = vor.u32 %v18035_v45, %v15781_v61  ;;  %v16198_v49 = vor.u32 %v18139_v29, %v16197_v1  ;;  %v16357_v25 = vld [vmem:[#allocation13 + $0x5e8] sm:$0xf]  ;;  %v16591_v51 = vld [vmem:[#allocation13 + $0x7d0] sm:$0xf0]  ;;  %v16150_v45 = vor.u32 %v18127_v46, %v16149_v5  ;;  %v18009_v46 = vld [vmem:[#allocation13 + $0xac] sm:$0xf] }
 0x58b   :  { %v10278_v32 = vpop.f32.mrf.mxu1  ;;  %v16358_v1 = vor.u32 %v18179_v3, %v16357_v25  ;;  %v15957_v29 = vld [vmem:[#allocation13 + $0x2c8] sm:$0xf]  ;;  %v15687_v3 = vld [vmem:[#allocation13 + $0xb8] sm:$0xf0] }
 0x58c   :  { %10342 = vmatmul.bf16.vlgmr.msra.gmra.mxu2 %v20327_v28  ;;  %10433 = vmatmul.bf16.vlgmr.msra.gmra.mxu1 %v20307_v50  ;;  %v20333_v14 = vadd.f32 %v10278_v32, %v10266_v8 }
 0x58d   :  { %10438 = vmatpush.bf16.msra.mxu2 %v16482_v11  ;;  %10477 = vmatpush.bf16.msrb.mxu1 %v15846_v53  ;;  %v18188_v11 = vld [vmem:[#allocation13 + $0x644] sm:$0xf]  ;;  %v18031_v53 = vld [vmem:[#allocation13 + $0x154] sm:$0xf0] }
 0x58e   :  { %10470 = vmatpush.bf16.msrb.mxu0 %v15622_v41  ;;  %v16402_v37 = vor.u32 %v18188_v11, %v16399_v63  ;;  %v15766_v55 = vor.u32 %v18031_v53, %v15765_v19  ;;  %v18184_v41 = vld [vmem:[#allocation13 + $0x624] sm:$0xf]  ;;  %v16575_v11 = vld [vmem:[#allocation13 + $0x7b0] sm:$0xf0]  ;;  %v15941_v19 = vld [vmem:[#allocation13 + $0x2a8] sm:$0xf] }
 0x58f   :  { %v16386_v15 = vor.u32 %v18184_v41, %v16383_v10  ;;  %v18228_v41 = vld [vmem:[#allocation13 + $0x784] sm:$0xf]  ;;  %v16559_v10 = vld [vmem:[#allocation13 + $0x790] sm:$0xf0] }
 0x591   :  { %10439 = vmatpush.bf16.msra.mxu2 %v16466_v26  ;;  %10478 = vmatpush.bf16.msrb.mxu1 %v15830_v6  ;;  %v16182_v26 = vor.u32 %v18135_v47, %v16181_v27  ;;  %v18027_v6 = vld [vmem:[#allocation13 + $0x134] sm:$0xf0] }
 0x592   :  { %10471 = vmatpush.bf16.msrb.mxu0 %v15606_v34  ;;  %v15750_v32 = vor.u32 %v18027_v6, %v15749_v48  ;;  %v18023_v34 = vld [vmem:[#allocation13 + $0x114] sm:$0xf0] }
 0x593   :  { %v10280_v16 = vpop.f32.mrf.mxu1  ;;  %v15734_v12 = vor.u32 %v18023_v34, %v15733_v52  ;;  %v18075_v47 = vld [vmem:[#allocation13 + $0x2b4] sm:$0xf0]  ;;  %v18224_v52 = vld [vmem:[#allocation13 + $0x764] sm:$0xf]  ;;  %v15909_v34 = vld [vmem:[#allocation13 + $0x268] sm:$0xf] }
 0x594   :  { %v15942_v48 = vor.u32 %v18075_v47, %v15941_v19  ;;  %v18059_v19 = vld [vmem:[#allocation13 + $0x234] sm:$0xf0]  ;;  %v16261_v47 = vld [vmem:[#allocation13 + $0x528] sm:$0xf] }
 0x595   :  { %10440 = vmatpush.bf16.msra.mxu2 %v16450_v18  ;;  %10479 = vmatpush.bf16.msrb.mxu1 %v15814_v35  ;;  %v16166_v18 = vor.u32 %v18131_v58, %v16165_v30  ;;  %v15973_v35 = vld [vmem:[#allocation13 + $0x2e8] sm:$0xf] }
 0x596   :  { %10516 = vmatpush.bf16.msra.mxu0 %v16230_v2  ;;  %v18083_v2 = vld [vmem:[#allocation13 + $0x2f4] sm:$0xf0]  ;;  %v15925_v58 = vld [vmem:[#allocation13 + $0x288] sm:$0xf] }
 0x597   :  { %10472 = vmatmul.bf16.vlgmr.msrb.gmra.mxu0 %v20241_v31  ;;  %v15974_v61 = vor.u32 %v18083_v2, %v15973_v35  ;;  %v18067_v35 = vld [vmem:[#allocation13 + $0x274] sm:$0xf0] }
 0x599   :  { %10441 = vmatpush.bf16.msra.mxu2 %v16434_v56  ;;  %10480 = vmatpush.bf16.msrb.mxu1 %v15798_v42  ;;  %v16370_v42 = vor.u32 %v18180_v33, %v16367_v22  ;;  %v18013_v33 = vld [vmem:[#allocation13 + $0xcc] sm:$0xf]  ;;  %v15703_v22 = vld [vmem:[#allocation13 + $0xd8] sm:$0xf0] }
 0x59a   :  { %10517 = vmatpush.bf16.msra.mxu0 %v16214_v21  ;;  %v18236_v21 = vld [vmem:[#allocation13 + $0x7c4] sm:$0xf]  ;;  %v15706_v2 = vor.u32 %v18013_v33, %v15703_v22  ;;  %v17997_v33 = vld [vmem:[#allocation13 + $0x4c] sm:$0xf] }
 0x59b   :  { %v16594_v16 = vor.u32 %v18236_v21, %v16591_v51  ;;  %v16527_v21 = vld [vmem:[#allocation13 + $0x750] sm:$0xf0] }
 0x59c   :  { %v8627_v39 = vpop.f32.mrf.mxu3  ;;  %10394 = vmatmul.bf16.vlgmr.msrb.gmra.mxu2 %v20271_v13 }
 0x59d   :  { %v8628_v40 = vadd.f32 %v8627_v39, %v8615_v20  ;;  %10442 = vmatpush.bf16.msra.mxu2 %v16418_v62  ;;  %10481 = vmatpush.bf16.msrb.mxu1 %v15782_v36  ;;  %v18079_v20 = vld [vmem:[#allocation13 + $0x2d4] sm:$0xf0]  ;;  %v16133_v39 = vld [vmem:[#allocation13 + $0x428] sm:$0xf] }
 0x59e   :  { %10518 = vmatpush.bf16.msra.mxu0 %v16198_v49  ;;  %v18123_v62 = vld [vmem:[#allocation13 + $0x434] sm:$0xf0]  ;;  %v18232_v49 = vld [vmem:[#allocation13 + $0x7a4] sm:$0xf]  ;;  %v15958_v63 = vor.u32 %v18079_v20, %v15957_v29  ;;  %v15690_v29 = vor.u32 %v18009_v46, %v15687_v3  ;;  %v16469_v46 = vld [vmem:[#allocation13 + $0x6c8] sm:$0xf] }
 0x59f   :  { %v8641_v7 = vadd.f32 %v20284_v60, %v8628_v40  ;;  %v16607_v60 = vld [vmem:[#allocation13 + $0x7f0] sm:$0xf0]  ;;  %v16341_v40 = vld [vmem:[#allocation13 + $0x5c8] sm:$0xf]  ;;  %v18175_v36 = vld [vmem:[#allocation13 + $0x5d4] sm:$0xf0]  ;;  %v16134_v53 = vor.u32 %v18123_v62, %v16133_v39 }
 0x5a0   :  { %v16610_v17 = vor.u32 %v18240_v57, %v16607_v60  ;;  %v16342_v27 = vor.u32 %v18175_v36, %v16341_v40  ;;  %v16562_v60 = vor.u32 %v18228_v41, %v16559_v10  ;;  %v16277_v39 = vld [vmem:[#allocation13 + $0x548] sm:$0xf]  ;;  %v18005_v62 = vld [vmem:[#allocation13 + $0x8c] sm:$0xf]  ;;  %v15671_v40 = vld [vmem:[#allocation13 + $0x98] sm:$0xf0] }
 0x5a1   :  { %v8651_v0 = vadd.f32 %v8641_v7, %v7022_v44  ;;  %10443 = vmatpush.bf16.msra.mxu2 %v16402_v37  ;;  %10482 = vmatpush.bf16.msrb.mxu1 %v15766_v55  ;;  %v16117_v44 = vld [vmem:[#allocation13 + $0x408] sm:$0xf]  ;;  %v18119_v7 = vld [vmem:[#allocation13 + $0x414] sm:$0xf0]  ;;  %v18017_v55 = vld [vmem:[#allocation13 + $0xec] sm:$0xf] }
 0x5a2   :  { %10519 = vmatpush.bf16.msra.mxu0 %v16182_v26  ;;  %v16325_v37 = vld [vmem:[#allocation13 + $0x5a8] sm:$0xf]  ;;  %v15719_v26 = vld [vmem:[#allocation13 + $0xf8] sm:$0xf0]  ;;  %v16118_v6 = vor.u32 %v18119_v7, %v16117_v44  ;;  %v18216_v36 = vld [vmem:[#allocation13 + $0x724] sm:$0xf] }
 0x5a3   :  { %v8677_v43 = vadd.f32 %v8661_v4, %v8651_v0  ;;  %v16578_v4 = vor.u32 %v18232_v49, %v16575_v11  ;;  %v18171_v0 = vld [vmem:[#allocation13 + $0x5b4] sm:$0xf0]  ;;  %v15722_v57 = vor.u32 %v18017_v55, %v15719_v26  ;;  %v16511_v49 = vld [vmem:[#allocation13 + $0x730] sm:$0xf0]  ;;  %v18001_v7 = vld [vmem:[#allocation13 + $0x6c] sm:$0xf] }
 0x5a4   :  { %v8629_v9 = vpop.f32.mrf.mxu3  ;;  %v16326_v30 = vor.u32 %v18171_v0, %v16325_v37  ;;  %v18155_v44 = vld [vmem:[#allocation13 + $0x534] sm:$0xf0]  ;;  %v15655_v37 = vld [vmem:[#allocation13 + $0x78] sm:$0xf0]  ;;  %v18212_v0 = vld [vmem:[#allocation13 + $0x704] sm:$0xf] }
 0x5a5   :  { %vm8685_vm1 = vcmp.ge.f32.partialorder %v8677_v43, 0.0  ;;  %v8693_v8 = vmul.f32 0.01, %v8677_v43  ;;  %10444 = vmatpush.bf16.msra.mxu2 %v16386_v15  ;;  %10483 = vmatpush.bf16.msrb.mxu1 %v15750_v32  ;;  %v16309_v9 = vld [vmem:[#allocation13 + $0x588] sm:$0xf] }
 0x5a6   :  { %10520 = vmatpush.bf16.msra.mxu0 %v16166_v18  ;;  %v18167_v15 = vld [vmem:[#allocation13 + $0x594] sm:$0xf0]  ;;  %v16495_v55 = vld [vmem:[#allocation13 + $0x710] sm:$0xf0]  ;;  %v16101_v41 = vld [vmem:[#allocation13 + $0x3e8] sm:$0xf] }
 0x5a7   :  { %v8701_v24 = vsel %vm8685_vm1, %v8677_v43, %v8693_v8  ;;  %v18071_v43 = vld [vmem:[#allocation13 + $0x294] sm:$0xf0]  ;;  %v16543_v8 = vld [vmem:[#allocation13 + $0x770] sm:$0xf0]  ;;  %v16310_v18 = vor.u32 %v18167_v15, %v16309_v9  ;;  %v16485_v9 = vld [vmem:[#allocation13 + $0x6e8] sm:$0xf] }
 0x5a8   :  { %v20343_v56 = vpack.c.bf16 %v8701_v24, %v8701_v24  ;;  %v15926_v32 = vor.u32 %v18071_v43, %v15925_v58  ;;  %v16546_v5 = vor.u32 %v18224_v52, %v16543_v8  ;;  %v16293_v24 = vld [vmem:[#allocation13 + $0x568] sm:$0xf]  ;;  %v18115_v10 = vld [vmem:[#allocation13 + $0x3f4] sm:$0xf0]  ;;  %v15639_v52 = vld [vmem:[#allocation13 + $0x58] sm:$0xf0] }
 0x5a9   :  { %10445 = vmatpush.bf16.msra.mxu2 %v16370_v42  ;;  %10484 = vmatpush.bf16.msrb.mxu1 %v15734_v12  ;;  %v18220_v42 = vld [vmem:[#allocation13 + $0x744] sm:$0xf]  ;;  %v15910_v12 = vor.u32 %v18067_v35, %v15909_v34  ;;  %v16245_v58 = vld [vmem:[#allocation13 + $0x508] sm:$0xf]  ;;  %v18151_v43 = vld [vmem:[#allocation13 + $0x514] sm:$0xf0]  ;;  %v16102_v22 = vor.u32 %v18115_v10, %v16101_v41 }
 0x5aa   :  { %10355 = vmatmul.bf16.vlgmr.msra.gmra.mxu3 %v20343_v56  ;;  %10521 = vmatpush.bf16.msra.mxu0 %v16150_v45  ;;  %v15893_v45 = vld [vmem:[#allocation13 + $0x248] sm:$0xf]  ;;  %v16530_v20 = vor.u32 %v18220_v42, %v16527_v21  ;;  %v18211_v15 = vld [vmem:[#allocation13 + $0x6f4] sm:$0xf0]  ;;  %v18049_v8 = vld [vmem:[#allocation13 + $0x1ec] sm:$0xf]  ;;  %v16246_v34 = vor.u32 %v18151_v43, %v16245_v58 }
 0x5ab   :  { %10451 = vmatpush.bf16.msra.mxu3 %v16610_v17  ;;  %v18163_v17 = vld [vmem:[#allocation13 + $0x574] sm:$0xf0]  ;;  %v10291_v25 = vpop.f32.mrf.mxu2  ;;  %v16486_v35 = vor.u32 %v18211_v15, %v16485_v9  ;;  %v17993_v3 = vld [vmem:[#allocation13 + $0x2c] sm:$0xf]  ;;  %v15623_v42 = vld [vmem:[#allocation13 + $0x38] sm:$0xf0] }
 0x5ac   :  { %10446 = vmatmul.bf16.vlgmr.msra.gmra.mxu2 %v20327_v28  ;;  %10485 = vmatmul.bf16.vlgmr.msrb.gmra.mxu1 %v20254_v54  ;;  %v20350_v51 = vadd.f32 %v10291_v25, %v20333_v14  ;;  %v18207_v25 = vld [vmem:[#allocation13 + $0x6d4] sm:$0xf0]  ;;  %v18045_v21 = vld [vmem:[#allocation13 + $0x1cc] sm:$0xf] }
 0x5ad   :  { %10490 = vmatpush.bf16.msrb.mxu2 %v15974_v61  ;;  %10529 = vmatpush.bf16.msra.mxu1 %v16358_v1  ;;  %v16294_v61 = vor.u32 %v18163_v17, %v16293_v24  ;;  %v18063_v1 = vld [vmem:[#allocation13 + $0x254] sm:$0xf0]  ;;  %v15642_v24 = vor.u32 %v17997_v33, %v15639_v52  ;;  %v18141_v10 = vld [vmem:[#allocation13 + $0x4cc] sm:$0xf]  ;;  %v15783_v52 = vld [vmem:[#allocation13 + $0x178] sm:$0xf0] }
 0x5ae   :  { %10522 = vmatpush.bf16.msra.mxu0 %v16134_v53  ;;  %v15894_v14 = vor.u32 %v18063_v1, %v15893_v45  ;;  %v15674_v53 = vor.u32 %v18005_v62, %v15671_v40  ;;  %v16470_v45 = vor.u32 %v18207_v25, %v16469_v46  ;;  %v16069_v1 = vld [vmem:[#allocation13 + $0x3a8] sm:$0xf]  ;;  %v18203_v62 = vld [vmem:[#allocation13 + $0x6b4] sm:$0xf0]  ;;  %v17989_v40 = vld [vmem:[#allocation13 + $0xc] sm:$0xf] }
 0x5af   :  { %10452 = vmatpush.bf16.msra.mxu3 %v16594_v16  ;;  %v18159_v16 = vld [vmem:[#allocation13 + $0x554] sm:$0xf0]  ;;  %v15767_v25 = vld [vmem:[#allocation13 + $0x158] sm:$0xf0] }
 0x5b0   :  { %v16278_v11 = vor.u32 %v18159_v16, %v16277_v39  ;;  %v16453_v16 = vld [vmem:[#allocation13 + $0x6a8] sm:$0xf]  ;;  %v18099_v58 = vld [vmem:[#allocation13 + $0x374] sm:$0xf0] }
 0x5b1   :  { %10491 = vmatpush.bf16.msrb.mxu2 %v15958_v63  ;;  %10530 = vmatpush.bf16.msra.mxu1 %v16342_v27  ;;  %v15877_v63 = vld [vmem:[#allocation13 + $0x228] sm:$0xf]  ;;  %v16514_v27 = vor.u32 %v18216_v36, %v16511_v49  ;;  %v15607_v36 = vld [vmem:[#allocation13 + $0x18] sm:$0xf0]  ;;  %v18041_v49 = vld [vmem:[#allocation13 + $0x1ac] sm:$0xf] }
 0x5b2   :  { %10523 = vmatpush.bf16.msra.mxu0 %v16118_v6  ;;  %v15878_v26 = vor.u32 %v18059_v19, %v15877_v63  ;;  %v16262_v6 = vor.u32 %v18155_v44, %v16261_v47  ;;  %v18145_v63 = vld [vmem:[#allocation13 + $0x4ec] sm:$0xf]  ;;  %v16231_v19 = vld [vmem:[#allocation13 + $0x4f8] sm:$0xf0]  ;;  %v18103_v47 = vld [vmem:[#allocation13 + $0x394] sm:$0xf0]  ;;  %v15610_v44 = vor.u32 %v17989_v40, %v15607_v36 }
 0x5b3   :  { %10453 = vmatpush.bf16.msra.mxu3 %v16578_v4  ;;  %v10293_v4 = vpop.f32.mrf.mxu2  ;;  %v18195_v9 = vld [vmem:[#allocation13 + $0x674] sm:$0xf0]  ;;  %v18025_v40 = vld [vmem:[#allocation13 + $0x12c] sm:$0xf]  ;;  %v15751_v36 = vld [vmem:[#allocation13 + $0x138] sm:$0xf0] }
 0x5b4   :  { %v16437_v4 = vld [vmem:[#allocation13 + $0x688] sm:$0xf] }
 0x5b5   :  { %10492 = vmatpush.bf16.msrb.mxu2 %v15942_v48  ;;  %10531 = vmatpush.bf16.msra.mxu1 %v16326_v30  ;;  %v15861_v48 = vld [vmem:[#allocation13 + $0x208] sm:$0xf]  ;;  %v18055_v30 = vld [vmem:[#allocation13 + $0x214] sm:$0xf0] }
 0x5b6   :  { %10568 = vmatpush.bf16.msrb.mxu0 %v15722_v57  ;;  %v15658_v57 = vor.u32 %v18001_v7, %v15655_v37  ;;  %v18199_v37 = vld [vmem:[#allocation13 + $0x694] sm:$0xf0] }
 0x5b7   :  { %10454 = vmatpush.bf16.msra.mxu3 %v16562_v60  ;;  %10524 = vmatmul.bf16.vlgmr.msra.gmra.mxu0 %v20296_v59  ;;  %v16498_v60 = vor.u32 %v18212_v0, %v16495_v55  ;;  %v16234_v0 = vor.u32 %v18145_v63, %v16231_v19  ;;  %v18037_v55 = vld [vmem:[#allocation13 + $0x18c] sm:$0xf]  ;;  %v15989_v63 = vld [vmem:[#allocation13 + $0x308] sm:$0xf] }
 0x5b9   :  { %10493 = vmatpush.bf16.msrb.mxu2 %v15926_v32  ;;  %10532 = vmatpush.bf16.msra.mxu1 %v16310_v18  ;;  %v15847_v32 = vld [vmem:[#allocation13 + $0x1f8] sm:$0xf0]  ;;  %v15862_v18 = vor.u32 %v18055_v30, %v15861_v48  ;;  %v16037_v30 = vld [vmem:[#allocation13 + $0x368] sm:$0xf] }
 0x5ba   :  { %10407 = vmatmul.bf16.vlgmr.msrb.gmra.mxu3 %v20288_v38  ;;  %10569 = vmatpush.bf16.msrb.mxu0 %v15706_v2  ;;  %v16085_v2 = vld [vmem:[#allocation13 + $0x3c8] sm:$0xf]  ;;  %v15850_v17 = vor.u32 %v18049_v8, %v15847_v32  ;;  %v16215_v48 = vld [vmem:[#allocation13 + $0x4d8] sm:$0xf0]  ;;  %v16038_v8 = vor.u32 %v18099_v58, %v16037_v30  ;;  %v18137_v32 = vld [vmem:[#allocation13 + $0x4ac] sm:$0xf] }
 0x5bb   :  { %10455 = vmatpush.bf16.msra.mxu3 %v16546_v5  ;;  %v18111_v5 = vld [vmem:[#allocation13 + $0x3d4] sm:$0xf0]  ;;  %v16218_v33 = vor.u32 %v18141_v10, %v16215_v48  ;;  %v18125_v48 = vld [vmem:[#allocation13 + $0x44c] sm:$0xf] }
 0x5bd   :  { %10494 = vmatpush.bf16.msrb.mxu2 %v15910_v12  ;;  %10533 = vmatpush.bf16.msra.mxu1 %v16294_v61  ;;  %v15831_v12 = vld [vmem:[#allocation13 + $0x1d8] sm:$0xf0]  ;;  %v16086_v61 = vor.u32 %v18111_v5, %v16085_v2  ;;  %v18095_v2 = vld [vmem:[#allocation13 + $0x354] sm:$0xf0] }
 0x5be   :  { %10570 = vmatpush.bf16.msrb.mxu0 %v15690_v29  ;;  %v18107_v29 = vld [vmem:[#allocation13 + $0x3b4] sm:$0xf0]  ;;  %v15834_v39 = vor.u32 %v18045_v21, %v15831_v12  ;;  %v16183_v21 = vld [vmem:[#allocation13 + $0x498] sm:$0xf0] }
 0x5bf   :  { %10456 = vmatpush.bf16.msra.mxu3 %v16530_v20  ;;  %v15626_v20 = vor.u32 %v17993_v3, %v15623_v42  ;;  %v18133_v42 = vld [vmem:[#allocation13 + $0x48c] sm:$0xf] }
 0x5c1   :  { %10495 = vmatpush.bf16.msrb.mxu2 %v15894_v14  ;;  %10534 = vmatpush.bf16.msra.mxu1 %v16278_v11  ;;  %v15815_v14 = vld [vmem:[#allocation13 + $0x1b8] sm:$0xf0]  ;;  %v16070_v11 = vor.u32 %v18107_v29, %v16069_v1 }
 0x5c2   :  { %10571 = vmatpush.bf16.msrb.mxu0 %v15674_v53  ;;  %v16454_v53 = vor.u32 %v18203_v62, %v16453_v16  ;;  %v15818_v7 = vor.u32 %v18041_v49, %v15815_v14  ;;  %v16186_v62 = vor.u32 %v18133_v42, %v16183_v21  ;;  %v18129_v14 = vld [vmem:[#allocation13 + $0x46c] sm:$0xf]  ;;  %v15943_v42 = vld [vmem:[#allocation13 + $0x2b8] sm:$0xf0] }
 0x5c3   :  { %10457 = vmatpush.bf16.msra.mxu3 %v16514_v27  ;;  %v16053_v27 = vld [vmem:[#allocation13 + $0x388] sm:$0xf] }
 0x5c4   :  { %v16054_v41 = vor.u32 %v18103_v47, %v16053_v27  ;;  %v16613_v27 = vld [vmem:[#allocation13 + $0x7e8] sm:$0xf]  ;;  %v18243_v47 = vld [vmem:[#allocation13 + $0x7f4] sm:$0xf0] }
 0x5c5   :  { %10496 = vmatpush.bf16.msrb.mxu2 %v15878_v26  ;;  %10535 = vmatpush.bf16.msra.mxu1 %v16262_v6  ;;  %v15799_v26 = vld [vmem:[#allocation13 + $0x198] sm:$0xf0]  ;;  %v16438_v6 = vor.u32 %v18199_v37, %v16437_v4  ;;  %v18183_v4 = vld [vmem:[#allocation13 + $0x614] sm:$0xf0]  ;;  %v18021_v37 = vld [vmem:[#allocation13 + $0x10c] sm:$0xf]  ;;  %v16614_v30 = vor.u32 %v18243_v47, %v16613_v27 }
 0x5c6   :  { %10572 = vmatpush.bf16.msrb.mxu0 %v15658_v57  ;;  %v15802_v57 = vor.u32 %v18037_v55, %v15799_v26  ;;  %v15735_v55 = vld [vmem:[#allocation13 + $0x118] sm:$0xf0]  ;;  %v18081_v26 = vld [vmem:[#allocation13 + $0x2ec] sm:$0xf]  ;;  %v16669_v47 = vld [vmem:[#allocation16 + $0x60] sm:$0xf] }
 0x5c7   :  { %10458 = vmatpush.bf16.msra.mxu3 %v16498_v60  ;;  %v16421_v60 = vld [vmem:[#allocation13 + $0x668] sm:$0xf]  ;;  %v16311_v27 = vld [vmem:[#allocation13 + $0x598] sm:$0xf0] }
 0x5c9   :  { %10497 = vmatpush.bf16.msrb.mxu2 %v15862_v18  ;;  %10536 = vmatpush.bf16.msra.mxu1 %v16246_v34  ;;  %v10304_v43 = vpop.f32.mrf.mxu3  ;;  %v16199_v18 = vld [vmem:[#allocation13 + $0x4b8] sm:$0xf0]  ;;  %v16422_v34 = vor.u32 %v18195_v9, %v16421_v60  ;;  %v15738_v9 = vor.u32 %v18021_v37, %v15735_v55  ;;  %v16549_v37 = vld [vmem:[#allocation13 + $0x768] sm:$0xf]  ;;  %v18065_v55 = vld [vmem:[#allocation13 + $0x26c] sm:$0xf] }
 0x5ca   :  { %10573 = vmatpush.bf16.msrb.mxu0 %v15642_v24  ;;  %10459 = vmatmul.bf16.vlgmr.msra.gmra.mxu3 %v20343_v56  ;;  %v10305_v15 = vadd.f32 %v10304_v43, %v20350_v51  ;;  %v16405_v24 = vld [vmem:[#allocation13 + $0x648] sm:$0xf]  ;;  %v16202_v46 = vor.u32 %v18137_v32, %v16199_v18  ;;  %v18029_v51 = vld [vmem:[#allocation13 + $0x14c] sm:$0xf]  ;;  %v15959_v32 = vld [vmem:[#allocation13 + $0x2d8] sm:$0xf0] }
 0x5cb   :  { %10503 = vmatpush.bf16.msrb.mxu3 %v16102_v22  ;;  %v18033_v22 = vld [vmem:[#allocation13 + $0x16c] sm:$0xf]  ;;  %v15770_v29 = vor.u32 %v18029_v51, %v15767_v25  ;;  %v18235_v51 = vld [vmem:[#allocation13 + $0x7b4] sm:$0xf0] }
 0x5cc   :  { %10498 = vmatmul.bf16.vlgmr.msrb.gmra.mxu2 %v20271_v13  ;;  %10537 = vmatmul.bf16.vlgmr.msra.gmra.mxu1 %v20307_v50  ;;  %v15786_v5 = vor.u32 %v18033_v22, %v15783_v52  ;;  %v18177_v43 = vld [vmem:[#allocation13 + $0x5ec] sm:$0xf]  ;;  %v18239_v22 = vld [vmem:[#allocation13 + $0x7d4] sm:$0xf0] }
 0x5cd   :  { %10542 = vmatpush.bf16.msra.mxu2 %v16486_v35  ;;  %10581 = vmatpush.bf16.msrb.mxu1 %v15850_v17  ;;  %v16021_v35 = vld [vmem:[#allocation13 + $0x348] sm:$0xf]  ;;  %v18191_v17 = vld [vmem:[#allocation13 + $0x654] sm:$0xf0] }
 0x5ce   :  { %10574 = vmatpush.bf16.msrb.mxu0 %v15626_v20  ;;  %v16022_v3 = vor.u32 %v18095_v2, %v16021_v35  ;;  %v16406_v12 = vor.u32 %v18191_v17, %v16405_v24  ;;  %v16389_v20 = vld [vmem:[#allocation13 + $0x628] sm:$0xf]  ;;  %v16135_v35 = vld [vmem:[#allocation13 + $0x438] sm:$0xf0] }
 0x5cf   :  { %10504 = vmatpush.bf16.msrb.mxu3 %v16086_v61  ;;  %v16005_v61 = vld [vmem:[#allocation13 + $0x328] sm:$0xf]  ;;  %v16343_v24 = vld [vmem:[#allocation13 + $0x5d8] sm:$0xf0] }
 0x5d1   :  { %10543 = vmatpush.bf16.msra.mxu2 %v16470_v45  ;;  %10582 = vmatpush.bf16.msrb.mxu1 %v15834_v39  ;;  %v10306_v45 = vpop.f32.mrf.mxu3  ;;  %v10317_v1 = vpop.f32.mrf.mxu0  ;;  %v18187_v39 = vld [vmem:[#allocation13 + $0x634] sm:$0xf0] }
 0x5d2   :  { %10575 = vmatpush.bf16.msrb.mxu0 %v15610_v44  ;;  %v20358_v16 = vadd.f32 %v10317_v1, %v10305_v15  ;;  %v16390_v19 = vor.u32 %v18187_v39, %v16389_v20  ;;  %v15754_v44 = vor.u32 %v18025_v40, %v15751_v36  ;;  %v16327_v1 = vld [vmem:[#allocation13 + $0x5b8] sm:$0xf0]  ;;  %v16565_v40 = vld [vmem:[#allocation13 + $0x788] sm:$0xf]  ;;  %v18231_v36 = vld [vmem:[#allocation13 + $0x794] sm:$0xf0] }
 0x5d3   :  { %10505 = vmatpush.bf16.msrb.mxu3 %v16070_v11  ;;  %v16167_v11 = vld [vmem:[#allocation13 + $0x478] sm:$0xf0] }
 0x5d4   :  { %v18259_v20 = vld [vmem:[#allocation16 + $0x74] sm:$0xf0] }
 0x5d5   :  { %10544 = vmatpush.bf16.msra.mxu2 %v16454_v53  ;;  %10583 = vmatpush.bf16.msrb.mxu1 %v15818_v7  ;;  %v18087_v53 = vld [vmem:[#allocation13 + $0x314] sm:$0xf0]  ;;  %v16373_v7 = vld [vmem:[#allocation13 + $0x608] sm:$0xf] }
 0x5d6   :  { %10620 = vmatpush.bf16.msra.mxu0 %v16234_v0  ;;  %v16170_v0 = vor.u32 %v18129_v14, %v16167_v11  ;;  %v15990_v10 = vor.u32 %v18087_v53, %v15989_v63  ;;  %v16374_v58 = vor.u32 %v18183_v4, %v16373_v7  ;;  %v18069_v14 = vld [vmem:[#allocation13 + $0x28c] sm:$0xf]  ;;  %v15927_v11 = vld [vmem:[#allocation13 + $0x298] sm:$0xf0] }
 0x5d7   :  { %10506 = vmatpush.bf16.msrb.mxu3 %v16054_v41  ;;  %10576 = vmatmul.bf16.vlgmr.msrb.gmra.mxu0 %v20241_v31  ;;  %v18091_v31 = vld [vmem:[#allocation13 + $0x334] sm:$0xf0]  ;;  %v15975_v41 = vld [vmem:[#allocation13 + $0x2f8] sm:$0xf0]  ;;  %v15930_v4 = vor.u32 %v18069_v14, %v15927_v11  ;;  %v18209_v11 = vld [vmem:[#allocation13 + $0x6ec] sm:$0xf] }
 0x5d8   :  { %v16006_v49 = vor.u32 %v18091_v31, %v16005_v61  ;;  %v15978_v15 = vor.u32 %v18081_v26, %v15975_v41  ;;  %v16119_v61 = vld [vmem:[#allocation13 + $0x418] sm:$0xf0]  ;;  %v18169_v31 = vld [vmem:[#allocation13 + $0x5ac] sm:$0xf] }
 0x5d9   :  { %10545 = vmatpush.bf16.msra.mxu2 %v16438_v6  ;;  %10584 = vmatpush.bf16.msrb.mxu1 %v15802_v57  ;;  %v16151_v6 = vld [vmem:[#allocation13 + $0x458] sm:$0xf0]  ;;  %v10319_v60 = vpop.f32.mrf.mxu0  ;;  %v16330_v63 = vor.u32 %v18169_v31, %v16327_v1  ;;  %v16645_v31 = vld [vmem:[#allocation16 + $0x30] sm:$0xf] }
 0x5da   :  { %10621 = vmatpush.bf16.msra.mxu0 %v16218_v33  ;;  %v16359_v57 = vld [vmem:[#allocation13 + $0x5f8] sm:$0xf0]  ;;  %v16597_v33 = vld [vmem:[#allocation13 + $0x7c8] sm:$0xf]  ;;  %v16154_v52 = vor.u32 %v18125_v48, %v16151_v6 }
 0x5db   :  { %10507 = vmatpush.bf16.msrb.mxu3 %v16038_v8  ;;  %v18077_v8 = vld [vmem:[#allocation13 + $0x2cc] sm:$0xf]  ;;  %v16362_v18 = vor.u32 %v18177_v43, %v16359_v57  ;;  %v16598_v2 = vor.u32 %v18239_v22, %v16597_v33  ;;  %v15911_v26 = vld [vmem:[#allocation13 + $0x278] sm:$0xf0] }
 0x5dc   :  { %v15962_v17 = vor.u32 %v18077_v8, %v15959_v32  ;;  %v18255_v43 = vld [vmem:[#allocation16 + $0x54] sm:$0xf0]  ;;  %v15914_v60 = vor.u32 %v18065_v55, %v15911_v26  ;;  %v18061_v33 = vld [vmem:[#allocation13 + $0x24c] sm:$0xf] }
 0x5dd   :  { %10546 = vmatpush.bf16.msra.mxu2 %v16422_v34  ;;  %10585 = vmatpush.bf16.msrb.mxu1 %v15786_v5  ;;  %v18121_v34 = vld [vmem:[#allocation13 + $0x42c] sm:$0xf]  ;;  %v15895_v22 = vld [vmem:[#allocation13 + $0x258] sm:$0xf0] }
 0x5de   :  { %10622 = vmatpush.bf16.msra.mxu0 %v16202_v46  ;;  %v18173_v5 = vld [vmem:[#allocation13 + $0x5cc] sm:$0xf]  ;;  %v16581_v46 = vld [vmem:[#allocation13 + $0x7a8] sm:$0xf]  ;;  %v16138_v25 = vor.u32 %v18121_v34, %v16135_v35  ;;  %v16279_v34 = vld [vmem:[#allocation13 + $0x558] sm:$0xf0] }
 0x5df   :  { %10508 = vmatpush.bf16.msrb.mxu3 %v16022_v3  ;;  %v18073_v3 = vld [vmem:[#allocation13 + $0x2ac] sm:$0xf]  ;;  %v16346_v21 = vor.u32 %v18173_v5, %v16343_v24  ;;  %v16582_v45 = vor.u32 %v18235_v51, %v16581_v46  ;;  %v16653_v35 = vld [vmem:[#allocation16 + $0x40] sm:$0xf]  ;;  %v16517_v24 = vld [vmem:[#allocation13 + $0x728] sm:$0xf] }
 0x5e0   :  { %v18157_v8 = vld [vmem:[#allocation13 + $0x54c] sm:$0xf]  ;;  %v15879_v51 = vld [vmem:[#allocation13 + $0x238] sm:$0xf0] }
 0x5e1   :  { %10547 = vmatpush.bf16.msra.mxu2 %v16406_v12  ;;  %10586 = vmatpush.bf16.msrb.mxu1 %v15770_v29  ;;  %v18117_v12 = vld [vmem:[#allocation13 + $0x40c] sm:$0xf]  ;;  %v16677_v29 = vld [vmem:[#allocation16 + $0x70] sm:$0xf]  ;;  %v20363_v39 = vpop.f32.mrf.mxu0 }
 0x5e2   :  { %10623 = vmatpush.bf16.msra.mxu0 %v16186_v62  ;;  %v15946_v62 = vor.u32 %v18073_v3, %v15943_v42  ;;  %v16678_v53 = vor.u32 %v18259_v20, %v16677_v29  ;;  %v18057_v46 = vld [vmem:[#allocation13 + $0x22c] sm:$0xf]  ;;  %v16282_v3 = vor.u32 %v18157_v8, %v16279_v34  ;;  %v16501_v20 = vld [vmem:[#allocation13 + $0x708] sm:$0xf]  ;;  %v16455_v8 = vld [vmem:[#allocation13 + $0x6b8] sm:$0xf0] }
 0x5e3   :  { %10509 = vmatpush.bf16.msrb.mxu3 %v16006_v49  ;;  %v16122_v49 = vor.u32 %v18117_v12, %v16119_v61  ;;  %v18153_v42 = vld [vmem:[#allocation13 + $0x52c] sm:$0xf]  ;;  %v16263_v61 = vld [vmem:[#allocation13 + $0x538] sm:$0xf0]  ;;  %v15882_v29 = vor.u32 %v18057_v46, %v15879_v51  ;;  %v16679_v46 = vld [vmem:[#allocation16 + $0x78] sm:$0xf0] }
 0x5e4   :  { %v16266_v14 = vor.u32 %v18153_v42, %v16263_v61  ;;  %v18249_v55 = vld [vmem:[#allocation16 + $0x24] sm:$0xf0]  ;;  %v16741_v51 = vld [vmem:[#allocation16 + $0xf0] sm:$0xf]  ;;  %v16439_v42 = vld [vmem:[#allocation13 + $0x698] sm:$0xf0] }
 0x5e5   :  { %10548 = vmatpush.bf16.msra.mxu2 %v16390_v19  ;;  %10587 = vmatpush.bf16.msrb.mxu1 %v15754_v44  ;;  %v18165_v19 = vld [vmem:[#allocation13 + $0x58c] sm:$0xf] }
 0x5e6   :  { %10624 = vmatpush.bf16.msra.mxu0 %v16170_v0  ;;  %v18257_v44 = vld [vmem:[#allocation16 + $0x64] sm:$0xf0]  ;;  %v18227_v0 = vld [vmem:[#allocation13 + $0x774] sm:$0xf0]  ;;  %v16314_v41 = vor.u32 %v18165_v19, %v16311_v27 }
 0x5e7   :  { %10510 = vmatpush.bf16.msrb.mxu3 %v15990_v10  ;;  %v18161_v10 = vld [vmem:[#allocation13 + $0x56c] sm:$0xf]  ;;  %v16670_v48 = vor.u32 %v18257_v44, %v16669_v47  ;;  %v16550_v6 = vor.u32 %v18227_v0, %v16549_v37  ;;  %v16247_v47 = vld [vmem:[#allocation13 + $0x518] sm:$0xf0]  ;;  %v16637_v0 = vld [vmem:[#allocation16 + $0x20] sm:$0xf] }
 0x5e8   :  { %v18149_v27 = vld [vmem:[#allocation13 + $0x50c] sm:$0xf] }
 0x5e9   :  { %10549 = vmatpush.bf16.msra.mxu2 %v16374_v58  ;;  %10588 = vmatpush.bf16.msrb.mxu1 %v15738_v9  ;;  %v20365_v7 = vpop.f32.mrf.mxu1  ;;  %v16661_v58 = vld [vmem:[#allocation16 + $0x50] sm:$0xf]  ;;  %v10371_v57 = vpop.f32.mrf.mxu0  ;;  %v16533_v9 = vld [vmem:[#allocation13 + $0x748] sm:$0xf]  ;;  %v18097_v61 = vld [vmem:[#allocation13 + $0x36c] sm:$0xf] }
 0x5ea   :  { %10511 = vmatmul.bf16.vlgmr.msrb.gmra.mxu3 %v20288_v38  ;;  %10625 = vmatpush.bf16.msra.mxu0 %v16154_v52  ;;  %v16662_v32 = vor.u32 %v18255_v43, %v16661_v58  ;;  %v16471_v58 = vld [vmem:[#allocation13 + $0x6d8] sm:$0xf0] }
 0x5eb   :  { %10555 = vmatpush.bf16.msra.mxu3 %v16614_v30  ;;  %v16295_v30 = vld [vmem:[#allocation13 + $0x578] sm:$0xf0] }
 0x5ec   :  { %10550 = vmatmul.bf16.vlgmr.msra.gmra.mxu2 %v20327_v28  ;;  %10589 = vmatmul.bf16.vlgmr.msrb.gmra.mxu1 %v20254_v54  ;;  %v16566_v54 = vor.u32 %v18231_v36, %v16565_v40  ;;  %v16298_v52 = vor.u32 %v18161_v10, %v16295_v30  ;;  %v18113_v40 = vld [vmem:[#allocation13 + $0x3ec] sm:$0xf]  ;;  %v16103_v36 = vld [vmem:[#allocation13 + $0x3f8] sm:$0xf0] }
 0x5ed   :  { %10594 = vmatpush.bf16.msrb.mxu2 %v15978_v15  ;;  %10633 = vmatpush.bf16.msra.mxu1 %v16362_v18  ;;  %v18223_v15 = vld [vmem:[#allocation13 + $0x754] sm:$0xf0]  ;;  %v18109_v10 = vld [vmem:[#allocation13 + $0x3cc] sm:$0xf] }
 0x5ee   :  { %10626 = vmatpush.bf16.msra.mxu0 %v16138_v25  ;;  %v16534_v18 = vor.u32 %v18223_v15, %v16533_v9  ;;  %v8969_v25 = vperm.slane %v20325_v23, 1  ;;  %v15863_v23 = vld [vmem:[#allocation13 + $0x218] sm:$0xf0]  ;;  %v18205_v30 = vld [vmem:[#allocation13 + $0x6cc] sm:$0xf] }
 0x5ef   :  { %10556 = vmatpush.bf16.msra.mxu3 %v16598_v2  ;;  %v18253_v2 = vld [vmem:[#allocation16 + $0x44] sm:$0xf0]  ;;  %v18247_v9 = vld [vmem:[#allocation16 + $0x14] sm:$0xf0]  ;;  %v16474_v15 = vor.u32 %v18205_v30, %v16471_v58 }
 0x5f1   :  { %10595 = vmatpush.bf16.msrb.mxu2 %v15962_v17  ;;  %10634 = vmatpush.bf16.msra.mxu1 %v16346_v21  ;;  %v10332_v5 = vpop.f32.mrf.mxu1  ;;  %v18219_v17 = vld [vmem:[#allocation13 + $0x734] sm:$0xf0]  ;;  %v16654_v21 = vor.u32 %v18253_v2, %v16653_v35  ;;  %v20369_v1 = vpop.f32.mrf.mxu0 }
 0x5f2   :  { %10627 = vmatpush.bf16.msra.mxu0 %v16122_v49  ;;  %v16518_v12 = vor.u32 %v18219_v17, %v16517_v24  ;;  %v18053_v49 = vld [vmem:[#allocation13 + $0x20c] sm:$0xf]  ;;  %v16621_v5 = vld [vmem:[#allocation16] sm:$0xf]  ;;  %v18258_v24 = vld [vmem:[#allocation16 + $0x74] sm:$0xf] }
 0x5f3   :  { %10557 = vmatpush.bf16.msra.mxu3 %v16582_v45  ;;  %v18251_v45 = vld [vmem:[#allocation16 + $0x34] sm:$0xf0]  ;;  %v15866_v37 = vor.u32 %v18053_v49, %v15863_v23  ;;  %v18273_v49 = vld [vmem:[#allocation16 + $0xe4] sm:$0xf0] }
 0x5f4   :  { %v16646_v19 = vor.u32 %v18251_v45, %v16645_v31  ;;  %v16039_v31 = vld [vmem:[#allocation13 + $0x378] sm:$0xf0]  ;;  %v16682_v45 = vor.u32 %v18258_v24, %v16679_v46  ;;  %v16709_v24 = vld [vmem:[#allocation16 + $0xb0] sm:$0xf] }
 0x5f5   :  { %10596 = vmatpush.bf16.msrb.mxu2 %v15946_v62  ;;  %10635 = vmatpush.bf16.msra.mxu1 %v16330_v63  ;;  %v18215_v62 = vld [vmem:[#allocation13 + $0x714] sm:$0xf0]  ;;  %v16487_v63 = vld [vmem:[#allocation13 + $0x6f8] sm:$0xf0] }
 0x5f6   :  { %11078 = vmatpush.bf16.msrb.mxu0 %v16678_v53  ;;  %v10370_v53 = vadd.f32 %v20363_v39, %v8969_v25  ;;  %v16638_v39 = vor.u32 %v18249_v55, %v16637_v0  ;;  %v18275_v25 = vld [vmem:[#allocation16 + $0xf4] sm:$0xf0] }
 0x5f7   :  { %10558 = vmatpush.bf16.msra.mxu3 %v16566_v54  ;;  %10628 = vmatmul.bf16.vlgmr.msra.gmra.mxu0 %v20296_v59  ;;  %v15898_v59 = vor.u32 %v18061_v33, %v15895_v22  ;;  %v16502_v54 = vor.u32 %v18215_v62, %v16501_v20  ;;  %v18105_v33 = vld [vmem:[#allocation13 + $0x3ac] sm:$0xf]  ;;  %v16071_v22 = vld [vmem:[#allocation13 + $0x3b8] sm:$0xf0]  ;;  %v16671_v62 = vld [vmem:[#allocation16 + $0x68] sm:$0xf0] }
 0x5f8   :  { %v16074_v2 = vor.u32 %v18105_v33, %v16071_v22  ;;  %v18193_v20 = vld [vmem:[#allocation13 + $0x66c] sm:$0xf]  ;;  %v18271_v0 = vld [vmem:[#allocation16 + $0xd4] sm:$0xf0] }
 0x5f9   :  { %10597 = vmatpush.bf16.msrb.mxu2 %v15930_v4  ;;  %10636 = vmatpush.bf16.msra.mxu1 %v16314_v41  ;;  %v10382_v44 = vpop.f32.mrf.mxu1  ;;  %v16106_v4 = vor.u32 %v18113_v40, %v16103_v36  ;;  %v16490_v41 = vor.u32 %v18209_v11, %v16487_v63  ;;  %v10423_v43 = vpop.f32.mrf.mxu0  ;;  %v16423_v40 = vld [vmem:[#allocation13 + $0x678] sm:$0xf0]  ;;  %v16733_v36 = vld [vmem:[#allocation16 + $0xe0] sm:$0xf]  ;;  %v16042_v11 = vor.u32 %v18097_v61, %v16039_v31  ;;  %v18093_v63 = vld [vmem:[#allocation13 + $0x34c] sm:$0xf] }
 0x5fa   :  { %11079 = vmatpush.bf16.msrb.mxu0 %v16670_v48  ;;  %v20372_v26 = vadd.f32 %v10382_v44, %v10370_v53  ;;  %v16087_v48 = vld [vmem:[#allocation13 + $0x3d8] sm:$0xf0]  ;;  %v16734_v23 = vor.u32 %v18273_v49, %v16733_v36  ;;  %v16663_v44 = vld [vmem:[#allocation16 + $0x58] sm:$0xf0]  ;;  %v18252_v43 = vld [vmem:[#allocation16 + $0x44] sm:$0xf] }
 0x5fb   :  { %10559 = vmatpush.bf16.msra.mxu3 %v16550_v6  ;;  %v16250_v6 = vor.u32 %v18149_v27, %v16247_v47  ;;  %v16090_v57 = vor.u32 %v18109_v10, %v16087_v48  ;;  %v18189_v27 = vld [vmem:[#allocation13 + $0x64c] sm:$0xf]  ;;  %v18254_v47 = vld [vmem:[#allocation16 + $0x54] sm:$0xf]  ;;  %v16615_v46 = vld [vmem:[#allocation13 + $0x7f8] sm:$0xf0] }
 0x5fc   :  { %v18089_v48 = vld [vmem:[#allocation13 + $0x32c] sm:$0xf]  ;;  %v16666_v30 = vor.u32 %v18254_v47, %v16663_v44  ;;  %v18246_v49 = vld [vmem:[#allocation16 + $0x14] sm:$0xf] }
 0x5fd   :  { %10598 = vmatpush.bf16.msrb.mxu2 %v15914_v60  ;;  %10637 = vmatpush.bf16.msra.mxu1 %v16298_v52  ;;  %v16629_v60 = vld [vmem:[#allocation16 + $0x10] sm:$0xf]  ;;  %v18201_v52 = vld [vmem:[#allocation13 + $0x6ac] sm:$0xf] }
 0x5fe   :  { %11080 = vmatpush.bf16.msrb.mxu0 %v16662_v32  ;;  %v18101_v32 = vld [vmem:[#allocation13 + $0x38c] sm:$0xf]  ;;  %v16630_v34 = vor.u32 %v18247_v9, %v16629_v60  ;;  %v16458_v17 = vor.u32 %v18201_v52, %v16455_v8  ;;  %v16391_v60 = vld [vmem:[#allocation13 + $0x638] sm:$0xf0]  ;;  %v16717_v9 = vld [vmem:[#allocation16 + $0xc0] sm:$0xf] }
 0x5ff   :  { %10560 = vmatpush.bf16.msra.mxu3 %v16534_v18  ;;  %v16055_v18 = vld [vmem:[#allocation13 + $0x398] sm:$0xf0]  ;;  %v18085_v33 = vld [vmem:[#allocation13 + $0x30c] sm:$0xf] }
 0x600   :  { %v18237_v31 = vld [vmem:[#allocation13 + $0x7cc] sm:$0xf] }
 0x601   :  { %10599 = vmatpush.bf16.msrb.mxu2 %v15898_v59  ;;  %10638 = vmatpush.bf16.msra.mxu1 %v16282_v3  ;;  %v10384_v35 = vpop.f32.mrf.mxu1  ;;  %v18245_v59 = vld [vmem:[#allocation16 + $0x4] sm:$0xf0] }
 0x602   :  { %11081 = vmatpush.bf16.msrb.mxu0 %v16654_v21  ;;  %v18197_v3 = vld [vmem:[#allocation13 + $0x68c] sm:$0xf]  ;;  %v16622_v21 = vor.u32 %v18245_v59, %v16621_v5  ;;  %v18250_v35 = vld [vmem:[#allocation16 + $0x34] sm:$0xf]  ;;  %v16647_v59 = vld [vmem:[#allocation16 + $0x38] sm:$0xf0] }
 0x603   :  { %10561 = vmatpush.bf16.msra.mxu3 %v16518_v12  ;;  %v16058_v12 = vor.u32 %v18101_v32, %v16055_v18  ;;  %v15991_v32 = vld [vmem:[#allocation13 + $0x318] sm:$0xf0]  ;;  %v18241_v18 = vld [vmem:[#allocation13 + $0x7ec] sm:$0xf] }
 0x605   :  { %10600 = vmatpush.bf16.msrb.mxu2 %v15882_v29  ;;  %10639 = vmatpush.bf16.msra.mxu1 %v16266_v14  ;;  %v16442_v29 = vor.u32 %v18197_v3, %v16439_v42 }
 0x606   :  { %11082 = vmatpush.bf16.msrb.mxu0 %v16646_v19  ;;  %v16023_v19 = vld [vmem:[#allocation13 + $0x358] sm:$0xf0] }
 0x607   :  { %10562 = vmatpush.bf16.msra.mxu3 %v16502_v54  ;;  %v16426_v54 = vor.u32 %v18193_v20, %v16423_v40  ;;  %v16026_v10 = vor.u32 %v18093_v63, %v16023_v19  ;;  %v16599_v20 = vld [vmem:[#allocation13 + $0x7d8] sm:$0xf0]  ;;  %v16631_v63 = vld [vmem:[#allocation16 + $0x18] sm:$0xf0]  ;;  %v16693_v19 = vld [vmem:[#allocation16 + $0x90] sm:$0xf] }
 0x609   :  { %10601 = vmatpush.bf16.msrb.mxu2 %v15866_v37  ;;  %10640 = vmatpush.bf16.msra.mxu1 %v16250_v6  ;;  %v20377_v14 = vpop.f32.mrf.mxu1  ;;  %v16725_v37 = vld [vmem:[#allocation16 + $0xd0] sm:$0xf]  ;;  %v16007_v6 = vld [vmem:[#allocation13 + $0x338] sm:$0xf0] }
 0x60a   :  { %10563 = vmatmul.bf16.vlgmr.msra.gmra.mxu3 %v20343_v56  ;;  %11083 = vmatpush.bf16.msrb.mxu0 %v16638_v39  ;;  %v18185_v39 = vld [vmem:[#allocation13 + $0x62c] sm:$0xf]  ;;  %v16010_v8 = vor.u32 %v18089_v48, %v16007_v6  ;;  %v16623_v48 = vld [vmem:[#allocation16 + $0x8] sm:$0xf0]  ;;  %v16685_v6 = vld [vmem:[#allocation16 + $0x80] sm:$0xf] }
 0x60b   :  { %10607 = vmatpush.bf16.msrb.mxu3 %v16106_v4  ;;  %v16407_v4 = vld [vmem:[#allocation13 + $0x658] sm:$0xf0]  ;;  %v16394_v5 = vor.u32 %v18185_v39, %v16391_v60  ;;  %v20387_v60 = vld [vmem:[#allocation15] sm:$0xf] }
 0x60c   :  { %10602 = vmatmul.bf16.vlgmr.msrb.gmra.mxu2 %v20271_v13  ;;  %10641 = vmatmul.bf16.vlgmr.msra.gmra.mxu1 %v20307_v50  ;;  %v16742_v13 = vor.u32 %v18275_v25, %v16741_v51  ;;  %v18256_v50 = vld [vmem:[#allocation16 + $0x64] sm:$0xf]  ;;  %v16410_v58 = vor.u32 %v18189_v27, %v16407_v4  ;;  %v18181_v51 = vld [vmem:[#allocation13 + $0x60c] sm:$0xf]  ;;  %v16375_v25 = vld [vmem:[#allocation13 + $0x618] sm:$0xf0] }
 0x60d   :  { %10646 = vmatpush.bf16.msra.mxu2 %v16490_v41  ;;  %v16674_v53 = vor.u32 %v18256_v50, %v16671_v62  ;;  %v16726_v41 = vor.u32 %v18271_v0, %v16725_v37  ;;  %v16378_v61 = vor.u32 %v18181_v51, %v16375_v25  ;;  %v16701_v50 = vld [vmem:[#allocation16 + $0xa0] sm:$0xf]  ;;  %v18265_v62 = vld [vmem:[#allocation16 + $0xa4] sm:$0xf0]  ;;  %v16583_v27 = vld [vmem:[#allocation13 + $0x7b8] sm:$0xf0]  ;;  %v16634_v37 = vor.u32 %v18246_v49, %v16631_v63 }
 0x60e   :  { %11084 = vmatpush.bf16.msrb.mxu0 %v16630_v34  ;;  %11091 = vmatpush.bf16.msrb.mxu1 %v16742_v13  ;;  %v15994_v13 = vor.u32 %v18085_v33, %v15991_v32  ;;  %v16702_v40 = vor.u32 %v18265_v62, %v16701_v50  ;;  %v18229_v4 = vld [vmem:[#allocation13 + $0x78c] sm:$0xf]  ;;  %v16551_v33 = vld [vmem:[#allocation13 + $0x778] sm:$0xf0]  ;;  %v16735_v32 = vld [vmem:[#allocation16 + $0xe8] sm:$0xf0] }
 0x60f   :  { %10608 = vmatpush.bf16.msrb.mxu3 %v16090_v57  ;;  %v20379_v55 = vpop.f32.mrf.mxu2  ;;  %v16655_v57 = vld [vmem:[#allocation16 + $0x48] sm:$0xf0] }
 0x610   :  { %v16658_v34 = vor.u32 %v18252_v43, %v16655_v57  ;;  %v16743_v43 = vld [vmem:[#allocation16 + $0xf8] sm:$0xf0] }
 0x611   :  { %10647 = vmatpush.bf16.msra.mxu2 %v16474_v15  ;;  %v18269_v15 = vld [vmem:[#allocation16 + $0xc4] sm:$0xf0]  ;;  %v10436_v52 = vpop.f32.mrf.mxu1 }
 0x612   :  { %11085 = vmatpush.bf16.msrb.mxu0 %v16622_v21  ;;  %11092 = vmatpush.bf16.msrb.mxu1 %v16734_v23  ;;  %v16718_v22 = vor.u32 %v18269_v15, %v16717_v9  ;;  %v16650_v21 = vor.u32 %v18250_v35, %v16647_v59  ;;  %v18225_v15 = vld [vmem:[#allocation13 + $0x76c] sm:$0xf] }
 0x613   :  { %10609 = vmatpush.bf16.msrb.mxu3 %v16074_v2 }
 0x614   :  { %v20381_v2 = vpop.f32.mrf.mxu0 }
 0x615   :  { %10648 = vmatpush.bf16.msra.mxu2 %v16458_v17  ;;  %v18267_v17 = vld [vmem:[#allocation16 + $0xb4] sm:$0xf0] }
 0x616   :  { %11130 = vmatpush.bf16.msra.mxu0 %v16682_v45  ;;  %11093 = vmatpush.bf16.msrb.mxu1 %v16726_v41  ;;  %v16710_v3 = vor.u32 %v18267_v17, %v16709_v24  ;;  %v18248_v45 = vld [vmem:[#allocation16 + $0x24] sm:$0xf]  ;;  %v16567_v41 = vld [vmem:[#allocation13 + $0x798] sm:$0xf0]  ;;  %v18221_v17 = vld [vmem:[#allocation13 + $0x74c] sm:$0xf] }
 0x617   :  { %10610 = vmatpush.bf16.msrb.mxu3 %v16058_v12  ;;  %v10345_v42 = vpop.f32.mrf.mxu2  ;;  %v16618_v12 = vor.u32 %v18241_v18, %v16615_v46  ;;  %v16570_v9 = vor.u32 %v18229_v4, %v16567_v41  ;;  %v16535_v46 = vld [vmem:[#allocation13 + $0x758] sm:$0xf0]  ;;  %v18262_v4 = vld [vmem:[#allocation16 + $0x94] sm:$0xf] }
 0x619   :  { %10649 = vmatpush.bf16.msra.mxu2 %v16442_v29  ;;  %v16639_v29 = vld [vmem:[#allocation16 + $0x28] sm:$0xf0] }
 0x61a   :  { %11131 = vmatpush.bf16.msra.mxu0 %v16674_v53  ;;  %11094 = vmatpush.bf16.msrb.mxu1 %v16718_v22  ;;  %v16642_v36 = vor.u32 %v18248_v45, %v16639_v29  ;;  %v18263_v53 = vld [vmem:[#allocation16 + $0x94] sm:$0xf0]  ;;  %v10331_v22 = vadd.f32 %v20365_v7, %v20358_v16  ;;  %v18270_v16 = vld [vmem:[#allocation16 + $0xd4] sm:$0xf]  ;;  %v16727_v7 = vld [vmem:[#allocation16 + $0xd8] sm:$0xf0] }
 0x61b   :  { %10611 = vmatpush.bf16.msrb.mxu3 %v16042_v11  ;;  %v16602_v11 = vor.u32 %v18237_v31, %v16599_v20  ;;  %v16694_v47 = vor.u32 %v18263_v53, %v16693_v19  ;;  %v16719_v31 = vld [vmem:[#allocation16 + $0xc8] sm:$0xf0] }
 0x61c   :  { %v10475_v23 = vpop.f32.mrf.mxu0 }
 0x61d   :  { %10650 = vmatpush.bf16.msra.mxu2 %v16426_v54  ;;  %v18233_v54 = vld [vmem:[#allocation13 + $0x7ac] sm:$0xf]  ;;  %v18266_v23 = vld [vmem:[#allocation16 + $0xb4] sm:$0xf] }
 0x61e   :  { %11132 = vmatpush.bf16.msra.mxu0 %v16666_v30  ;;  %11095 = vmatpush.bf16.msrb.mxu1 %v16710_v3  ;;  %v16586_v0 = vor.u32 %v18233_v54, %v16583_v27  ;;  %v18261_v30 = vld [vmem:[#allocation16 + $0x84] sm:$0xf0]  ;;  %v16730_v3 = vor.u32 %v18270_v16, %v16727_v7  ;;  %v18264_v54 = vld [vmem:[#allocation16 + $0xa4] sm:$0xf]  ;;  %v16703_v27 = vld [vmem:[#allocation16 + $0xa8] sm:$0xf0] }
 0x61f   :  { %10612 = vmatpush.bf16.msrb.mxu3 %v16026_v10  ;;  %v20384_v44 = vpop.f32.mrf.mxu2  ;;  %v18244_v10 = vld [vmem:[#allocation16 + $0x4] sm:$0xf]  ;;  %v16686_v39 = vor.u32 %v18261_v30, %v16685_v6  ;;  %v18283_v16 = vld [vmem:[#allocation16 + $0x134] sm:$0xf0] }
 0x620   :  { %v10396_v41 = vadd.f32 %v20384_v44, %v20372_v26  ;;  %v16797_v26 = vld [vmem:[#allocation16 + $0x160] sm:$0xf]  ;;  %v18289_v44 = vld [vmem:[#allocation16 + $0x164] sm:$0xf0] }
 0x621   :  { %10651 = vmatpush.bf16.msra.mxu2 %v16410_v58  ;;  %v18274_v58 = vld [vmem:[#allocation16 + $0xf4] sm:$0xf] }
 0x622   :  { %11133 = vmatpush.bf16.msra.mxu0 %v16658_v34  ;;  %11096 = vmatpush.bf16.msrb.mxu1 %v16702_v40  ;;  %v16746_v57 = vor.u32 %v18274_v58, %v16743_v43  ;;  %v10344_v34 = vadd.f32 %v20379_v55, %v10331_v22  ;;  %v18217_v55 = vld [vmem:[#allocation13 + $0x72c] sm:$0xf]  ;;  %v18260_v43 = vld [vmem:[#allocation16 + $0x84] sm:$0xf] }
 0x623   :  { %10613 = vmatpush.bf16.msrb.mxu3 %v16010_v8  ;;  %v18272_v8 = vld [vmem:[#allocation16 + $0xe4] sm:$0xf]  ;;  %v18213_v40 = vld [vmem:[#allocation13 + $0x70c] sm:$0xf] }
 0x624   :  { %v16738_v18 = vor.u32 %v18272_v8, %v16735_v32 }
 0x625   :  { %10652 = vmatpush.bf16.msra.mxu2 %v16394_v5  ;;  %v16554_v5 = vor.u32 %v18225_v15, %v16551_v33  ;;  %v16798_v15 = vor.u32 %v18289_v44, %v16797_v26  ;;  %v16767_v26 = vld [vmem:[#allocation16 + $0x128] sm:$0xf0] }
 0x626   :  { %11134 = vmatpush.bf16.msra.mxu0 %v16650_v21  ;;  %11097 = vmatpush.bf16.msrb.mxu1 %v16694_v47  ;;  %v16519_v21 = vld [vmem:[#allocation13 + $0x738] sm:$0xf0]  ;;  %v16706_v47 = vor.u32 %v18264_v54, %v16703_v27  ;;  %v18286_v27 = vld [vmem:[#allocation16 + $0x154] sm:$0xf] }
 0x627   :  { %10614 = vmatpush.bf16.msrb.mxu3 %v15994_v13  ;;  %v10397_v52 = vpop.f32.mrf.mxu2  ;;  %v16538_v13 = vor.u32 %v18221_v17, %v16535_v46  ;;  %v16522_v20 = vor.u32 %v18217_v55, %v16519_v21  ;;  %v16773_v46 = vld [vmem:[#allocation16 + $0x130] sm:$0xf] }
 0x628   :  { %v16789_v52 = vld [vmem:[#allocation16 + $0x150] sm:$0xf] }
 0x629   :  { %10653 = vmatpush.bf16.msra.mxu2 %v16378_v61  ;;  %v10486_v59 = vpop.f32.mrf.mxu1  ;;  %v18268_v61 = vld [vmem:[#allocation16 + $0xc4] sm:$0xf] }
 0x62a   :  { %10615 = vmatmul.bf16.vlgmr.msrb.gmra.mxu3 %v20288_v38  ;;  %11135 = vmatpush.bf16.msra.mxu0 %v16642_v36  ;;  %v16626_v38 = vor.u32 %v18244_v10, %v16623_v48  ;;  %v16722_v29 = vor.u32 %v18268_v61, %v16719_v31  ;;  %v16503_v36 = vld [vmem:[#allocation13 + $0x718] sm:$0xf0] }
 0x62b   :  { %10659 = vmatpush.bf16.msra.mxu3 %v16618_v12  ;;  %11098 = vmatpush.bf16.msrb.mxu1 %v16686_v39  ;;  %v16506_v19 = vor.u32 %v18213_v40, %v16503_v36  ;;  %v18291_v10 = vld [vmem:[#allocation16 + $0x174] sm:$0xf0] }
 0x62c   :  { %10654 = vmatmul.bf16.vlgmr.msra.gmra.mxu2 %v20327_v28  ;;  %v8970_v28 = vperm.slane %v20387_v60, 2  ;;  %v18279_v61 = vld [vmem:[#allocation16 + $0x114] sm:$0xf0] }
 0x62d   :  { %v10356_v24 = vpop.f32.mrf.mxu3 }
 0x62e   :  { %11136 = vmatpush.bf16.msra.mxu0 %v16634_v37  ;;  %v10474_v35 = vadd.f32 %v20381_v2, %v8970_v28  ;;  %v10357_v25 = vadd.f32 %v10356_v24, %v10344_v34  ;;  %v16695_v37 = vld [vmem:[#allocation16 + $0x98] sm:$0xf0] }
 0x62f   :  { %10660 = vmatpush.bf16.msra.mxu3 %v16602_v11  ;;  %11143 = vmatpush.bf16.msra.mxu1 %v16746_v57  ;;  %v10447_v12 = vpop.f32.mrf.mxu2  ;;  %v16711_v11 = vld [vmem:[#allocation16 + $0xb8] sm:$0xf0]  ;;  %v16698_v39 = vor.u32 %v18262_v4, %v16695_v37 }
 0x630   :  { %v20394_v51 = vadd.f32 %v10486_v59, %v10474_v35  ;;  %vm10672_vm2 = vcmp.ge.f32.partialorder %v10357_v25, 0.0  ;;  %v10676_v42 = vmul.f32 0.01, %v10357_v25  ;;  %v16714_v63 = vor.u32 %v18266_v23, %v16711_v11  ;;  %v18288_v11 = vld [vmem:[#allocation16 + $0x164] sm:$0xf] }
 0x631   :  { %v10488_v50 = vpop.f32.mrf.mxu1  ;;  %v8971_v23 = vperm.slane %v20387_v60, 3  ;;  %v16783_v60 = vld [vmem:[#allocation16 + $0x148] sm:$0xf0] }
 0x632   :  { %11137 = vmatpush.bf16.msra.mxu0 %v16626_v38  ;;  %v10680_v2 = vsel %vm10672_vm2, %v10357_v25, %v10676_v42  ;;  %v16687_v38 = vld [vmem:[#allocation16 + $0x88] sm:$0xf0]  ;;  %v16765_v42 = vld [vmem:[#allocation16 + $0x120] sm:$0xf]  ;;  %v18290_v50 = vld [vmem:[#allocation16 + $0x174] sm:$0xf] }
 0x633   :  { %10661 = vmatpush.bf16.msra.mxu3 %v16586_v0  ;;  %11144 = vmatpush.bf16.msra.mxu1 %v16738_v18  ;;  %v10684_v45 = vpack.c.bf16 %v10680_v2, %v10680_v2  ;;  %v16805_v0 = vld [vmem:[#allocation16 + $0x170] sm:$0xf]  ;;  %v16690_v28 = vor.u32 %v18260_v43, %v16687_v38  ;;  %v16781_v18 = vld [vmem:[#allocation16 + $0x140] sm:$0xf]  ;;  %v18282_v43 = vld [vmem:[#allocation16 + $0x134] sm:$0xf] }
 0x634   :  { %v20396_v49 = vpop.f32.mrf.mxu0  ;;  %v16806_v6 = vor.u32 %v18291_v10, %v16805_v0  ;;  %v18284_v10 = vld [vmem:[#allocation16 + $0x144] sm:$0xf]  ;;  %v16775_v38 = vld [vmem:[#allocation16 + $0x138] sm:$0xf0] }
 0x635   :  { %v10358_v62 = vpop.f32.mrf.mxu3  ;;  %11086 = vmatmul.bf16.vlgmr.msrb.gmra.mxu0 %v10684_v45 }
 0x636   :  { %11104 = vmatpush.bf16.msrb.mxu2 %v16806_v6  ;;  %v16807_v62 = vld [vmem:[#allocation16 + $0x178] sm:$0xf0] }
 0x637   :  { %10662 = vmatpush.bf16.msra.mxu3 %v16570_v9  ;;  %11145 = vmatpush.bf16.msra.mxu1 %v16730_v3  ;;  %v10449_v53 = vpop.f32.mrf.mxu2  ;;  %v16810_v36 = vor.u32 %v18290_v50, %v16807_v62  ;;  %v16829_v50 = vld [vmem:[#allocation16 + $0x1a0] sm:$0xf]  ;;  %v18297_v62 = vld [vmem:[#allocation16 + $0x1a4] sm:$0xf0] }
 0x63a   :  { %11105 = vmatpush.bf16.msrb.mxu2 %v16798_v15  ;;  %v16869_v15 = vld [vmem:[#allocation16 + $0x1f0] sm:$0xf] }
 0x63b   :  { %10663 = vmatpush.bf16.msra.mxu3 %v16554_v5  ;;  %11146 = vmatpush.bf16.msra.mxu1 %v16722_v29  ;;  %v16749_v29 = vld [vmem:[#allocation16 + $0x100] sm:$0xf] }
 0x63c   :  { %v10527_v30 = vpop.f32.mrf.mxu0 }
 0x63d   :  { %v10408_v48 = vpop.f32.mrf.mxu3  ;;  %v16786_v30 = vor.u32 %v18284_v10, %v16783_v60  ;;  %v16863_v10 = vld [vmem:[#allocation16 + $0x1e8] sm:$0xf0] }
 0x63e   :  { %v10409_v58 = vadd.f32 %v10408_v48, %v10396_v41 }
 0x63f   :  { %10664 = vmatpush.bf16.msra.mxu3 %v16538_v13  ;;  %11147 = vmatpush.bf16.msra.mxu1 %v16714_v63  ;;  %v18281_v13 = vld [vmem:[#allocation16 + $0x124] sm:$0xf0]  ;;  %v16799_v63 = vld [vmem:[#allocation16 + $0x168] sm:$0xf0] }
 0x640   :  { %v10422_v57 = vadd.f32 %v20369_v1, %v10409_v58  ;;  %v18285_v1 = vld [vmem:[#allocation16 + $0x144] sm:$0xf0]  ;;  %v16766_v2 = vor.u32 %v18281_v13, %v16765_v42  ;;  %v16845_v42 = vld [vmem:[#allocation16 + $0x1c0] sm:$0xf] }
 0x641   :  { %v16782_v5 = vor.u32 %v18285_v1, %v16781_v18  ;;  %v18276_v1 = vld [vmem:[#allocation16 + $0x104] sm:$0xf]  ;;  %v18301_v13 = vld [vmem:[#allocation16 + $0x1c4] sm:$0xf0] }
 0x642   :  { %v10435_v22 = vadd.f32 %v20377_v14, %v10422_v57  ;;  %v16774_v14 = vor.u32 %v18283_v16, %v16773_v46  ;;  %v16853_v46 = vld [vmem:[#allocation16 + $0x1d0] sm:$0xf] }
 0x643   :  { %10665 = vmatpush.bf16.msra.mxu3 %v16522_v20  ;;  %11148 = vmatpush.bf16.msra.mxu1 %v16706_v47  ;;  %v18277_v20 = vld [vmem:[#allocation16 + $0x104] sm:$0xf0]  ;;  %v16791_v47 = vld [vmem:[#allocation16 + $0x158] sm:$0xf0] }
 0x644   :  { %v10448_v32 = vadd.f32 %v10447_v12, %v10435_v22  ;;  %v16757_v12 = vld [vmem:[#allocation16 + $0x110] sm:$0xf]  ;;  %v16750_v40 = vor.u32 %v18277_v20, %v16749_v29  ;;  %v16794_v37 = vor.u32 %v18286_v27, %v16791_v47  ;;  %v18307_v22 = vld [vmem:[#allocation16 + $0x1f4] sm:$0xf0]  ;;  %v18306_v27 = vld [vmem:[#allocation16 + $0x1f4] sm:$0xf] }
 0x645   :  { %v10410_v9 = vpop.f32.mrf.mxu3  ;;  %11138 = vmatmul.bf16.vlgmr.msra.gmra.mxu0 %v10684_v45  ;;  %v16758_v31 = vor.u32 %v18279_v61, %v16757_v12  ;;  %v16837_v61 = vld [vmem:[#allocation16 + $0x1b0] sm:$0xf]  ;;  %v16871_v47 = vld [vmem:[#allocation16 + $0x1f8] sm:$0xf0] }
 0x646   :  { %v18280_v9 = vld [vmem:[#allocation16 + $0x124] sm:$0xf] }
 0x647   :  { %10666 = vmatpush.bf16.msra.mxu3 %v16506_v19  ;;  %11149 = vmatpush.bf16.msra.mxu1 %v16698_v39  ;;  %v16802_v19 = vor.u32 %v18288_v11, %v16799_v63  ;;  %v16821_v11 = vld [vmem:[#allocation16 + $0x190] sm:$0xf]  ;;  %v18295_v63 = vld [vmem:[#allocation16 + $0x194] sm:$0xf0] }
 0x649   :  { %v20402_v33 = vpop.f32.mrf.mxu1 }
 0x64a   :  { %10667 = vmatmul.bf16.vlgmr.msra.gmra.mxu3 %v20343_v56  ;;  %v18287_v56 = vld [vmem:[#allocation16 + $0x154] sm:$0xf0] }
 0x64b   :  { %11150 = vmatpush.bf16.msra.mxu1 %v16690_v28  ;;  %v16790_v8 = vor.u32 %v18287_v56, %v16789_v52  ;;  %v16778_v28 = vor.u32 %v18282_v43, %v16775_v38  ;;  %v18278_v56 = vld [vmem:[#allocation16 + $0x114] sm:$0xf]  ;;  %v18300_v43 = vld [vmem:[#allocation16 + $0x1c4] sm:$0xf]  ;;  %v16847_v38 = vld [vmem:[#allocation16 + $0x1c8] sm:$0xf0] }
 0x64d   :  { %11106 = vmatpush.bf16.msrb.mxu2 %v16790_v8  ;;  %v10460_v34 = vpop.f32.mrf.mxu3  ;;  %v16759_v8 = vld [vmem:[#allocation16 + $0x118] sm:$0xf0] }
 0x64e   :  { %v10461_v59 = vadd.f32 %v10460_v34, %v10448_v32  ;;  %v16870_v32 = vor.u32 %v18307_v22, %v16869_v15  ;;  %v16751_v34 = vld [vmem:[#allocation16 + $0x108] sm:$0xf0]  ;;  %v16839_v15 = vld [vmem:[#allocation16 + $0x1b8] sm:$0xf0] }
 0x64f   :  { %v10499_v35 = vpop.f32.mrf.mxu2 }
 0x650   :  { %vm10673_vm3 = vcmp.ge.f32.partialorder %v10461_v59, 0.0  ;;  %v10677_v24 = vmul.f32 0.01, %v10461_v59  ;;  %v10500_v0 = vadd.f32 %v10499_v35, %v20394_v51  ;;  %v16770_v51 = vor.u32 %v18280_v9, %v16767_v26  ;;  %11117 = vmatpush.bf16.msrb.mxu3 %v16870_v32 }
 0x651   :  { %11107 = vmatpush.bf16.msrb.mxu2 %v16782_v5  ;;  %v10540_v17 = vpop.f32.mrf.mxu1  ;;  %v16754_v35 = vor.u32 %v18276_v1, %v16751_v34  ;;  %v16861_v5 = vld [vmem:[#allocation16 + $0x1e0] sm:$0xf]  ;;  %v16850_v26 = vor.u32 %v18300_v43, %v16847_v38 }
 0x652   :  { %v10681_v7 = vsel %vm10673_vm3, %v10461_v59, %v10677_v24  ;;  %v18305_v59 = vld [vmem:[#allocation16 + $0x1e4] sm:$0xf0] }
 0x653   :  { %v10685_v3 = vpack.c.bf16 %v10681_v7, %v10681_v7  ;;  %v16862_v24 = vor.u32 %v18305_v59, %v16861_v5  ;;  %v16815_v5 = vld [vmem:[#allocation16 + $0x188] sm:$0xf0] }
 0x654   :  { %v10577_v25 = vpop.f32.mrf.mxu0 }
 0x655   :  { %11108 = vmatpush.bf16.msrb.mxu2 %v16774_v14  ;;  %v10462_v55 = vpop.f32.mrf.mxu3  ;;  %11099 = vmatmul.bf16.vlgmr.msrb.gmra.mxu1 %v10685_v3  ;;  %v10578_v53 = vadd.f32 %v10577_v25, %v8971_v23  ;;  %v18303_v25 = vld [vmem:[#allocation16 + $0x1d4] sm:$0xf0] }
 0x656   :  { %11118 = vmatpush.bf16.msrb.mxu3 %v16862_v24  ;;  %v16854_v7 = vor.u32 %v18303_v25, %v16853_v46 }
 0x657   :  { %v10501_v21 = vpop.f32.mrf.mxu2 }
 0x659   :  { %11109 = vmatpush.bf16.msrb.mxu2 %v16766_v2  ;;  %v16846_v2 = vor.u32 %v18301_v13, %v16845_v42 }
 0x65a   :  { %11119 = vmatpush.bf16.msrb.mxu3 %v16854_v7 }
 0x65c   :  { %v10579_v45 = vpop.f32.mrf.mxu0 }
 0x65d   :  { %11110 = vmatpush.bf16.msrb.mxu2 %v16758_v31  ;;  %v18299_v31 = vld [vmem:[#allocation16 + $0x1b4] sm:$0xf0] }
 0x65e   :  { %11120 = vmatpush.bf16.msrb.mxu3 %v16846_v2  ;;  %v16838_v29 = vor.u32 %v18299_v31, %v16837_v61 }
 0x661   :  { %11111 = vmatpush.bf16.msrb.mxu2 %v16750_v40  ;;  %v16830_v40 = vor.u32 %v18297_v62, %v16829_v50  ;;  %v18315_v62 = vld [vmem:[#allocation19 + $0x38] sm:$0xff] }
 0x662   :  { %11121 = vmatpush.bf16.msrb.mxu3 %v16838_v29  ;;  %11322 = vmatpush.bf16.msrb.mxu0 %v18315_v62 }
 0x665   :  { %11156 = vmatpush.bf16.msra.mxu2 %v16810_v36  ;;  %11151 = vmatmul.bf16.vlgmr.msra.gmra.mxu1 %v10685_v3 }
 0x666   :  { %11122 = vmatpush.bf16.msrb.mxu3 %v16830_v40  ;;  %v18323_v40 = vld [vmem:[#allocation19 + $0x78] sm:$0xff] }
 0x667   :  { %11335 = vmatpush.bf16.msrb.mxu1 %v18323_v40 }
 0x669   :  { %v10590_v54 = vpop.f32.mrf.mxu1  ;;  %11157 = vmatpush.bf16.msra.mxu2 %v16802_v19  ;;  %v16822_v19 = vor.u32 %v18295_v63, %v16821_v11  ;;  %v18313_v11 = vld [vmem:[#allocation19 + $0x28] sm:$0xff] }
 0x66a   :  { %v20406_v4 = vadd.f32 %v10590_v54, %v10578_v53  ;;  %v16813_v53 = vld [vmem:[#allocation16 + $0x180] sm:$0xf]  ;;  %v18293_v54 = vld [vmem:[#allocation16 + $0x184] sm:$0xf0] }
 0x66b   :  { %11123 = vmatpush.bf16.msrb.mxu3 %v16822_v19  ;;  %v18312_v19 = vld [vmem:[#allocation19 + $0x20] sm:$0xff] }
 0x66d   :  { %v10512_v41 = vpop.f32.mrf.mxu3  ;;  %11158 = vmatpush.bf16.msra.mxu2 %v16794_v37  ;;  %v16814_v37 = vor.u32 %v18293_v54, %v16813_v53  ;;  %v18311_v53 = vld [vmem:[#allocation19 + $0x18] sm:$0xff] }
 0x66e   :  { %v10513_v48 = vadd.f32 %v10512_v41, %v10500_v0  ;;  %v16874_v0 = vor.u32 %v18306_v27, %v16871_v47  ;;  %v18304_v41 = vld [vmem:[#allocation16 + $0x1e4] sm:$0xf]  ;;  %v18310_v27 = vld [vmem:[#allocation19 + $0x10] sm:$0xff] }
 0x66f   :  { %v10551_v6 = vpop.f32.mrf.mxu2  ;;  %11124 = vmatpush.bf16.msrb.mxu3 %v16814_v37  ;;  %v16866_v60 = vor.u32 %v18304_v41, %v16863_v10  ;;  %v18321_v41 = vld [vmem:[#allocation19 + $0x68] sm:$0xff]  ;;  %v18308_v10 = vld [vmem:[#allocation19] sm:$0xff] }
 0x670   :  { %v10526_v58 = vadd.f32 %v20396_v49, %v10513_v48  ;;  %v16762_v49 = vor.u32 %v18278_v56, %v16759_v8  ;;  %v18302_v48 = vld [vmem:[#allocation16 + $0x1d4] sm:$0xf]  ;;  %v16831_v56 = vld [vmem:[#allocation16 + $0x1a8] sm:$0xf0] }
 0x671   :  { %v10592_v39 = vpop.f32.mrf.mxu1  ;;  %11159 = vmatpush.bf16.msra.mxu2 %v16786_v30 }
 0x672   :  { %v10539_v17 = vadd.f32 %v20402_v33, %v10526_v58 }
 0x673   :  { %11169 = vmatpush.bf16.msra.mxu3 %v16874_v0  ;;  %v18309_v0 = vld [vmem:[#allocation19 + $0x8] sm:$0xff] }
 0x674   :  { %v20410_v57 = vpop.f32.mrf.mxu0  ;;  %v10552_v14 = vadd.f32 %v10551_v6, %v10539_v17  ;;  %v16855_v6 = vld [vmem:[#allocation16 + $0x1d8] sm:$0xf0] }
 0x675   :  { %v10514_v44 = vpop.f32.mrf.mxu3  ;;  %11160 = vmatpush.bf16.msra.mxu2 %v16778_v28  ;;  %v16858_v30 = vor.u32 %v18302_v48, %v16855_v6  ;;  %v18319_v48 = vld [vmem:[#allocation19 + $0x58] sm:$0xff]  ;;  %v18318_v6 = vld [vmem:[#allocation19 + $0x50] sm:$0xff] }
 0x677   :  { %v10553_v52 = vpop.f32.mrf.mxu2  ;;  %11170 = vmatpush.bf16.msra.mxu3 %v16866_v60  ;;  %v18320_v60 = vld [vmem:[#allocation19 + $0x60] sm:$0xff] }
 0x678   :  { %v18296_v52 = vld [vmem:[#allocation16 + $0x1a4] sm:$0xf] }
 0x679   :  { %11161 = vmatpush.bf16.msra.mxu2 %v16770_v51  ;;  %v18298_v51 = vld [vmem:[#allocation16 + $0x1b4] sm:$0xf]  ;;  %v16834_v8 = vor.u32 %v18296_v52, %v16831_v56 }
 0x67a   :  { %v16842_v22 = vor.u32 %v18298_v51, %v16839_v15 }
 0x67b   :  { %11171 = vmatpush.bf16.msra.mxu3 %v16858_v30  ;;  %v18317_v30 = vld [vmem:[#allocation19 + $0x48] sm:$0xff] }
 0x67c   :  { %v10631_v18 = vpop.f32.mrf.mxu0 }
 0x67d   :  { %11162 = vmatpush.bf16.msra.mxu2 %v16762_v49  ;;  %v18294_v49 = vld [vmem:[#allocation16 + $0x194] sm:$0xf] }
 0x67f   :  { %11172 = vmatpush.bf16.msra.mxu3 %v16850_v26 }
 0x681   :  { %11163 = vmatpush.bf16.msra.mxu2 %v16754_v35  ;;  %v18292_v35 = vld [vmem:[#allocation16 + $0x184] sm:$0xf] }
 0x682   :  { %v16818_v59 = vor.u32 %v18292_v35, %v16815_v5 }
 0x683   :  { %11173 = vmatpush.bf16.msra.mxu3 %v16842_v22 }
 0x687   :  { %11174 = vmatpush.bf16.msra.mxu3 %v16834_v8 }
 0x689   :  { %v20413_v16 = vpop.f32.mrf.mxu1 }
 0x68d   :  { %v10564_v3 = vpop.f32.mrf.mxu3 }
 0x68e   :  { %v10565_v55 = vadd.f32 %v10564_v3, %v10552_v14 }
 0x68f   :  { %v10603_v21 = vpop.f32.mrf.mxu2 }
 0x690   :  { %vm10674_vm4 = vcmp.ge.f32.partialorder %v10565_v55, 0.0  ;;  %v10678_v12 = vmul.f32 0.01, %v10565_v55  ;;  %v10604_v58 = vadd.f32 %v10603_v21, %v20406_v4  ;;  %v16823_v4 = vld [vmem:[#allocation16 + $0x198] sm:$0xf0] }
 0x691   :  { %v10644_v45 = vpop.f32.mrf.mxu1  ;;  %v16826_v1 = vor.u32 %v18294_v49, %v16823_v4  ;;  %v10752_v21 = vld [vmem:[#allocation18] sm:$0x3] }
 0x692   :  { %v10682_v33 = vsel %vm10674_vm4, %v10565_v55, %v10678_v12  ;;  %v10754_v2 = vperm.slane %v10752_v21, 0  ;;  %v10755_v45 = vperm.slane %v10752_v21, 1 }
 0x693   :  { %v10686_v20 = vpack.c.bf16 %v10682_v33, %v10682_v33  ;;  %11175 = vmatpush.bf16.msra.mxu3 %v16826_v1 }
 0x695   :  { %v10566_v36 = vpop.f32.mrf.mxu3  ;;  %11112 = vmatmul.bf16.vlgmr.msrb.gmra.mxu2 %v10686_v20 }
 0x696   :  { %v18314_v36 = vld [vmem:[#allocation19 + $0x30] sm:$0xff] }
 0x697   :  { %v10605_v23 = vpop.f32.mrf.mxu2  ;;  %11176 = vmatpush.bf16.msra.mxu3 %v16818_v59  ;;  %11323 = vmatpush.bf16.msrb.mxu0 %v18314_v36 }
 0x698   :  { %v18322_v23 = vld [vmem:[#allocation19 + $0x70] sm:$0xff] }
 0x699   :  { %11336 = vmatpush.bf16.msrb.mxu1 %v18322_v23 }
 0x69b   :  { %11324 = vmatpush.bf16.msrb.mxu0 %v18313_v11 }
 0x69d   :  { %11337 = vmatpush.bf16.msrb.mxu1 %v18321_v41 }
 0x69f   :  { %11325 = vmatpush.bf16.msrb.mxu0 %v18312_v19 }
 0x6a1   :  { %11338 = vmatpush.bf16.msrb.mxu1 %v18320_v60 }
 0x6a3   :  { %11326 = vmatpush.bf16.msrb.mxu0 %v18311_v53 }
 0x6a5   :  { %11164 = vmatmul.bf16.vlgmr.msra.gmra.mxu2 %v10686_v20  ;;  %11339 = vmatpush.bf16.msrb.mxu1 %v18319_v48 }
 0x6a7   :  { %11327 = vmatpush.bf16.msrb.mxu0 %v18310_v27 }
 0x6a9   :  { %11340 = vmatpush.bf16.msrb.mxu1 %v18318_v6 }
 0x6ab   :  { %11328 = vmatpush.bf16.msrb.mxu0 %v18309_v0 }
 0x6ad   :  { %v10616_v39 = vpop.f32.mrf.mxu3  ;;  %11341 = vmatpush.bf16.msrb.mxu1 %v18317_v30 }
 0x6ae   :  { %v10617_v28 = vadd.f32 %v10616_v39, %v10604_v58  ;;  %v18316_v58 = vld [vmem:[#allocation19 + $0x40] sm:$0xff] }
 0x6af   :  { %v10655_v9 = vpop.f32.mrf.mxu2  ;;  %11329 = vmatpush.bf16.msrb.mxu0 %v18308_v10 }
 0x6b0   :  { %v10630_v44 = vadd.f32 %v20410_v57, %v10617_v28 }
 0x6b1   :  { %11342 = vmatpush.bf16.msrb.mxu1 %v18316_v58 }
 0x6b2   :  { %v11087_v34 = vpop.f32.mrf.mxu0  ;;  %v10643_v24 = vadd.f32 %v20413_v16, %v10630_v44 }
 0x6b3   :  { %v11088_v12 = vadd.f32 %v11087_v34, %v10754_v2 }
 0x6b4   :  { %v10656_v17 = vadd.f32 %v10655_v9, %v10643_v24 }
 0x6b5   :  { %v10618_v32 = vpop.f32.mrf.mxu3 }
 0x6b7   :  { %v10657_v18 = vpop.f32.mrf.mxu2 }
 0x6b8   :  { %v18346_v18 = vld [vmem:[#allocation21] ss:$0 sm:$0xff] }
 0x6ba   :  { %v11089_v57 = vpop.f32.mrf.mxu0 }
 0x6c2   :  { %v11139_v25 = vpop.f32.mrf.mxu0 }
 0x6c3   :  { %v11140_v16 = vadd.f32 %v11139_v25, %v10755_v45 }
 0x6ca   :  { %v11141_v55 = vpop.f32.mrf.mxu0 }
 0x6cd   :  { %v10668_v46 = vpop.f32.mrf.mxu3 }
 0x6ce   :  { %v10669_v7 = vadd.f32 %v10668_v46, %v10656_v17 }
 0x6d0   :  { %vm10675_vm5 = vcmp.ge.f32.partialorder %v10669_v7, 0.0  ;;  %v10679_v14 = vmul.f32 0.01, %v10669_v7 }
 0x6d2   :  { %v10683_v3 = vsel %vm10675_vm5, %v10669_v7, %v10679_v14  ;;  %v11100_v61 = vpop.f32.mrf.mxu1 }
 0x6d3   :  { %v10687_v42 = vpack.c.bf16 %v10683_v3, %v10683_v3  ;;  %v11101_v31 = vadd.f32 %v11100_v61, %v11088_v12 }
 0x6d5   :  { %v10670_v13 = vpop.f32.mrf.mxu3  ;;  %11125 = vmatmul.bf16.vlgmr.msrb.gmra.mxu3 %v10687_v42 }
 0x6da   :  { %v11102_v33 = vpop.f32.mrf.mxu1 }
 0x6e2   :  { %v11152_v29 = vpop.f32.mrf.mxu1 }
 0x6e3   :  { %v11153_v20 = vadd.f32 %v11152_v29, %v11140_v16 }
 0x6e5   :  { %11177 = vmatmul.bf16.vlgmr.msra.gmra.mxu3 %v10687_v42 }
 0x6ea   :  { %v11154_v50 = vpop.f32.mrf.mxu1 }
 0x718   :  { %v11113_v63 = vpop.f32.mrf.mxu2 }
 0x719   :  { %v11114_v39 = vadd.f32 %v11113_v63, %v11101_v31 }
 0x720   :  { %v11115_v54 = vpop.f32.mrf.mxu2 }
 0x728   :  { %v11165_v47 = vpop.f32.mrf.mxu2 }
 0x729   :  { %v11166_v51 = vadd.f32 %v11165_v47, %v11153_v20 }
 0x730   :  { %v11167_v37 = vpop.f32.mrf.mxu2 }
 0x758   :  { %v11126_v43 = vpop.f32.mrf.mxu3 }
 0x759   :  { %v11127_v38 = vadd.f32 %v11126_v43, %v11114_v39 }
 0x75b   :  { %vm11182_vm6 = vcmp.ge.f32.partialorder %v11127_v38, 0.0  ;;  %v11184_v28 = vmul.f32 0.01, %v11127_v38 }
 0x75d   :  { %v11186_v9 = vsel %vm11182_vm6, %v11127_v38, %v11184_v28 }
 0x75e   :  { %v11188_v26 = vpack.c.bf16 %v11186_v9, %v11186_v9 }
 0x760   :  { %v11128_v44 = vpop.f32.mrf.mxu3  ;;  %11330 = vmatmul.bf16.vlgmr.msrb.gmra.mxu0 %v11188_v26 }
 0x768   :  { %v11178_v15 = vpop.f32.mrf.mxu3 }
 0x769   :  { %v11179_v22 = vadd.f32 %v11178_v15, %v11166_v51 }
 0x76b   :  { %vm11183_vm7 = vcmp.ge.f32.partialorder %v11179_v22, 0.0  ;;  %v11185_v52 = vmul.f32 0.01, %v11179_v22 }
 0x76d   :  { %v11187_v56 = vsel %vm11183_vm7, %v11179_v22, %v11185_v52 }
 0x76e   :  { %v11189_v8 = vpack.c.bf16 %v11187_v56, %v11187_v56 }
 0x770   :  { %v11180_v32 = vpop.f32.mrf.mxu3  ;;  %11343 = vmatmul.bf16.vlgmr.msrb.gmra.mxu1 %v11189_v8 }
 0x7dd   :  { %v11331_v49 = vpop.f32.mrf.mxu0 }
 0x7de   :  { %v11332_v1 = vadd.f32 %v18346_v18, %v11331_v49 }
 0x7e5   :  { %v11333_v4 = vpop.f32.mrf.mxu0 }
 0x7ed   :  { %v11344_v34 = vpop.f32.mrf.mxu1 }
 0x7ee   :  { %v11345_v35 = vadd.f32 %v11344_v34, %v11332_v1 }
 0x7f0   :  { %v16939_v5 = vmul.f32 -1.442695, %v11345_v35 }
 0x7f2   :  { %18349 = vpow2.f32 %v16939_v5 }
 0x7f5   :  { %v11346_v59 = vpop.f32.mrf.mxu1 }
 0x7f8   :  { %v18350_v57 = vpop.eup %18349 }
 0x7f9   :  { %v11351_v24 = vadd.f32 1.0, %v18350_v57 }
 0x7fb   :  { %18351 = vrcp.f32 %v11351_v24  ;;  %v11363_v7 = vand.u32 2147483648, %v11351_v24  ;;  %v11361_v3 = vand.u32 2147483647, %v11351_v24  ;;  %vm11357_vm9 = vweird.f32 %v11351_v24 }
 0x7fd   :  { %v11364_v13 = vor.u32 1.1754944e-38, %v11363_v7  ;;  %vm11362_vm11 = vcmp.eq.f32.partialorder %v11361_v3, 8.507059e+37 }
 0x801   :  { %v18352_v17 = vpop.eup %18351 }
 0x802   :  { %v11353_v46 = vmul.f32 %v18352_v17, %v11351_v24  ;;  %vm11358_vm8 = vweird.f32 %v18352_v17 }
 0x803   :  { %vm11359_vm10 = vmor %vm11357_vm9, %vm11358_vm8 }
 0x804   :  { %v11354_v25 = vsub.f32 1.0, %v11353_v46 }
 0x806   :  { %v11355_v14 = vmul.f32 %v18352_v17, %v11354_v25 }
 0x808   :  { %v11356_v42 = vadd.f32 %v18352_v17, %v11355_v14 }
 0x80a   :  { %v11360_v55 = vsel %vm11359_vm10, %v18352_v17, %v11356_v42 }
 0x80b   :  { %v11365_v21 = vsel %vm11362_vm11, %v11364_v13, %v11360_v55 }
 0x80c   :  { %11367 = vst [vmem:[%s20438_s17] sm:$0xff] %v11365_v21 }
 0x80d   :  { %11372 = vsyncpa [#allocation3], 1 }
 0x80e   :  { %11373 = vsyncpa [#allocation5], 1 }
 0x80f   :  { %11374 = vsyncpa [#allocation8], 1 }
 0x810   :  { %11375 = vsyncpa [#allocation11], 1 }
 0x811   :  { %11376 = vsyncpa [#allocation14], 1 }
 0x812   :  { %11377 = vsyncpa [#allocation17], 1 }
 0x813   :  { %11378 = vsyncpa [#allocation20], 1 }

</bundles_post_ra>
